<compile_context>
chip_gen: v6e
topology: v6e:2x2x1
jax: 0.10.0
libtpu: 0.0.40
codegen_flags: <defaults>
</compile_context>

<pallas_src>
import numpy as np
import jax
import jax.numpy as jnp
from jax import lax
from jax.experimental import pallas as pl
from jax.experimental.pallas import tpu as pltpu


# ---------------------------------------------------------------------------
# Fused forward kernel (one batch tile per grid step)
# ---------------------------------------------------------------------------
def fused_net_kernel(x_ref, w1e_ref, w1o_ref, b1t_ref,
                     w2e_ref, w2o_ref, b2t_ref,
                     fw1_ref, fb1_ref, fw2_ref, fb2_ref, o_ref):
    B = x_ref.shape[0]
    f32 = jnp.float32

    # ---- conv1 (5x5, 1->10) + 2x2 max-pool + ReLU ---------------------------
    # ye/yo: (B*24, 120) conv outputs restricted to even / odd output columns.
    xk = x_ref[:, 0:24, :].reshape(B * 24, 28)
    ye = jnp.dot(xk, w1e_ref[0], preferred_element_type=f32)
    yo = jnp.dot(xk, w1o_ref[0], preferred_element_type=f32)
    for kh in range(1, 5):
        xk = x_ref[:, kh:kh + 24, :].reshape(B * 24, 28)
        ye = ye + jnp.dot(xk, w1e_ref[kh], preferred_element_type=f32)
        yo = yo + jnp.dot(xk, w1o_ref[kh], preferred_element_type=f32)
    y = jnp.maximum(ye, yo) + b1t_ref[...]            # width-pooled + bias
    y = y.reshape(B * 12, 2, 120)                     # pair up output rows
    a1 = jnp.maximum(jnp.maximum(y[:, 0, :], y[:, 1, :]), 0.0)   # (B*12, 120)

    # ---- conv2 (5x5, 10->20) + 2x2 max-pool + ReLU --------------------------
    # TODO(synk): nn.Dropout2d is identity here (inference semantics).
    a1_3d = a1.reshape(B, 12, 120)                    # (B, H=12, W*C=120)
    ak = a1_3d[:, 0:8, :].reshape(B * 8, 120)
    ze = jnp.dot(ak, w2e_ref[0], preferred_element_type=f32)
    zo = jnp.dot(ak, w2o_ref[0], preferred_element_type=f32)
    for kh in range(1, 5):
        ak = a1_3d[:, kh:kh + 8, :].reshape(B * 8, 120)
        ze = ze + jnp.dot(ak, w2e_ref[kh], preferred_element_type=f32)
        zo = zo + jnp.dot(ak, w2o_ref[kh], preferred_element_type=f32)
    z = jnp.maximum(ze, zo) + b2t_ref[...]            # (B*8, 80)
    z = z.reshape(B * 4, 2, 80)
    a2 = jnp.maximum(jnp.maximum(z[:, 0, :], z[:, 1, :]), 0.0)   # (B*4, 80)

    # ---- fc1 (320 -> 50, zero-padded to 128) + ReLU -------------------------
    # Contract the pooled-height axis against per-row weight slabs; the NHWC
    # slab order matches the host-permuted fc1 weights, so no transpose/flatten.
    a2_3d = a2.reshape(B, 4, 80)
    h = jnp.dot(a2_3d[:, 0, :], fw1_ref[0], preferred_element_type=f32)
    for r in range(1, 4):
        h = h + jnp.dot(a2_3d[:, r, :], fw1_ref[r], preferred_element_type=f32)
    h = jnp.maximum(h + fb1_ref[...], 0.0)            # (B, 128); cols 50.. = 0
    # TODO(synk): F.dropout is identity here (inference semantics).

    # ---- fc2 (50 -> 10) + log_softmax ---------------------------------------
    logits = jnp.dot(h, fw2_ref[...], preferred_element_type=f32) + fb2_ref[...]
    m = jnp.max(logits, axis=-1, keepdims=True)
    s = logits - m
    lse = jnp.log(jnp.sum(jnp.exp(s), axis=-1, keepdims=True))
    o_ref[...] = s - lse


# ---------------------------------------------------------------------------
# Wrapper: one pallas_call for the whole network
# ---------------------------------------------------------------------------
def _pick_b_tile(n):
    # Single grid step for small batches (step overhead dominates this tiny
    # net); 64-image tiles for large batches (amortizes per-step overhead
    # while staying far below VMEM limits and enabling megacore sharding).
    if n <= 64:
        return max(8, int(pl.next_power_of_2(n)))
    return 64


def net_forward(x_nchw, prep, b_tile=None):
    n = x_nchw.shape[0]
    if b_tile is None:
        b_tile = _pick_b_tile(n)
    x = x_nchw.reshape(n, 28, 28).astype(jnp.float32)     # (N,1,28,28) -> (N,28,28)
    pad = (-n) % b_tile
    if pad:
        x = jnp.concatenate([x, jnp.zeros((pad, 28, 28), jnp.float32)], axis=0)
    n_padded = x.shape[0]
    w1e, w1o, b1t, w2e, w2o, b2t, fw1p, fb1p, fw2p, fb2p = prep

    out = pl.pallas_call(
        fused_net_kernel,
        out_shape=jax.ShapeDtypeStruct((n_padded, 10), jnp.float32),
        grid=(n_padded // b_tile,),
        in_specs=[
            pl.BlockSpec((b_tile, 28, 28), lambda i: (i, 0, 0)),   # images
            pl.BlockSpec((5, 28, 120), lambda i: (0, 0, 0)),       # conv1 even
            pl.BlockSpec((5, 28, 120), lambda i: (0, 0, 0)),       # conv1 odd
            pl.BlockSpec((1, 120), lambda i: (0, 0)),              # conv1 bias
            pl.BlockSpec((5, 120, 80), lambda i: (0, 0, 0)),       # conv2 even
            pl.BlockSpec((5, 120, 80), lambda i: (0, 0, 0)),       # conv2 odd
            pl.BlockSpec((1, 80), lambda i: (0, 0)),               # conv2 bias
            pl.BlockSpec((4, 80, 128), lambda i: (0, 0, 0)),       # fc1 (padded)
            pl.BlockSpec((1, 128), lambda i: (0, 0)),              # fc1 bias
            pl.BlockSpec((128, 10), lambda i: (0, 0)),             # fc2 (padded)
            pl.BlockSpec((1, 10), lambda i: (0, 0)),               # fc2 bias
        ],
        out_specs=pl.BlockSpec((b_tile, 10), lambda i: (i, 0)),
        compiler_params=pltpu.CompilerParams(
            dimension_semantics=("parallel",)),   # shard batch tiles on v7x's 2 TCs
    )(x, w1e, w1o, b1t, w2e, w2o, b2t, fw1p, fb1p, fw2p, fb2p)
    return out[:n]


# ---------------------------------------------------------------------------
# Parameter init + host-side weight lowering
# ---------------------------------------------------------------------------
def init_params(key):
    ks = jax.random.split(key, 8)

    def u(k, shape, fan_in):
        bound = 1.0 / np.sqrt(fan_in)
        return jax.random.uniform(k, shape, jnp.float32, -bound, bound)

    w1 = u(ks[0], (5, 5, 1, 10), 25)        # HWIO
    b1 = u(ks[1], (1, 10), 25)
    w2 = u(ks[2], (5, 5, 10, 20), 250)      # HWIO
    b2 = u(ks[3], (1, 20), 250)
    fw1 = u(ks[4], (320, 50), 320)          # rows in CHW flatten order (PyTorch)
    fb1 = u(ks[5], (1, 50), 320)
    fw2 = u(ks[6], (50, 10), 50)
    fb2 = u(ks[7], (1, 10), 50)
    return (w1, b1, w2, b2, fw1, fb1, fw2, fb2)


def prepare_params(params):
    """Lower the weights host-side: per-kernel-row Toeplitz conv matrices with
    the width half of the 2x2 max-pool folded in (even/odd output columns),
    tiled biases, and a row-permuted + zero-padded fc1/fc2 pair so the kernel
    is transpose-free and lane-dense."""
    w1, b1, w2, b2, fw1, fb1, fw2, fb2 = (np.asarray(p) for p in params)

    # conv1: (B*24, 28) @ (28, 120) per kernel row; out cols = (ow//2, cout).
    w1e = np.zeros((5, 28, 12 * 10), np.float32)
    w1o = np.zeros((5, 28, 12 * 10), np.float32)
    for kh in range(5):
        for j in range(12):
            for kw in range(5):
                w1e[kh, 2 * j + kw,     j * 10:(j + 1) * 10] = w1[kh, kw, 0, :]
                w1o[kh, 2 * j + 1 + kw, j * 10:(j + 1) * 10] = w1[kh, kw, 0, :]
    b1t = np.tile(b1.reshape(1, 10), (1, 12)).astype(np.float32)      # (1, 120)

    # conv2: (B*8, 120) @ (120, 80) per kernel row; in cols = (iw, cin),
    # out cols = (ow//2, cout).
    w2e = np.zeros((5, 120, 80), np.float32)
    w2o = np.zeros((5, 120, 80), np.float32)
    for kh in range(5):
        for j in range(4):
            for kw in range(5):
                re = (2 * j + kw) * 10
                ro = (2 * j + 1 + kw) * 10
                w2e[kh, re:re + 10, j * 20:(j + 1) * 20] = w2[kh, kw, :, :]
                w2o[kh, ro:ro + 10, j * 20:(j + 1) * 20] = w2[kh, kw, :, :]
    b2t = np.tile(b2.reshape(1, 20), (1, 4)).astype(np.float32)       # (1, 80)

    # fc1: permute rows from CHW to HWC order (so the NHWC activation slab
    # feeds it directly), pad 50 hidden units -> 128 lanes, split by pooled row.
    fw1_hwc = fw1.reshape(20, 4, 4, 50).transpose(1, 2, 0, 3).reshape(320, 50)
    fw1_p = np.zeros((320, 128), np.float32)
    fw1_p[:, :50] = fw1_hwc
    fw1_p = fw1_p.reshape(4, 80, 128)
    fb1_p = np.zeros((1, 128), np.float32)
    fb1_p[:, :50] = fb1
    fw2_p = np.zeros((128, 10), np.float32)
    fw2_p[:50, :] = fw2
    fb2_p = fb2.reshape(1, 10).astype(np.float32)

    return tuple(jnp.asarray(a) for a in
                 (w1e, w1o, b1t, w2e, w2o, b2t, fw1_p, fb1_p, fw2_p, fb2_p))


# ---------------------------------------------------------------------------
# Pure-JAX reference for correctness checking.
# ---------------------------------------------------------------------------
def ref_forward(x_nchw, params):
    w1, b1, w2, b2, fw1, fb1, fw2, fb2 = params
    dn = ('NHWC', 'HWIO', 'NHWC')
    hi = lax.Precision.HIGHEST
    x = jnp.transpose(x_nchw, (0, 2, 3, 1))
    y = lax.conv_general_dilated(x, w1, (1, 1), 'VALID', dimension_numbers=dn,
                                 precision=hi) + b1.reshape(1, 1, 1, -1)
    y = lax.reduce_window(y, -jnp.inf, lax.max, (1, 2, 2, 1), (1, 2, 2, 1), 'VALID')
    y = jnp.maximum(y, 0.0)
    y = lax.conv_general_dilated(y, w2, (1, 1), 'VALID', dimension_numbers=dn,
                                 precision=hi) + b2.reshape(1, 1, 1, -1)
    y = lax.reduce_window(y, -jnp.inf, lax.max, (1, 2, 2, 1), (1, 2, 2, 1), 'VALID')
    y = jnp.maximum(y, 0.0)
    y = jnp.transpose(y, (0, 3, 1, 2)).reshape(y.shape[0], -1)   # CHW flatten
    h = jnp.maximum(jnp.dot(y, fw1, precision=hi) + fb1, 0.0)
    logits = jnp.dot(h, fw2, precision=hi) + fb2
    return jax.nn.log_softmax(logits, axis=1)


if __name__ == "__main__":
    key = jax.random.PRNGKey(0)
    kx, kp = jax.random.split(key)
    # MNIST-sized input is required by the fixed view(-1, 320): (N, 1, 28, 28)
    x = jax.random.normal(kx, (16, 1, 28, 28), jnp.float32)
    params = init_params(kp)
    prep = prepare_params(params)

    out = net_forward(x, prep)
    out = jax.block_until_ready(out)
    assert out.shape == (16, 10)

    ref = ref_forward(x, params)
    np.testing.assert_allclose(np.asarray(out), np.asarray(ref),
                               rtol=2e-4, atol=2e-4)
    print("KERNEL_OK")
</pallas_src>

<mosaic_0001>
module attributes {stable_mosaic.version = 11 : i64} {
  func.func @fused_net_kernel(%arg0: i32, %arg1: memref<16x28x28xf32, #tpu.memory_space<vmem>>, %arg2: memref<5x28x120xf32, #tpu.memory_space<vmem>>, %arg3: memref<5x28x120xf32, #tpu.memory_space<vmem>>, %arg4: memref<1x120xf32, #tpu.memory_space<vmem>>, %arg5: memref<5x120x80xf32, #tpu.memory_space<vmem>>, %arg6: memref<5x120x80xf32, #tpu.memory_space<vmem>>, %arg7: memref<1x80xf32, #tpu.memory_space<vmem>>, %arg8: memref<4x80x128xf32, #tpu.memory_space<vmem>>, %arg9: memref<1x128xf32, #tpu.memory_space<vmem>>, %arg10: memref<128x10xf32, #tpu.memory_space<vmem>>, %arg11: memref<1x10xf32, #tpu.memory_space<vmem>>, %arg12: memref<16x10xf32, #tpu.memory_space<vmem>>) attributes {dimension_semantics = [#tpu.dimension_semantics<parallel>], iteration_bounds = array<i64: 1>, scalar_prefetch = 0 : i64, scratch_operands = 0 : i64, tpu.core_type = #tpu.core_type<tc>, window_params = [{transform_indices = @transform_0, window_bounds = array<i64: 16, 28, 28>}, {pipeline_mode = #tpu.pipeline_mode<synchronous>, transform_indices = @transform_1, window_bounds = array<i64: 5, 28, 120>}, {pipeline_mode = #tpu.pipeline_mode<synchronous>, transform_indices = @transform_2, window_bounds = array<i64: 5, 28, 120>}, {pipeline_mode = #tpu.pipeline_mode<synchronous>, transform_indices = @transform_3, window_bounds = array<i64: 1, 120>}, {pipeline_mode = #tpu.pipeline_mode<synchronous>, transform_indices = @transform_4, window_bounds = array<i64: 5, 120, 80>}, {pipeline_mode = #tpu.pipeline_mode<synchronous>, transform_indices = @transform_5, window_bounds = array<i64: 5, 120, 80>}, {pipeline_mode = #tpu.pipeline_mode<synchronous>, transform_indices = @transform_6, window_bounds = array<i64: 1, 80>}, {pipeline_mode = #tpu.pipeline_mode<synchronous>, transform_indices = @transform_7, window_bounds = array<i64: 4, 80, 128>}, {pipeline_mode = #tpu.pipeline_mode<synchronous>, transform_indices = @transform_8, window_bounds = array<i64: 1, 128>}, {pipeline_mode = #tpu.pipeline_mode<synchronous>, transform_indices = @transform_9, window_bounds = array<i64: 128, 10>}, {pipeline_mode = #tpu.pipeline_mode<synchronous>, transform_indices = @transform_10, window_bounds = array<i64: 1, 10>}, {transform_indices = @transform_11, window_bounds = array<i64: 16, 10>}]} {
    %c0 = arith.constant 0 : index
    %c0_0 = arith.constant 0 : index
    %c0_1 = arith.constant 0 : index
    %0 = vector.load %arg1[%c0, %c0_0, %c0_1] : memref<16x28x28xf32, #tpu.memory_space<vmem>>, vector<16x24x28xf32>
    %1 = vector.shape_cast %0 : vector<16x24x28xf32> to vector<384x28xf32>
    %c0_2 = arith.constant 0 : index
    %c0_3 = arith.constant 0 : index
    %c0_4 = arith.constant 0 : index
    %2 = vector.load %arg2[%c0_2, %c0_3, %c0_4] : memref<5x28x120xf32, #tpu.memory_space<vmem>>, vector<1x28x120xf32>
    %3 = vector.shape_cast %2 : vector<1x28x120xf32> to vector<28x120xf32>
    %cst = arith.constant dense<0.000000e+00> : vector<384x120xf32>
    %4 = tpu.matmul %1, %3, %cst {dimension_numbers = #tpu.dot_dimension_numbers<[1], [0], [0], [1], [0, 0, 1, 1], [], []>} : vector<384x28xf32>, vector<28x120xf32>, vector<384x120xf32> -> vector<384x120xf32>
    %c0_5 = arith.constant 0 : index
    %c0_6 = arith.constant 0 : index
    %c0_7 = arith.constant 0 : index
    %5 = vector.load %arg3[%c0_5, %c0_6, %c0_7] : memref<5x28x120xf32, #tpu.memory_space<vmem>>, vector<1x28x120xf32>
    %6 = vector.shape_cast %5 : vector<1x28x120xf32> to vector<28x120xf32>
    %cst_8 = arith.constant dense<0.000000e+00> : vector<384x120xf32>
    %7 = tpu.matmul %1, %6, %cst_8 {dimension_numbers = #tpu.dot_dimension_numbers<[1], [0], [0], [1], [0, 0, 1, 1], [], []>} : vector<384x28xf32>, vector<28x120xf32>, vector<384x120xf32> -> vector<384x120xf32>
    %c0_9 = arith.constant 0 : index
    %c1 = arith.constant 1 : index
    %c0_10 = arith.constant 0 : index
    %8 = vector.load %arg1[%c0_9, %c1, %c0_10] : memref<16x28x28xf32, #tpu.memory_space<vmem>>, vector<16x24x28xf32>
    %9 = vector.shape_cast %8 : vector<16x24x28xf32> to vector<384x28xf32>
    %c1_11 = arith.constant 1 : index
    %c0_12 = arith.constant 0 : index
    %c0_13 = arith.constant 0 : index
    %10 = vector.load %arg2[%c1_11, %c0_12, %c0_13] : memref<5x28x120xf32, #tpu.memory_space<vmem>>, vector<1x28x120xf32>
    %11 = vector.shape_cast %10 : vector<1x28x120xf32> to vector<28x120xf32>
    %cst_14 = arith.constant dense<0.000000e+00> : vector<384x120xf32>
    %12 = tpu.matmul %9, %11, %cst_14 {dimension_numbers = #tpu.dot_dimension_numbers<[1], [0], [0], [1], [0, 0, 1, 1], [], []>} : vector<384x28xf32>, vector<28x120xf32>, vector<384x120xf32> -> vector<384x120xf32>
    %13 = arith.addf %4, %12 : vector<384x120xf32>
    %c1_15 = arith.constant 1 : index
    %c0_16 = arith.constant 0 : index
    %c0_17 = arith.constant 0 : index
    %14 = vector.load %arg3[%c1_15, %c0_16, %c0_17] : memref<5x28x120xf32, #tpu.memory_space<vmem>>, vector<1x28x120xf32>
    %15 = vector.shape_cast %14 : vector<1x28x120xf32> to vector<28x120xf32>
    %cst_18 = arith.constant dense<0.000000e+00> : vector<384x120xf32>
    %16 = tpu.matmul %9, %15, %cst_18 {dimension_numbers = #tpu.dot_dimension_numbers<[1], [0], [0], [1], [0, 0, 1, 1], [], []>} : vector<384x28xf32>, vector<28x120xf32>, vector<384x120xf32> -> vector<384x120xf32>
    %17 = arith.addf %7, %16 : vector<384x120xf32>
    %c0_19 = arith.constant 0 : index
    %c2 = arith.constant 2 : index
    %c0_20 = arith.constant 0 : index
    %18 = vector.load %arg1[%c0_19, %c2, %c0_20] : memref<16x28x28xf32, #tpu.memory_space<vmem>>, vector<16x24x28xf32>
    %19 = vector.shape_cast %18 : vector<16x24x28xf32> to vector<384x28xf32>
    %c2_21 = arith.constant 2 : index
    %c0_22 = arith.constant 0 : index
    %c0_23 = arith.constant 0 : index
    %20 = vector.load %arg2[%c2_21, %c0_22, %c0_23] : memref<5x28x120xf32, #tpu.memory_space<vmem>>, vector<1x28x120xf32>
    %21 = vector.shape_cast %20 : vector<1x28x120xf32> to vector<28x120xf32>
    %cst_24 = arith.constant dense<0.000000e+00> : vector<384x120xf32>
    %22 = tpu.matmul %19, %21, %cst_24 {dimension_numbers = #tpu.dot_dimension_numbers<[1], [0], [0], [1], [0, 0, 1, 1], [], []>} : vector<384x28xf32>, vector<28x120xf32>, vector<384x120xf32> -> vector<384x120xf32>
    %23 = arith.addf %13, %22 : vector<384x120xf32>
    %c2_25 = arith.constant 2 : index
    %c0_26 = arith.constant 0 : index
    %c0_27 = arith.constant 0 : index
    %24 = vector.load %arg3[%c2_25, %c0_26, %c0_27] : memref<5x28x120xf32, #tpu.memory_space<vmem>>, vector<1x28x120xf32>
    %25 = vector.shape_cast %24 : vector<1x28x120xf32> to vector<28x120xf32>
    %cst_28 = arith.constant dense<0.000000e+00> : vector<384x120xf32>
    %26 = tpu.matmul %19, %25, %cst_28 {dimension_numbers = #tpu.dot_dimension_numbers<[1], [0], [0], [1], [0, 0, 1, 1], [], []>} : vector<384x28xf32>, vector<28x120xf32>, vector<384x120xf32> -> vector<384x120xf32>
    %27 = arith.addf %17, %26 : vector<384x120xf32>
    %c0_29 = arith.constant 0 : index
    %c3 = arith.constant 3 : index
    %c0_30 = arith.constant 0 : index
    %28 = vector.load %arg1[%c0_29, %c3, %c0_30] : memref<16x28x28xf32, #tpu.memory_space<vmem>>, vector<16x24x28xf32>
    %29 = vector.shape_cast %28 : vector<16x24x28xf32> to vector<384x28xf32>
    %c3_31 = arith.constant 3 : index
    %c0_32 = arith.constant 0 : index
    %c0_33 = arith.constant 0 : index
    %30 = vector.load %arg2[%c3_31, %c0_32, %c0_33] : memref<5x28x120xf32, #tpu.memory_space<vmem>>, vector<1x28x120xf32>
    %31 = vector.shape_cast %30 : vector<1x28x120xf32> to vector<28x120xf32>
    %cst_34 = arith.constant dense<0.000000e+00> : vector<384x120xf32>
    %32 = tpu.matmul %29, %31, %cst_34 {dimension_numbers = #tpu.dot_dimension_numbers<[1], [0], [0], [1], [0, 0, 1, 1], [], []>} : vector<384x28xf32>, vector<28x120xf32>, vector<384x120xf32> -> vector<384x120xf32>
    %33 = arith.addf %23, %32 : vector<384x120xf32>
    %c3_35 = arith.constant 3 : index
    %c0_36 = arith.constant 0 : index
    %c0_37 = arith.constant 0 : index
    %34 = vector.load %arg3[%c3_35, %c0_36, %c0_37] : memref<5x28x120xf32, #tpu.memory_space<vmem>>, vector<1x28x120xf32>
    %35 = vector.shape_cast %34 : vector<1x28x120xf32> to vector<28x120xf32>
    %cst_38 = arith.constant dense<0.000000e+00> : vector<384x120xf32>
    %36 = tpu.matmul %29, %35, %cst_38 {dimension_numbers = #tpu.dot_dimension_numbers<[1], [0], [0], [1], [0, 0, 1, 1], [], []>} : vector<384x28xf32>, vector<28x120xf32>, vector<384x120xf32> -> vector<384x120xf32>
    %37 = arith.addf %27, %36 : vector<384x120xf32>
    %c0_39 = arith.constant 0 : index
    %c4 = arith.constant 4 : index
    %c0_40 = arith.constant 0 : index
    %38 = vector.load %arg1[%c0_39, %c4, %c0_40] : memref<16x28x28xf32, #tpu.memory_space<vmem>>, vector<16x24x28xf32>
    %39 = vector.shape_cast %38 : vector<16x24x28xf32> to vector<384x28xf32>
    %c4_41 = arith.constant 4 : index
    %c0_42 = arith.constant 0 : index
    %c0_43 = arith.constant 0 : index
    %40 = vector.load %arg2[%c4_41, %c0_42, %c0_43] : memref<5x28x120xf32, #tpu.memory_space<vmem>>, vector<1x28x120xf32>
    %41 = vector.shape_cast %40 : vector<1x28x120xf32> to vector<28x120xf32>
    %cst_44 = arith.constant dense<0.000000e+00> : vector<384x120xf32>
    %42 = tpu.matmul %39, %41, %cst_44 {dimension_numbers = #tpu.dot_dimension_numbers<[1], [0], [0], [1], [0, 0, 1, 1], [], []>} : vector<384x28xf32>, vector<28x120xf32>, vector<384x120xf32> -> vector<384x120xf32>
    %43 = arith.addf %33, %42 : vector<384x120xf32>
    %c4_45 = arith.constant 4 : index
    %c0_46 = arith.constant 0 : index
    %c0_47 = arith.constant 0 : index
    %44 = vector.load %arg3[%c4_45, %c0_46, %c0_47] : memref<5x28x120xf32, #tpu.memory_space<vmem>>, vector<1x28x120xf32>
    %45 = vector.shape_cast %44 : vector<1x28x120xf32> to vector<28x120xf32>
    %cst_48 = arith.constant dense<0.000000e+00> : vector<384x120xf32>
    %46 = tpu.matmul %39, %45, %cst_48 {dimension_numbers = #tpu.dot_dimension_numbers<[1], [0], [0], [1], [0, 0, 1, 1], [], []>} : vector<384x28xf32>, vector<28x120xf32>, vector<384x120xf32> -> vector<384x120xf32>
    %47 = arith.addf %37, %46 : vector<384x120xf32>
    %48 = arith.maximumf %43, %47 : vector<384x120xf32>
    %c0_49 = arith.constant 0 : index
    %c0_50 = arith.constant 0 : index
    %49 = vector.load %arg4[%c0_49, %c0_50] : memref<1x120xf32, #tpu.memory_space<vmem>>, vector<1x120xf32>
    %50 = vector.broadcast %49 : vector<1x120xf32> to vector<384x120xf32>
    %51 = arith.addf %48, %50 : vector<384x120xf32>
    %52 = vector.shape_cast %51 : vector<384x120xf32> to vector<192x2x120xf32>
    %53 = vector.extract_strided_slice %52 {offsets = [0, 0, 0], sizes = [192, 1, 120], strides = [1, 1, 1]} : vector<192x2x120xf32> to vector<192x1x120xf32>
    %54 = vector.shape_cast %53 : vector<192x1x120xf32> to vector<192x120xf32>
    %55 = vector.extract_strided_slice %52 {offsets = [0, 1, 0], sizes = [192, 1, 120], strides = [1, 1, 1]} : vector<192x2x120xf32> to vector<192x1x120xf32>
    %56 = vector.shape_cast %55 : vector<192x1x120xf32> to vector<192x120xf32>
    %57 = arith.maximumf %54, %56 : vector<192x120xf32>
    %cst_51 = arith.constant 0.000000e+00 : f32
    %58 = vector.broadcast %cst_51 : f32 to vector<192x120xf32>
    %59 = arith.maximumf %57, %58 : vector<192x120xf32>
    %60 = vector.shape_cast %59 : vector<192x120xf32> to vector<16x12x120xf32>
    %61 = vector.extract_strided_slice %60 {offsets = [0, 0, 0], sizes = [16, 8, 120], strides = [1, 1, 1]} : vector<16x12x120xf32> to vector<16x8x120xf32>
    %62 = vector.shape_cast %61 : vector<16x8x120xf32> to vector<128x120xf32>
    %c0_52 = arith.constant 0 : index
    %c0_53 = arith.constant 0 : index
    %c0_54 = arith.constant 0 : index
    %63 = vector.load %arg5[%c0_52, %c0_53, %c0_54] : memref<5x120x80xf32, #tpu.memory_space<vmem>>, vector<1x120x80xf32>
    %64 = vector.shape_cast %63 : vector<1x120x80xf32> to vector<120x80xf32>
    %cst_55 = arith.constant dense<0.000000e+00> : vector<128x80xf32>
    %65 = tpu.matmul %62, %64, %cst_55 {dimension_numbers = #tpu.dot_dimension_numbers<[1], [0], [0], [1], [0, 0, 1, 1], [], []>} : vector<128x120xf32>, vector<120x80xf32>, vector<128x80xf32> -> vector<128x80xf32>
    %c0_56 = arith.constant 0 : index
    %c0_57 = arith.constant 0 : index
    %c0_58 = arith.constant 0 : index
    %66 = vector.load %arg6[%c0_56, %c0_57, %c0_58] : memref<5x120x80xf32, #tpu.memory_space<vmem>>, vector<1x120x80xf32>
    %67 = vector.shape_cast %66 : vector<1x120x80xf32> to vector<120x80xf32>
    %cst_59 = arith.constant dense<0.000000e+00> : vector<128x80xf32>
    %68 = tpu.matmul %62, %67, %cst_59 {dimension_numbers = #tpu.dot_dimension_numbers<[1], [0], [0], [1], [0, 0, 1, 1], [], []>} : vector<128x120xf32>, vector<120x80xf32>, vector<128x80xf32> -> vector<128x80xf32>
    %69 = vector.extract_strided_slice %60 {offsets = [0, 1, 0], sizes = [16, 8, 120], strides = [1, 1, 1]} : vector<16x12x120xf32> to vector<16x8x120xf32>
    %70 = vector.shape_cast %69 : vector<16x8x120xf32> to vector<128x120xf32>
    %c1_60 = arith.constant 1 : index
    %c0_61 = arith.constant 0 : index
    %c0_62 = arith.constant 0 : index
    %71 = vector.load %arg5[%c1_60, %c0_61, %c0_62] : memref<5x120x80xf32, #tpu.memory_space<vmem>>, vector<1x120x80xf32>
    %72 = vector.shape_cast %71 : vector<1x120x80xf32> to vector<120x80xf32>
    %cst_63 = arith.constant dense<0.000000e+00> : vector<128x80xf32>
    %73 = tpu.matmul %70, %72, %cst_63 {dimension_numbers = #tpu.dot_dimension_numbers<[1], [0], [0], [1], [0, 0, 1, 1], [], []>} : vector<128x120xf32>, vector<120x80xf32>, vector<128x80xf32> -> vector<128x80xf32>
    %74 = arith.addf %65, %73 : vector<128x80xf32>
    %c1_64 = arith.constant 1 : index
    %c0_65 = arith.constant 0 : index
    %c0_66 = arith.constant 0 : index
    %75 = vector.load %arg6[%c1_64, %c0_65, %c0_66] : memref<5x120x80xf32, #tpu.memory_space<vmem>>, vector<1x120x80xf32>
    %76 = vector.shape_cast %75 : vector<1x120x80xf32> to vector<120x80xf32>
    %cst_67 = arith.constant dense<0.000000e+00> : vector<128x80xf32>
    %77 = tpu.matmul %70, %76, %cst_67 {dimension_numbers = #tpu.dot_dimension_numbers<[1], [0], [0], [1], [0, 0, 1, 1], [], []>} : vector<128x120xf32>, vector<120x80xf32>, vector<128x80xf32> -> vector<128x80xf32>
    %78 = arith.addf %68, %77 : vector<128x80xf32>
    %79 = vector.extract_strided_slice %60 {offsets = [0, 2, 0], sizes = [16, 8, 120], strides = [1, 1, 1]} : vector<16x12x120xf32> to vector<16x8x120xf32>
    %80 = vector.shape_cast %79 : vector<16x8x120xf32> to vector<128x120xf32>
    %c2_68 = arith.constant 2 : index
    %c0_69 = arith.constant 0 : index
    %c0_70 = arith.constant 0 : index
    %81 = vector.load %arg5[%c2_68, %c0_69, %c0_70] : memref<5x120x80xf32, #tpu.memory_space<vmem>>, vector<1x120x80xf32>
    %82 = vector.shape_cast %81 : vector<1x120x80xf32> to vector<120x80xf32>
    %cst_71 = arith.constant dense<0.000000e+00> : vector<128x80xf32>
    %83 = tpu.matmul %80, %82, %cst_71 {dimension_numbers = #tpu.dot_dimension_numbers<[1], [0], [0], [1], [0, 0, 1, 1], [], []>} : vector<128x120xf32>, vector<120x80xf32>, vector<128x80xf32> -> vector<128x80xf32>
    %84 = arith.addf %74, %83 : vector<128x80xf32>
    %c2_72 = arith.constant 2 : index
    %c0_73 = arith.constant 0 : index
    %c0_74 = arith.constant 0 : index
    %85 = vector.load %arg6[%c2_72, %c0_73, %c0_74] : memref<5x120x80xf32, #tpu.memory_space<vmem>>, vector<1x120x80xf32>
    %86 = vector.shape_cast %85 : vector<1x120x80xf32> to vector<120x80xf32>
    %cst_75 = arith.constant dense<0.000000e+00> : vector<128x80xf32>
    %87 = tpu.matmul %80, %86, %cst_75 {dimension_numbers = #tpu.dot_dimension_numbers<[1], [0], [0], [1], [0, 0, 1, 1], [], []>} : vector<128x120xf32>, vector<120x80xf32>, vector<128x80xf32> -> vector<128x80xf32>
    %88 = arith.addf %78, %87 : vector<128x80xf32>
    %89 = vector.extract_strided_slice %60 {offsets = [0, 3, 0], sizes = [16, 8, 120], strides = [1, 1, 1]} : vector<16x12x120xf32> to vector<16x8x120xf32>
    %90 = vector.shape_cast %89 : vector<16x8x120xf32> to vector<128x120xf32>
    %c3_76 = arith.constant 3 : index
    %c0_77 = arith.constant 0 : index
    %c0_78 = arith.constant 0 : index
    %91 = vector.load %arg5[%c3_76, %c0_77, %c0_78] : memref<5x120x80xf32, #tpu.memory_space<vmem>>, vector<1x120x80xf32>
    %92 = vector.shape_cast %91 : vector<1x120x80xf32> to vector<120x80xf32>
    %cst_79 = arith.constant dense<0.000000e+00> : vector<128x80xf32>
    %93 = tpu.matmul %90, %92, %cst_79 {dimension_numbers = #tpu.dot_dimension_numbers<[1], [0], [0], [1], [0, 0, 1, 1], [], []>} : vector<128x120xf32>, vector<120x80xf32>, vector<128x80xf32> -> vector<128x80xf32>
    %94 = arith.addf %84, %93 : vector<128x80xf32>
    %c3_80 = arith.constant 3 : index
    %c0_81 = arith.constant 0 : index
    %c0_82 = arith.constant 0 : index
    %95 = vector.load %arg6[%c3_80, %c0_81, %c0_82] : memref<5x120x80xf32, #tpu.memory_space<vmem>>, vector<1x120x80xf32>
    %96 = vector.shape_cast %95 : vector<1x120x80xf32> to vector<120x80xf32>
    %cst_83 = arith.constant dense<0.000000e+00> : vector<128x80xf32>
    %97 = tpu.matmul %90, %96, %cst_83 {dimension_numbers = #tpu.dot_dimension_numbers<[1], [0], [0], [1], [0, 0, 1, 1], [], []>} : vector<128x120xf32>, vector<120x80xf32>, vector<128x80xf32> -> vector<128x80xf32>
    %98 = arith.addf %88, %97 : vector<128x80xf32>
    %99 = vector.extract_strided_slice %60 {offsets = [0, 4, 0], sizes = [16, 8, 120], strides = [1, 1, 1]} : vector<16x12x120xf32> to vector<16x8x120xf32>
    %100 = vector.shape_cast %99 : vector<16x8x120xf32> to vector<128x120xf32>
    %c4_84 = arith.constant 4 : index
    %c0_85 = arith.constant 0 : index
    %c0_86 = arith.constant 0 : index
    %101 = vector.load %arg5[%c4_84, %c0_85, %c0_86] : memref<5x120x80xf32, #tpu.memory_space<vmem>>, vector<1x120x80xf32>
    %102 = vector.shape_cast %101 : vector<1x120x80xf32> to vector<120x80xf32>
    %cst_87 = arith.constant dense<0.000000e+00> : vector<128x80xf32>
    %103 = tpu.matmul %100, %102, %cst_87 {dimension_numbers = #tpu.dot_dimension_numbers<[1], [0], [0], [1], [0, 0, 1, 1], [], []>} : vector<128x120xf32>, vector<120x80xf32>, vector<128x80xf32> -> vector<128x80xf32>
    %104 = arith.addf %94, %103 : vector<128x80xf32>
    %c4_88 = arith.constant 4 : index
    %c0_89 = arith.constant 0 : index
    %c0_90 = arith.constant 0 : index
    %105 = vector.load %arg6[%c4_88, %c0_89, %c0_90] : memref<5x120x80xf32, #tpu.memory_space<vmem>>, vector<1x120x80xf32>
    %106 = vector.shape_cast %105 : vector<1x120x80xf32> to vector<120x80xf32>
    %cst_91 = arith.constant dense<0.000000e+00> : vector<128x80xf32>
    %107 = tpu.matmul %100, %106, %cst_91 {dimension_numbers = #tpu.dot_dimension_numbers<[1], [0], [0], [1], [0, 0, 1, 1], [], []>} : vector<128x120xf32>, vector<120x80xf32>, vector<128x80xf32> -> vector<128x80xf32>
    %108 = arith.addf %98, %107 : vector<128x80xf32>
    %109 = arith.maximumf %104, %108 : vector<128x80xf32>
    %c0_92 = arith.constant 0 : index
    %c0_93 = arith.constant 0 : index
    %110 = vector.load %arg7[%c0_92, %c0_93] : memref<1x80xf32, #tpu.memory_space<vmem>>, vector<1x80xf32>
    %111 = vector.broadcast %110 : vector<1x80xf32> to vector<128x80xf32>
    %112 = arith.addf %109, %111 : vector<128x80xf32>
    %113 = vector.shape_cast %112 : vector<128x80xf32> to vector<64x2x80xf32>
    %114 = vector.extract_strided_slice %113 {offsets = [0, 0, 0], sizes = [64, 1, 80], strides = [1, 1, 1]} : vector<64x2x80xf32> to vector<64x1x80xf32>
    %115 = vector.shape_cast %114 : vector<64x1x80xf32> to vector<64x80xf32>
    %116 = vector.extract_strided_slice %113 {offsets = [0, 1, 0], sizes = [64, 1, 80], strides = [1, 1, 1]} : vector<64x2x80xf32> to vector<64x1x80xf32>
    %117 = vector.shape_cast %116 : vector<64x1x80xf32> to vector<64x80xf32>
    %118 = arith.maximumf %115, %117 : vector<64x80xf32>
    %cst_94 = arith.constant 0.000000e+00 : f32
    %119 = vector.broadcast %cst_94 : f32 to vector<64x80xf32>
    %120 = arith.maximumf %118, %119 : vector<64x80xf32>
    %121 = vector.shape_cast %120 : vector<64x80xf32> to vector<16x4x80xf32>
    %122 = vector.extract_strided_slice %121 {offsets = [0, 0, 0], sizes = [16, 1, 80], strides = [1, 1, 1]} : vector<16x4x80xf32> to vector<16x1x80xf32>
    %123 = vector.shape_cast %122 : vector<16x1x80xf32> to vector<16x80xf32>
    %c0_95 = arith.constant 0 : index
    %c0_96 = arith.constant 0 : index
    %c0_97 = arith.constant 0 : index
    %124 = vector.load %arg8[%c0_95, %c0_96, %c0_97] : memref<4x80x128xf32, #tpu.memory_space<vmem>>, vector<1x80x128xf32>
    %125 = vector.shape_cast %124 : vector<1x80x128xf32> to vector<80x128xf32>
    %cst_98 = arith.constant dense<0.000000e+00> : vector<16x128xf32>
    %126 = tpu.matmul %123, %125, %cst_98 {dimension_numbers = #tpu.dot_dimension_numbers<[1], [0], [0], [1], [0, 0, 1, 1], [], []>} : vector<16x80xf32>, vector<80x128xf32>, vector<16x128xf32> -> vector<16x128xf32>
    %127 = vector.extract_strided_slice %121 {offsets = [0, 1, 0], sizes = [16, 1, 80], strides = [1, 1, 1]} : vector<16x4x80xf32> to vector<16x1x80xf32>
    %128 = vector.shape_cast %127 : vector<16x1x80xf32> to vector<16x80xf32>
    %c1_99 = arith.constant 1 : index
    %c0_100 = arith.constant 0 : index
    %c0_101 = arith.constant 0 : index
    %129 = vector.load %arg8[%c1_99, %c0_100, %c0_101] : memref<4x80x128xf32, #tpu.memory_space<vmem>>, vector<1x80x128xf32>
    %130 = vector.shape_cast %129 : vector<1x80x128xf32> to vector<80x128xf32>
    %cst_102 = arith.constant dense<0.000000e+00> : vector<16x128xf32>
    %131 = tpu.matmul %128, %130, %cst_102 {dimension_numbers = #tpu.dot_dimension_numbers<[1], [0], [0], [1], [0, 0, 1, 1], [], []>} : vector<16x80xf32>, vector<80x128xf32>, vector<16x128xf32> -> vector<16x128xf32>
    %132 = arith.addf %126, %131 : vector<16x128xf32>
    %133 = vector.extract_strided_slice %121 {offsets = [0, 2, 0], sizes = [16, 1, 80], strides = [1, 1, 1]} : vector<16x4x80xf32> to vector<16x1x80xf32>
    %134 = vector.shape_cast %133 : vector<16x1x80xf32> to vector<16x80xf32>
    %c2_103 = arith.constant 2 : index
    %c0_104 = arith.constant 0 : index
    %c0_105 = arith.constant 0 : index
    %135 = vector.load %arg8[%c2_103, %c0_104, %c0_105] : memref<4x80x128xf32, #tpu.memory_space<vmem>>, vector<1x80x128xf32>
    %136 = vector.shape_cast %135 : vector<1x80x128xf32> to vector<80x128xf32>
    %cst_106 = arith.constant dense<0.000000e+00> : vector<16x128xf32>
    %137 = tpu.matmul %134, %136, %cst_106 {dimension_numbers = #tpu.dot_dimension_numbers<[1], [0], [0], [1], [0, 0, 1, 1], [], []>} : vector<16x80xf32>, vector<80x128xf32>, vector<16x128xf32> -> vector<16x128xf32>
    %138 = arith.addf %132, %137 : vector<16x128xf32>
    %139 = vector.extract_strided_slice %121 {offsets = [0, 3, 0], sizes = [16, 1, 80], strides = [1, 1, 1]} : vector<16x4x80xf32> to vector<16x1x80xf32>
    %140 = vector.shape_cast %139 : vector<16x1x80xf32> to vector<16x80xf32>
    %c3_107 = arith.constant 3 : index
    %c0_108 = arith.constant 0 : index
    %c0_109 = arith.constant 0 : index
    %141 = vector.load %arg8[%c3_107, %c0_108, %c0_109] : memref<4x80x128xf32, #tpu.memory_space<vmem>>, vector<1x80x128xf32>
    %142 = vector.shape_cast %141 : vector<1x80x128xf32> to vector<80x128xf32>
    %cst_110 = arith.constant dense<0.000000e+00> : vector<16x128xf32>
    %143 = tpu.matmul %140, %142, %cst_110 {dimension_numbers = #tpu.dot_dimension_numbers<[1], [0], [0], [1], [0, 0, 1, 1], [], []>} : vector<16x80xf32>, vector<80x128xf32>, vector<16x128xf32> -> vector<16x128xf32>
    %144 = arith.addf %138, %143 : vector<16x128xf32>
    %c0_111 = arith.constant 0 : index
    %c0_112 = arith.constant 0 : index
    %145 = vector.load %arg9[%c0_111, %c0_112] : memref<1x128xf32, #tpu.memory_space<vmem>>, vector<1x128xf32>
    %146 = vector.broadcast %145 : vector<1x128xf32> to vector<16x128xf32>
    %147 = arith.addf %144, %146 : vector<16x128xf32>
    %cst_113 = arith.constant 0.000000e+00 : f32
    %148 = vector.broadcast %cst_113 : f32 to vector<16x128xf32>
    %149 = arith.maximumf %147, %148 : vector<16x128xf32>
    %c0_114 = arith.constant 0 : index
    %c0_115 = arith.constant 0 : index
    %150 = vector.load %arg10[%c0_114, %c0_115] : memref<128x10xf32, #tpu.memory_space<vmem>>, vector<128x10xf32>
    %cst_116 = arith.constant dense<0.000000e+00> : vector<16x10xf32>
    %151 = tpu.matmul %149, %150, %cst_116 {dimension_numbers = #tpu.dot_dimension_numbers<[1], [0], [0], [1], [0, 0, 1, 1], [], []>} : vector<16x128xf32>, vector<128x10xf32>, vector<16x10xf32> -> vector<16x10xf32>
    %c0_117 = arith.constant 0 : index
    %c0_118 = arith.constant 0 : index
    %152 = vector.load %arg11[%c0_117, %c0_118] : memref<1x10xf32, #tpu.memory_space<vmem>>, vector<1x10xf32>
    %153 = vector.broadcast %152 : vector<1x10xf32> to vector<16x10xf32>
    %154 = arith.addf %151, %153 : vector<16x10xf32>
    %cst_119 = arith.constant dense<0xFF800000> : vector<16xf32>
    %155 = vector.multi_reduction <maximumf>, %154, %cst_119 [1] : vector<16x10xf32> to vector<16xf32>
    %156 = vector.shape_cast %155 : vector<16xf32> to vector<16x1xf32>
    %157 = vector.broadcast %156 : vector<16x1xf32> to vector<16x10xf32>
    %158 = arith.subf %154, %157 : vector<16x10xf32>
    %159 = math.exp %158 : vector<16x10xf32>
    %cst_120 = arith.constant dense<0.000000e+00> : vector<16xf32>
    %160 = vector.multi_reduction <add>, %159, %cst_120 [1] : vector<16x10xf32> to vector<16xf32>
    %161 = vector.shape_cast %160 : vector<16xf32> to vector<16x1xf32>
    %162 = math.log %161 : vector<16x1xf32>
    %163 = vector.broadcast %162 : vector<16x1xf32> to vector<16x10xf32>
    %164 = arith.subf %158, %163 : vector<16x10xf32>
    %c0_121 = arith.constant 0 : index
    %c0_122 = arith.constant 0 : index
    %165 = vector.load %arg12[%c0_121, %c0_122] : memref<16x10xf32, #tpu.memory_space<vmem>>, vector<16x10xf32>
    tpu.vector_store %arg12[%c0_121, %c0_122], %164 {strides = array<i32>} : memref<16x10xf32, #tpu.memory_space<vmem>>, vector<16x10xf32>,
    return
  }
  func.func @transform_0(%arg0: i32) -> (i32, i32, i32) {
    %c0_i32 = arith.constant 0 : i32
    %c0_i32_0 = arith.constant 0 : i32
    %c0_i32_1 = arith.constant 0 : i32
    return %arg0, %c0_i32, %c0_i32_0 : i32, i32, i32
  }
  func.func @transform_1(%arg0: i32) -> (i32, i32, i32) {
    %c0_i32 = arith.constant 0 : i32
    %c0_i32_0 = arith.constant 0 : i32
    %c0_i32_1 = arith.constant 0 : i32
    %c0_i32_2 = arith.constant 0 : i32
    return %c0_i32, %c0_i32_0, %c0_i32_1 : i32, i32, i32
  }
  func.func @transform_2(%arg0: i32) -> (i32, i32, i32) {
    %c0_i32 = arith.constant 0 : i32
    %c0_i32_0 = arith.constant 0 : i32
    %c0_i32_1 = arith.constant 0 : i32
    %c0_i32_2 = arith.constant 0 : i32
    return %c0_i32, %c0_i32_0, %c0_i32_1 : i32, i32, i32
  }
  func.func @transform_3(%arg0: i32) -> (i32, i32) {
    %c0_i32 = arith.constant 0 : i32
    %c0_i32_0 = arith.constant 0 : i32
    %c0_i32_1 = arith.constant 0 : i32
    return %c0_i32, %c0_i32_0 : i32, i32
  }
  func.func @transform_4(%arg0: i32) -> (i32, i32, i32) {
    %c0_i32 = arith.constant 0 : i32
    %c0_i32_0 = arith.constant 0 : i32
    %c0_i32_1 = arith.constant 0 : i32
    %c0_i32_2 = arith.constant 0 : i32
    return %c0_i32, %c0_i32_0, %c0_i32_1 : i32, i32, i32
  }
  func.func @transform_5(%arg0: i32) -> (i32, i32, i32) {
    %c0_i32 = arith.constant 0 : i32
    %c0_i32_0 = arith.constant 0 : i32
    %c0_i32_1 = arith.constant 0 : i32
    %c0_i32_2 = arith.constant 0 : i32
    return %c0_i32, %c0_i32_0, %c0_i32_1 : i32, i32, i32
  }
  func.func @transform_6(%arg0: i32) -> (i32, i32) {
    %c0_i32 = arith.constant 0 : i32
    %c0_i32_0 = arith.constant 0 : i32
    %c0_i32_1 = arith.constant 0 : i32
    return %c0_i32, %c0_i32_0 : i32, i32
  }
  func.func @transform_7(%arg0: i32) -> (i32, i32, i32) {
    %c0_i32 = arith.constant 0 : i32
    %c0_i32_0 = arith.constant 0 : i32
    %c0_i32_1 = arith.constant 0 : i32
    %c0_i32_2 = arith.constant 0 : i32
    return %c0_i32, %c0_i32_0, %c0_i32_1 : i32, i32, i32
  }
  func.func @transform_8(%arg0: i32) -> (i32, i32) {
    %c0_i32 = arith.constant 0 : i32
    %c0_i32_0 = arith.constant 0 : i32
    %c0_i32_1 = arith.constant 0 : i32
    return %c0_i32, %c0_i32_0 : i32, i32
  }
  func.func @transform_9(%arg0: i32) -> (i32, i32) {
    %c0_i32 = arith.constant 0 : i32
    %c0_i32_0 = arith.constant 0 : i32
    %c0_i32_1 = arith.constant 0 : i32
    return %c0_i32, %c0_i32_0 : i32, i32
  }
  func.func @transform_10(%arg0: i32) -> (i32, i32) {
    %c0_i32 = arith.constant 0 : i32
    %c0_i32_0 = arith.constant 0 : i32
    %c0_i32_1 = arith.constant 0 : i32
    return %c0_i32, %c0_i32_0 : i32, i32
  }
  func.func @transform_11(%arg0: i32) -> (i32, i32) {
    %c0_i32 = arith.constant 0 : i32
    %c0_i32_0 = arith.constant 0 : i32
    return %arg0, %c0_i32 : i32, i32
  }
}

</mosaic_0001>

<bundles_post_ra>
// kernel: tpu_custom_call.1
= control target key start
LH: loop header
LB: loop body
LE: loop exit
PB: predicated region body
PF: predicated region fallthrough
CT: control target
= control target key end

     0   :  { %vm293_vm0 = vcmask 1043456   ;;  %vm148_vm1 = vcmask 228352   ;;  %s23145_s0 = inlined_call_operand.vmem [shape: f32[16,28,28], index: 0, kind: input, shape index: {}]   ;;  %s23146_s1 = inlined_call_operand.vmem [shape: f32[5,28,120], index: 1, kind: input, shape index: {}]   ;;  %s23147_s2 = inlined_call_operand.vmem [shape: f32[5,28,120], index: 2, kind: input, shape index: {}]   ;;  %s23148_s3 = inlined_call_operand.vmem [shape: f32[1,120], index: 3, kind: input, shape index: {}]   ;;  %s23149_s4 = inlined_call_operand.vmem [shape: f32[5,120,80], index: 4, kind: input, shape index: {}]   ;;  %s23150_s5 = inlined_call_operand.vmem [shape: f32[5,120,80], index: 5, kind: input, shape index: {}]   ;;  %s23151_s6 = inlined_call_operand.vmem [shape: f32[1,80], index: 6, kind: input, shape index: {}]   ;;  %s23152_s7 = inlined_call_operand.vmem [shape: f32[4,80,128], index: 7, kind: input, shape index: {}]   ;;  %s23153_s8 = inlined_call_operand.vmem [shape: f32[1,128], index: 8, kind: input, shape index: {}]   ;;  %s23154_s9 = inlined_call_operand.vmem [shape: f32[128,10], index: 9, kind: input, shape index: {}]   ;;  %s23155_s10 = inlined_call_operand.vmem [shape: f32[1,10], index: 10, kind: input, shape index: {}]   ;;  %s23156_s11 = inlined_call_operand.hbm [shape: f32[16,10], index: 11, kind: output, shape index: {}]  }
   0x1   :  { %v11534_v0 = vld [vmem:[%s23146_s1 + $0x38] sm:$0xf]  ;;  %v11533_v1 = vld [vmem:[%s23146_s1 + $0x30] sm:$0xff]  ;;  %v11532_v2 = vld [vmem:[%s23146_s1 + $0x28] sm:$0xff] }
   0x2   :  { %13527 = vmatprep.subr.msk.mxu0 %vm293_vm0, %v11534_v0  ;;  %14994 = vmatprep.subr.msk.mxu1 %vm293_vm0, %v11534_v0  ;;  %v11531_v3 = vld [vmem:[%s23146_s1 + $0x20] sm:$0xff]  ;;  %v15129_v5 = vld [vmem:[%s23145_s0 + $0x1a9] sm:$0xff]  ;;  %v15139_v7 = vld [vmem:[%s23145_s0 + $0x1b1] sm:$0xff] }
   0x3   :  { %13528 = vmatpush3.msk.msra.mxu0 %vm293_vm0, %v11534_v0  ;;  %14998 = vmatpush3.msk.msra.mxu1 %vm293_vm0, %v11534_v0  ;;  %v15124_v4 = vld [vmem:[%s23145_s0 + $0x1] sm:$0xff]  ;;  %23516 = vst [vmem:[#allocation5_spill] sm:$0xff] %v15129_v5  ;;  %v15134_v6 = vld [vmem:[%s23145_s0 + $0x9] sm:$0xff]  ;;  %23517 = vst [vmem:[#allocation6_spill] sm:$0xff] %v15139_v7 }
   0x4   :  { %13529 = vmatprep.subr.mxu0 %v11533_v1  ;;  %14995 = vmatprep.subr.mxu1 %v11533_v1  ;;  %v90_v8 = vld [vmem:[%s23146_s1 + $0x18] sm:$0xf]  ;;  %v15156_v10 = vld [vmem:[%s23145_s0 + $0x1c1] sm:$0xff]  ;;  %v89_v11 = vld [vmem:[%s23146_s1 + $0x10] sm:$0xff] }
   0x5   :  { %13530 = vmatpush3.msra.mxu0 %v11533_v1  ;;  %14999 = vmatpush3.msra.mxu1 %v11533_v1  ;;  %v15147_v9 = vld [vmem:[%s23145_s0 + $0x11] sm:$0xff]  ;;  %23518 = vst [vmem:[#allocation7_spill] sm:$0xff] %v15156_v10  ;;  %v15171_v12 = vld [vmem:[%s23145_s0 + $0x21] sm:$0xff]  ;;  %v15176_v13 = vld [vmem:[%s23145_s0 + $0x1c9] sm:$0xff] }
   0x6   :  { %13531 = vmatprep.subr.mxu0 %v11532_v2  ;;  %14996 = vmatprep.subr.mxu1 %v11532_v2  ;;  %23519 = vst [vmem:[#allocation8_spill] sm:$0xff] %v15176_v13  ;;  %v15184_v14 = vld [vmem:[%s23145_s0 + $0x29] sm:$0xff]  ;;  %v15189_v15 = vld [vmem:[%s23145_s0 + $0x1d1] sm:$0xff]  ;;  %v15208_v18 = vld [vmem:[%s23145_s0 + $0x1e1] sm:$0xff] }
   0x7   :  { %13532 = vmatpush3.msra.mxu0 %v11532_v2  ;;  %15000 = vmatpush3.msra.mxu1 %v11532_v2  ;;  %23520 = vst [vmem:[#allocation9_spill] sm:$0xff] %v15189_v15  ;;  %v88_v16 = vld [vmem:[%s23146_s1 + $0x8] sm:$0xff]  ;;  %v15203_v17 = vld [vmem:[%s23145_s0 + $0x31] sm:$0xff]  ;;  %23521 = vst [vmem:[#allocation10_spill] sm:$0xff] %v15208_v18 }
   0x8   :  { %13533 = vmatprep.subr.mxu0 %v11531_v3  ;;  %14997 = vmatprep.subr.mxu1 %v11531_v3  ;;  %v11636_v19 = vld [vmem:[%s23147_s2 + $0x38] sm:$0xf]  ;;  %v15218_v20 = vld [vmem:[%s23145_s0 + $0x41] sm:$0xff]  ;;  %v15223_v21 = vld [vmem:[%s23145_s0 + $0x1e9] sm:$0xff] }
   0x9   :  { %13534 = vmatpush3.msra.mxu0 %v11531_v3  ;;  %15001 = vmatpush3.msra.mxu1 %v11531_v3  ;;  %23522 = vst [vmem:[#allocation11_spill] sm:$0xff] %v15223_v21  ;;  %v87_v22 = vld [vmem:[%s23146_s1] sm:$0xff]  ;;  %v15240_v23 = vld [vmem:[%s23145_s0 + $0x49] sm:$0xff]  ;;  %v15245_v24 = vld [vmem:[%s23145_s0 + $0x1f1] sm:$0xff] }
   0xa   :  { %13535 = vmatprep.mubr.msk.f32.mxu0 %vm148_vm1, %v15124_v4  ;;  %13595 = vmatprep.mubr.msk.f32.mxu1 %vm148_vm1, %v15129_v5  ;;  %23523 = vst [vmem:[#allocation12_spill] sm:$0xff] %v15245_v24  ;;  %v15250_v25 = vld [vmem:[%s23145_s0 + $0x51] sm:$0xff]  ;;  %v15255_v26 = vld [vmem:[%s23145_s0] sm:$0xff]  ;;  %v15280_v30 = vld [vmem:[%s23145_s0 + $0x8] sm:$0xff] }
   0xb   :  { %13536 = vmatmul.mubr.msk.f32.vlgmr.msra.gmra.mxu0 %vm148_vm1, %v15134_v6  ;;  %13596 = vmatmul.mubr.msk.f32.vlgmr.msra.gmra.mxu1 %vm148_vm1, %v15139_v7  ;;  %v94_v27 = vld [vmem:[%s23147_s2 + $0x18] sm:$0xf]  ;;  %v11635_v28 = vld [vmem:[%s23147_s2 + $0x30] sm:$0xff]  ;;  %v15275_v29 = vld [vmem:[%s23145_s0 + $0x61] sm:$0xff] }
   0xc   :  { %13607 = vmatprep.subr.msk.mxu1 %vm293_vm0, %v90_v8  ;;  %13538 = vmatprep.mubr.msk.f32.mxu0 %vm148_vm1, %v15147_v9  ;;  %v15286_v31 = vld [vmem:[%s23145_s0 + $0x69] sm:$0xff]  ;;  %v15306_v34 = vld [vmem:[%s23145_s0 + $0x71] sm:$0xff]  ;;  %v15311_v35 = vld [vmem:[%s23145_s0 + $0x20] sm:$0xff] }
   0xd   :  { %13608 = vmatpush3.msk.msra.mxu1 %vm293_vm0, %v90_v8  ;;  %13598 = vmatprep.mubr.msk.f32.mxu1 %vm148_vm1, %v15156_v10  ;;  %v15291_v32 = vld [vmem:[%s23145_s0 + $0x10] sm:$0xff]  ;;  %v15318_v36 = vld [vmem:[%s23145_s0 + $0x81] sm:$0xff]  ;;  %v15396_v50 = vld [vmem:[%s23146_s1 + $0x58] sm:$0xf] }
   0xe   :  { %13609 = vmatprep.subr.mxu1 %v89_v11  ;;  %13687 = vmatprep.subr.msk.mxu0 %vm293_vm0, %v11636_v19  ;;  %v93_v33 = vld [vmem:[%s23147_s2 + $0x10] sm:$0xff]  ;;  %v15323_v37 = vld [vmem:[%s23145_s0 + $0x28] sm:$0xff]  ;;  %v15357_v43 = vld [vmem:[%s23145_s0 + $0x40] sm:$0xff] }
   0xf   :  { %13539 = vmatmul.mubr.msk.f32.gmra.mxu0 %vm148_vm1, %v15171_v12  ;;  %13599 = vmatmul.mubr.msk.f32.gmra.mxu1 %vm148_vm1, %v15176_v13  ;;  %v92_v38 = vld [vmem:[%s23147_s2 + $0x8] sm:$0xff]  ;;  %v15347_v41 = vld [vmem:[%s23145_s0 + $0x30] sm:$0xff]  ;;  %v11633_v44 = vld [vmem:[%s23147_s2 + $0x20] sm:$0xff] }
  0x10   :  { %13610 = vmatpush3.msra.mxu1 %v89_v11  ;;  %13541 = vmatprep.mubr.msk.f32.mxu0 %vm148_vm1, %v15184_v14  ;;  %v11634_v39 = vld [vmem:[%s23147_s2 + $0x28] sm:$0xff]  ;;  %v15352_v42 = vld [vmem:[%s23145_s0 + $0x91] sm:$0xff]  ;;  %v91_v45 = vld [vmem:[%s23147_s2] sm:$0xff] }
  0x11   :  { %13601 = vmatprep.mubr.msk.f32.mxu1 %vm148_vm1, %v15189_v15  ;;  %13611 = vmatprep.subr.mxu1 %v88_v16  ;;  %v15342_v40 = vld [vmem:[%s23145_s0 + $0x89] sm:$0xff]  ;;  %v15376_v46 = vld [vmem:[%s23145_s0 + $0xa1] sm:$0xff]  ;;  %v15401_v51 = vld [vmem:[%s23147_s2 + $0x58] sm:$0xf] }
  0x12   :  { %13612 = vmatpush3.msra.mxu1 %v88_v16  ;;  %13688 = vmatpush3.msk.msra.mxu0 %vm293_vm0, %v11636_v19  ;;  %v15381_v47 = vld [vmem:[%s23145_s0 + $0x48] sm:$0xff]  ;;  %v15391_v49 = vld [vmem:[%s23145_s0 + $0x50] sm:$0xff] }
  0x13   :  { %13542 = vmatmul.mubr.msk.f32.gmra.mxu0 %vm148_vm1, %v15203_v17  ;;  %13602 = vmatmul.mubr.msk.f32.gmra.mxu1 %vm148_vm1, %v15208_v18  ;;  %v15386_v48 = vld [vmem:[%s23145_s0 + $0xa9] sm:$0xff] }
  0x14   :  { %13544 = vmatprep.mubr.msk.f32.mxu0 %vm148_vm1, %v15218_v20  ;;  %13604 = vmatprep.mubr.msk.f32.mxu1 %vm148_vm1, %v15223_v21 }
  0x15   :  { %13613 = vmatprep.subr.mxu1 %v87_v22  ;;  %13689 = vmatprep.subr.mxu0 %v11635_v28 }
  0x16   :  { %13614 = vmatpush3.msra.mxu1 %v87_v22  ;;  %13690 = vmatpush3.msra.mxu0 %v11635_v28 }
  0x17   :  { %13545 = vmatmul.mubr.msk.f32.gmra.mxu0 %vm148_vm1, %v15240_v23  ;;  %13605 = vmatmul.mubr.msk.f32.gmra.mxu1 %vm148_vm1, %v15245_v24 }
  0x18   :  { %13547 = vmatprep.mubr.msk.f32.mxu0 %vm148_vm1, %v15250_v25  ;;  %13615 = vmatprep.mubr.msk.f32.mxu1 %vm148_vm1, %v15255_v26 }
  0x19   :  { %13767 = vmatprep.subr.msk.mxu1 %vm293_vm0, %v94_v27  ;;  %13691 = vmatprep.subr.mxu0 %v11634_v39 }
  0x1a   :  { %13692 = vmatpush3.msra.mxu0 %v11634_v39 }
  0x1b   :  { %13548 = vmatmul.mubr.msk.f32.gmra.mxu0 %vm148_vm1, %v15275_v29  ;;  %13616 = vmatmul.mubr.msk.f32.vlgmr.msra.gmra.mxu1 %vm148_vm1, %v15280_v30 }
  0x1c   :  { %13768 = vmatpush3.msk.msra.mxu1 %vm293_vm0, %v94_v27  ;;  %13550 = vmatprep.mubr.msk.f32.mxu0 %vm148_vm1, %v15286_v31 }
  0x1d   :  { %13618 = vmatprep.mubr.msk.f32.mxu1 %vm148_vm1, %v15291_v32  ;;  %13769 = vmatprep.subr.mxu1 %v93_v33 }
  0x1e   :  { %13770 = vmatpush3.msra.mxu1 %v93_v33  ;;  %13693 = vmatprep.subr.mxu0 %v11633_v44 }
  0x1f   :  { %13551 = vmatmul.mubr.msk.f32.gmra.mxu0 %vm148_vm1, %v15306_v34  ;;  %13619 = vmatmul.mubr.msk.f32.gmra.mxu1 %vm148_vm1, %v15311_v35 }
  0x20   :  { %13553 = vmatprep.mubr.msk.f32.mxu0 %vm148_vm1, %v15318_v36  ;;  %13621 = vmatprep.mubr.msk.f32.mxu1 %vm148_vm1, %v15323_v37 }
  0x21   :  { %13771 = vmatprep.subr.mxu1 %v92_v38  ;;  %13694 = vmatpush3.msra.mxu0 %v11633_v44 }
  0x22   :  { %13772 = vmatpush3.msra.mxu1 %v92_v38 }
  0x23   :  { %13554 = vmatmul.mubr.msk.f32.gmra.mxu0 %vm148_vm1, %v15342_v40  ;;  %13622 = vmatmul.mubr.msk.f32.gmra.mxu1 %vm148_vm1, %v15347_v41 }
  0x24   :  { %13556 = vmatprep.mubr.msk.f32.mxu0 %vm148_vm1, %v15352_v42  ;;  %13624 = vmatprep.mubr.msk.f32.mxu1 %vm148_vm1, %v15357_v43 }
  0x25   :  { %13773 = vmatprep.subr.mxu1 %v91_v45 }
  0x26   :  { %13774 = vmatpush3.msra.mxu1 %v91_v45 }
  0x27   :  { %13557 = vmatmul.mubr.msk.f32.gmra.mxu0 %vm148_vm1, %v15376_v46  ;;  %13625 = vmatmul.mubr.msk.f32.gmra.mxu1 %vm148_vm1, %v15381_v47 }
  0x28   :  { %16 = vsyncpa [#allocation3], 0  ;;  %13559 = vmatprep.mubr.msk.f32.mxu0 %vm148_vm1, %v15386_v48  ;;  %13627 = vmatprep.mubr.msk.f32.mxu1 %vm148_vm1, %v15391_v49  ;;  %v15414_v52 = vld [vmem:[%s23145_s0 + $0xb1] sm:$0xff]  ;;  %v15419_v53 = vld [vmem:[%s23145_s0 + $0x60] sm:$0xff]  ;;  %vm7222_vm2 = vcmask 1041409   ;;  %vm7224_vm3 = vcmask 1042434  }
  0x29   :  { %v15424_v54 = vld [vmem:[%s23145_s0 + $0xc1] sm:$0xff]  ;;  %13847 = vmatprep.subr.msk.mxu0 %vm293_vm0, %v15396_v50  ;;  %13927 = vmatprep.subr.msk.mxu1 %vm293_vm0, %v15401_v51  ;;  %v15446_v56 = vld [vmem:[%s23145_s0 + $0xc9] sm:$0xff]  ;;  %v15456_v58 = vld [vmem:[%s23145_s0 + $0xd1] sm:$0xff]  ;;  %vm7226_vm4 = vcmask 1043459   ;;  %vm7228_vm5 = vcmask 1044484   ;;  %vm7230_vm6 = vcmask 1045509  }
  0x2a   :  { %v15429_v55 = vld [vmem:[%s23145_s0 + $0x68] sm:$0xff]  ;;  %v15451_v57 = vld [vmem:[%s23145_s0 + $0x70] sm:$0xff]  ;;  %v15461_v59 = vld [vmem:[%s23145_s0 + $0x80] sm:$0xff]  ;;  %vm7232_vm7 = vcmask 1046534   ;;  %vm7234_vm8 = vcmask 1047559   ;;  %vm7341_vm9 = vcmask 982016  }
  0x2b   :  { %13560 = vmatmul.mubr.msk.f32.gmra.mxu0 %vm148_vm1, %v15414_v52  ;;  %13628 = vmatmul.mubr.msk.f32.gmra.mxu1 %vm148_vm1, %v15419_v53  ;;  %v15474_v60 = vld [vmem:[%s23145_s0 + $0xe1] sm:$0xff]  ;;  %v15484_v62 = vld [vmem:[%s23145_s0 + $0xe9] sm:$0xff]  ;;  %v15502_v0 = vld [vmem:[%s23145_s0 + $0xf1] sm:$0xff]  ;;  %vm10754_vm10 = vcmask 654336   ;;  %vm11488_vm11 = vcmask 80896  }
  0x2c   :  { %13562 = vmatprep.mubr.msk.f32.mxu0 %vm148_vm1, %v15424_v54  ;;  %13630 = vmatprep.mubr.msk.f32.mxu1 %vm148_vm1, %v15429_v55  ;;  %v15479_v61 = vld [vmem:[%s23145_s0 + $0x88] sm:$0xff]  ;;  %v15489_v63 = vld [vmem:[%s23145_s0 + $0x90] sm:$0xff]  ;;  %v15507_v1 = vld [vmem:[%s23145_s0 + $0xa0] sm:$0xff] }
  0x2d   :  { %v15512_v2 = vld [vmem:[%s23145_s0 + $0x101] sm:$0xff]  ;;  %v15530_v8 = vld [vmem:[%s23145_s0 + $0x109] sm:$0xff]  ;;  %v15540_v16 = vld [vmem:[%s23145_s0 + $0x111] sm:$0xff] }
  0x2e   :  { %v15517_v3 = vld [vmem:[%s23145_s0 + $0xa8] sm:$0xff]  ;;  %v15535_v11 = vld [vmem:[%s23145_s0 + $0xb0] sm:$0xff]  ;;  %v15545_v19 = vld [vmem:[%s23145_s0 + $0xc0] sm:$0xff] }
  0x2f   :  { %13563 = vmatmul.mubr.msk.f32.gmra.mxu0 %vm148_vm1, %v15446_v56  ;;  %13631 = vmatmul.mubr.msk.f32.gmra.mxu1 %vm148_vm1, %v15451_v57  ;;  %v15558_v22 = vld [vmem:[%s23145_s0 + $0x121] sm:$0xff]  ;;  %v15568_v28 = vld [vmem:[%s23145_s0 + $0x129] sm:$0xff]  ;;  %v15586_v38 = vld [vmem:[%s23145_s0 + $0x131] sm:$0xff] }
  0x30   :  { %13565 = vmatprep.mubr.msk.f32.mxu0 %vm148_vm1, %v15456_v58  ;;  %13633 = vmatprep.mubr.msk.f32.mxu1 %vm148_vm1, %v15461_v59  ;;  %v15563_v27 = vld [vmem:[%s23145_s0 + $0xc8] sm:$0xff]  ;;  %v15573_v33 = vld [vmem:[%s23145_s0 + $0xd0] sm:$0xff]  ;;  %v15591_v39 = vld [vmem:[%s23145_s0 + $0xe0] sm:$0xff] }
  0x31   :  { %23524 = vst [vmem:[#allocation13_spill] sm:$0xff] %v15573_v33  ;;  %23525 = vst [vmem:[#allocation14_spill] sm:$0xff] %v15591_v39  ;;  %v15596_v44 = vld [vmem:[%s23145_s0 + $0x141] sm:$0xff]  ;;  %v15614_v24 = vld [vmem:[%s23145_s0 + $0x149] sm:$0xff] }
  0x32   :  { %v15601_v45 = vld [vmem:[%s23145_s0 + $0xe8] sm:$0xff]  ;;  %v15619_v21 = vld [vmem:[%s23145_s0 + $0xf0] sm:$0xff]  ;;  %v15629_v15 = vld [vmem:[%s23145_s0 + $0x100] sm:$0xff] }
  0x33   :  { %13566 = vmatmul.mubr.msk.f32.gmra.mxu0 %vm148_vm1, %v15474_v60  ;;  %13634 = vmatmul.mubr.msk.f32.gmra.mxu1 %vm148_vm1, %v15479_v61  ;;  %23526 = vst [vmem:[#allocation15_spill] sm:$0xff] %v15601_v45  ;;  %23527 = vst [vmem:[#allocation16_spill] sm:$0xff] %v15619_v21  ;;  %v15624_v18 = vld [vmem:[%s23145_s0 + $0x151] sm:$0xff]  ;;  %v15642_v13 = vld [vmem:[%s23145_s0 + $0x161] sm:$0xff] }
  0x34   :  { %13568 = vmatprep.mubr.msk.f32.mxu0 %vm148_vm1, %v15484_v62  ;;  %13636 = vmatprep.mubr.msk.f32.mxu1 %vm148_vm1, %v15489_v63  ;;  %23528 = vst [vmem:[#allocation17_spill] sm:$0xff] %v15629_v15  ;;  %v15647_v10 = vld [vmem:[%s23145_s0 + $0x108] sm:$0xff]  ;;  %v15657_v5 = vld [vmem:[%s23145_s0 + $0x110] sm:$0xff] }
  0x35   :  { %23529 = vst [vmem:[#allocation18_spill] sm:$0xff] %v15647_v10  ;;  %v15652_v7 = vld [vmem:[%s23145_s0 + $0x169] sm:$0xff]  ;;  %23530 = vst [vmem:[#allocation19_spill] sm:$0xff] %v15657_v5 }
  0x37   :  { %13569 = vmatmul.mubr.msk.f32.gmra.mxu0 %vm148_vm1, %v15502_v0  ;;  %13637 = vmatmul.mubr.msk.f32.gmra.mxu1 %vm148_vm1, %v15507_v1 }
  0x38   :  { %13571 = vmatprep.mubr.msk.f32.mxu0 %vm148_vm1, %v15512_v2  ;;  %13639 = vmatprep.mubr.msk.f32.mxu1 %vm148_vm1, %v15517_v3 }
  0x3b   :  { %13572 = vmatmul.mubr.msk.f32.gmra.mxu0 %vm148_vm1, %v15530_v8  ;;  %13640 = vmatmul.mubr.msk.f32.gmra.mxu1 %vm148_vm1, %v15535_v11 }
  0x3c   :  { %13574 = vmatprep.mubr.msk.f32.mxu0 %vm148_vm1, %v15540_v16  ;;  %13642 = vmatprep.mubr.msk.f32.mxu1 %vm148_vm1, %v15545_v19 }
  0x3f   :  { %13575 = vmatmul.mubr.msk.f32.gmra.mxu0 %vm148_vm1, %v15558_v22  ;;  %13643 = vmatmul.mubr.msk.f32.gmra.mxu1 %vm148_vm1, %v15563_v27 }
  0x40   :  { %13577 = vmatprep.mubr.msk.f32.mxu0 %vm148_vm1, %v15568_v28  ;;  %13645 = vmatprep.mubr.msk.f32.mxu1 %vm148_vm1, %v15573_v33  ;;  %v15713_v33 = vld [vmem:[%s23145_s0 + $0x140] sm:$0xff] }
  0x41   :  { %23536 = vst [vmem:[#allocation25_spill] sm:$0xff] %v15713_v33 }
  0x43   :  { %13578 = vmatmul.mubr.msk.f32.gmra.mxu0 %vm148_vm1, %v15586_v38  ;;  %13646 = vmatmul.mubr.msk.f32.gmra.mxu1 %vm148_vm1, %v15591_v39  ;;  %v15703_v39 = vld [vmem:[%s23145_s0 + $0x130] sm:$0xff] }
  0x44   :  { %13580 = vmatprep.mubr.msk.f32.mxu0 %vm148_vm1, %v15596_v44  ;;  %13648 = vmatprep.mubr.msk.f32.mxu1 %vm148_vm1, %v15601_v45  ;;  %v15685_v45 = vld [vmem:[%s23145_s0 + $0x128] sm:$0xff]  ;;  %23534 = vst [vmem:[#allocation23_spill] sm:$0xff] %v15703_v39 }
  0x45   :  { %23533 = vst [vmem:[#allocation22_spill] sm:$0xff] %v15685_v45 }
  0x47   :  { %13581 = vmatmul.mubr.msk.f32.gmra.mxu0 %vm148_vm1, %v15614_v24  ;;  %13649 = vmatmul.mubr.msk.f32.gmra.mxu1 %vm148_vm1, %v15619_v21  ;;  %v15675_v21 = vld [vmem:[%s23145_s0 + $0x120] sm:$0xff] }
  0x48   :  { %13583 = vmatprep.mubr.msk.f32.mxu0 %vm148_vm1, %v15624_v18  ;;  %13651 = vmatprep.mubr.msk.f32.mxu1 %vm148_vm1, %v15629_v15  ;;  %v15670_v15 = vld [vmem:[%s23145_s0 + $0x171] sm:$0xff]  ;;  %23531 = vst [vmem:[#allocation20_spill] sm:$0xff] %v15675_v21 }
  0x4b   :  { %13584 = vmatmul.mubr.msk.f32.gmra.mxu0 %vm148_vm1, %v15642_v13  ;;  %13652 = vmatmul.mubr.msk.f32.gmra.mxu1 %vm148_vm1, %v15647_v10  ;;  %v15680_v10 = vld [vmem:[%s23145_s0 + $0x181] sm:$0xff] }
  0x4c   :  { %13586 = vmatprep.mubr.msk.f32.mxu0 %vm148_vm1, %v15652_v7  ;;  %13654 = vmatprep.mubr.msk.f32.mxu1 %vm148_vm1, %v15657_v5  ;;  %23532 = vst [vmem:[#allocation21_spill] sm:$0xff] %v15680_v10  ;;  %v15698_v5 = vld [vmem:[%s23145_s0 + $0x189] sm:$0xff] }
  0x4f   :  { %13587 = vmatmul.mubr.msk.f32.gmra.mxu0 %vm148_vm1, %v15670_v15  ;;  %13655 = vmatmul.mubr.msk.f32.gmra.mxu1 %vm148_vm1, %v15675_v21  ;;  %v15708_v21 = vld [vmem:[%s23145_s0 + $0x191] sm:$0xff] }
  0x50   :  { %13589 = vmatprep.mubr.msk.f32.mxu0 %vm148_vm1, %v15680_v10  ;;  %13657 = vmatprep.mubr.msk.f32.mxu1 %vm148_vm1, %v15685_v45  ;;  %23535 = vst [vmem:[#allocation24_spill] sm:$0xff] %v15708_v21  ;;  %v15726_v45 = vld [vmem:[%s23145_s0 + $0x1a1] sm:$0xff] }
  0x51   :  { %v15731_v10 = vld [vmem:[%s23145_s0 + $0x148] sm:$0xff] }
  0x53   :  { %13590 = vmatmul.mubr.msk.f32.gmra.mxu0 %vm148_vm1, %v15698_v5  ;;  %13658 = vmatmul.mubr.msk.f32.gmra.mxu1 %vm148_vm1, %v15703_v39  ;;  %v15736_v39 = vld [vmem:[%s23145_s0 + $0x150] sm:$0xff] }
  0x54   :  { %13592 = vmatprep.mubr.msk.f32.mxu0 %vm148_vm1, %v15708_v21  ;;  %13660 = vmatprep.mubr.msk.f32.mxu1 %vm148_vm1, %v15713_v33  ;;  %23537 = vst [vmem:[#allocation26_spill] sm:$0xff] %v15736_v39  ;;  %v15749_v33 = vld [vmem:[%s23145_s0 + $0x160] sm:$0xff]  ;;  %v15754_v21 = vld [vmem:[%s23145_s0 + $0x168] sm:$0xff] }
  0x55   :  { %23538 = vst [vmem:[#allocation27_spill] sm:$0xff] %v15749_v33 }
  0x57   :  { %13593 = vmatmul.mubr.msk.f32.gmra.mxu0 %vm148_vm1, %v15726_v45  ;;  %13661 = vmatmul.mubr.msk.f32.gmra.mxu1 %vm148_vm1, %v15731_v10 }
  0x58   :  { %13663 = vmatprep.mubr.msk.f32.mxu1 %vm148_vm1, %v15736_v39  ;;  %13695 = vmatprep.mubr.msk.f32.mxu0 %vm148_vm1, %v15124_v4  ;;  %v11737_v4 = vld [vmem:[%s23146_s1 + $0x50] sm:$0xff] }
  0x59   :  { %v15770_v39 = vld [vmem:[%s23145_s0 + $0x170] sm:$0xff] }
  0x5b   :  { %13664 = vmatmul.mubr.msk.f32.gmra.mxu1 %vm148_vm1, %v15749_v33  ;;  %13696 = vmatmul.mubr.msk.f32.vlgmr.msra.gmra.mxu0 %vm148_vm1, %v15134_v6  ;;  %v15775_v33 = vld [vmem:[%s23145_s0 + $0x180] sm:$0xff]  ;;  %v11736_v6 = vld [vmem:[%s23146_s1 + $0x48] sm:$0xff] }
  0x5c   :  { %13666 = vmatprep.mubr.msk.f32.mxu1 %vm148_vm1, %v15754_v21  ;;  %13698 = vmatprep.mubr.msk.f32.mxu0 %vm148_vm1, %v15147_v9  ;;  %v15793_v9 = vld [vmem:[%s23145_s0 + $0x188] sm:$0xff] }
  0x5d   :  { %13848 = vmatpush3.msk.msra.mxu0 %vm293_vm0, %v15396_v50  ;;  %v15798_v50 = vld [vmem:[%s23145_s0 + $0x190] sm:$0xff] }
  0x5e   :  { %13849 = vmatprep.subr.mxu0 %v11737_v4 }
  0x5f   :  { %13667 = vmatmul.mubr.msk.f32.gmra.mxu1 %vm148_vm1, %v15770_v39  ;;  %13699 = vmatmul.mubr.msk.f32.gmra.mxu0 %vm148_vm1, %v15171_v12  ;;  %v11735_v12 = vld [vmem:[%s23146_s1 + $0x40] sm:$0xff] }
  0x60   :  { %13669 = vmatprep.mubr.msk.f32.mxu1 %vm148_vm1, %v15775_v33  ;;  %13701 = vmatprep.mubr.msk.f32.mxu0 %vm148_vm1, %v15184_v14  ;;  %v15814_v14 = vld [vmem:[%s23145_s0 + $0x1a0] sm:$0xff] }
  0x61   :  { %13850 = vmatpush3.msra.mxu0 %v11737_v4  ;;  %v15819_v4 = vld [vmem:[%s23145_s0 + $0x1a8] sm:$0xff] }
  0x62   :  { %13851 = vmatprep.subr.mxu0 %v11736_v6 }
  0x63   :  { %13670 = vmatmul.mubr.msk.f32.gmra.mxu1 %vm148_vm1, %v15793_v9  ;;  %13702 = vmatmul.mubr.msk.f32.gmra.mxu0 %vm148_vm1, %v15203_v17  ;;  %v15828_v17 = vld [vmem:[%s23146_s1 + $0x78] sm:$0xf] }
  0x64   :  { %13672 = vmatprep.mubr.msk.f32.mxu1 %vm148_vm1, %v15798_v50  ;;  %13704 = vmatprep.mubr.msk.f32.mxu0 %vm148_vm1, %v15218_v20  ;;  %v15837_v20 = vld [vmem:[%s23145_s0 + $0x1b0] sm:$0xff] }
  0x65   :  { %13852 = vmatpush3.msra.mxu0 %v11736_v6  ;;  %v15862_v6 = vld [vmem:[%s23145_s0 + $0x1d0] sm:$0xff] }
  0x66   :  { %13853 = vmatprep.subr.mxu0 %v11735_v12 }
  0x67   :  { %13673 = vmatmul.mubr.msk.f32.gmra.mxu1 %vm148_vm1, %v15814_v14  ;;  %13705 = vmatmul.mubr.msk.f32.gmra.mxu0 %vm148_vm1, %v15240_v23  ;;  %v15842_v23 = vld [vmem:[%s23145_s0 + $0x1c0] sm:$0xff] }
  0x68   :  { %13675 = vmatprep.mubr.msk.f32.mxu1 %vm148_vm1, %v15819_v4  ;;  %13707 = vmatprep.mubr.msk.f32.mxu0 %vm148_vm1, %v15250_v25  ;;  %v15857_v25 = vld [vmem:[%s23145_s0 + $0x1c8] sm:$0xff] }
  0x69   :  { %13854 = vmatpush3.msra.mxu0 %v11735_v12  ;;  %v16196_v12 = vld [vmem:[%s23145_s0 + $0x92] sm:$0xff] }
  0x6a   :  { %14007 = vmatprep.subr.msk.mxu0 %vm293_vm0, %v15828_v17 }
  0x6b   :  { %13676 = vmatmul.mubr.msk.f32.gmra.mxu1 %vm148_vm1, %v15837_v20  ;;  %13708 = vmatmul.mubr.msk.f32.gmra.mxu0 %vm148_vm1, %v15275_v29  ;;  %v15875_v29 = vld [vmem:[%s23145_s0 + $0x1e0] sm:$0xff] }
  0x6c   :  { %13678 = vmatprep.mubr.msk.f32.mxu1 %vm148_vm1, %v15842_v23  ;;  %13710 = vmatprep.mubr.msk.f32.mxu0 %vm148_vm1, %v15286_v31  ;;  %v15880_v31 = vld [vmem:[%s23145_s0 + $0x1e8] sm:$0xff] }
  0x6f   :  { %13679 = vmatmul.mubr.msk.f32.gmra.mxu1 %vm148_vm1, %v15857_v25  ;;  %13711 = vmatmul.mubr.msk.f32.gmra.mxu0 %vm148_vm1, %v15306_v34  ;;  %v15893_v34 = vld [vmem:[%s23145_s0 + $0x1f0] sm:$0xff] }
  0x70   :  { %13681 = vmatprep.mubr.msk.f32.mxu1 %vm148_vm1, %v15862_v6  ;;  %13713 = vmatprep.mubr.msk.f32.mxu0 %vm148_vm1, %v15318_v36  ;;  %v11790_v36 = vld [vmem:[%s23147_s2 + $0x50] sm:$0xff] }
  0x73   :  { %13682 = vmatmul.mubr.msk.f32.gmra.mxu1 %vm148_vm1, %v15875_v29  ;;  %13714 = vmatmul.mubr.msk.f32.gmra.mxu0 %vm148_vm1, %v15342_v40  ;;  %v23546_v40 = vld [vmem:[#allocation17_spill] sm:$0xff] }
  0x74   :  { %13684 = vmatprep.mubr.msk.f32.mxu1 %vm148_vm1, %v15880_v31  ;;  %13716 = vmatprep.mubr.msk.f32.mxu0 %vm148_vm1, %v15352_v42  ;;  %v23549_v42 = vld [vmem:[#allocation7_spill] sm:$0xff] }
  0x77   :  { %13685 = vmatmul.mubr.msk.f32.gmra.mxu1 %vm148_vm1, %v15893_v34  ;;  %13717 = vmatmul.mubr.msk.f32.gmra.mxu0 %vm148_vm1, %v15376_v46  ;;  %v23551_v46 = vld [vmem:[#allocation8_spill] sm:$0xff] }
  0x78   :  { %13719 = vmatprep.mubr.msk.f32.mxu0 %vm148_vm1, %v15386_v48  ;;  %13775 = vmatprep.mubr.msk.f32.mxu1 %vm148_vm1, %v15255_v26  ;;  %v11789_v26 = vld [vmem:[%s23147_s2 + $0x48] sm:$0xff]  ;;  %v23553_v48 = vld [vmem:[#allocation9_spill] sm:$0xff] }
  0x7b   :  { %13720 = vmatmul.mubr.msk.f32.gmra.mxu0 %vm148_vm1, %v15414_v52  ;;  %13776 = vmatmul.mubr.msk.f32.vlgmr.msra.gmra.mxu1 %vm148_vm1, %v15280_v30  ;;  %v11788_v30 = vld [vmem:[%s23147_s2 + $0x40] sm:$0xff] }
  0x7c   :  { %13928 = vmatpush3.msk.msra.mxu1 %vm293_vm0, %v15401_v51  ;;  %13722 = vmatprep.mubr.msk.f32.mxu0 %vm148_vm1, %v15424_v54  ;;  %v23555_v51 = vld [vmem:[#allocation10_spill] sm:$0xff]  ;;  %v23556_v52 = vld [vmem:[#allocation23_spill] sm:$0xff]  ;;  %v23558_v54 = vld [vmem:[#allocation25_spill] sm:$0xff] }
  0x7d   :  { %13778 = vmatprep.mubr.msk.f32.mxu1 %vm148_vm1, %v15291_v32  ;;  %13929 = vmatprep.subr.mxu1 %v11790_v36  ;;  %v15941_v32 = vld [vmem:[%s23147_s2 + $0x78] sm:$0xf] }
  0x7e   :  { %13930 = vmatpush3.msra.mxu1 %v11790_v36 }
  0x7f   :  { %13723 = vmatmul.mubr.msk.f32.gmra.mxu0 %vm148_vm1, %v15446_v56  ;;  %13779 = vmatmul.mubr.msk.f32.gmra.mxu1 %vm148_vm1, %v15311_v35  ;;  %v23543_v35 = vld [vmem:[#allocation15_spill] sm:$0xff]  ;;  %v23559_v56 = vld [vmem:[#allocation12_spill] sm:$0xff] }
  0x80   :  { %13725 = vmatprep.mubr.msk.f32.mxu0 %vm148_vm1, %v15456_v58  ;;  %13781 = vmatprep.mubr.msk.f32.mxu1 %vm148_vm1, %v15323_v37  ;;  %v23545_v37 = vld [vmem:[#allocation5_spill] sm:$0xff] }
  0x81   :  { %13931 = vmatprep.subr.mxu1 %v11789_v26  ;;  %v16057_v58 = vld [vmem:[%s23145_s0 + $0xa] sm:$0xff] }
  0x82   :  { %13932 = vmatpush3.msra.mxu1 %v11789_v26 }
  0x83   :  { %13726 = vmatmul.mubr.msk.f32.gmra.mxu0 %vm148_vm1, %v15474_v60  ;;  %13782 = vmatmul.mubr.msk.f32.gmra.mxu1 %vm148_vm1, %v15347_v41  ;;  %v23548_v41 = vld [vmem:[#allocation18_spill] sm:$0xff]  ;;  %v23561_v60 = vld [vmem:[#allocation27_spill] sm:$0xff] }
  0x84   :  { %13728 = vmatprep.mubr.msk.f32.mxu0 %vm148_vm1, %v15484_v62  ;;  %13784 = vmatprep.mubr.msk.f32.mxu1 %vm148_vm1, %v15357_v43  ;;  %v23550_v43 = vld [vmem:[#allocation19_spill] sm:$0xff]  ;;  %v16083_v62 = vld [vmem:[%s23145_s0 + $0x2a] sm:$0xff] }
  0x85   :  { %13933 = vmatprep.subr.mxu1 %v11788_v30 }
  0x86   :  { %13934 = vmatpush3.msra.mxu1 %v11788_v30  ;;  %v11896_v30 = vld [vmem:[%s23147_s2 + $0x70] sm:$0xff] }
  0x87   :  { %13729 = vmatmul.mubr.msk.f32.gmra.mxu0 %vm148_vm1, %v15502_v0  ;;  %13785 = vmatmul.mubr.msk.f32.gmra.mxu1 %vm148_vm1, %v15381_v47  ;;  %v23552_v47 = vld [vmem:[#allocation20_spill] sm:$0xff] }
  0x88   :  { %13731 = vmatprep.mubr.msk.f32.mxu0 %vm148_vm1, %v15512_v2  ;;  %13787 = vmatprep.mubr.msk.f32.mxu1 %vm148_vm1, %v15391_v49  ;;  %v23554_v49 = vld [vmem:[#allocation22_spill] sm:$0xff]  ;;  %v16106_v0 = vld [vmem:[%s23145_s0 + $0x42] sm:$0xff]  ;;  %v16122_v2 = vld [vmem:[%s23145_s0 + $0x4a] sm:$0xff] }
  0x89   :  { %14087 = vmatprep.subr.msk.mxu1 %vm293_vm0, %v15941_v32 }
  0x8b   :  { %13732 = vmatmul.mubr.msk.f32.gmra.mxu0 %vm148_vm1, %v15530_v8  ;;  %13788 = vmatmul.mubr.msk.f32.gmra.mxu1 %vm148_vm1, %v15419_v53  ;;  %v23557_v53 = vld [vmem:[#allocation11_spill] sm:$0xff]  ;;  %v16136_v8 = vld [vmem:[%s23146_s1 + $0x98] sm:$0xf] }
  0x8c   :  { %13734 = vmatprep.mubr.msk.f32.mxu0 %vm148_vm1, %v15540_v16  ;;  %13790 = vmatprep.mubr.msk.f32.mxu1 %vm148_vm1, %v15429_v55  ;;  %v16044_v55 = vld [vmem:[%s23145_s0 + $0x2] sm:$0xff]  ;;  %v16150_v16 = vld [vmem:[%s23145_s0 + $0x6a] sm:$0xff] }
  0x8f   :  { %13735 = vmatmul.mubr.msk.f32.gmra.mxu0 %vm148_vm1, %v15558_v22  ;;  %13791 = vmatmul.mubr.msk.f32.gmra.mxu1 %vm148_vm1, %v15451_v57  ;;  %v23560_v57 = vld [vmem:[#allocation26_spill] sm:$0xff] }
  0x90   :  { %13737 = vmatprep.mubr.msk.f32.mxu0 %vm148_vm1, %v15568_v28  ;;  %13793 = vmatprep.mubr.msk.f32.mxu1 %vm148_vm1, %v15461_v59  ;;  %v16062_v59 = vld [vmem:[%s23145_s0 + $0x12] sm:$0xff] }
  0x93   :  { %13738 = vmatmul.mubr.msk.f32.gmra.mxu0 %vm148_vm1, %v15586_v38  ;;  %13794 = vmatmul.mubr.msk.f32.gmra.mxu1 %vm148_vm1, %v15479_v61  ;;  %v16078_v61 = vld [vmem:[%s23145_s0 + $0x22] sm:$0xff] }
  0x94   :  { %13740 = vmatprep.mubr.msk.f32.mxu0 %vm148_vm1, %v15596_v44  ;;  %13796 = vmatprep.mubr.msk.f32.mxu1 %vm148_vm1, %v15489_v63  ;;  %v16101_v63 = vld [vmem:[%s23145_s0 + $0x32] sm:$0xff]  ;;  %v16174_v38 = vld [vmem:[%s23145_s0 + $0x82] sm:$0xff] }
  0x97   :  { %13741 = vmatmul.mubr.msk.f32.gmra.mxu0 %vm148_vm1, %v15614_v24  ;;  %13797 = vmatmul.mubr.msk.f32.gmra.mxu1 %vm148_vm1, %v15507_v1  ;;  %v23540_v24 = vld [vmem:[#allocation13_spill] sm:$0xff]  ;;  %v11841_v1 = vld [vmem:[%s23146_s1 + $0x60] sm:$0xff] }
  0x98   :  { %13743 = vmatprep.mubr.msk.f32.mxu0 %vm148_vm1, %v15624_v18  ;;  %13799 = vmatprep.mubr.msk.f32.mxu1 %vm148_vm1, %v15517_v3  ;;  %v23539_v18 = vld [vmem:[#allocation21_spill] sm:$0xff] }
  0x99   :  { %v16127_v3 = vld [vmem:[%s23145_s0 + $0x52] sm:$0xff] }
  0x9b   :  { %13744 = vmatmul.mubr.msk.f32.gmra.mxu0 %vm148_vm1, %v15642_v13  ;;  %13800 = vmatmul.mubr.msk.f32.gmra.mxu1 %vm148_vm1, %v15535_v11  ;;  %v23541_v13 = vld [vmem:[#allocation14_spill] sm:$0xff]  ;;  %v16145_v11 = vld [vmem:[%s23145_s0 + $0x62] sm:$0xff] }
  0x9c   :  { %13746 = vmatprep.mubr.msk.f32.mxu0 %vm148_vm1, %v15652_v7  ;;  %13802 = vmatprep.mubr.msk.f32.mxu1 %vm148_vm1, %v15545_v19  ;;  %v23542_v7 = vld [vmem:[#allocation24_spill] sm:$0xff] }
  0x9f   :  { %13747 = vmatmul.mubr.msk.f32.gmra.mxu0 %vm148_vm1, %v15670_v15  ;;  %13803 = vmatmul.mubr.msk.f32.gmra.mxu1 %vm148_vm1, %v15563_v27  ;;  %v23544_v15 = vld [vmem:[#allocation16_spill] sm:$0xff]  ;;  %v16167_v27 = vld [vmem:[%s23145_s0 + $0x72] sm:$0xff] }
  0xa0   :  { %13749 = vmatprep.mubr.msk.f32.mxu0 %vm148_vm1, %v23539_v18  ;;  %13805 = vmatprep.mubr.msk.f32.mxu1 %vm148_vm1, %v23540_v24 }
  0xa3   :  { %13750 = vmatmul.mubr.msk.f32.gmra.mxu0 %vm148_vm1, %v15698_v5  ;;  %13806 = vmatmul.mubr.msk.f32.gmra.mxu1 %vm148_vm1, %v23541_v13  ;;  %v23547_v5 = vld [vmem:[#allocation6_spill] sm:$0xff] }
  0xa4   :  { %13752 = vmatprep.mubr.msk.f32.mxu0 %vm148_vm1, %v23542_v7  ;;  %13808 = vmatprep.mubr.msk.f32.mxu1 %vm148_vm1, %v23543_v35  ;;  %v16260_v7 = vld [vmem:[%s23145_s0 + $0xca] sm:$0xff] }
  0xa7   :  { %13753 = vmatmul.mubr.msk.f32.gmra.mxu0 %vm148_vm1, %v15726_v45  ;;  %13809 = vmatmul.mubr.msk.f32.gmra.mxu1 %vm148_vm1, %v23544_v15  ;;  %v16189_v45 = vld [vmem:[%s23145_s0 + $0x8a] sm:$0xff] }
  0xa8   :  { %13755 = vmatprep.mubr.msk.f32.mxu0 %vm148_vm1, %v23545_v37  ;;  %13811 = vmatprep.mubr.msk.f32.mxu1 %vm148_vm1, %v23546_v40  ;;  %v16267_v37 = vld [vmem:[%s23145_s0 + $0xd2] sm:$0xff]  ;;  %v11895_v40 = vld [vmem:[%s23147_s2 + $0x68] sm:$0xff] }
  0xab   :  { %13756 = vmatmul.mubr.msk.f32.gmra.mxu0 %vm148_vm1, %v23547_v5  ;;  %13812 = vmatmul.mubr.msk.f32.gmra.mxu1 %vm148_vm1, %v23548_v41 }
  0xac   :  { %13758 = vmatprep.mubr.msk.f32.mxu0 %vm148_vm1, %v23549_v42  ;;  %13814 = vmatprep.mubr.msk.f32.mxu1 %vm148_vm1, %v23550_v43  ;;  %v16287_v43 = vld [vmem:[%s23145_s0 + $0xe2] sm:$0xff] }
  0xaf   :  { %13759 = vmatmul.mubr.msk.f32.gmra.mxu0 %vm148_vm1, %v23551_v46  ;;  %13815 = vmatmul.mubr.msk.f32.gmra.mxu1 %vm148_vm1, %v23552_v47 }
  0xb0   :  { %13761 = vmatprep.mubr.msk.f32.mxu0 %vm148_vm1, %v23553_v48  ;;  %13817 = vmatprep.mubr.msk.f32.mxu1 %vm148_vm1, %v23554_v49  ;;  %v16292_v48 = vld [vmem:[%s23145_s0 + $0xea] sm:$0xff] }
  0xb3   :  { %13762 = vmatmul.mubr.msk.f32.gmra.mxu0 %vm148_vm1, %v23555_v51  ;;  %13818 = vmatmul.mubr.msk.f32.gmra.mxu1 %vm148_vm1, %v23556_v52  ;;  %v11894_v51 = vld [vmem:[%s23147_s2 + $0x60] sm:$0xff] }
  0xb4   :  { %13764 = vmatprep.mubr.msk.f32.mxu0 %vm148_vm1, %v23557_v53  ;;  %13820 = vmatprep.mubr.msk.f32.mxu1 %vm148_vm1, %v23558_v54 }
  0xb7   :  { %13765 = vmatmul.mubr.msk.f32.gmra.mxu0 %vm148_vm1, %v23559_v56  ;;  %13821 = vmatmul.mubr.msk.f32.gmra.mxu1 %vm148_vm1, %v15731_v10  ;;  %v11843_v10 = vld [vmem:[%s23146_s1 + $0x70] sm:$0xff] }
  0xb8   :  { %13823 = vmatprep.mubr.msk.f32.mxu1 %vm148_vm1, %v23560_v57  ;;  %13855 = vmatprep.mubr.msk.f32.mxu0 %vm148_vm1, %v16044_v55 }
  0xbb   :  { %13824 = vmatmul.mubr.msk.f32.gmra.mxu1 %vm148_vm1, %v23561_v60  ;;  %13856 = vmatmul.mubr.msk.f32.vlgmr.msra.gmra.mxu0 %vm148_vm1, %v16057_v58  ;;  %v16324_v60 = vld [vmem:[%s23147_s2 + $0x98] sm:$0xf] }
  0xbc   :  { %13826 = vmatprep.mubr.msk.f32.mxu1 %vm148_vm1, %v15754_v21  ;;  %13858 = vmatprep.mubr.msk.f32.mxu0 %vm148_vm1, %v16062_v59  ;;  %v11842_v21 = vld [vmem:[%s23146_s1 + $0x68] sm:$0xff] }
  0xbd   :  { %14008 = vmatpush3.msk.msra.mxu0 %vm293_vm0, %v15828_v17  ;;  %v16211_v17 = vld [vmem:[%s23145_s0 + $0xa2] sm:$0xff] }
  0xbe   :  { %14009 = vmatprep.subr.mxu0 %v11843_v10 }
  0xbf   :  { %13827 = vmatmul.mubr.msk.f32.gmra.mxu1 %vm148_vm1, %v15770_v39  ;;  %13859 = vmatmul.mubr.msk.f32.gmra.mxu0 %vm148_vm1, %v16078_v61 }
  0xc0   :  { %13829 = vmatprep.mubr.msk.f32.mxu1 %vm148_vm1, %v15775_v33  ;;  %13861 = vmatprep.mubr.msk.f32.mxu0 %vm148_vm1, %v16083_v62 }
  0xc1   :  { %14010 = vmatpush3.msra.mxu0 %v11843_v10 }
  0xc2   :  { %14011 = vmatprep.subr.mxu0 %v11842_v21 }
  0xc3   :  { %13830 = vmatmul.mubr.msk.f32.gmra.mxu1 %vm148_vm1, %v15793_v9  ;;  %13862 = vmatmul.mubr.msk.f32.gmra.mxu0 %vm148_vm1, %v16101_v63 }
  0xc4   :  { %13832 = vmatprep.mubr.msk.f32.mxu1 %vm148_vm1, %v15798_v50  ;;  %13864 = vmatprep.mubr.msk.f32.mxu0 %vm148_vm1, %v16106_v0 }
  0xc5   :  { %14012 = vmatpush3.msra.mxu0 %v11842_v21  ;;  %v16339_v21 = vld [vmem:[%s23145_s0 + $0x10a] sm:$0xff] }
  0xc6   :  { %14013 = vmatprep.subr.mxu0 %v11841_v1 }
  0xc7   :  { %13833 = vmatmul.mubr.msk.f32.gmra.mxu1 %vm148_vm1, %v15814_v14  ;;  %13865 = vmatmul.mubr.msk.f32.gmra.mxu0 %vm148_vm1, %v16122_v2 }
  0xc8   :  { %13835 = vmatprep.mubr.msk.f32.mxu1 %vm148_vm1, %v15819_v4  ;;  %13867 = vmatprep.mubr.msk.f32.mxu0 %vm148_vm1, %v16127_v3 }
  0xc9   :  { %14014 = vmatpush3.msra.mxu0 %v11841_v1  ;;  %v16344_v1 = vld [vmem:[%s23145_s0 + $0x112] sm:$0xff] }
  0xca   :  { %14167 = vmatprep.subr.msk.mxu0 %vm293_vm0, %v16136_v8 }
  0xcb   :  { %v13537_v19 = vpop.f32.mrf.mxu0  ;;  %v16154_v22 = vpop.f32.mrf.mxu1  ;;  %13836 = vmatmul.mubr.msk.f32.gmra.mxu1 %vm148_vm1, %v15837_v20  ;;  %13868 = vmatmul.mubr.msk.f32.gmra.mxu0 %vm148_vm1, %v16145_v11 }
  0xcc   :  { %23562 = vst [vmem:[#allocation21_spill] sm:$0xff] %v16154_v22  ;;  %13838 = vmatprep.mubr.msk.f32.mxu1 %vm148_vm1, %v15842_v23  ;;  %13870 = vmatprep.mubr.msk.f32.mxu0 %vm148_vm1, %v16150_v16 }
  0xcd   :  { %v363_v28 = vpop.f32.mrf.mxu0  ;;  %v16169_v33 = vpop.f32.mrf.mxu1 }
  0xce   :  { %23563 = vst [vmem:[#allocation13_spill] sm:$0xff] %v16169_v33 }
  0xcf   :  { %v13540_v39 = vpop.f32.mrf.mxu0  ;;  %v16176_v44 = vpop.f32.mrf.mxu1  ;;  %13839 = vmatmul.mubr.msk.f32.gmra.mxu1 %vm148_vm1, %v15857_v25  ;;  %13871 = vmatmul.mubr.msk.f32.gmra.mxu0 %vm148_vm1, %v16167_v27  ;;  %v16218_v25 = vld [vmem:[%s23145_s0 + $0xaa] sm:$0xff] }
  0xd0   :  { %23564 = vst [vmem:[#allocation14_spill] sm:$0xff] %v16176_v44  ;;  %13841 = vmatprep.mubr.msk.f32.mxu1 %vm148_vm1, %v15862_v6  ;;  %13873 = vmatprep.mubr.msk.f32.mxu0 %vm148_vm1, %v16174_v38  ;;  %v16589_v44 = vld [vmem:[%s23145_s0 + $0x3] sm:$0xff] }
  0xd1   :  { %v373_v9 = vpop.f32.mrf.mxu0  ;;  %v16191_v50 = vpop.f32.mrf.mxu1 }
  0xd2   :  { %23565 = vst [vmem:[#allocation24_spill] sm:$0xff] %v16191_v50  ;;  %v16545_v50 = vld [vmem:[%s23145_s0 + $0x1d2] sm:$0xff] }
  0xd3   :  { %v13543_v14 = vpop.f32.mrf.mxu0  ;;  %v16198_v4 = vpop.f32.mrf.mxu1  ;;  %13842 = vmatmul.mubr.msk.f32.gmra.mxu1 %vm148_vm1, %v15875_v29  ;;  %13874 = vmatmul.mubr.msk.f32.gmra.mxu0 %vm148_vm1, %v16189_v45 }
  0xd4   :  { %23566 = vst [vmem:[#allocation15_spill] sm:$0xff] %v16198_v4  ;;  %13844 = vmatprep.mubr.msk.f32.mxu1 %vm148_vm1, %v15880_v31  ;;  %13876 = vmatprep.mubr.msk.f32.mxu0 %vm148_vm1, %v16196_v12  ;;  %v16233_v31 = vld [vmem:[%s23145_s0 + $0xb2] sm:$0xff] }
  0xd5   :  { %v383_v20 = vpop.f32.mrf.mxu0  ;;  %v16213_v23 = vpop.f32.mrf.mxu1 }
  0xd6   :  { %23567 = vst [vmem:[#allocation16_spill] sm:$0xff] %v16213_v23 }
  0xd7   :  { %v13546_v6 = vpop.f32.mrf.mxu0  ;;  %v16220_v29 = vpop.f32.mrf.mxu1  ;;  %13845 = vmatmul.mubr.msk.f32.gmra.mxu1 %vm148_vm1, %v15893_v34  ;;  %13877 = vmatmul.mubr.msk.f32.gmra.mxu0 %vm148_vm1, %v16211_v17  ;;  %v16240_v34 = vld [vmem:[%s23145_s0 + $0xc2] sm:$0xff] }
  0xd8   :  { %23568 = vst [vmem:[#allocation5_spill] sm:$0xff] %v16220_v29  ;;  %13879 = vmatprep.mubr.msk.f32.mxu0 %vm148_vm1, %v16218_v25  ;;  %13935 = vmatprep.mubr.msk.f32.mxu1 %vm148_vm1, %v16044_v55  ;;  %v16312_v55 = vld [vmem:[%s23145_s0 + $0xf2] sm:$0xff]  ;;  %v16567_v29 = vld [vmem:[%s23145_s0 + $0x1ea] sm:$0xff] }
  0xd9   :  { %v393_v36 = vpop.f32.mrf.mxu0  ;;  %v16235_v26 = vpop.f32.mrf.mxu1 }
  0xda   :  { %23569 = vst [vmem:[#allocation17_spill] sm:$0xff] %v16235_v26  ;;  %v16523_v26 = vld [vmem:[%s23145_s0 + $0x1c2] sm:$0xff] }
  0xdb   :  { %v16245_v18 = vpop.f32.mrf.mxu0  ;;  %v13617_v24 = vpop.f32.mrf.mxu1  ;;  %13880 = vmatmul.mubr.msk.f32.gmra.mxu0 %vm148_vm1, %v16233_v31  ;;  %13936 = vmatmul.mubr.msk.f32.vlgmr.msra.gmra.mxu1 %vm148_vm1, %v16057_v58  ;;  %v16317_v58 = vld [vmem:[%s23145_s0 + $0x102] sm:$0xff] }
  0xdc   :  { %v16251_v13 = vadd.f32 %v13617_v24, %v13537_v19  ;;  %14088 = vmatpush3.msk.msra.mxu1 %vm293_vm0, %v15941_v32  ;;  %13882 = vmatprep.mubr.msk.f32.mxu0 %vm148_vm1, %v16240_v34 }
  0xdd   :  { %v403_v35 = vpop.f32.mrf.mxu0  ;;  %v815_v15 = vpop.f32.mrf.mxu1  ;;  %13938 = vmatprep.mubr.msk.f32.mxu1 %vm148_vm1, %v16062_v59  ;;  %14089 = vmatprep.subr.mxu1 %v11896_v30 }
  0xde   :  { %v16269_v32 = vadd.f32 %v815_v15, %v363_v28  ;;  %14090 = vmatpush3.msra.mxu1 %v11896_v30  ;;  %v16386_v30 = vld [vmem:[%s23145_s0 + $0x132] sm:$0xff] }
  0xdf   :  { %v13552_v5 = vpop.f32.mrf.mxu0  ;;  %v13620_v41 = vpop.f32.mrf.mxu1  ;;  %13883 = vmatmul.mubr.msk.f32.gmra.mxu0 %vm148_vm1, %v16260_v7  ;;  %13939 = vmatmul.mubr.msk.f32.gmra.mxu1 %vm148_vm1, %v16078_v61 }
  0xe0   :  { %v16278_v42 = vadd.f32 %v13620_v41, %v13540_v39  ;;  %13885 = vmatprep.mubr.msk.f32.mxu0 %vm148_vm1, %v16267_v37  ;;  %13941 = vmatprep.mubr.msk.f32.mxu1 %vm148_vm1, %v16083_v62  ;;  %v16364_v39 = vld [vmem:[%s23145_s0 + $0x122] sm:$0xff] }
  0xe1   :  { %v413_v46 = vpop.f32.mrf.mxu0  ;;  %v825_v47 = vpop.f32.mrf.mxu1  ;;  %14091 = vmatprep.subr.mxu1 %v11895_v40 }
  0xe2   :  { %v16294_v49 = vadd.f32 %v825_v47, %v373_v9  ;;  %14092 = vmatpush3.msra.mxu1 %v11895_v40  ;;  %v16413_v47 = vld [vmem:[%s23145_s0 + $0x152] sm:$0xff] }
  0xe3   :  { %v13555_v52 = vpop.f32.mrf.mxu0  ;;  %v13623_v53 = vpop.f32.mrf.mxu1  ;;  %13886 = vmatmul.mubr.msk.f32.gmra.mxu0 %vm148_vm1, %v16287_v43  ;;  %13942 = vmatmul.mubr.msk.f32.gmra.mxu1 %vm148_vm1, %v16101_v63 }
  0xe4   :  { %v16303_v54 = vadd.f32 %v13623_v53, %v13543_v14  ;;  %13888 = vmatprep.mubr.msk.f32.mxu0 %vm148_vm1, %v16292_v48  ;;  %13944 = vmatprep.mubr.msk.f32.mxu1 %vm148_vm1, %v16106_v0  ;;  %v16430_v53 = vld [vmem:[%s23145_s0 + $0x162] sm:$0xff] }
  0xe5   :  { %v423_v56 = vpop.f32.mrf.mxu0  ;;  %v835_v57 = vpop.f32.mrf.mxu1  ;;  %14093 = vmatprep.subr.mxu1 %v11894_v51 }
  0xe6   :  { %v16319_v59 = vadd.f32 %v835_v57, %v383_v20  ;;  %14094 = vmatpush3.msra.mxu1 %v11894_v51 }
  0xe7   :  { %v13558_v10 = vpop.f32.mrf.mxu0  ;;  %v13626_v61 = vpop.f32.mrf.mxu1  ;;  %13889 = vmatmul.mubr.msk.f32.gmra.mxu0 %vm148_vm1, %v16312_v55  ;;  %13945 = vmatmul.mubr.msk.f32.gmra.mxu1 %vm148_vm1, %v16122_v2 }
  0xe8   :  { %v16330_v62 = vadd.f32 %v13626_v61, %v13546_v6  ;;  %13891 = vmatprep.mubr.msk.f32.mxu0 %vm148_vm1, %v16317_v58  ;;  %13947 = vmatprep.mubr.msk.f32.mxu1 %vm148_vm1, %v16127_v3  ;;  %v16435_v61 = vld [vmem:[%s23145_s0 + $0x16a] sm:$0xff] }
  0xe9   :  { %v433_v63 = vpop.f32.mrf.mxu0  ;;  %v845_v0 = vpop.f32.mrf.mxu1  ;;  %14247 = vmatprep.subr.msk.mxu1 %vm293_vm0, %v16324_v60 }
  0xea   :  { %v16348_v2 = vadd.f32 %v845_v0, %v393_v36 }
  0xeb   :  { %v13561_v19 = vpop.f32.mrf.mxu0  ;;  %v13629_v28 = vpop.f32.mrf.mxu1  ;;  %13892 = vmatmul.mubr.msk.f32.gmra.mxu0 %vm148_vm1, %v16339_v21  ;;  %13948 = vmatmul.mubr.msk.f32.gmra.mxu1 %vm148_vm1, %v16145_v11  ;;  %v16369_v11 = vld [vmem:[%s23145_s0 + $0x12a] sm:$0xff] }
  0xec   :  { %v16355_v3 = vadd.f32 %v13629_v28, %v16245_v18  ;;  %13894 = vmatprep.mubr.msk.f32.mxu0 %vm148_vm1, %v16344_v1  ;;  %13950 = vmatprep.mubr.msk.f32.mxu1 %vm148_vm1, %v16150_v16 }
  0xed   :  { %v443_v9 = vpop.f32.mrf.mxu0  ;;  %v855_v14 = vpop.f32.mrf.mxu1 }
  0xee   :  { %v16371_v20 = vadd.f32 %v855_v14, %v403_v35  ;;  %v16391_v35 = vld [vmem:[%s23145_s0 + $0x142] sm:$0xff] }
  0xef   :  { %v13564_v6 = vpop.f32.mrf.mxu0  ;;  %v13632_v36 = vpop.f32.mrf.mxu1  ;;  %13895 = vmatmul.mubr.msk.f32.gmra.mxu0 %vm148_vm1, %v16364_v39  ;;  %13951 = vmatmul.mubr.msk.f32.gmra.mxu1 %vm148_vm1, %v16167_v27 }
  0xf0   :  { %v16377_v16 = vadd.f32 %v13632_v36, %v13552_v5  ;;  %13897 = vmatprep.mubr.msk.f32.mxu0 %vm148_vm1, %v16369_v11  ;;  %13953 = vmatprep.mubr.msk.f32.mxu1 %vm148_vm1, %v16174_v38  ;;  %v16408_v5 = vld [vmem:[%s23145_s0 + $0x14a] sm:$0xff]  ;;  %v16457_v36 = vld [vmem:[%s23145_s0 + $0x182] sm:$0xff] }
  0xf1   :  { %v453_v18 = vpop.f32.mrf.mxu0  ;;  %v865_v24 = vpop.f32.mrf.mxu1 }
  0xf2   :  { %v16393_v27 = vadd.f32 %v865_v24, %v413_v46 }
  0xf3   :  { %v13567_v15 = vpop.f32.mrf.mxu0  ;;  %v13635_v40 = vpop.f32.mrf.mxu1  ;;  %13898 = vmatmul.mubr.msk.f32.gmra.mxu0 %vm148_vm1, %v16386_v30  ;;  %13954 = vmatmul.mubr.msk.f32.gmra.mxu1 %vm148_vm1, %v16189_v45 }
  0xf4   :  { %v16399_v38 = vadd.f32 %v13635_v40, %v13555_v52  ;;  %13900 = vmatprep.mubr.msk.f32.mxu0 %vm148_vm1, %v16391_v35  ;;  %13956 = vmatprep.mubr.msk.f32.mxu1 %vm148_vm1, %v16196_v12 }
  0xf5   :  { %v463_v41 = vpop.f32.mrf.mxu0  ;;  %v875_v46 = vpop.f32.mrf.mxu1 }
  0xf6   :  { %v16415_v45 = vadd.f32 %v875_v46, %v423_v56 }
  0xf7   :  { %v13570_v51 = vpop.f32.mrf.mxu0  ;;  %v13638_v52 = vpop.f32.mrf.mxu1  ;;  %13901 = vmatmul.mubr.msk.f32.gmra.mxu0 %vm148_vm1, %v16408_v5  ;;  %13957 = vmatmul.mubr.msk.f32.gmra.mxu1 %vm148_vm1, %v16211_v17 }
  0xf8   :  { %v16421_v12 = vadd.f32 %v13638_v52, %v13558_v10  ;;  %13903 = vmatprep.mubr.msk.f32.mxu0 %vm148_vm1, %v16413_v47  ;;  %13959 = vmatprep.mubr.msk.f32.mxu1 %vm148_vm1, %v16218_v25  ;;  %v16479_v52 = vld [vmem:[%s23145_s0 + $0x192] sm:$0xff] }
  0xf9   :  { %v473_v56 = vpop.f32.mrf.mxu0  ;;  %v885_v57 = vpop.f32.mrf.mxu1 }
  0xfa   :  { %v16437_v17 = vadd.f32 %v885_v57, %v433_v63  ;;  %v16452_v63 = vld [vmem:[%s23145_s0 + $0x172] sm:$0xff] }
  0xfb   :  { %v13573_v10 = vpop.f32.mrf.mxu0  ;;  %v13641_v0 = vpop.f32.mrf.mxu1  ;;  %13904 = vmatmul.mubr.msk.f32.gmra.mxu0 %vm148_vm1, %v16430_v53  ;;  %13960 = vmatmul.mubr.msk.f32.gmra.mxu1 %vm148_vm1, %v16233_v31 }
  0xfc   :  { %v16443_v25 = vadd.f32 %v13641_v0, %v13561_v19  ;;  %13906 = vmatprep.mubr.msk.f32.mxu0 %vm148_vm1, %v16435_v61  ;;  %13962 = vmatprep.mubr.msk.f32.mxu1 %vm148_vm1, %v16240_v34 }
  0xfd   :  { %v483_v28 = vpop.f32.mrf.mxu0  ;;  %v895_v14 = vpop.f32.mrf.mxu1 }
  0xfe   :  { %v16459_v31 = vadd.f32 %v895_v14, %v443_v9  ;;  %v16474_v9 = vld [vmem:[%s23145_s0 + $0x18a] sm:$0xff] }
  0xff   :  { %v13576_v19 = vpop.f32.mrf.mxu0  ;;  %v13644_v24 = vpop.f32.mrf.mxu1  ;;  %13907 = vmatmul.mubr.msk.f32.gmra.mxu0 %vm148_vm1, %v16452_v63  ;;  %13963 = vmatmul.mubr.msk.f32.gmra.mxu1 %vm148_vm1, %v16260_v7 }
 0x100   :  { %v16465_v34 = vadd.f32 %v13644_v24, %v13564_v6  ;;  %13909 = vmatprep.mubr.msk.f32.mxu0 %vm148_vm1, %v16457_v36  ;;  %13965 = vmatprep.mubr.msk.f32.mxu1 %vm148_vm1, %v16267_v37  ;;  %v16501_v24 = vld [vmem:[%s23145_s0 + $0x1aa] sm:$0xff] }
 0x101   :  { %v493_v40 = vpop.f32.mrf.mxu0  ;;  %v905_v46 = vpop.f32.mrf.mxu1 }
 0x102   :  { %v16481_v7 = vadd.f32 %v905_v46, %v453_v18  ;;  %v16496_v18 = vld [vmem:[%s23145_s0 + $0x1a2] sm:$0xff] }
 0x103   :  { %v13579_v6 = vpop.f32.mrf.mxu0  ;;  %v13647_v57 = vpop.f32.mrf.mxu1  ;;  %13910 = vmatmul.mubr.msk.f32.gmra.mxu0 %vm148_vm1, %v16474_v9  ;;  %13966 = vmatmul.mubr.msk.f32.gmra.mxu1 %vm148_vm1, %v16287_v43 }
 0x104   :  { %23570 = vst [vmem:[#allocation6_spill] sm:$0xff] %v16481_v7  ;;  %v16487_v37 = vadd.f32 %v13647_v57, %v13567_v15  ;;  %13912 = vmatprep.mubr.msk.f32.mxu0 %vm148_vm1, %v16479_v52  ;;  %13968 = vmatprep.mubr.msk.f32.mxu1 %vm148_vm1, %v16292_v48 }
 0x105   :  { %v503_v0 = vpop.f32.mrf.mxu0  ;;  %v915_v14 = vpop.f32.mrf.mxu1 }
 0x106   :  { %23571 = vst [vmem:[#allocation18_spill] sm:$0xff] %v16487_v37  ;;  %v16503_v43 = vadd.f32 %v915_v14, %v463_v41  ;;  %v16518_v41 = vld [vmem:[%s23145_s0 + $0x1b2] sm:$0xff] }
 0x107   :  { %v13582_v15 = vpop.f32.mrf.mxu0  ;;  %v13650_v46 = vpop.f32.mrf.mxu1  ;;  %13913 = vmatmul.mubr.msk.f32.gmra.mxu0 %vm148_vm1, %v16496_v18  ;;  %13969 = vmatmul.mubr.msk.f32.gmra.mxu1 %vm148_vm1, %v16312_v55 }
 0x108   :  { %23572 = vst [vmem:[#allocation7_spill] sm:$0xff] %v16503_v43  ;;  %v16509_v48 = vadd.f32 %v13650_v46, %v13570_v51  ;;  %13915 = vmatprep.mubr.msk.f32.mxu0 %vm148_vm1, %v16501_v24  ;;  %13971 = vmatprep.mubr.msk.f32.mxu1 %vm148_vm1, %v16317_v58 }
 0x109   :  { %v513_v57 = vpop.f32.mrf.mxu0  ;;  %v925_v14 = vpop.f32.mrf.mxu1 }
 0x10a   :  { %23573 = vst [vmem:[#allocation19_spill] sm:$0xff] %v16509_v48  ;;  %v16525_v55 = vadd.f32 %v925_v14, %v473_v56  ;;  %v16540_v56 = vld [vmem:[%s23145_s0 + $0x1ca] sm:$0xff] }
 0x10b   :  { %v13585_v51 = vpop.f32.mrf.mxu0  ;;  %v13653_v46 = vpop.f32.mrf.mxu1  ;;  %13916 = vmatmul.mubr.msk.f32.gmra.mxu0 %vm148_vm1, %v16518_v41  ;;  %13972 = vmatmul.mubr.msk.f32.gmra.mxu1 %vm148_vm1, %v16339_v21 }
 0x10c   :  { %23574 = vst [vmem:[#allocation8_spill] sm:$0xff] %v16525_v55  ;;  %v16531_v58 = vadd.f32 %v13653_v46, %v13573_v10  ;;  %13918 = vmatprep.mubr.msk.f32.mxu0 %vm148_vm1, %v16523_v26  ;;  %13974 = vmatprep.mubr.msk.f32.mxu1 %vm148_vm1, %v16344_v1 }
 0x10d   :  { %v523_v14 = vpop.f32.mrf.mxu0  ;;  %v935_v23 = vpop.f32.mrf.mxu1 }
 0x10e   :  { %23575 = vst [vmem:[#allocation20_spill] sm:$0xff] %v16531_v58  ;;  %v16547_v21 = vadd.f32 %v935_v23, %v483_v28  ;;  %v16562_v23 = vld [vmem:[%s23145_s0 + $0x1e2] sm:$0xff]  ;;  %v16853_v58 = vld [vmem:[%s23145_s0 + $0xcb] sm:$0xff] }
 0x10f   :  { %v13588_v10 = vpop.f32.mrf.mxu0  ;;  %v13656_v46 = vpop.f32.mrf.mxu1  ;;  %13919 = vmatmul.mubr.msk.f32.gmra.mxu0 %vm148_vm1, %v16540_v56  ;;  %13975 = vmatmul.mubr.msk.f32.gmra.mxu1 %vm148_vm1, %v16364_v39 }
 0x110   :  { %23576 = vst [vmem:[#allocation9_spill] sm:$0xff] %v16547_v21  ;;  %v16553_v1 = vadd.f32 %v13656_v46, %v13576_v19  ;;  %13921 = vmatprep.mubr.msk.f32.mxu0 %vm148_vm1, %v16545_v50  ;;  %13977 = vmatprep.mubr.msk.f32.mxu1 %vm148_vm1, %v16369_v11 }
 0x111   :  { %v533_v28 = vpop.f32.mrf.mxu0  ;;  %v945_v33 = vpop.f32.mrf.mxu1 }
 0x112   :  { %23577 = vst [vmem:[#allocation22_spill] sm:$0xff] %v16553_v1  ;;  %v16569_v39 = vadd.f32 %v945_v33, %v493_v40  ;;  %v16584_v33 = vld [vmem:[%s23145_s0 + $0x1f2] sm:$0xff] }
 0x113   :  { %v13591_v19 = vpop.f32.mrf.mxu0  ;;  %v13659_v46 = vpop.f32.mrf.mxu1  ;;  %13922 = vmatmul.mubr.msk.f32.gmra.mxu0 %vm148_vm1, %v16562_v23  ;;  %13978 = vmatmul.mubr.msk.f32.gmra.mxu1 %vm148_vm1, %v16386_v30  ;;  %v12002_v1 = vld [vmem:[%s23147_s2 + $0x90] sm:$0xff] }
 0x114   :  { %23578 = vst [vmem:[#allocation10_spill] sm:$0xff] %v16569_v39  ;;  %v16575_v11 = vadd.f32 %v13659_v46, %v13579_v6  ;;  %13924 = vmatprep.mubr.msk.f32.mxu0 %vm148_vm1, %v16567_v29  ;;  %13980 = vmatprep.mubr.msk.f32.mxu1 %vm148_vm1, %v16391_v35 }
 0x115   :  { %v543_v40 = vpop.f32.mrf.mxu0  ;;  %v955_v4 = vpop.f32.mrf.mxu1 }
 0x116   :  { %23579 = vst [vmem:[#allocation23_spill] sm:$0xff] %v16575_v11  ;;  %v16591_v30 = vadd.f32 %v955_v4, %v503_v0  ;;  %v16606_v4 = vld [vmem:[%s23145_s0 + $0xb] sm:$0xff] }
 0x117   :  { %v13594_v6 = vpop.f32.mrf.mxu0  ;;  %v13662_v46 = vpop.f32.mrf.mxu1  ;;  %13925 = vmatmul.mubr.msk.f32.gmra.mxu0 %vm148_vm1, %v16584_v33  ;;  %13981 = vmatmul.mubr.msk.f32.gmra.mxu1 %vm148_vm1, %v16408_v5 }
 0x118   :  { %23580 = vst [vmem:[#allocation11_spill] sm:$0xff] %v16591_v30  ;;  %v16597_v35 = vadd.f32 %v13662_v46, %v13582_v15  ;;  %13983 = vmatprep.mubr.msk.f32.mxu1 %vm148_vm1, %v16413_v47  ;;  %14015 = vmatprep.mubr.msk.f32.mxu0 %vm148_vm1, %v16589_v44  ;;  %v16611_v30 = vld [vmem:[%s23145_s0 + $0x13] sm:$0xff] }
 0x119   :  { %v553_v0 = vpop.f32.mrf.mxu0  ;;  %v965_v22 = vpop.f32.mrf.mxu1  ;;  %v11949_v47 = vld [vmem:[%s23146_s1 + $0x90] sm:$0xff] }
 0x11a   :  { %23581 = vst [vmem:[#allocation25_spill] sm:$0xff] %v16597_v35  ;;  %v16613_v5 = vadd.f32 %v965_v22, %v513_v57  ;;  %v16633_v22 = vld [vmem:[%s23145_s0 + $0x23] sm:$0xff] }
 0x11b   :  { %v13665_v15 = vpop.f32.mrf.mxu1  ;;  %v16615_v46 = vpop.f32.mrf.mxu0  ;;  %13984 = vmatmul.mubr.msk.f32.gmra.mxu1 %vm148_vm1, %v16430_v53  ;;  %14016 = vmatmul.mubr.msk.f32.vlgmr.msra.gmra.mxu0 %vm148_vm1, %v16606_v4 }
 0x11c   :  { %23582 = vst [vmem:[#allocation12_spill] sm:$0xff] %v16613_v5  ;;  %v16624_v35 = vadd.f32 %v13665_v15, %v13585_v51  ;;  %13986 = vmatprep.mubr.msk.f32.mxu1 %vm148_vm1, %v16435_v61  ;;  %14018 = vmatprep.mubr.msk.f32.mxu0 %vm148_vm1, %v16611_v30  ;;  %v16640_v5 = vld [vmem:[%s23145_s0 + $0x2b] sm:$0xff] }
 0x11d   :  { %v975_v53 = vpop.f32.mrf.mxu1  ;;  %v16635_v57 = vpop.f32.mrf.mxu0  ;;  %14168 = vmatpush3.msk.msra.mxu0 %vm293_vm0, %v16136_v8  ;;  %v16664_v8 = vld [vmem:[%s23145_s0 + $0x33] sm:$0xff] }
 0x11e   :  { %23583 = vst [vmem:[#allocation26_spill] sm:$0xff] %v16624_v35  ;;  %v16644_v61 = vadd.f32 %v975_v53, %v523_v14  ;;  %14169 = vmatprep.subr.mxu0 %v11949_v47  ;;  %v11948_v35 = vld [vmem:[%s23146_s1 + $0x88] sm:$0xff] }
 0x11f   :  { %v13668_v51 = vpop.f32.mrf.mxu1  ;;  %v16646_v15 = vpop.f32.mrf.mxu0  ;;  %13987 = vmatmul.mubr.msk.f32.gmra.mxu1 %vm148_vm1, %v16452_v63  ;;  %14019 = vmatmul.mubr.msk.f32.gmra.mxu0 %vm148_vm1, %v16633_v22  ;;  %v16671_v53 = vld [vmem:[%s23145_s0 + $0x43] sm:$0xff] }
 0x120   :  { %23584 = vst [vmem:[#allocation27_spill] sm:$0xff] %v16644_v61  ;;  %v16655_v11 = vadd.f32 %v13668_v51, %v13588_v10  ;;  %13989 = vmatprep.mubr.msk.f32.mxu1 %vm148_vm1, %v16457_v36  ;;  %14021 = vmatprep.mubr.msk.f32.mxu0 %vm148_vm1, %v16640_v5  ;;  %v11947_v61 = vld [vmem:[%s23146_s1 + $0x80] sm:$0xff] }
 0x121   :  { %v985_v63 = vpop.f32.mrf.mxu1  ;;  %v16666_v14 = vpop.f32.mrf.mxu0  ;;  %14170 = vmatpush3.msra.mxu0 %v11949_v47 }
 0x122   :  { %23585 = vst [vmem:[#allocation28_spill] sm:$0xff] %v16655_v11  ;;  %v16673_v10 = vadd.f32 %v985_v63, %v533_v28  ;;  %14171 = vmatprep.subr.mxu0 %v11948_v35  ;;  %v16693_v28 = vld [vmem:[%s23145_s0 + $0x4b] sm:$0xff]  ;;  %v16700_v63 = vld [vmem:[%s23145_s0 + $0x53] sm:$0xff] }
 0x123   :  { %v13671_v36 = vpop.f32.mrf.mxu1  ;;  %v16675_v51 = vpop.f32.mrf.mxu0  ;;  %13990 = vmatmul.mubr.msk.f32.gmra.mxu1 %vm148_vm1, %v16474_v9  ;;  %14022 = vmatmul.mubr.msk.f32.gmra.mxu0 %vm148_vm1, %v16664_v8 }
 0x124   :  { %23586 = vst [vmem:[#allocation29_spill] sm:$0xff] %v16673_v10  ;;  %v16684_v11 = vadd.f32 %v13671_v36, %v13591_v19  ;;  %13992 = vmatprep.mubr.msk.f32.mxu1 %vm148_vm1, %v16479_v52  ;;  %14024 = vmatprep.mubr.msk.f32.mxu0 %vm148_vm1, %v16671_v53 }
 0x125   :  { %v995_v9 = vpop.f32.mrf.mxu1  ;;  %v16695_v47 = vpop.f32.mrf.mxu0  ;;  %14172 = vmatpush3.msra.mxu0 %v11948_v35 }
 0x126   :  { %23587 = vst [vmem:[#allocation30_spill] sm:$0xff] %v16684_v11  ;;  %v16702_v19 = vadd.f32 %v995_v9, %v543_v40  ;;  %14173 = vmatprep.subr.mxu0 %v11947_v61  ;;  %v16719_v40 = vld [vmem:[%s23145_s0 + $0x63] sm:$0xff] }
 0x127   :  { %v13674_v52 = vpop.f32.mrf.mxu1  ;;  %v16704_v36 = vpop.f32.mrf.mxu0  ;;  %13993 = vmatmul.mubr.msk.f32.gmra.mxu1 %vm148_vm1, %v16496_v18  ;;  %14025 = vmatmul.mubr.msk.f32.gmra.mxu0 %vm148_vm1, %v16693_v28  ;;  %v16726_v18 = vld [vmem:[%s23145_s0 + $0x6b] sm:$0xff] }
 0x128   :  { %23588 = vst [vmem:[#allocation31_spill] sm:$0xff] %v16702_v19  ;;  %v16710_v10 = vadd.f32 %v13674_v52, %v13594_v6  ;;  %13995 = vmatprep.mubr.msk.f32.mxu1 %vm148_vm1, %v16501_v24  ;;  %14027 = vmatprep.mubr.msk.f32.mxu0 %vm148_vm1, %v16700_v63  ;;  %v16771_v19 = vld [vmem:[%s23145_s0 + $0x8b] sm:$0xff] }
 0x129   :  { %v1005_v35 = vpop.f32.mrf.mxu1  ;;  %v16721_v9 = vpop.f32.mrf.mxu0  ;;  %14174 = vmatpush3.msra.mxu0 %v11947_v61 }
 0x12a   :  { %23589 = vst [vmem:[#allocation32_spill] sm:$0xff] %v16710_v10  ;;  %v16728_v6 = vadd.f32 %v1005_v35, %v553_v0  ;;  %v16745_v0 = vld [vmem:[%s23145_s0 + $0x73] sm:$0xff] }
 0x12b   :  { %v16730_v24 = vpop.f32.mrf.mxu1  ;;  %v16732_v52 = vpop.f32.mrf.mxu0  ;;  %13996 = vmatmul.mubr.msk.f32.gmra.mxu1 %vm148_vm1, %v16518_v41  ;;  %14028 = vmatmul.mubr.msk.f32.gmra.mxu0 %vm148_vm1, %v16719_v40  ;;  %v16754_v41 = vld [vmem:[%s23145_s0 + $0x83] sm:$0xff] }
 0x12c   :  { %23590 = vst [vmem:[#allocation33_spill] sm:$0xff] %v16728_v6  ;;  %23591 = vst [vmem:[#allocation34_spill] sm:$0xff] %v16730_v24  ;;  %13998 = vmatprep.mubr.msk.f32.mxu1 %vm148_vm1, %v16523_v26  ;;  %14030 = vmatprep.mubr.msk.f32.mxu0 %vm148_vm1, %v16726_v18 }
 0x12d   :  { %v16747_v61 = vpop.f32.mrf.mxu1  ;;  %v16749_v35 = vpop.f32.mrf.mxu0 }
 0x12e   :  { %23592 = vst [vmem:[#allocation35_spill] sm:$0xff] %v16747_v61 }
 0x12f   :  { %v16756_v6 = vpop.f32.mrf.mxu1  ;;  %v16758_v26 = vpop.f32.mrf.mxu0  ;;  %13999 = vmatmul.mubr.msk.f32.gmra.mxu1 %vm148_vm1, %v16540_v56  ;;  %14031 = vmatmul.mubr.msk.f32.gmra.mxu0 %vm148_vm1, %v16745_v0  ;;  %v16780_v56 = vld [vmem:[%s23145_s0 + $0x93] sm:$0xff] }
 0x130   :  { %23593 = vst [vmem:[#allocation36_spill] sm:$0xff] %v16756_v6  ;;  %14001 = vmatprep.mubr.msk.f32.mxu1 %vm148_vm1, %v16545_v50  ;;  %14033 = vmatprep.mubr.msk.f32.mxu0 %vm148_vm1, %v16754_v41 }
 0x131   :  { %v16773_v61 = vpop.f32.mrf.mxu1  ;;  %v16775_v6 = vpop.f32.mrf.mxu0 }
 0x132   :  { %23594 = vst [vmem:[#allocation37_spill] sm:$0xff] %v16773_v61  ;;  %v16797_v61 = vld [vmem:[%s23145_s0 + $0xa3] sm:$0xff] }
 0x133   :  { %v16782_v24 = vpop.f32.mrf.mxu1  ;;  %v16784_v50 = vpop.f32.mrf.mxu0  ;;  %14002 = vmatmul.mubr.msk.f32.gmra.mxu1 %vm148_vm1, %v16562_v23  ;;  %14034 = vmatmul.mubr.msk.f32.gmra.mxu0 %vm148_vm1, %v16771_v19  ;;  %v16806_v23 = vld [vmem:[%s23145_s0 + $0xab] sm:$0xff] }
 0x134   :  { %23595 = vst [vmem:[#allocation38_spill] sm:$0xff] %v16782_v24  ;;  %14004 = vmatprep.mubr.msk.f32.mxu1 %vm148_vm1, %v16567_v29  ;;  %14036 = vmatprep.mubr.msk.f32.mxu0 %vm148_vm1, %v16780_v56 }
 0x135   :  { %v16799_v24 = vpop.f32.mrf.mxu1  ;;  %v16801_v10 = vpop.f32.mrf.mxu0 }
 0x136   :  { %23596 = vst [vmem:[#allocation39_spill] sm:$0xff] %v16799_v24  ;;  %v16823_v24 = vld [vmem:[%s23145_s0 + $0xb3] sm:$0xff] }
 0x137   :  { %v16808_v11 = vpop.f32.mrf.mxu1  ;;  %v16810_v29 = vpop.f32.mrf.mxu0  ;;  %14005 = vmatmul.mubr.msk.f32.gmra.mxu1 %vm148_vm1, %v16584_v33  ;;  %14037 = vmatmul.mubr.msk.f32.gmra.mxu0 %vm148_vm1, %v16797_v61  ;;  %v16832_v33 = vld [vmem:[%s23145_s0 + $0xc3] sm:$0xff] }
 0x138   :  { %23597 = vst [vmem:[#allocation40_spill] sm:$0xff] %v16808_v11  ;;  %14039 = vmatprep.mubr.msk.f32.mxu0 %vm148_vm1, %v16806_v23  ;;  %14095 = vmatprep.mubr.msk.f32.mxu1 %vm148_vm1, %v16589_v44 }
 0x139   :  { %v16825_v11 = vpop.f32.mrf.mxu1  ;;  %v16827_v39 = vpop.f32.mrf.mxu0 }
 0x13a   :  { %23598 = vst [vmem:[#allocation41_spill] sm:$0xff] %v16825_v11 }
 0x13b   :  { %v16837_v21 = vpop.f32.mrf.mxu0  ;;  %v13777_v44 = vpop.f32.mrf.mxu1  ;;  %14040 = vmatmul.mubr.msk.f32.gmra.mxu0 %vm148_vm1, %v16823_v24  ;;  %14096 = vmatmul.mubr.msk.f32.vlgmr.msra.gmra.mxu1 %vm148_vm1, %v16606_v4  ;;  %v16862_v4 = vld [vmem:[%s23145_s0 + $0xd3] sm:$0xff] }
 0x13c   :  { %v16844_v11 = vadd.f32 %v13777_v44, %v16615_v46  ;;  %14248 = vmatpush3.msk.msra.mxu1 %vm293_vm0, %v16324_v60  ;;  %14042 = vmatprep.mubr.msk.f32.mxu0 %vm148_vm1, %v16832_v33  ;;  %v12001_v46 = vld [vmem:[%s23147_s2 + $0x88] sm:$0xff] }
 0x13d   :  { %v16855_v55 = vpop.f32.mrf.mxu0  ;;  %v1436_v48 = vpop.f32.mrf.mxu1  ;;  %14098 = vmatprep.mubr.msk.f32.mxu1 %vm148_vm1, %v16611_v30  ;;  %14249 = vmatprep.subr.mxu1 %v12002_v1 }
 0x13e   :  { %v16865_v60 = vadd.f32 %v1436_v48, %v16635_v57  ;;  %14250 = vmatpush3.msra.mxu1 %v12002_v1  ;;  %v16886_v48 = vld [vmem:[%s23145_s0 + $0xe3] sm:$0xff] }
 0x13f   :  { %v16870_v44 = vpop.f32.mrf.mxu0  ;;  %v13780_v43 = vpop.f32.mrf.mxu1  ;;  %14043 = vmatmul.mubr.msk.f32.gmra.mxu0 %vm148_vm1, %v16853_v58  ;;  %14099 = vmatmul.mubr.msk.f32.gmra.mxu1 %vm148_vm1, %v16633_v22  ;;  %v16893_v22 = vld [vmem:[%s23145_s0 + $0xeb] sm:$0xff] }
 0x140   :  { %v16877_v30 = vadd.f32 %v13780_v43, %v16646_v15  ;;  %14045 = vmatprep.mubr.msk.f32.mxu0 %vm148_vm1, %v16862_v4  ;;  %14101 = vmatprep.mubr.msk.f32.mxu1 %vm148_vm1, %v16640_v5  ;;  %v12000_v5 = vld [vmem:[%s23147_s2 + $0x80] sm:$0xff] }
 0x141   :  { %v16888_v1 = vpop.f32.mrf.mxu0  ;;  %v1446_v57 = vpop.f32.mrf.mxu1  ;;  %14251 = vmatprep.subr.mxu1 %v12001_v46 }
 0x142   :  { %v16896_v43 = vadd.f32 %v1446_v57, %v16666_v14  ;;  %14252 = vmatpush3.msra.mxu1 %v12001_v46  ;;  %v16917_v14 = vld [vmem:[%s23145_s0 + $0xf3] sm:$0xff] }
 0x143   :  { %v16901_v15 = vpop.f32.mrf.mxu0  ;;  %v13783_v37 = vpop.f32.mrf.mxu1  ;;  %14046 = vmatmul.mubr.msk.f32.gmra.mxu0 %vm148_vm1, %v16886_v48  ;;  %14102 = vmatmul.mubr.msk.f32.gmra.mxu1 %vm148_vm1, %v16664_v8  ;;  %v16924_v8 = vld [vmem:[%s23145_s0 + $0x103] sm:$0xff] }
 0x144   :  { %v16908_v7 = vadd.f32 %v13783_v37, %v16675_v51  ;;  %14048 = vmatprep.mubr.msk.f32.mxu0 %vm148_vm1, %v16893_v22  ;;  %14104 = vmatprep.mubr.msk.f32.mxu1 %vm148_vm1, %v16671_v53 }
 0x145   :  { %v16919_v46 = vpop.f32.mrf.mxu0  ;;  %v1456_v57 = vpop.f32.mrf.mxu1  ;;  %14253 = vmatprep.subr.mxu1 %v12000_v5 }
 0x146   :  { %23599 = vst [vmem:[#allocation42_spill] sm:$0xff] %v16908_v7  ;;  %v16927_v37 = vadd.f32 %v1456_v57, %v16695_v47  ;;  %14254 = vmatpush3.msra.mxu1 %v12000_v5  ;;  %v16945_v47 = vld [vmem:[%s23145_s0 + $0x10b] sm:$0xff] }
 0x147   :  { %v16929_v51 = vpop.f32.mrf.mxu0  ;;  %v13786_v53 = vpop.f32.mrf.mxu1  ;;  %14049 = vmatmul.mubr.msk.f32.gmra.mxu0 %vm148_vm1, %v16917_v14  ;;  %14105 = vmatmul.mubr.msk.f32.gmra.mxu1 %vm148_vm1, %v16693_v28  ;;  %v16952_v28 = vld [vmem:[%s23145_s0 + $0x113] sm:$0xff] }
 0x148   :  { %23600 = vst [vmem:[#allocation43_spill] sm:$0xff] %v16927_v37  ;;  %v16936_v7 = vadd.f32 %v13786_v53, %v16704_v36  ;;  %14051 = vmatprep.mubr.msk.f32.mxu0 %vm148_vm1, %v16924_v8  ;;  %14107 = vmatprep.mubr.msk.f32.mxu1 %vm148_vm1, %v16700_v63 }
 0x149   :  { %v16947_v5 = vpop.f32.mrf.mxu0  ;;  %v1466_v57 = vpop.f32.mrf.mxu1 }
 0x14a   :  { %23601 = vst [vmem:[#allocation44_spill] sm:$0xff] %v16936_v7  ;;  %v16955_v36 = vadd.f32 %v1466_v57, %v16721_v9  ;;  %v16973_v9 = vld [vmem:[%s23145_s0 + $0x123] sm:$0xff] }
 0x14b   :  { %v16957_v53 = vpop.f32.mrf.mxu0  ;;  %v13789_v7 = vpop.f32.mrf.mxu1  ;;  %14052 = vmatmul.mubr.msk.f32.gmra.mxu0 %vm148_vm1, %v16945_v47  ;;  %14108 = vmatmul.mubr.msk.f32.gmra.mxu1 %vm148_vm1, %v16719_v40  ;;  %v16980_v40 = vld [vmem:[%s23145_s0 + $0x12b] sm:$0xff] }
 0x14c   :  { %23602 = vst [vmem:[#allocation45_spill] sm:$0xff] %v16955_v36  ;;  %v16964_v63 = vadd.f32 %v13789_v7, %v16732_v52  ;;  %14054 = vmatprep.mubr.msk.f32.mxu0 %vm148_vm1, %v16952_v28  ;;  %14110 = vmatprep.mubr.msk.f32.mxu1 %vm148_vm1, %v16726_v18 }
 0x14d   :  { %v16975_v57 = vpop.f32.mrf.mxu0  ;;  %v1476_v36 = vpop.f32.mrf.mxu1 }
 0x14e   :  { %23603 = vst [vmem:[#allocation46_spill] sm:$0xff] %v16964_v63  ;;  %v16983_v7 = vadd.f32 %v1476_v36, %v16749_v35  ;;  %v17001_v35 = vld [vmem:[%s23145_s0 + $0x133] sm:$0xff] }
 0x14f   :  { %v16985_v52 = vpop.f32.mrf.mxu0  ;;  %v13792_v63 = vpop.f32.mrf.mxu1  ;;  %14055 = vmatmul.mubr.msk.f32.gmra.mxu0 %vm148_vm1, %v16973_v9  ;;  %14111 = vmatmul.mubr.msk.f32.gmra.mxu1 %vm148_vm1, %v16745_v0  ;;  %v17008_v0 = vld [vmem:[%s23145_s0 + $0x143] sm:$0xff] }
 0x150   :  { %23604 = vst [vmem:[#allocation47_spill] sm:$0xff] %v16983_v7  ;;  %v16992_v18 = vadd.f32 %v13792_v63, %v16758_v26  ;;  %14057 = vmatprep.mubr.msk.f32.mxu0 %vm148_vm1, %v16980_v40  ;;  %14113 = vmatprep.mubr.msk.f32.mxu1 %vm148_vm1, %v16754_v41 }
 0x151   :  { %v17003_v36 = vpop.f32.mrf.mxu0  ;;  %v1486_v7 = vpop.f32.mrf.mxu1 }
 0x152   :  { %23605 = vst [vmem:[#allocation48_spill] sm:$0xff] %v16992_v18  ;;  %v17011_v26 = vadd.f32 %v1486_v7, %v16775_v6  ;;  %v17029_v6 = vld [vmem:[%s23145_s0 + $0x14b] sm:$0xff] }
 0x153   :  { %v17013_v63 = vpop.f32.mrf.mxu0  ;;  %v13795_v18 = vpop.f32.mrf.mxu1  ;;  %14058 = vmatmul.mubr.msk.f32.gmra.mxu0 %vm148_vm1, %v17001_v35  ;;  %14114 = vmatmul.mubr.msk.f32.gmra.mxu1 %vm148_vm1, %v16771_v19  ;;  %v17036_v19 = vld [vmem:[%s23145_s0 + $0x153] sm:$0xff] }
 0x154   :  { %23606 = vst [vmem:[#allocation49_spill] sm:$0xff] %v17011_v26  ;;  %v17020_v41 = vadd.f32 %v13795_v18, %v16784_v50  ;;  %14060 = vmatprep.mubr.msk.f32.mxu0 %vm148_vm1, %v17008_v0  ;;  %14116 = vmatprep.mubr.msk.f32.mxu1 %vm148_vm1, %v16780_v56 }
 0x155   :  { %v17031_v7 = vpop.f32.mrf.mxu0  ;;  %v1496_v26 = vpop.f32.mrf.mxu1 }
 0x156   :  { %23607 = vst [vmem:[#allocation50_spill] sm:$0xff] %v17020_v41  ;;  %v17039_v50 = vadd.f32 %v1496_v26, %v16801_v10  ;;  %v17057_v10 = vld [vmem:[%s23145_s0 + $0x163] sm:$0xff] }
 0x157   :  { %v17041_v18 = vpop.f32.mrf.mxu0  ;;  %v13798_v41 = vpop.f32.mrf.mxu1  ;;  %14061 = vmatmul.mubr.msk.f32.gmra.mxu0 %vm148_vm1, %v17029_v6  ;;  %14117 = vmatmul.mubr.msk.f32.gmra.mxu1 %vm148_vm1, %v16797_v61  ;;  %v17064_v61 = vld [vmem:[%s23145_s0 + $0x16b] sm:$0xff] }
 0x158   :  { %23608 = vst [vmem:[#allocation51_spill] sm:$0xff] %v17039_v50  ;;  %v17048_v56 = vadd.f32 %v13798_v41, %v16810_v29  ;;  %14063 = vmatprep.mubr.msk.f32.mxu0 %vm148_vm1, %v17036_v19  ;;  %14119 = vmatprep.mubr.msk.f32.mxu1 %vm148_vm1, %v16806_v23 }
 0x159   :  { %v17059_v26 = vpop.f32.mrf.mxu0  ;;  %v1506_v50 = vpop.f32.mrf.mxu1 }
 0x15a   :  { %23609 = vst [vmem:[#allocation52_spill] sm:$0xff] %v17048_v56  ;;  %v17067_v29 = vadd.f32 %v1506_v50, %v16827_v39  ;;  %v17085_v39 = vld [vmem:[%s23145_s0 + $0x173] sm:$0xff] }
 0x15b   :  { %v17069_v41 = vpop.f32.mrf.mxu0  ;;  %v13801_v56 = vpop.f32.mrf.mxu1  ;;  %14064 = vmatmul.mubr.msk.f32.gmra.mxu0 %vm148_vm1, %v17057_v10  ;;  %14120 = vmatmul.mubr.msk.f32.gmra.mxu1 %vm148_vm1, %v16823_v24  ;;  %v17092_v24 = vld [vmem:[%s23145_s0 + $0x183] sm:$0xff] }
 0x15c   :  { %23610 = vst [vmem:[#allocation53_spill] sm:$0xff] %v17067_v29  ;;  %v17076_v23 = vadd.f32 %v13801_v56, %v16837_v21  ;;  %14066 = vmatprep.mubr.msk.f32.mxu0 %vm148_vm1, %v17064_v61  ;;  %14122 = vmatprep.mubr.msk.f32.mxu1 %vm148_vm1, %v16832_v33 }
 0x15d   :  { %v17087_v50 = vpop.f32.mrf.mxu0  ;;  %v1516_v29 = vpop.f32.mrf.mxu1 }
 0x15e   :  { %23611 = vst [vmem:[#allocation54_spill] sm:$0xff] %v17076_v23  ;;  %v17095_v21 = vadd.f32 %v1516_v29, %v16855_v55  ;;  %v17113_v55 = vld [vmem:[%s23145_s0 + $0x18b] sm:$0xff] }
 0x15f   :  { %v17097_v56 = vpop.f32.mrf.mxu0  ;;  %v13804_v23 = vpop.f32.mrf.mxu1  ;;  %14067 = vmatmul.mubr.msk.f32.gmra.mxu0 %vm148_vm1, %v17085_v39  ;;  %14123 = vmatmul.mubr.msk.f32.gmra.mxu1 %vm148_vm1, %v16853_v58  ;;  %v17120_v58 = vld [vmem:[%s23145_s0 + $0x193] sm:$0xff] }
 0x160   :  { %23612 = vst [vmem:[#allocation55_spill] sm:$0xff] %v17095_v21  ;;  %v17104_v33 = vadd.f32 %v13804_v23, %v16870_v44  ;;  %14069 = vmatprep.mubr.msk.f32.mxu0 %vm148_vm1, %v17092_v24  ;;  %14125 = vmatprep.mubr.msk.f32.mxu1 %vm148_vm1, %v16862_v4 }
 0x161   :  { %v17115_v29 = vpop.f32.mrf.mxu0  ;;  %v1526_v21 = vpop.f32.mrf.mxu1 }
 0x162   :  { %23613 = vst [vmem:[#allocation56_spill] sm:$0xff] %v17104_v33  ;;  %v17123_v44 = vadd.f32 %v1526_v21, %v16888_v1  ;;  %v17141_v1 = vld [vmem:[%s23145_s0 + $0x1a3] sm:$0xff] }
 0x163   :  { %v17125_v23 = vpop.f32.mrf.mxu0  ;;  %v13807_v33 = vpop.f32.mrf.mxu1  ;;  %14070 = vmatmul.mubr.msk.f32.gmra.mxu0 %vm148_vm1, %v17113_v55  ;;  %14126 = vmatmul.mubr.msk.f32.gmra.mxu1 %vm148_vm1, %v16886_v48  ;;  %v17148_v48 = vld [vmem:[%s23145_s0 + $0x1ab] sm:$0xff] }
 0x164   :  { %23614 = vst [vmem:[#allocation57_spill] sm:$0xff] %v17123_v44  ;;  %v17132_v4 = vadd.f32 %v13807_v33, %v16901_v15  ;;  %14072 = vmatprep.mubr.msk.f32.mxu0 %vm148_vm1, %v17120_v58  ;;  %14128 = vmatprep.mubr.msk.f32.mxu1 %vm148_vm1, %v16893_v22 }
 0x165   :  { %v17143_v21 = vpop.f32.mrf.mxu0  ;;  %v1536_v44 = vpop.f32.mrf.mxu1 }
 0x166   :  { %23615 = vst [vmem:[#allocation58_spill] sm:$0xff] %v17132_v4  ;;  %v17151_v15 = vadd.f32 %v1536_v44, %v16919_v46  ;;  %v17169_v46 = vld [vmem:[%s23145_s0 + $0x1b3] sm:$0xff] }
 0x167   :  { %v17153_v33 = vpop.f32.mrf.mxu0  ;;  %v13810_v4 = vpop.f32.mrf.mxu1  ;;  %14073 = vmatmul.mubr.msk.f32.gmra.mxu0 %vm148_vm1, %v17141_v1  ;;  %14129 = vmatmul.mubr.msk.f32.gmra.mxu1 %vm148_vm1, %v16917_v14  ;;  %v17176_v14 = vld [vmem:[%s23145_s0 + $0x1c3] sm:$0xff] }
 0x168   :  { %23616 = vst [vmem:[#allocation59_spill] sm:$0xff] %v17151_v15  ;;  %v17160_v22 = vadd.f32 %v13810_v4, %v16929_v51  ;;  %14075 = vmatprep.mubr.msk.f32.mxu0 %vm148_vm1, %v17148_v48  ;;  %14131 = vmatprep.mubr.msk.f32.mxu1 %vm148_vm1, %v16924_v8 }
 0x169   :  { %v17171_v44 = vpop.f32.mrf.mxu0  ;;  %v1546_v15 = vpop.f32.mrf.mxu1 }
 0x16a   :  { %23617 = vst [vmem:[#allocation60_spill] sm:$0xff] %v17160_v22  ;;  %v17179_v51 = vadd.f32 %v1546_v15, %v16947_v5  ;;  %v17197_v5 = vld [vmem:[%s23145_s0 + $0x1cb] sm:$0xff] }
 0x16b   :  { %v17181_v4 = vpop.f32.mrf.mxu0  ;;  %v13813_v22 = vpop.f32.mrf.mxu1  ;;  %14076 = vmatmul.mubr.msk.f32.gmra.mxu0 %vm148_vm1, %v17169_v46  ;;  %14132 = vmatmul.mubr.msk.f32.gmra.mxu1 %vm148_vm1, %v16945_v47  ;;  %v17204_v47 = vld [vmem:[%s23145_s0 + $0x1d3] sm:$0xff] }
 0x16c   :  { %23618 = vst [vmem:[#allocation61_spill] sm:$0xff] %v17179_v51  ;;  %v17188_v8 = vadd.f32 %v13813_v22, %v16957_v53  ;;  %14078 = vmatprep.mubr.msk.f32.mxu0 %vm148_vm1, %v17176_v14  ;;  %14134 = vmatprep.mubr.msk.f32.mxu1 %vm148_vm1, %v16952_v28 }
 0x16d   :  { %v17199_v15 = vpop.f32.mrf.mxu0  ;;  %v1556_v51 = vpop.f32.mrf.mxu1 }
 0x16e   :  { %23619 = vst [vmem:[#allocation62_spill] sm:$0xff] %v17188_v8  ;;  %v17207_v53 = vadd.f32 %v1556_v51, %v16975_v57  ;;  %v17225_v57 = vld [vmem:[%s23145_s0 + $0x1e3] sm:$0xff] }
 0x16f   :  { %v17209_v22 = vpop.f32.mrf.mxu0  ;;  %v13816_v8 = vpop.f32.mrf.mxu1  ;;  %14079 = vmatmul.mubr.msk.f32.gmra.mxu0 %vm148_vm1, %v17197_v5  ;;  %14135 = vmatmul.mubr.msk.f32.gmra.mxu1 %vm148_vm1, %v16973_v9  ;;  %v17232_v9 = vld [vmem:[%s23145_s0 + $0x1eb] sm:$0xff] }
 0x170   :  { %23620 = vst [vmem:[#allocation63_spill] sm:$0xff] %v17207_v53  ;;  %v17216_v28 = vadd.f32 %v13816_v8, %v16985_v52  ;;  %14081 = vmatprep.mubr.msk.f32.mxu0 %vm148_vm1, %v17204_v47  ;;  %14137 = vmatprep.mubr.msk.f32.mxu1 %vm148_vm1, %v16980_v40 }
 0x171   :  { %v17227_v51 = vpop.f32.mrf.mxu0  ;;  %v1566_v53 = vpop.f32.mrf.mxu1 }
 0x172   :  { %23621 = vst [vmem:[#allocation64_spill] sm:$0xff] %v17216_v28  ;;  %v17235_v52 = vadd.f32 %v1566_v53, %v17003_v36  ;;  %v17253_v36 = vld [vmem:[%s23145_s0 + $0x1f3] sm:$0xff] }
 0x173   :  { %v17237_v8 = vpop.f32.mrf.mxu0  ;;  %v13819_v28 = vpop.f32.mrf.mxu1  ;;  %14082 = vmatmul.mubr.msk.f32.gmra.mxu0 %vm148_vm1, %v17225_v57  ;;  %14138 = vmatmul.mubr.msk.f32.gmra.mxu1 %vm148_vm1, %v17001_v35  ;;  %v17260_v35 = vld [vmem:[%s23145_s0 + $0x4] sm:$0xff] }
 0x174   :  { %23622 = vst [vmem:[#allocation65_spill] sm:$0xff] %v17235_v52  ;;  %v17244_v40 = vadd.f32 %v13819_v28, %v17013_v63  ;;  %14084 = vmatprep.mubr.msk.f32.mxu0 %vm148_vm1, %v17232_v9  ;;  %14140 = vmatprep.mubr.msk.f32.mxu1 %vm148_vm1, %v17008_v0 }
 0x175   :  { %v17255_v53 = vpop.f32.mrf.mxu0  ;;  %v1576_v52 = vpop.f32.mrf.mxu1 }
 0x176   :  { %23623 = vst [vmem:[#allocation66_spill] sm:$0xff] %v17244_v40  ;;  %v17263_v63 = vadd.f32 %v1576_v52, %v17031_v7  ;;  %v17281_v7 = vld [vmem:[%s23145_s0 + $0xc] sm:$0xff] }
 0x177   :  { %v17265_v28 = vpop.f32.mrf.mxu0  ;;  %v13822_v40 = vpop.f32.mrf.mxu1  ;;  %14085 = vmatmul.mubr.msk.f32.gmra.mxu0 %vm148_vm1, %v17253_v36  ;;  %14141 = vmatmul.mubr.msk.f32.gmra.mxu1 %vm148_vm1, %v17029_v6  ;;  %v17288_v6 = vld [vmem:[%s23145_s0 + $0x14] sm:$0xff] }
 0x178   :  { %23624 = vst [vmem:[#allocation67_spill] sm:$0xff] %v17263_v63  ;;  %v17272_v0 = vadd.f32 %v13822_v40, %v17041_v18  ;;  %14143 = vmatprep.mubr.msk.f32.mxu1 %vm148_vm1, %v17036_v19  ;;  %14175 = vmatprep.mubr.msk.f32.mxu0 %vm148_vm1, %v17260_v35 }
 0x179   :  { %v17283_v52 = vpop.f32.mrf.mxu0  ;;  %v1586_v63 = vpop.f32.mrf.mxu1 }
 0x17a   :  { %23625 = vst [vmem:[#allocation68_spill] sm:$0xff] %v17272_v0  ;;  %v17291_v18 = vadd.f32 %v1586_v63, %v17059_v26  ;;  %v17310_v26 = vld [vmem:[%s23145_s0 + $0x24] sm:$0xff] }
 0x17b   :  { %v13825_v19 = vpop.f32.mrf.mxu1  ;;  %v13857_v40 = vpop.f32.mrf.mxu0  ;;  %14144 = vmatmul.mubr.msk.f32.gmra.mxu1 %vm148_vm1, %v17057_v10  ;;  %14176 = vmatmul.mubr.msk.f32.vlgmr.msra.gmra.mxu0 %vm148_vm1, %v17281_v7 }
 0x17c   :  { %v17298_v0 = vadd.f32 %v13825_v19, %v17069_v41  ;;  %v17301_v37 = vadd.f32 %v13857_v40, %v16251_v13  ;;  %14146 = vmatprep.mubr.msk.f32.mxu1 %vm148_vm1, %v17064_v61  ;;  %14178 = vmatprep.mubr.msk.f32.mxu0 %vm148_vm1, %v17288_v6  ;;  %v17315_v41 = vld [vmem:[%s23145_s0 + $0x2c] sm:$0xff] }
 0x17d   :  { %v1596_v10 = vpop.f32.mrf.mxu1  ;;  %v1941_v63 = vpop.f32.mrf.mxu0 }
 0x17e   :  { %23626 = vst [vmem:[#allocation69_spill] sm:$0xff] %v17298_v0  ;;  %23627 = vst [vmem:[#allocation70_spill] sm:$0xff] %v17301_v37  ;;  %v17318_v13 = vadd.f32 %v1596_v10, %v17087_v50  ;;  %v17321_v61 = vadd.f32 %v1941_v63, %v16269_v32  ;;  %v17340_v32 = vld [vmem:[%s23145_s0 + $0x34] sm:$0xff] }
 0x17f   :  { %v13828_v19 = vpop.f32.mrf.mxu1  ;;  %v13860_v40 = vpop.f32.mrf.mxu0  ;;  %14147 = vmatmul.mubr.msk.f32.gmra.mxu1 %vm148_vm1, %v17085_v39  ;;  %14179 = vmatmul.mubr.msk.f32.gmra.mxu0 %vm148_vm1, %v17310_v26 }
 0x180   :  { %23628 = vst [vmem:[#allocation71_spill] sm:$0xff] %v17318_v13  ;;  %23629 = vst [vmem:[#allocation72_spill] sm:$0xff] %v17321_v61  ;;  %v17328_v37 = vadd.f32 %v13828_v19, %v17097_v56  ;;  %v17331_v0 = vadd.f32 %v13860_v40, %v16278_v42  ;;  %14149 = vmatprep.mubr.msk.f32.mxu1 %vm148_vm1, %v17092_v24  ;;  %14181 = vmatprep.mubr.msk.f32.mxu0 %vm148_vm1, %v17315_v41  ;;  %v17345_v56 = vld [vmem:[%s23145_s0 + $0x44] sm:$0xff]  ;;  %v23686_v13 = vld [vmem:[#allocation54_spill] sm:$0xff] }
 0x181   :  { %v1606_v39 = vpop.f32.mrf.mxu1  ;;  %v1951_v50 = vpop.f32.mrf.mxu0 }
 0x182   :  { %v17348_v42 = vadd.f32 %v1606_v39, %v17115_v29  ;;  %v17351_v24 = vadd.f32 %v1951_v50, %v16294_v49  ;;  %v17370_v49 = vld [vmem:[%s23145_s0 + $0x4c] sm:$0xff] }
 0x183   :  { %v13831_v10 = vpop.f32.mrf.mxu1  ;;  %v13863_v63 = vpop.f32.mrf.mxu0  ;;  %14150 = vmatmul.mubr.msk.f32.gmra.mxu1 %vm148_vm1, %v17113_v55  ;;  %14182 = vmatmul.mubr.msk.f32.gmra.mxu0 %vm148_vm1, %v17340_v32 }
 0x184   :  { %23630 = vst [vmem:[#allocation73_spill] sm:$0xff] %v17348_v42  ;;  %23631 = vst [vmem:[#allocation74_spill] sm:$0xff] %v17351_v24  ;;  %v17358_v19 = vadd.f32 %v13831_v10, %v17125_v23  ;;  %v17361_v40 = vadd.f32 %v13863_v63, %v16303_v54  ;;  %14152 = vmatprep.mubr.msk.f32.mxu1 %vm148_vm1, %v17120_v58  ;;  %14184 = vmatprep.mubr.msk.f32.mxu0 %vm148_vm1, %v17345_v56  ;;  %v17375_v23 = vld [vmem:[%s23145_s0 + $0x54] sm:$0xff] }
 0x185   :  { %v1616_v55 = vpop.f32.mrf.mxu1  ;;  %v1961_v29 = vpop.f32.mrf.mxu0 }
 0x186   :  { %v17378_v54 = vadd.f32 %v1616_v55, %v17143_v21  ;;  %v17381_v58 = vadd.f32 %v1961_v29, %v16319_v59  ;;  %v17400_v59 = vld [vmem:[%s23145_s0 + $0x64] sm:$0xff] }
 0x187   :  { %v13834_v39 = vpop.f32.mrf.mxu1  ;;  %v13866_v50 = vpop.f32.mrf.mxu0  ;;  %14153 = vmatmul.mubr.msk.f32.gmra.mxu1 %vm148_vm1, %v17141_v1  ;;  %14185 = vmatmul.mubr.msk.f32.gmra.mxu0 %vm148_vm1, %v17370_v49 }
 0x188   :  { %23632 = vst [vmem:[#allocation75_spill] sm:$0xff] %v17378_v54  ;;  %23633 = vst [vmem:[#allocation76_spill] sm:$0xff] %v17381_v58  ;;  %v17388_v10 = vadd.f32 %v13834_v39, %v17153_v33  ;;  %v17391_v63 = vadd.f32 %v13866_v50, %v16330_v62  ;;  %14155 = vmatprep.mubr.msk.f32.mxu1 %vm148_vm1, %v17148_v48  ;;  %14187 = vmatprep.mubr.msk.f32.mxu0 %vm148_vm1, %v17375_v23  ;;  %v17405_v33 = vld [vmem:[%s23145_s0 + $0x6c] sm:$0xff] }
 0x189   :  { %v1626_v1 = vpop.f32.mrf.mxu1  ;;  %v1971_v21 = vpop.f32.mrf.mxu0  ;;  %v23680_v54 = vld [vmem:[#allocation52_spill] sm:$0xff] }
 0x18a   :  { %v17408_v62 = vadd.f32 %v1626_v1, %v17171_v44  ;;  %v17411_v48 = vadd.f32 %v1971_v21, %v16348_v2  ;;  %v17430_v2 = vld [vmem:[%s23145_s0 + $0x74] sm:$0xff] }
 0x18b   :  { %v13837_v55 = vpop.f32.mrf.mxu1  ;;  %v13869_v29 = vpop.f32.mrf.mxu0  ;;  %14156 = vmatmul.mubr.msk.f32.gmra.mxu1 %vm148_vm1, %v17169_v46  ;;  %14188 = vmatmul.mubr.msk.f32.gmra.mxu0 %vm148_vm1, %v17400_v59 }
 0x18c   :  { %23634 = vst [vmem:[#allocation77_spill] sm:$0xff] %v17408_v62  ;;  %23635 = vst [vmem:[#allocation78_spill] sm:$0xff] %v17411_v48  ;;  %v17418_v39 = vadd.f32 %v13837_v55, %v17181_v4  ;;  %v17421_v50 = vadd.f32 %v13869_v29, %v16355_v3  ;;  %14158 = vmatprep.mubr.msk.f32.mxu1 %vm148_vm1, %v17176_v14  ;;  %14190 = vmatprep.mubr.msk.f32.mxu0 %vm148_vm1, %v17405_v33  ;;  %v17435_v4 = vld [vmem:[%s23145_s0 + $0x84] sm:$0xff]  ;;  %v23674_v62 = vld [vmem:[#allocation50_spill] sm:$0xff] }
 0x18d   :  { %v1636_v46 = vpop.f32.mrf.mxu1  ;;  %v1981_v44 = vpop.f32.mrf.mxu0 }
 0x18e   :  { %v17438_v3 = vadd.f32 %v1636_v46, %v17199_v15  ;;  %v17441_v14 = vadd.f32 %v1981_v44, %v16371_v20  ;;  %v17460_v20 = vld [vmem:[%s23145_s0 + $0x8c] sm:$0xff] }
 0x18f   :  { %v13840_v1 = vpop.f32.mrf.mxu1  ;;  %v13872_v21 = vpop.f32.mrf.mxu0  ;;  %14159 = vmatmul.mubr.msk.f32.gmra.mxu1 %vm148_vm1, %v17197_v5  ;;  %14191 = vmatmul.mubr.msk.f32.gmra.mxu0 %vm148_vm1, %v17430_v2 }
 0x190   :  { %23636 = vst [vmem:[#allocation79_spill] sm:$0xff] %v17438_v3  ;;  %23637 = vst [vmem:[#allocation80_spill] sm:$0xff] %v17441_v14  ;;  %v17448_v55 = vadd.f32 %v13840_v1, %v17209_v22  ;;  %v17451_v29 = vadd.f32 %v13872_v21, %v16377_v16  ;;  %14161 = vmatprep.mubr.msk.f32.mxu1 %vm148_vm1, %v17204_v47  ;;  %14193 = vmatprep.mubr.msk.f32.mxu0 %vm148_vm1, %v17435_v4  ;;  %v17465_v22 = vld [vmem:[%s23145_s0 + $0x94] sm:$0xff]  ;;  %v23668_v3 = vld [vmem:[#allocation48_spill] sm:$0xff] }
 0x191   :  { %v1646_v5 = vpop.f32.mrf.mxu1  ;;  %v1991_v15 = vpop.f32.mrf.mxu0 }
 0x192   :  { %v17468_v16 = vadd.f32 %v1646_v5, %v17227_v51  ;;  %v17471_v47 = vadd.f32 %v1991_v15, %v16393_v27  ;;  %v17490_v27 = vld [vmem:[%s23145_s0 + $0xa4] sm:$0xff] }
 0x193   :  { %v13843_v46 = vpop.f32.mrf.mxu1  ;;  %v13875_v44 = vpop.f32.mrf.mxu0  ;;  %14162 = vmatmul.mubr.msk.f32.gmra.mxu1 %vm148_vm1, %v17225_v57  ;;  %14194 = vmatmul.mubr.msk.f32.gmra.mxu0 %vm148_vm1, %v17460_v20 }
 0x194   :  { %23638 = vst [vmem:[#allocation81_spill] sm:$0xff] %v17468_v16  ;;  %23639 = vst [vmem:[#allocation82_spill] sm:$0xff] %v17471_v47  ;;  %v17478_v1 = vadd.f32 %v13843_v46, %v17237_v8  ;;  %v17481_v21 = vadd.f32 %v13875_v44, %v16399_v38  ;;  %14164 = vmatprep.mubr.msk.f32.mxu1 %vm148_vm1, %v17232_v9  ;;  %14196 = vmatprep.mubr.msk.f32.mxu0 %vm148_vm1, %v17465_v22  ;;  %v17495_v8 = vld [vmem:[%s23145_s0 + $0xac] sm:$0xff]  ;;  %v23662_v16 = vld [vmem:[#allocation46_spill] sm:$0xff] }
 0x195   :  { %v1656_v57 = vpop.f32.mrf.mxu1  ;;  %v2001_v51 = vpop.f32.mrf.mxu0 }
 0x196   :  { %v17498_v38 = vadd.f32 %v1656_v57, %v17255_v53  ;;  %v17501_v9 = vadd.f32 %v2001_v51, %v16415_v45  ;;  %v17520_v45 = vld [vmem:[%s23145_s0 + $0xb4] sm:$0xff] }
 0x197   :  { %v13846_v5 = vpop.f32.mrf.mxu1  ;;  %v13878_v15 = vpop.f32.mrf.mxu0  ;;  %14165 = vmatmul.mubr.msk.f32.gmra.mxu1 %vm148_vm1, %v17253_v36  ;;  %14197 = vmatmul.mubr.msk.f32.gmra.mxu0 %vm148_vm1, %v17490_v27 }
 0x198   :  { %23640 = vst [vmem:[#allocation83_spill] sm:$0xff] %v17498_v38  ;;  %23641 = vst [vmem:[#allocation84_spill] sm:$0xff] %v17501_v9  ;;  %v17508_v46 = vadd.f32 %v13846_v5, %v17265_v28  ;;  %v17511_v44 = vadd.f32 %v13878_v15, %v16421_v12  ;;  %14199 = vmatprep.mubr.msk.f32.mxu0 %vm148_vm1, %v17495_v8  ;;  %14255 = vmatprep.mubr.msk.f32.mxu1 %vm148_vm1, %v17260_v35  ;;  %v17525_v28 = vld [vmem:[%s23145_s0 + $0xc4] sm:$0xff] }
 0x199   :  { %v1666_v36 = vpop.f32.mrf.mxu1  ;;  %v2011_v53 = vpop.f32.mrf.mxu0  ;;  %v23656_v38 = vld [vmem:[#allocation44_spill] sm:$0xff] }
 0x19a   :  { %v17528_v12 = vadd.f32 %v1666_v36, %v17283_v52  ;;  %v17531_v57 = vadd.f32 %v2011_v53, %v16437_v17  ;;  %v17550_v17 = vld [vmem:[%s23145_s0 + $0xcc] sm:$0xff] }
 0x19b   :  { %v13881_v51 = vpop.f32.mrf.mxu0  ;;  %v13937_v35 = vpop.f32.mrf.mxu1  ;;  %14200 = vmatmul.mubr.msk.f32.gmra.mxu0 %vm148_vm1, %v17520_v45  ;;  %14256 = vmatmul.mubr.msk.f32.vlgmr.msra.gmra.mxu1 %vm148_vm1, %v17281_v7 }
 0x19c   :  { %23642 = vst [vmem:[#allocation85_spill] sm:$0xff] %v17528_v12  ;;  %23643 = vst [vmem:[#allocation86_spill] sm:$0xff] %v17531_v57  ;;  %v17538_v5 = vadd.f32 %v13881_v51, %v16443_v25  ;;  %v17541_v15 = vadd.f32 %v13937_v35, %v16844_v11  ;;  %14202 = vmatprep.mubr.msk.f32.mxu0 %vm148_vm1, %v17525_v28  ;;  %14258 = vmatprep.mubr.msk.f32.mxu1 %vm148_vm1, %v17288_v6  ;;  %v17555_v25 = vld [vmem:[%s23145_s0 + $0xd4] sm:$0xff] }
 0x19d   :  { %v2021_v52 = vpop.f32.mrf.mxu0  ;;  %v2302_v36 = vpop.f32.mrf.mxu1  ;;  %v23650_v57 = vld [vmem:[#allocation42_spill] sm:$0xff] }
 0x19e   :  { %v17558_v11 = vadd.f32 %v2021_v52, %v16459_v31  ;;  %v17561_v7 = vadd.f32 %v2302_v36, %v16865_v60  ;;  %v17580_v31 = vld [vmem:[%s23145_s0 + $0xe4] sm:$0xff] }
 0x19f   :  { %v13884_v53 = vpop.f32.mrf.mxu0  ;;  %v13940_v6 = vpop.f32.mrf.mxu1  ;;  %14203 = vmatmul.mubr.msk.f32.gmra.mxu0 %vm148_vm1, %v17550_v17  ;;  %14259 = vmatmul.mubr.msk.f32.gmra.mxu1 %vm148_vm1, %v17310_v26 }
 0x1a0   :  { %23644 = vst [vmem:[#allocation87_spill] sm:$0xff] %v17558_v11  ;;  %23645 = vst [vmem:[#allocation88_spill] sm:$0xff] %v17561_v7  ;;  %v17568_v51 = vadd.f32 %v13884_v53, %v16465_v34  ;;  %v17571_v35 = vadd.f32 %v13940_v6, %v16877_v30  ;;  %14205 = vmatprep.mubr.msk.f32.mxu0 %vm148_vm1, %v17555_v25  ;;  %14261 = vmatprep.mubr.msk.f32.mxu1 %vm148_vm1, %v17315_v41  ;;  %v17585_v34 = vld [vmem:[%s23145_s0 + $0xec] sm:$0xff]  ;;  %v23646_v30 = vld [vmem:[#allocation6_spill] sm:$0xff] }
 0x1a1   :  { %v2031_v60 = vpop.f32.mrf.mxu0  ;;  %v2312_v52 = vpop.f32.mrf.mxu1  ;;  %v23649_v6 = vld [vmem:[#allocation18_spill] sm:$0xff] }
 0x1a2   :  { %v17588_v26 = vadd.f32 %v2031_v60, %v23646_v30  ;;  %v17591_v36 = vadd.f32 %v2312_v52, %v16896_v43  ;;  %v17610_v43 = vld [vmem:[%s23145_s0 + $0xf4] sm:$0xff] }
 0x1a3   :  { %v13887_v53 = vpop.f32.mrf.mxu0  ;;  %v13943_v41 = vpop.f32.mrf.mxu1  ;;  %14206 = vmatmul.mubr.msk.f32.gmra.mxu0 %vm148_vm1, %v17580_v31  ;;  %14262 = vmatmul.mubr.msk.f32.gmra.mxu1 %vm148_vm1, %v17340_v32  ;;  %v17615_v32 = vld [vmem:[%s23145_s0 + $0x104] sm:$0xff] }
 0x1a4   :  { %23647 = vst [vmem:[#allocation6_spill] sm:$0xff] %v17588_v26  ;;  %23648 = vst [vmem:[#allocation89_spill] sm:$0xff] %v17591_v36  ;;  %v17598_v11 = vadd.f32 %v13887_v53, %v23649_v6  ;;  %v17601_v12 = vadd.f32 %v13943_v41, %v23650_v57  ;;  %14208 = vmatprep.mubr.msk.f32.mxu0 %vm148_vm1, %v17585_v34  ;;  %14264 = vmatprep.mubr.msk.f32.mxu1 %vm148_vm1, %v17345_v56  ;;  %v23651_v57 = vld [vmem:[#allocation7_spill] sm:$0xff] }
 0x1a5   :  { %v2041_v60 = vpop.f32.mrf.mxu0  ;;  %v2322_v52 = vpop.f32.mrf.mxu1  ;;  %v23653_v53 = vld [vmem:[#allocation43_spill] sm:$0xff] }
 0x1a6   :  { %v17618_v30 = vadd.f32 %v2041_v60, %v23651_v57  ;;  %v17621_v41 = vadd.f32 %v2322_v52, %v23653_v53  ;;  %v23655_v26 = vld [vmem:[#allocation19_spill] sm:$0xff]  ;;  %v17640_v60 = vld [vmem:[%s23145_s0 + $0x10c] sm:$0xff] }
 0x1a7   :  { %v13890_v6 = vpop.f32.mrf.mxu0  ;;  %v13946_v56 = vpop.f32.mrf.mxu1  ;;  %14209 = vmatmul.mubr.msk.f32.gmra.mxu0 %vm148_vm1, %v17610_v43  ;;  %14265 = vmatmul.mubr.msk.f32.gmra.mxu1 %vm148_vm1, %v17370_v49  ;;  %v17645_v49 = vld [vmem:[%s23145_s0 + $0x114] sm:$0xff] }
 0x1a8   :  { %23652 = vst [vmem:[#allocation18_spill] sm:$0xff] %v17618_v30  ;;  %23654 = vst [vmem:[#allocation42_spill] sm:$0xff] %v17621_v41  ;;  %v17628_v9 = vadd.f32 %v13890_v6, %v23655_v26  ;;  %v17631_v47 = vadd.f32 %v13946_v56, %v23656_v38  ;;  %14211 = vmatprep.mubr.msk.f32.mxu0 %vm148_vm1, %v17615_v32  ;;  %14267 = vmatprep.mubr.msk.f32.mxu1 %vm148_vm1, %v17375_v23  ;;  %v23657_v38 = vld [vmem:[#allocation8_spill] sm:$0xff]  ;;  %v23659_v53 = vld [vmem:[#allocation45_spill] sm:$0xff] }
 0x1a9   :  { %v2051_v52 = vpop.f32.mrf.mxu0  ;;  %v2332_v57 = vpop.f32.mrf.mxu1  ;;  %v23661_v41 = vld [vmem:[#allocation20_spill] sm:$0xff] }
 0x1aa   :  { %v17648_v26 = vadd.f32 %v2051_v52, %v23657_v38  ;;  %v17651_v6 = vadd.f32 %v2332_v57, %v23659_v53  ;;  %v17670_v52 = vld [vmem:[%s23145_s0 + $0x124] sm:$0xff] }
 0x1ab   :  { %v13893_v56 = vpop.f32.mrf.mxu0  ;;  %v13949_v23 = vpop.f32.mrf.mxu1  ;;  %14212 = vmatmul.mubr.msk.f32.gmra.mxu0 %vm148_vm1, %v17640_v60  ;;  %14268 = vmatmul.mubr.msk.f32.gmra.mxu1 %vm148_vm1, %v17400_v59  ;;  %v17675_v59 = vld [vmem:[%s23145_s0 + $0x12c] sm:$0xff]  ;;  %v23665_v53 = vld [vmem:[#allocation47_spill] sm:$0xff] }
 0x1ac   :  { %23658 = vst [vmem:[#allocation7_spill] sm:$0xff] %v17648_v26  ;;  %23660 = vst [vmem:[#allocation43_spill] sm:$0xff] %v17651_v6  ;;  %v17658_v30 = vadd.f32 %v13893_v56, %v23661_v41  ;;  %v17661_v14 = vadd.f32 %v13949_v23, %v23662_v16  ;;  %14214 = vmatprep.mubr.msk.f32.mxu0 %vm148_vm1, %v17645_v49  ;;  %14270 = vmatprep.mubr.msk.f32.mxu1 %vm148_vm1, %v17405_v33  ;;  %v23663_v16 = vld [vmem:[#allocation9_spill] sm:$0xff]  ;;  %v23667_v6 = vld [vmem:[#allocation22_spill] sm:$0xff] }
 0x1ad   :  { %v2061_v57 = vpop.f32.mrf.mxu0  ;;  %v2342_v38 = vpop.f32.mrf.mxu1 }
 0x1ae   :  { %v17678_v41 = vadd.f32 %v2061_v57, %v23663_v16  ;;  %v17681_v56 = vadd.f32 %v2342_v38, %v23665_v53  ;;  %v17700_v57 = vld [vmem:[%s23145_s0 + $0x134] sm:$0xff] }
 0x1af   :  { %v13896_v23 = vpop.f32.mrf.mxu0  ;;  %v13952_v33 = vpop.f32.mrf.mxu1  ;;  %14215 = vmatmul.mubr.msk.f32.gmra.mxu0 %vm148_vm1, %v17670_v52  ;;  %14271 = vmatmul.mubr.msk.f32.gmra.mxu1 %vm148_vm1, %v17430_v2  ;;  %v17705_v2 = vld [vmem:[%s23145_s0 + $0x144] sm:$0xff]  ;;  %v23671_v53 = vld [vmem:[#allocation49_spill] sm:$0xff] }
 0x1b0   :  { %23664 = vst [vmem:[#allocation19_spill] sm:$0xff] %v17678_v41  ;;  %23666 = vst [vmem:[#allocation44_spill] sm:$0xff] %v17681_v56  ;;  %v17688_v26 = vadd.f32 %v13896_v23, %v23667_v6  ;;  %v17691_v48 = vadd.f32 %v13952_v33, %v23668_v3  ;;  %14217 = vmatprep.mubr.msk.f32.mxu0 %vm148_vm1, %v17675_v59  ;;  %14273 = vmatprep.mubr.msk.f32.mxu1 %vm148_vm1, %v17435_v4  ;;  %v23669_v3 = vld [vmem:[#allocation10_spill] sm:$0xff]  ;;  %v23673_v56 = vld [vmem:[#allocation23_spill] sm:$0xff] }
 0x1b1   :  { %v2071_v38 = vpop.f32.mrf.mxu0  ;;  %v2352_v16 = vpop.f32.mrf.mxu1 }
 0x1b2   :  { %v17708_v6 = vadd.f32 %v2071_v38, %v23669_v3  ;;  %v17711_v23 = vadd.f32 %v2352_v16, %v23671_v53  ;;  %v17730_v38 = vld [vmem:[%s23145_s0 + $0x14c] sm:$0xff]  ;;  %v23677_v53 = vld [vmem:[#allocation51_spill] sm:$0xff] }
 0x1b3   :  { %v13899_v33 = vpop.f32.mrf.mxu0  ;;  %v13955_v4 = vpop.f32.mrf.mxu1  ;;  %14218 = vmatmul.mubr.msk.f32.gmra.mxu0 %vm148_vm1, %v17700_v57  ;;  %14274 = vmatmul.mubr.msk.f32.gmra.mxu1 %vm148_vm1, %v17460_v20  ;;  %v17735_v20 = vld [vmem:[%s23145_s0 + $0x154] sm:$0xff] }
 0x1b4   :  { %23670 = vst [vmem:[#allocation8_spill] sm:$0xff] %v17708_v6  ;;  %23672 = vst [vmem:[#allocation45_spill] sm:$0xff] %v17711_v23  ;;  %v17718_v41 = vadd.f32 %v13899_v33, %v23673_v56  ;;  %v17721_v58 = vadd.f32 %v13955_v4, %v23674_v62  ;;  %14220 = vmatprep.mubr.msk.f32.mxu0 %vm148_vm1, %v17705_v2  ;;  %14276 = vmatprep.mubr.msk.f32.mxu1 %vm148_vm1, %v17465_v22  ;;  %v23675_v62 = vld [vmem:[#allocation11_spill] sm:$0xff]  ;;  %v23679_v23 = vld [vmem:[#allocation25_spill] sm:$0xff] }
 0x1b5   :  { %v2081_v16 = vpop.f32.mrf.mxu0  ;;  %v2362_v3 = vpop.f32.mrf.mxu1 }
 0x1b6   :  { %v17738_v56 = vadd.f32 %v2081_v16, %v23675_v62  ;;  %v17741_v33 = vadd.f32 %v2362_v3, %v23677_v53  ;;  %v17760_v16 = vld [vmem:[%s23145_s0 + $0x164] sm:$0xff]  ;;  %v23683_v53 = vld [vmem:[#allocation53_spill] sm:$0xff] }
 0x1b7   :  { %v13902_v4 = vpop.f32.mrf.mxu0  ;;  %v13958_v22 = vpop.f32.mrf.mxu1  ;;  %14221 = vmatmul.mubr.msk.f32.gmra.mxu0 %vm148_vm1, %v17730_v38  ;;  %14277 = vmatmul.mubr.msk.f32.gmra.mxu1 %vm148_vm1, %v17490_v27  ;;  %v17765_v27 = vld [vmem:[%s23145_s0 + $0x16c] sm:$0xff] }
 0x1b8   :  { %23676 = vst [vmem:[#allocation20_spill] sm:$0xff] %v17738_v56  ;;  %23678 = vst [vmem:[#allocation46_spill] sm:$0xff] %v17741_v33  ;;  %v17748_v6 = vadd.f32 %v13902_v4, %v23679_v23  ;;  %v17751_v42 = vadd.f32 %v13958_v22, %v23680_v54  ;;  %14223 = vmatprep.mubr.msk.f32.mxu0 %vm148_vm1, %v17735_v20  ;;  %14279 = vmatprep.mubr.msk.f32.mxu1 %vm148_vm1, %v17495_v8  ;;  %v23681_v54 = vld [vmem:[#allocation12_spill] sm:$0xff]  ;;  %v23685_v33 = vld [vmem:[#allocation26_spill] sm:$0xff] }
 0x1b9   :  { %v2091_v3 = vpop.f32.mrf.mxu0  ;;  %v2372_v62 = vpop.f32.mrf.mxu1 }
 0x1ba   :  { %v17768_v23 = vadd.f32 %v2091_v3, %v23681_v54  ;;  %v17771_v4 = vadd.f32 %v2372_v62, %v23683_v53  ;;  %v17790_v3 = vld [vmem:[%s23145_s0 + $0x174] sm:$0xff] }
 0x1bb   :  { %v13905_v22 = vpop.f32.mrf.mxu0  ;;  %v13961_v8 = vpop.f32.mrf.mxu1  ;;  %14224 = vmatmul.mubr.msk.f32.gmra.mxu0 %vm148_vm1, %v17760_v16  ;;  %14280 = vmatmul.mubr.msk.f32.gmra.mxu1 %vm148_vm1, %v17520_v45 }
 0x1bc   :  { %23682 = vst [vmem:[#allocation9_spill] sm:$0xff] %v17768_v23  ;;  %23684 = vst [vmem:[#allocation47_spill] sm:$0xff] %v17771_v4  ;;  %v17778_v56 = vadd.f32 %v13905_v22, %v23685_v33  ;;  %v17781_v36 = vadd.f32 %v13961_v8, %v23686_v13  ;;  %14226 = vmatprep.mubr.msk.f32.mxu0 %vm148_vm1, %v17765_v27  ;;  %14282 = vmatprep.mubr.msk.f32.mxu1 %vm148_vm1, %v17525_v28  ;;  %v17797_v33 = vld [vmem:[%s23145_s0 + $0x184] sm:$0xff] }
 0x1bd   :  { %v17792_v62 = vpop.f32.mrf.mxu0  ;;  %v2382_v45 = vpop.f32.mrf.mxu1  ;;  %v23688_v13 = vld [vmem:[#allocation55_spill] sm:$0xff]  ;;  %v23690_v28 = vld [vmem:[#allocation28_spill] sm:$0xff] }
 0x1be   :  { %23687 = vst [vmem:[#allocation22_spill] sm:$0xff] %v17792_v62  ;;  %v17800_v54 = vadd.f32 %v2382_v45, %v23688_v13  ;;  %v23691_v4 = vld [vmem:[#allocation56_spill] sm:$0xff] }
 0x1bf   :  { %v13908_v53 = vpop.f32.mrf.mxu0  ;;  %v13964_v22 = vpop.f32.mrf.mxu1  ;;  %14227 = vmatmul.mubr.msk.f32.gmra.mxu0 %vm148_vm1, %v17790_v3  ;;  %14283 = vmatmul.mubr.msk.f32.gmra.mxu1 %vm148_vm1, %v17550_v17  ;;  %v17819_v45 = vld [vmem:[%s23145_s0 + $0x18c] sm:$0xff] }
 0x1c0   :  { %23689 = vst [vmem:[#allocation48_spill] sm:$0xff] %v17800_v54  ;;  %v17807_v8 = vadd.f32 %v13908_v53, %v23690_v28  ;;  %v17810_v23 = vadd.f32 %v13964_v22, %v23691_v4  ;;  %14229 = vmatprep.mubr.msk.f32.mxu0 %vm148_vm1, %v17797_v33  ;;  %14285 = vmatprep.mubr.msk.f32.mxu1 %vm148_vm1, %v17555_v25  ;;  %v17826_v53 = vld [vmem:[%s23145_s0 + $0x194] sm:$0xff] }
 0x1c1   :  { %v17821_v13 = vpop.f32.mrf.mxu0  ;;  %v2392_v17 = vpop.f32.mrf.mxu1  ;;  %v23694_v4 = vld [vmem:[#allocation57_spill] sm:$0xff]  ;;  %v23696_v25 = vld [vmem:[#allocation30_spill] sm:$0xff] }
 0x1c2   :  { %23692 = vst [vmem:[#allocation10_spill] sm:$0xff] %v17810_v23  ;;  %23693 = vst [vmem:[#allocation49_spill] sm:$0xff] %v17821_v13  ;;  %v17829_v22 = vadd.f32 %v2392_v17, %v23694_v4  ;;  %v23698_v13 = vld [vmem:[#allocation58_spill] sm:$0xff]  ;;  %v17848_v17 = vld [vmem:[%s23145_s0 + $0x1a4] sm:$0xff] }
 0x1c3   :  { %v13911_v28 = vpop.f32.mrf.mxu0  ;;  %v13967_v54 = vpop.f32.mrf.mxu1  ;;  %14230 = vmatmul.mubr.msk.f32.gmra.mxu0 %vm148_vm1, %v17819_v45  ;;  %14286 = vmatmul.mubr.msk.f32.gmra.mxu1 %vm148_vm1, %v17580_v31 }
 0x1c4   :  { %23695 = vst [vmem:[#allocation23_spill] sm:$0xff] %v17829_v22  ;;  %v17836_v24 = vadd.f32 %v13911_v28, %v23696_v25  ;;  %v17839_v62 = vadd.f32 %v13967_v54, %v23698_v13  ;;  %14232 = vmatprep.mubr.msk.f32.mxu0 %vm148_vm1, %v17826_v53  ;;  %14288 = vmatprep.mubr.msk.f32.mxu1 %vm148_vm1, %v17585_v34  ;;  %v17855_v28 = vld [vmem:[%s23145_s0 + $0x1ac] sm:$0xff]  ;;  %v23701_v54 = vld [vmem:[#allocation59_spill] sm:$0xff] }
 0x1c5   :  { %v17850_v4 = vpop.f32.mrf.mxu0  ;;  %v2402_v31 = vpop.f32.mrf.mxu1  ;;  %v23703_v34 = vld [vmem:[#allocation32_spill] sm:$0xff] }
 0x1c6   :  { %23697 = vst [vmem:[#allocation50_spill] sm:$0xff] %v17836_v24  ;;  %23699 = vst [vmem:[#allocation11_spill] sm:$0xff] %v17839_v62  ;;  %v17858_v13 = vadd.f32 %v2402_v31, %v23701_v54  ;;  %v17877_v31 = vld [vmem:[%s23145_s0 + $0x1b4] sm:$0xff] }
 0x1c7   :  { %23700 = vst [vmem:[#allocation51_spill] sm:$0xff] %v17850_v4  ;;  %v13914_v25 = vpop.f32.mrf.mxu0  ;;  %v13970_v22 = vpop.f32.mrf.mxu1  ;;  %14233 = vmatmul.mubr.msk.f32.gmra.mxu0 %vm148_vm1, %v17848_v17  ;;  %14289 = vmatmul.mubr.msk.f32.gmra.mxu1 %vm148_vm1, %v17610_v43  ;;  %v23705_v4 = vld [vmem:[#allocation60_spill] sm:$0xff]  ;;  %v23713_v62 = vld [vmem:[#allocation62_spill] sm:$0xff] }
 0x1c8   :  { %23702 = vst [vmem:[#allocation25_spill] sm:$0xff] %v17858_v13  ;;  %v17865_v7 = vadd.f32 %v13914_v25, %v23703_v34  ;;  %v17868_v61 = vadd.f32 %v13970_v22, %v23705_v4  ;;  %14235 = vmatprep.mubr.msk.f32.mxu0 %vm148_vm1, %v17855_v28  ;;  %14291 = vmatprep.mubr.msk.f32.mxu1 %vm148_vm1, %v17615_v32  ;;  %v17884_v25 = vld [vmem:[%s23145_s0 + $0x1c4] sm:$0xff]  ;;  %v23708_v22 = vld [vmem:[#allocation21_spill] sm:$0xff]  ;;  %v23709_v4 = vld [vmem:[#allocation34_spill] sm:$0xff] }
 0x1c9   :  { %v17879_v54 = vpop.f32.mrf.mxu0  ;;  %v2412_v43 = vpop.f32.mrf.mxu1  ;;  %v1021_v34 = vadd.f32 %v23709_v4, %v23708_v22  ;;  %v23710_v13 = vld [vmem:[#allocation61_spill] sm:$0xff] }
 0x1ca   :  { %23704 = vst [vmem:[#allocation52_spill] sm:$0xff] %v17865_v7  ;;  %23706 = vst [vmem:[#allocation12_spill] sm:$0xff] %v17868_v61  ;;  %v17889_v61 = vadd.f32 %v2412_v43, %v23710_v13  ;;  %v17907_v13 = vld [vmem:[%s23145_s0 + $0x1cc] sm:$0xff] }
 0x1cb   :  { %23707 = vst [vmem:[#allocation53_spill] sm:$0xff] %v17879_v54  ;;  %v13917_v32 = vpop.f32.mrf.mxu0  ;;  %v13973_v7 = vpop.f32.mrf.mxu1  ;;  %14236 = vmatmul.mubr.msk.f32.gmra.mxu0 %vm148_vm1, %v17877_v31  ;;  %14292 = vmatmul.mubr.msk.f32.gmra.mxu1 %vm148_vm1, %v17640_v60  ;;  %v17914_v60 = vld [vmem:[%s23145_s0 + $0x1d4] sm:$0xff] }
 0x1cc   :  { %23711 = vst [vmem:[#allocation26_spill] sm:$0xff] %v17889_v61  ;;  %v17895_v54 = vadd.f32 %v13917_v32, %v1021_v34  ;;  %v17898_v24 = vadd.f32 %v13973_v7, %v23713_v62  ;;  %14238 = vmatprep.mubr.msk.f32.mxu0 %vm148_vm1, %v17884_v25  ;;  %14294 = vmatprep.mubr.msk.f32.mxu1 %vm148_vm1, %v17645_v49  ;;  %v23716_v7 = vld [vmem:[#allocation14_spill] sm:$0xff]  ;;  %v23717_v62 = vld [vmem:[#allocation36_spill] sm:$0xff]  ;;  %v23718_v34 = vld [vmem:[#allocation63_spill] sm:$0xff] }
 0x1cd   :  { %v17909_v43 = vpop.f32.mrf.mxu0  ;;  %v2422_v22 = vpop.f32.mrf.mxu1  ;;  %v1031_v4 = vadd.f32 %v23717_v62, %v23716_v7 }
 0x1ce   :  { %23712 = vst [vmem:[#allocation54_spill] sm:$0xff] %v17895_v54  ;;  %23714 = vst [vmem:[#allocation55_spill] sm:$0xff] %v17898_v24  ;;  %v17919_v32 = vadd.f32 %v2422_v22, %v23718_v34  ;;  %v23721_v24 = vld [vmem:[#allocation64_spill] sm:$0xff]  ;;  %v23726_v34 = vld [vmem:[#allocation65_spill] sm:$0xff] }
 0x1cf   :  { %23715 = vst [vmem:[#allocation28_spill] sm:$0xff] %v17909_v43  ;;  %v13920_v49 = vpop.f32.mrf.mxu0  ;;  %v13976_v61 = vpop.f32.mrf.mxu1  ;;  %14239 = vmatmul.mubr.msk.f32.gmra.mxu0 %vm148_vm1, %v17907_v13  ;;  %14295 = vmatmul.mubr.msk.f32.gmra.mxu1 %vm148_vm1, %v17670_v52  ;;  %v17937_v22 = vld [vmem:[%s23145_s0 + $0x1e4] sm:$0xff]  ;;  %v17944_v52 = vld [vmem:[%s23145_s0 + $0x1ec] sm:$0xff] }
 0x1d0   :  { %23719 = vst [vmem:[#allocation56_spill] sm:$0xff] %v17919_v32  ;;  %v17925_v43 = vadd.f32 %v13920_v49, %v1031_v4  ;;  %v17928_v54 = vadd.f32 %v13976_v61, %v23721_v24  ;;  %14241 = vmatprep.mubr.msk.f32.mxu0 %vm148_vm1, %v17914_v60  ;;  %14297 = vmatprep.mubr.msk.f32.mxu1 %vm148_vm1, %v17675_v59  ;;  %v23724_v61 = vld [vmem:[#allocation15_spill] sm:$0xff]  ;;  %v23725_v24 = vld [vmem:[#allocation38_spill] sm:$0xff] }
 0x1d1   :  { %v17939_v7 = vpop.f32.mrf.mxu0  ;;  %v2432_v62 = vpop.f32.mrf.mxu1  ;;  %v1041_v4 = vadd.f32 %v23725_v24, %v23724_v61  ;;  %v23732_v24 = vld [vmem:[#allocation5_spill] sm:$0xff] }
 0x1d2   :  { %23720 = vst [vmem:[#allocation57_spill] sm:$0xff] %v17925_v43  ;;  %23722 = vst [vmem:[#allocation30_spill] sm:$0xff] %v17928_v54  ;;  %v17949_v49 = vadd.f32 %v2432_v62, %v23726_v34  ;;  %v23729_v54 = vld [vmem:[#allocation66_spill] sm:$0xff]  ;;  %v23734_v34 = vld [vmem:[#allocation67_spill] sm:$0xff] }
 0x1d3   :  { %23723 = vst [vmem:[#allocation58_spill] sm:$0xff] %v17939_v7  ;;  %v13923_v59 = vpop.f32.mrf.mxu0  ;;  %v13979_v32 = vpop.f32.mrf.mxu1  ;;  %14242 = vmatmul.mubr.msk.f32.gmra.mxu0 %vm148_vm1, %v17937_v22  ;;  %14298 = vmatmul.mubr.msk.f32.gmra.mxu1 %vm148_vm1, %v17700_v57  ;;  %v17967_v62 = vld [vmem:[%s23145_s0 + $0x1f4] sm:$0xff]  ;;  %v12260_v57 = vld [vmem:[%s23149_s4 + $0xe8] sm:$0xff] }
 0x1d4   :  { %23727 = vst [vmem:[#allocation59_spill] sm:$0xff] %v17949_v49  ;;  %v17955_v7 = vadd.f32 %v13923_v59, %v1041_v4  ;;  %v17958_v43 = vadd.f32 %v13979_v32, %v23729_v54  ;;  %14244 = vmatprep.mubr.msk.f32.mxu0 %vm148_vm1, %v17944_v52  ;;  %14300 = vmatprep.mubr.msk.f32.mxu1 %vm148_vm1, %v17705_v2  ;;  %v6550_v54 = vld [vmem:[%s23149_s4 + $0x70] sm:$0xff]  ;;  %v23733_v2 = vld [vmem:[#allocation40_spill] sm:$0xff] }
 0x1d5   :  { %v17975_v32 = vpop.f32.mrf.mxu0  ;;  %v2442_v61 = vpop.f32.mrf.mxu1  ;;  %14327 = vmatprep.subr.mxu0 %v12260_v57  ;;  %14381 = vmatprep.subr.mxu1 %v6550_v54  ;;  %v1051_v4 = vadd.f32 %v23733_v2, %v23732_v24 }
 0x1d6   :  { %23728 = vst [vmem:[#allocation32_spill] sm:$0xff] %v17955_v7  ;;  %23730 = vst [vmem:[#allocation60_spill] sm:$0xff] %v17958_v43  ;;  %v17980_v59 = vadd.f32 %v2442_v61, %v23734_v34  ;;  %14328 = vmatpush3.msra.mxu0 %v12260_v57  ;;  %14382 = vmatpush3.msra.mxu1 %v6550_v54  ;;  %v23736_v7 = vld [vmem:[#allocation68_spill] sm:$0xff] }
 0x1d7   :  { %23731 = vst [vmem:[#allocation21_spill] sm:$0xff] %v17975_v32  ;;  %v13926_v49 = vpop.f32.mrf.mxu0  ;;  %v13982_v43 = vpop.f32.mrf.mxu1  ;;  %14245 = vmatmul.mubr.msk.f32.gmra.mxu0 %vm148_vm1, %v17967_v62  ;;  %14301 = vmatmul.mubr.msk.f32.gmra.mxu1 %vm148_vm1, %v17730_v38  ;;  %v23738_v38 = vld [vmem:[#allocation69_spill] sm:$0xff] }
 0x1d8   :  { %23735 = vst [vmem:[#allocation34_spill] sm:$0xff] %v17980_v59  ;;  %v17986_v32 = vadd.f32 %v13926_v49, %v1051_v4  ;;  %v17989_v23 = vadd.f32 %v13982_v43, %v23736_v7  ;;  %14303 = vmatprep.mubr.msk.f32.mxu1 %vm148_vm1, %v17735_v20  ;;  %v23739_v4 = vld [vmem:[#allocation70_spill] sm:$0xff] }
 0x1d9   :  { %v17993_v61 = vpop.f32.mrf.mxu0  ;;  %v2452_v57 = vpop.f32.mrf.mxu1 }
 0x1da   :  { %v17996_v54 = vadd.f32 %v2452_v57, %v17291_v18  ;;  %v6549_v18 = vld [vmem:[%s23149_s4 + $0x68] sm:$0xff] }
 0x1db   :  { %v13985_v24 = vpop.f32.mrf.mxu1  ;;  %v14017_v2 = vpop.f32.mrf.mxu0  ;;  %14304 = vmatmul.mubr.msk.f32.gmra.mxu1 %vm148_vm1, %v17760_v16  ;;  %v12259_v16 = vld [vmem:[%s23149_s4 + $0xe0] sm:$0xff]  ;;  %14383 = vmatprep.subr.mxu1 %v6549_v18 }
 0x1dc   :  { %23737 = vst [vmem:[#allocation61_spill] sm:$0xff] %v17996_v54  ;;  %v18001_v49 = vadd.f32 %v13985_v24, %v23738_v38  ;;  %v18004_v43 = vadd.f32 %v14017_v2, %v23739_v4  ;;  %14306 = vmatprep.mubr.msk.f32.mxu1 %vm148_vm1, %v17765_v27  ;;  %14329 = vmatprep.subr.mxu0 %v12259_v16 }
 0x1dd   :  { %v18008_v20 = vpop.f32.mrf.mxu1  ;;  %v18010_v7 = vpop.f32.mrf.mxu0  ;;  %14330 = vmatpush3.msra.mxu0 %v12259_v16  ;;  %14384 = vmatpush3.msra.mxu1 %v6549_v18  ;;  %v6548_v16 = vld [vmem:[%s23149_s4 + $0x60] sm:$0xff] }
 0x1de   :  { %14385 = vmatprep.subr.mxu1 %v6548_v16 }
 0x1df   :  { %v13988_v34 = vpop.f32.mrf.mxu1  ;;  %v14020_v57 = vpop.f32.mrf.mxu0  ;;  %14307 = vmatmul.mubr.msk.f32.gmra.mxu1 %vm148_vm1, %v17790_v3 }
 0x1e0   :  { %v18021_v27 = vadd.f32 %v13988_v34, %v17328_v37  ;;  %v18024_v24 = vadd.f32 %v14020_v57, %v17331_v0  ;;  %14309 = vmatprep.mubr.msk.f32.mxu1 %vm148_vm1, %v17797_v33  ;;  %14386 = vmatpush3.msra.mxu1 %v6548_v16 }
 0x1e1   :  { %v18028_v2 = vpop.f32.mrf.mxu1  ;;  %v18030_v38 = vpop.f32.mrf.mxu0 }
 0x1e3   :  { %v13991_v3 = vpop.f32.mrf.mxu1  ;;  %v14023_v4 = vpop.f32.mrf.mxu0  ;;  %14310 = vmatmul.mubr.msk.f32.gmra.mxu1 %vm148_vm1, %v17819_v45 }
 0x1e4   :  { %v18035_v37 = vadd.f32 %v13991_v3, %v17358_v19  ;;  %v18038_v0 = vadd.f32 %v14023_v4, %v17361_v40  ;;  %14312 = vmatprep.mubr.msk.f32.mxu1 %vm148_vm1, %v17826_v53 }
 0x1e5   :  { %v18042_v33 = vpop.f32.mrf.mxu1  ;;  %v18044_v34 = vpop.f32.mrf.mxu0 }
 0x1e6   :  { %23740 = vst [vmem:[#allocation62_spill] sm:$0xff] %v18038_v0 }
 0x1e7   :  { %v13994_v57 = vpop.f32.mrf.mxu1  ;;  %v14026_v18 = vpop.f32.mrf.mxu0  ;;  %14313 = vmatmul.mubr.msk.f32.gmra.mxu1 %vm148_vm1, %v17848_v17  ;;  %v12258_v17 = vld [vmem:[%s23149_s4 + $0xd8] sm:$0xff] }
 0x1e8   :  { %v18049_v45 = vadd.f32 %v13994_v57, %v17388_v10  ;;  %v18052_v19 = vadd.f32 %v14026_v18, %v17391_v63  ;;  %14315 = vmatprep.mubr.msk.f32.mxu1 %vm148_vm1, %v17855_v28  ;;  %14331 = vmatprep.subr.mxu0 %v12258_v17 }
 0x1e9   :  { %v18056_v40 = vpop.f32.mrf.mxu1  ;;  %v18058_v53 = vpop.f32.mrf.mxu0  ;;  %14332 = vmatpush3.msra.mxu0 %v12258_v17 }
 0x1ea   :  { %23741 = vst [vmem:[#allocation14_spill] sm:$0xff] %v18052_v19 }
 0x1eb   :  { %v13997_v10 = vpop.f32.mrf.mxu1  ;;  %v14029_v3 = vpop.f32.mrf.mxu0  ;;  %14316 = vmatmul.mubr.msk.f32.gmra.mxu1 %vm148_vm1, %v17877_v31  ;;  %v6547_v31 = vld [vmem:[%s23149_s4 + $0x58] sm:$0xff] }
 0x1ec   :  { %v18069_v63 = vadd.f32 %v13997_v10, %v17418_v39  ;;  %v18072_v28 = vadd.f32 %v14029_v3, %v17421_v50  ;;  %14318 = vmatprep.mubr.msk.f32.mxu1 %vm148_vm1, %v17884_v25  ;;  %14387 = vmatprep.subr.mxu1 %v6547_v31  ;;  %v12257_v39 = vld [vmem:[%s23149_s4 + $0xd0] sm:$0xff] }
 0x1ed   :  { %v18076_v4 = vpop.f32.mrf.mxu1  ;;  %v18078_v57 = vpop.f32.mrf.mxu0  ;;  %14333 = vmatprep.subr.mxu0 %v12257_v39  ;;  %14388 = vmatpush3.msra.mxu1 %v6547_v31 }
 0x1ee   :  { %23742 = vst [vmem:[#allocation36_spill] sm:$0xff] %v18072_v28  ;;  %14334 = vmatpush3.msra.mxu0 %v12257_v39 }
 0x1ef   :  { %v14000_v18 = vpop.f32.mrf.mxu1  ;;  %v14032_v19 = vpop.f32.mrf.mxu0  ;;  %14319 = vmatmul.mubr.msk.f32.gmra.mxu1 %vm148_vm1, %v17907_v13 }
 0x1f0   :  { %v18089_v50 = vadd.f32 %v14000_v18, %v17448_v55  ;;  %v18092_v25 = vadd.f32 %v14032_v19, %v17451_v29  ;;  %14321 = vmatprep.mubr.msk.f32.mxu1 %vm148_vm1, %v17914_v60  ;;  %v6546_v60 = vld [vmem:[%s23149_s4 + $0x50] sm:$0xff] }
 0x1f1   :  { %v18096_v16 = vpop.f32.mrf.mxu1  ;;  %v18098_v17 = vpop.f32.mrf.mxu0  ;;  %14389 = vmatprep.subr.mxu1 %v6546_v60 }
 0x1f2   :  { %23743 = vst [vmem:[#allocation63_spill] sm:$0xff] %v18092_v25  ;;  %14390 = vmatpush3.msra.mxu1 %v6546_v60  ;;  %v6545_v60 = vld [vmem:[%s23149_s4 + $0x48] sm:$0xff] }
 0x1f3   :  { %v14003_v13 = vpop.f32.mrf.mxu1  ;;  %v14035_v10 = vpop.f32.mrf.mxu0  ;;  %14322 = vmatmul.mubr.msk.f32.gmra.mxu1 %vm148_vm1, %v17937_v22  ;;  %14391 = vmatprep.subr.mxu1 %v6545_v60 }
 0x1f4   :  { %v18103_v55 = vadd.f32 %v14003_v13, %v17478_v1  ;;  %v18106_v29 = vadd.f32 %v14035_v10, %v17481_v21  ;;  %14324 = vmatprep.mubr.msk.f32.mxu1 %vm148_vm1, %v17944_v52  ;;  %v12256_v1 = vld [vmem:[%s23149_s4 + $0xc8] sm:$0xff]  ;;  %14392 = vmatpush3.msra.mxu1 %v6545_v60  ;;  %v12254_v60 = vld [vmem:[%s23149_s4 + $0xb8] sm:$0xff] }
 0x1f5   :  { %v18113_v19 = vpop.f32.mrf.mxu1  ;;  %v18115_v3 = vpop.f32.mrf.mxu0  ;;  %14335 = vmatprep.subr.mxu0 %v12256_v1 }
 0x1f6   :  { %23744 = vst [vmem:[#allocation64_spill] sm:$0xff] %v18106_v29  ;;  %14336 = vmatpush3.msra.mxu0 %v12256_v1 }
 0x1f7   :  { %v14006_v21 = vpop.f32.mrf.mxu1  ;;  %v14038_v22 = vpop.f32.mrf.mxu0  ;;  %14325 = vmatmul.mubr.msk.f32.gmra.mxu1 %vm148_vm1, %v17967_v62 }
 0x1f8   :  { %v18123_v52 = vadd.f32 %v14006_v21, %v17508_v46  ;;  %v18126_v31 = vadd.f32 %v14038_v22, %v17511_v44  ;;  %v12255_v46 = vld [vmem:[%s23149_s4 + $0xc0] sm:$0xff] }
 0x1f9   :  { %v18128_v18 = vpop.f32.mrf.mxu1  ;;  %v18130_v39 = vpop.f32.mrf.mxu0  ;;  %14337 = vmatprep.subr.mxu0 %v12255_v46 }
 0x1fa   :  { %23745 = vst [vmem:[#allocation15_spill] sm:$0xff] %v18126_v31  ;;  %14338 = vmatpush3.msra.mxu0 %v12255_v46  ;;  %v6543_v31 = vld [vmem:[%s23149_s4 + $0x38] sm:$0xff] }
 0x1fb   :  { %v14041_v13 = vpop.f32.mrf.mxu0  ;;  %v14097_v10 = vpop.f32.mrf.mxu1  ;;  %14339 = vmatprep.subr.mxu0 %v12254_v60 }
 0x1fc   :  { %v18136_v29 = vadd.f32 %v14041_v13, %v17538_v5  ;;  %v18139_v62 = vadd.f32 %v14097_v10, %v17541_v15  ;;  %v6544_v13 = vld [vmem:[%s23149_s4 + $0x40] sm:$0xff]  ;;  %14340 = vmatpush3.msra.mxu0 %v12254_v60 }
 0x1fd   :  { %v18144_v44 = vpop.f32.mrf.mxu0  ;;  %v18146_v1 = vpop.f32.mrf.mxu1  ;;  %14393 = vmatprep.subr.mxu1 %v6544_v13 }
 0x1fe   :  { %23746 = vst [vmem:[#allocation38_spill] sm:$0xff] %v18136_v29  ;;  %14394 = vmatpush3.msra.mxu1 %v6544_v13  ;;  %v12253_v13 = vld [vmem:[%s23149_s4 + $0xb0] sm:$0xff] }
 0x1ff   :  { %v14044_v21 = vpop.f32.mrf.mxu0  ;;  %v14100_v22 = vpop.f32.mrf.mxu1  ;;  %14395 = vmatprep.subr.mxu1 %v6543_v31  ;;  %14341 = vmatprep.subr.mxu0 %v12253_v13 }
 0x200   :  { %v18149_v5 = vadd.f32 %v14044_v21, %v17568_v51  ;;  %v18152_v15 = vadd.f32 %v14100_v22, %v17571_v35  ;;  %14396 = vmatpush3.msra.mxu1 %v6543_v31  ;;  %14342 = vmatpush3.msra.mxu0 %v12253_v13 }
 0x201   :  { %v18157_v10 = vpop.f32.mrf.mxu0  ;;  %v18159_v29 = vpop.f32.mrf.mxu1 }
 0x202   :  { %23747 = vst [vmem:[#allocation65_spill] sm:$0xff] %v18149_v5 }
 0x203   :  { %v14047_v51 = vpop.f32.mrf.mxu0  ;;  %v14103_v46 = vpop.f32.mrf.mxu1 }
 0x204   :  { %v18165_v35 = vadd.f32 %v14047_v51, %v17598_v11  ;;  %v18168_v21 = vadd.f32 %v14103_v46, %v17601_v12 }
 0x205   :  { %v18170_v22 = vpop.f32.mrf.mxu0  ;;  %v18172_v5 = vpop.f32.mrf.mxu1 }
 0x206   :  { %23748 = vst [vmem:[#allocation66_spill] sm:$0xff] %v18165_v35  ;;  %23749 = vst [vmem:[#allocation5_spill] sm:$0xff] %v18168_v21 }
 0x207   :  { %v14050_v60 = vpop.f32.mrf.mxu0  ;;  %v14106_v25 = vpop.f32.mrf.mxu1 }
 0x208   :  { %v18181_v12 = vadd.f32 %v14050_v60, %v17628_v9  ;;  %v18184_v11 = vadd.f32 %v14106_v25, %v17631_v47 }
 0x209   :  { %v18186_v51 = vpop.f32.mrf.mxu0  ;;  %v18188_v46 = vpop.f32.mrf.mxu1 }
 0x20a   :  { %23750 = vst [vmem:[#allocation40_spill] sm:$0xff] %v18181_v12  ;;  %23751 = vst [vmem:[#allocation67_spill] sm:$0xff] %v18184_v11 }
 0x20b   :  { %v14053_v35 = vpop.f32.mrf.mxu0  ;;  %v14109_v28 = vpop.f32.mrf.mxu1 }
 0x20c   :  { %v18191_v54 = vadd.f32 %v14053_v35, %v17658_v30  ;;  %v18194_v21 = vadd.f32 %v14109_v28, %v17661_v14  ;;  %v6542_v14 = vld [vmem:[%s23149_s4 + $0x30] sm:$0xff]  ;;  %v12252_v35 = vld [vmem:[%s23149_s4 + $0xa8] sm:$0xff] }
 0x20d   :  { %v18196_v31 = vpop.f32.mrf.mxu0  ;;  %v18198_v9 = vpop.f32.mrf.mxu1  ;;  %14397 = vmatprep.subr.mxu1 %v6542_v14  ;;  %14343 = vmatprep.subr.mxu0 %v12252_v35 }
 0x20e   :  { %23752 = vst [vmem:[#allocation68_spill] sm:$0xff] %v18191_v54  ;;  %23753 = vst [vmem:[#allocation69_spill] sm:$0xff] %v18194_v21  ;;  %14398 = vmatpush3.msra.mxu1 %v6542_v14  ;;  %14344 = vmatpush3.msra.mxu0 %v12252_v35  ;;  %v23764_v21 = vld [vmem:[#allocation10_spill] sm:$0xff] }
 0x20f   :  { %v14056_v60 = vpop.f32.mrf.mxu0  ;;  %v14112_v47 = vpop.f32.mrf.mxu1 }
 0x210   :  { %v18201_v25 = vadd.f32 %v14056_v60, %v17688_v26  ;;  %v18204_v13 = vadd.f32 %v14112_v47, %v17691_v48  ;;  %v6541_v60 = vld [vmem:[%s23149_s4 + $0x28] sm:$0xff] }
 0x211   :  { %v18206_v12 = vpop.f32.mrf.mxu0  ;;  %v18208_v11 = vpop.f32.mrf.mxu1  ;;  %14399 = vmatprep.subr.mxu1 %v6541_v60 }
 0x212   :  { %23754 = vst [vmem:[#allocation70_spill] sm:$0xff] %v18201_v25  ;;  %23755 = vst [vmem:[#allocation90_spill] sm:$0xff] %v18204_v13  ;;  %14400 = vmatpush3.msra.mxu1 %v6541_v60 }
 0x213   :  { %v14059_v30 = vpop.f32.mrf.mxu0  ;;  %v14115_v28 = vpop.f32.mrf.mxu1 }
 0x214   :  { %v18217_v26 = vadd.f32 %v14059_v30, %v17718_v41  ;;  %v18220_v48 = vadd.f32 %v14115_v28, %v17721_v58  ;;  %v12251_v41 = vld [vmem:[%s23149_s4 + $0xa0] sm:$0xff]  ;;  %v12250_v28 = vld [vmem:[%s23149_s4 + $0x98] sm:$0xff] }
 0x215   :  { %v18225_v47 = vpop.f32.mrf.mxu0  ;;  %v18227_v25 = vpop.f32.mrf.mxu1  ;;  %14345 = vmatprep.subr.mxu0 %v12251_v41  ;;  %v6540_v58 = vld [vmem:[%s23149_s4 + $0x20] sm:$0xff] }
 0x216   :  { %23756 = vst [vmem:[#allocation91_spill] sm:$0xff] %v18217_v26  ;;  %23757 = vst [vmem:[#allocation92_spill] sm:$0xff] %v18220_v48  ;;  %14346 = vmatpush3.msra.mxu0 %v12251_v41  ;;  %14401 = vmatprep.subr.mxu1 %v6540_v58  ;;  %v6539_v41 = vld [vmem:[%s23149_s4 + $0x18] sm:$0xff] }
 0x217   :  { %v14062_v14 = vpop.f32.mrf.mxu0  ;;  %v14118_v30 = vpop.f32.mrf.mxu1  ;;  %14347 = vmatprep.subr.mxu0 %v12250_v28  ;;  %14402 = vmatpush3.msra.mxu1 %v6540_v58 }
 0x218   :  { %v18239_v35 = vadd.f32 %v14062_v14, %v17748_v6  ;;  %v18242_v26 = vadd.f32 %v14118_v30, %v17751_v42  ;;  %14348 = vmatpush3.msra.mxu0 %v12250_v28  ;;  %14403 = vmatprep.subr.mxu1 %v6539_v41  ;;  %v12249_v6 = vld [vmem:[%s23149_s4 + $0x90] sm:$0xff] }
 0x219   :  { %v18244_v60 = vpop.f32.mrf.mxu0  ;;  %v18246_v54 = vpop.f32.mrf.mxu1  ;;  %14349 = vmatprep.subr.mxu0 %v12249_v6  ;;  %14404 = vmatpush3.msra.mxu1 %v6539_v41 }
 0x21a   :  { %23758 = vst [vmem:[#allocation93_spill] sm:$0xff] %v18239_v35  ;;  %23759 = vst [vmem:[#allocation94_spill] sm:$0xff] %v18242_v26  ;;  %14350 = vmatpush3.msra.mxu0 %v12249_v6 }
 0x21b   :  { %v14065_v14 = vpop.f32.mrf.mxu0  ;;  %v14121_v35 = vpop.f32.mrf.mxu1 }
 0x21c   :  { %v18255_v42 = vadd.f32 %v14065_v14, %v17778_v56  ;;  %v18258_v58 = vadd.f32 %v14121_v35, %v17781_v36  ;;  %v6538_v36 = vld [vmem:[%s23149_s4 + $0x10] sm:$0xff]  ;;  %v12248_v14 = vld [vmem:[%s23149_s4 + $0x88] sm:$0xff] }
 0x21d   :  { %v18260_v30 = vpop.f32.mrf.mxu0  ;;  %v18262_v28 = vpop.f32.mrf.mxu1  ;;  %14405 = vmatprep.subr.mxu1 %v6538_v36  ;;  %14351 = vmatprep.subr.mxu0 %v12248_v14 }
 0x21e   :  { %23760 = vst [vmem:[#allocation95_spill] sm:$0xff] %v18255_v42  ;;  %23761 = vst [vmem:[#allocation96_spill] sm:$0xff] %v18258_v58  ;;  %14406 = vmatpush3.msra.mxu1 %v6538_v36  ;;  %14352 = vmatpush3.msra.mxu0 %v12248_v14 }
 0x21f   :  { %23762 = vst [vmem:[#allocation97_spill] sm:$0xff] %v18262_v28  ;;  %v14068_v26 = vpop.f32.mrf.mxu0  ;;  %v14124_v48 = vpop.f32.mrf.mxu1 }
 0x220   :  { %v18265_v13 = vadd.f32 %v14068_v26, %v17807_v8  ;;  %v18268_v0 = vadd.f32 %v14124_v48, %v23764_v21  ;;  %v23768_v8 = vld [vmem:[#allocation50_spill] sm:$0xff]  ;;  %v23770_v21 = vld [vmem:[#allocation11_spill] sm:$0xff] }
 0x221   :  { %v18270_v41 = vpop.f32.mrf.mxu0  ;;  %v18272_v56 = vpop.f32.mrf.mxu1 }
 0x222   :  { %23763 = vst [vmem:[#allocation98_spill] sm:$0xff] %v18265_v13  ;;  %23765 = vst [vmem:[#allocation10_spill] sm:$0xff] %v18268_v0  ;;  %v6537_v0 = vld [vmem:[%s23149_s4 + $0x8] sm:$0xff] }
 0x223   :  { %23766 = vst [vmem:[#allocation99_spill] sm:$0xff] %v18270_v41  ;;  %23767 = vst [vmem:[#allocation100_spill] sm:$0xff] %v18272_v56  ;;  %v14071_v35 = vpop.f32.mrf.mxu0  ;;  %v14127_v6 = vpop.f32.mrf.mxu1  ;;  %14407 = vmatprep.subr.mxu1 %v6537_v0  ;;  %v23782_v56 = vld [vmem:[#allocation55_spill] sm:$0xff] }
 0x224   :  { %v18281_v26 = vadd.f32 %v14071_v35, %v23768_v8  ;;  %v18284_v48 = vadd.f32 %v14127_v6, %v23770_v21  ;;  %14408 = vmatpush3.msra.mxu1 %v6537_v0  ;;  %v23774_v35 = vld [vmem:[#allocation52_spill] sm:$0xff] }
 0x225   :  { %v18286_v13 = vpop.f32.mrf.mxu0  ;;  %v18288_v42 = vpop.f32.mrf.mxu1  ;;  %v23776_v6 = vld [vmem:[#allocation12_spill] sm:$0xff] }
 0x226   :  { %23769 = vst [vmem:[#allocation50_spill] sm:$0xff] %v18281_v26  ;;  %23771 = vst [vmem:[#allocation11_spill] sm:$0xff] %v18284_v48 }
 0x227   :  { %23772 = vst [vmem:[#allocation101_spill] sm:$0xff] %v18286_v13  ;;  %23773 = vst [vmem:[#allocation102_spill] sm:$0xff] %v18288_v42  ;;  %v14074_v58 = vpop.f32.mrf.mxu0  ;;  %v14130_v59 = vpop.f32.mrf.mxu1  ;;  %v23780_v42 = vld [vmem:[#allocation54_spill] sm:$0xff] }
 0x228   :  { %v18294_v8 = vadd.f32 %v14074_v58, %v23774_v35  ;;  %v18297_v21 = vadd.f32 %v14130_v59, %v23776_v6  ;;  %v23786_v59 = vld [vmem:[#allocation57_spill] sm:$0xff] }
 0x229   :  { %v18299_v36 = vpop.f32.mrf.mxu0  ;;  %v18301_v26 = vpop.f32.mrf.mxu1 }
 0x22a   :  { %23775 = vst [vmem:[#allocation52_spill] sm:$0xff] %v18294_v8  ;;  %23777 = vst [vmem:[#allocation12_spill] sm:$0xff] %v18297_v21  ;;  %v23788_v8 = vld [vmem:[#allocation30_spill] sm:$0xff] }
 0x22b   :  { %23778 = vst [vmem:[#allocation103_spill] sm:$0xff] %v18299_v36  ;;  %23779 = vst [vmem:[#allocation104_spill] sm:$0xff] %v18301_v26  ;;  %v14077_v48 = vpop.f32.mrf.mxu0  ;;  %v14133_v14 = vpop.f32.mrf.mxu1 }
 0x22c   :  { %v18304_v13 = vadd.f32 %v14077_v48, %v23780_v42  ;;  %v18307_v41 = vadd.f32 %v14133_v14, %v23782_v56  ;;  %v23791_v56 = vld [vmem:[#allocation32_spill] sm:$0xff] }
 0x22d   :  { %v18309_v28 = vpop.f32.mrf.mxu0  ;;  %v18311_v0 = vpop.f32.mrf.mxu1 }
 0x22e   :  { %23781 = vst [vmem:[#allocation54_spill] sm:$0xff] %v18304_v13  ;;  %23783 = vst [vmem:[#allocation55_spill] sm:$0xff] %v18307_v41  ;;  %v23793_v13 = vld [vmem:[#allocation60_spill] sm:$0xff] }
 0x22f   :  { %23784 = vst [vmem:[#allocation105_spill] sm:$0xff] %v18309_v28  ;;  %23785 = vst [vmem:[#allocation106_spill] sm:$0xff] %v18311_v0  ;;  %v14080_v58 = vpop.f32.mrf.mxu0  ;;  %v14136_v35 = vpop.f32.mrf.mxu1 }
 0x230   :  { %v18314_v6 = vadd.f32 %v14080_v58, %v23786_v59  ;;  %v18317_v21 = vadd.f32 %v14136_v35, %v23788_v8  ;;  %v12247_v8 = vld [vmem:[%s23149_s4 + $0x80] sm:$0xff] }
 0x231   :  { %v18319_v26 = vpop.f32.mrf.mxu0  ;;  %v18321_v36 = vpop.f32.mrf.mxu1  ;;  %14353 = vmatprep.subr.mxu0 %v12247_v8 }
 0x232   :  { %23787 = vst [vmem:[#allocation57_spill] sm:$0xff] %v18314_v6  ;;  %23789 = vst [vmem:[#allocation30_spill] sm:$0xff] %v18317_v21  ;;  %14354 = vmatpush3.msra.mxu0 %v12247_v8 }
 0x233   :  { %23790 = vst [vmem:[#allocation107_spill] sm:$0xff] %v18321_v36  ;;  %v14083_v42 = vpop.f32.mrf.mxu0  ;;  %v14139_v48 = vpop.f32.mrf.mxu1 }
 0x234   :  { %v18324_v14 = vadd.f32 %v14083_v42, %v23791_v56  ;;  %v18327_v41 = vadd.f32 %v14139_v48, %v23793_v13 }
 0x235   :  { %v18329_v0 = vpop.f32.mrf.mxu0  ;;  %v18331_v28 = vpop.f32.mrf.mxu1 }
 0x236   :  { %23792 = vst [vmem:[#allocation32_spill] sm:$0xff] %v18324_v14  ;;  %23794 = vst [vmem:[#allocation60_spill] sm:$0xff] %v18327_v41  ;;  %v6536_v14 = vld [vmem:[%s23149_s4] sm:$0xff] }
 0x237   :  { %23795 = vst [vmem:[#allocation108_spill] sm:$0xff] %v18329_v0  ;;  %23796 = vst [vmem:[#allocation109_spill] sm:$0xff] %v18331_v28  ;;  %v14086_v58 = vpop.f32.mrf.mxu0  ;;  %v14142_v59 = vpop.f32.mrf.mxu1  ;;  %14409 = vmatprep.subr.mxu1 %v6536_v14 }
 0x238   :  { %v18337_v35 = vadd.f32 %v14086_v58, %v17986_v32  ;;  %v18340_v6 = vadd.f32 %v14142_v59, %v17989_v23  ;;  %v12246_v23 = vld [vmem:[%s23149_s4 + $0x78] sm:$0xff]  ;;  %14410 = vmatpush3.msra.mxu1 %v6536_v14 }
 0x239   :  { %v18342_v42 = vpop.f32.mrf.mxu0  ;;  %v18344_v13 = vpop.f32.mrf.mxu1  ;;  %14355 = vmatprep.subr.mxu0 %v12246_v23 }
 0x23a   :  { %23797 = vst [vmem:[#allocation110_spill] sm:$0xff] %v18337_v35  ;;  %23798 = vst [vmem:[#allocation111_spill] sm:$0xff] %v18340_v6  ;;  %14356 = vmatpush3.msra.mxu0 %v12246_v23 }
 0x23b   :  { %23799 = vst [vmem:[#allocation112_spill] sm:$0xff] %v18342_v42  ;;  %23800 = vst [vmem:[#allocation113_spill] sm:$0xff] %v18344_v13  ;;  %v14145_v48 = vpop.f32.mrf.mxu1  ;;  %v14177_v56 = vpop.f32.mrf.mxu0 }
 0x23c   :  { %v18350_v41 = vadd.f32 %v14145_v48, %v18001_v49 }
 0x23d   :  { %v18355_v32 = vpop.f32.mrf.mxu1  ;;  %v3769_v58 = vpop.f32.mrf.mxu0 }
 0x23e   :  { %23801 = vst [vmem:[#allocation114_spill] sm:$0xff] %v18350_v41  ;;  %23802 = vst [vmem:[#allocation115_spill] sm:$0xff] %v18355_v32 }
 0x23f   :  { %v14148_v59 = vpop.f32.mrf.mxu1  ;;  %v14180_v8 = vpop.f32.mrf.mxu0 }
 0x240   :  { %v18358_v35 = vadd.f32 %v14148_v59, %v18021_v27 }
 0x241   :  { %v18360_v6 = vpop.f32.mrf.mxu1  ;;  %v18362_v49 = vpop.f32.mrf.mxu0 }
 0x242   :  { %23803 = vst [vmem:[#allocation116_spill] sm:$0xff] %v18358_v35  ;;  %23804 = vst [vmem:[#allocation117_spill] sm:$0xff] %v18360_v6 }
 0x243   :  { %v14151_v48 = vpop.f32.mrf.mxu1  ;;  %v18364_v41 = vpop.f32.mrf.mxu0 }
 0x244   :  { %23805 = vst [vmem:[#allocation118_spill] sm:$0xff] %v18364_v41  ;;  %v18367_v21 = vadd.f32 %v14151_v48, %v18035_v37  ;;  %v23833_v41 = vld [vmem:[#allocation39_spill] sm:$0xff] }
 0x245   :  { %v18369_v32 = vpop.f32.mrf.mxu1  ;;  %v18371_v13 = vpop.f32.mrf.mxu0 }
 0x246   :  { %23806 = vst [vmem:[#allocation119_spill] sm:$0xff] %v18367_v21  ;;  %23807 = vst [vmem:[#allocation120_spill] sm:$0xff] %v18369_v32  ;;  %v23832_v32 = vld [vmem:[#allocation16_spill] sm:$0xff] }
 0x247   :  { %23808 = vst [vmem:[#allocation121_spill] sm:$0xff] %v18371_v13  ;;  %v14154_v14 = vpop.f32.mrf.mxu1  ;;  %v18373_v23 = vpop.f32.mrf.mxu0  ;;  %v1036_v28 = vadd.f32 %v23833_v41, %v23832_v32  ;;  %v18443_v32 = vadd.f32 %v14180_v8, %v18024_v24 }
 0x248   :  { %23809 = vst [vmem:[#allocation122_spill] sm:$0xff] %v18373_v23  ;;  %v18376_v27 = vadd.f32 %v14154_v14, %v18049_v45 }
 0x249   :  { %v18378_v59 = vpop.f32.mrf.mxu1  ;;  %v18380_v35 = vpop.f32.mrf.mxu0 }
 0x24a   :  { %23810 = vst [vmem:[#allocation123_spill] sm:$0xff] %v18376_v27  ;;  %23811 = vst [vmem:[#allocation124_spill] sm:$0xff] %v18378_v59 }
 0x24b   :  { %23812 = vst [vmem:[#allocation125_spill] sm:$0xff] %v18380_v35  ;;  %v14157_v6 = vpop.f32.mrf.mxu1  ;;  %v18382_v42 = vpop.f32.mrf.mxu0 }
 0x24c   :  { %23813 = vst [vmem:[#allocation126_spill] sm:$0xff] %v18382_v42  ;;  %v18385_v37 = vadd.f32 %v14157_v6, %v18069_v63 }
 0x24d   :  { %v18387_v48 = vpop.f32.mrf.mxu1  ;;  %v18389_v21 = vpop.f32.mrf.mxu0 }
 0x24e   :  { %23814 = vst [vmem:[#allocation127_spill] sm:$0xff] %v18385_v37  ;;  %23815 = vst [vmem:[#allocation128_spill] sm:$0xff] %v18387_v48  ;;  %v23826_v48 = vld [vmem:[#allocation72_spill] sm:$0xff] }
 0x24f   :  { %23816 = vst [vmem:[#allocation129_spill] sm:$0xff] %v18389_v21  ;;  %v14160_v13 = vpop.f32.mrf.mxu1  ;;  %v18396_v14 = vpop.f32.mrf.mxu0 }
 0x250   :  { %v18392_v23 = vadd.f32 %v14160_v13, %v18089_v50  ;;  %23819 = vst [vmem:[#allocation132_spill] sm:$0xff] %v18396_v14  ;;  %v4572_v14 = vlaneseq }
 0x251   :  { %v18394_v45 = vpop.f32.mrf.mxu1  ;;  %v18403_v63 = vpop.f32.mrf.mxu0 }
 0x252   :  { %23817 = vst [vmem:[#allocation130_spill] sm:$0xff] %v18392_v23  ;;  %23818 = vst [vmem:[#allocation131_spill] sm:$0xff] %v18394_v45  ;;  %v15041_v23 = vmov 1983009808  }
 0x253   :  { %v14163_v27 = vpop.f32.mrf.mxu1  ;;  %23822 = vst [vmem:[#allocation135_spill] sm:$0xff] %v18403_v63  ;;  %v18410_v50 = vpop.f32.mrf.mxu0  ;;  %v4570_v45 = vunpack.c.l.s4 %v15041_v23  ;;  %v23831_v63 = vld [vmem:[#allocation37_spill] sm:$0xff] }
 0x254   :  { %v18399_v35 = vadd.f32 %v14163_v27, %v18103_v55  ;;  %23825 = vst [vmem:[#allocation138_spill] sm:$0xff] %v18410_v50  ;;  %v3094_v55 = vadd.f32 %v18010_v7, %v23826_v48  ;;  %v23827_v27 = vld [vmem:[#allocation88_spill] sm:$0xff] }
 0x255   :  { %v18401_v42 = vpop.f32.mrf.mxu1  ;;  %v23830_v50 = vld [vmem:[#allocation24_spill] sm:$0xff]  ;;  %v18430_v48 = vpop.f32.mrf.mxu0  ;;  %v4571_v36 = vunpack.c.0.s8 %v4570_v45 }
 0x256   :  { %23820 = vst [vmem:[#allocation133_spill] sm:$0xff] %v18399_v35  ;;  %23821 = vst [vmem:[#allocation134_spill] sm:$0xff] %v18401_v42  ;;  %v3455_v35 = vadd.f32 %v18146_v1, %v23827_v27  ;;  %v18417_v42 = vadd.f32 %v14177_v56, %v18004_v43  ;;  %v1026_v59 = vadd.f32 %v23831_v63, %v23830_v50  ;;  %v23837_v56 = vld [vmem:[#allocation41_spill] sm:$0xff]  ;;  %v23839_v27 = vld [vmem:[#allocation22_spill] sm:$0xff] }
 0x257   :  { %v14166_v6 = vpop.f32.mrf.mxu1  ;;  %v18428_v7 = vadd.f32 %v3769_v58, %v3094_v55  ;;  %23834 = vst [vmem:[#allocation72_spill] sm:$0xff] %v18430_v48  ;;  %v23840_v63 = vld [vmem:[#allocation29_spill] sm:$0xff]  ;;  %v4573_v58 = vshrl.u32 %v4572_v14, 7  ;;  %v23842_v55 = vld [vmem:[#allocation31_spill] sm:$0xff]  ;;  %v23848_v14 = vld [vmem:[#allocation28_spill] sm:$0xff] }
 0x258   :  { %v18406_v37 = vadd.f32 %v14166_v6, %v18123_v52  ;;  %v23828_v6 = vld [vmem:[#allocation13_spill] sm:$0xff]  ;;  %v23849_v48 = vld [vmem:[#allocation58_spill] sm:$0xff] }
 0x259   :  { %v18408_v21 = vpop.f32.mrf.mxu1  ;;  %v23841_v50 = vld [vmem:[#allocation49_spill] sm:$0xff] }
 0x25a   :  { %23823 = vst [vmem:[#allocation136_spill] sm:$0xff] %v18406_v37  ;;  %23824 = vst [vmem:[#allocation137_spill] sm:$0xff] %v18408_v21  ;;  %v23829_v37 = vld [vmem:[#allocation35_spill] sm:$0xff]  ;;  %v2214_v0 = vadd.f32 %v23841_v50, %v23840_v63  ;;  %v23847_v63 = vld [vmem:[#allocation89_spill] sm:$0xff] }
 0x25b   :  { %v14257_v13 = vpop.f32.mrf.mxu1  ;;  %v1016_v21 = vadd.f32 %v23829_v37, %v23828_v6  ;;  %v23838_v37 = vld [vmem:[#allocation27_spill] sm:$0xff]  ;;  %v3457_v24 = vadd.f32 %v18159_v29, %v23847_v63 }
 0x25c   :  { %v18420_v52 = vadd.f32 %v14257_v13, %v18139_v62  ;;  %v23836_v62 = vld [vmem:[#allocation17_spill] sm:$0xff]  ;;  %v2212_v6 = vadd.f32 %v23839_v27, %v23838_v37  ;;  %v23846_v27 = vld [vmem:[#allocation74_spill] sm:$0xff] }
 0x25d   :  { %v4130_v23 = vpop.f32.mrf.mxu1  ;;  %v1046_v13 = vadd.f32 %v23837_v56, %v23836_v62  ;;  %v23844_v62 = vld [vmem:[#allocation33_spill] sm:$0xff]  ;;  %v3096_v45 = vadd.f32 %v18030_v38, %v23846_v27  ;;  %v2220_v50 = vadd.f32 %v23848_v14, %v1016_v21 }
 0x25e   :  { %v4418_v43 = vmax.f32 %v18417_v42, %v18420_v52  ;;  %v18434_v1 = vadd.f32 %v4130_v23, %v3455_v35  ;;  %v23843_v52 = vld [vmem:[#allocation51_spill] sm:$0xff]  ;;  %v23845_v56 = vld [vmem:[#allocation53_spill] sm:$0xff]  ;;  %v2222_v42 = vadd.f32 %v23849_v48, %v1026_v59 }
 0x25f   :  { %v14260_v41 = vpop.f32.mrf.mxu1  ;;  %v2216_v23 = vadd.f32 %v23843_v52, %v23842_v55  ;;  %v2218_v37 = vadd.f32 %v23845_v56, %v23844_v62  ;;  %v2226_v52 = vadd.f32 %v17993_v61, %v1046_v13  ;;  %v23851_v62 = vld [vmem:[#allocation71_spill] sm:$0xff]  ;;  %v18469_v56 = vadd.f32 %v18362_v49, %v3096_v45  ;;  %v23852_v21 = vld [vmem:[#allocation73_spill] sm:$0xff] }
 0x260   :  { %23835 = vst [vmem:[#allocation88_spill] sm:$0xff] %v18434_v1  ;;  %v18448_v35 = vadd.f32 %v14260_v41, %v18152_v15  ;;  %v23850_v1 = vld [vmem:[#allocation21_spill] sm:$0xff]  ;;  %v18461_v41 = vpop.f32.mrf.mxu0  ;;  %v2573_v38 = vadd.f32 %v18008_v20, %v23851_v62  ;;  %v2575_v59 = vadd.f32 %v18028_v2, %v23852_v21  ;;  %v23853_v48 = vld [vmem:[#allocation75_spill] sm:$0xff]  ;;  %v23857_v20 = vld [vmem:[#allocation78_spill] sm:$0xff] }
 0x261   :  { %v4140_v8 = vpop.f32.mrf.mxu1  ;;  %v2224_v15 = vadd.f32 %v23850_v1, %v1036_v28  ;;  %v2577_v28 = vadd.f32 %v18042_v33, %v23853_v48  ;;  %v23854_v1 = vld [vmem:[#allocation76_spill] sm:$0xff]  ;;  %v23856_v61 = vld [vmem:[#allocation77_spill] sm:$0xff]  ;;  %v3100_v49 = vadd.f32 %v18058_v53, %v23857_v20  ;;  %v23859_v2 = vld [vmem:[#allocation79_spill] sm:$0xff] }
 0x262   :  { %v4420_v55 = vmax.f32 %v18443_v32, %v18448_v35  ;;  %v18471_v29 = vadd.f32 %v4140_v8, %v3457_v24  ;;  %v3098_v27 = vadd.f32 %v18044_v34, %v23854_v1  ;;  %v18479_v32 = vsub.s32 %v4571_v36, %v4573_v58  ;;  %v23860_v33 = vld [vmem:[#allocation80_spill] sm:$0xff]  ;;  %v23861_v34 = vld [vmem:[#allocation81_spill] sm:$0xff]  ;;  %v23862_v8 = vld [vmem:[#allocation82_spill] sm:$0xff]  ;;  %v18501_v53 = vpop.f32.mrf.mxu0 }
 0x263   :  { %v2579_v13 = vadd.f32 %v18056_v40, %v23856_v61  ;;  %v18485_v35 = vsub.s32 0, %v4573_v58  ;;  %v2581_v63 = vadd.f32 %v18076_v4, %v23859_v2  ;;  %v3102_v24 = vadd.f32 %v18078_v57, %v23860_v33  ;;  %v23863_v58 = vld [vmem:[#allocation83_spill] sm:$0xff]  ;;  %v23864_v62 = vld [vmem:[#allocation84_spill] sm:$0xff]  ;;  %v23865_v21 = vld [vmem:[#allocation85_spill] sm:$0xff] }
 0x264   :  { %23855 = vst [vmem:[#allocation13_spill] sm:$0xff] %v18479_v32  ;;  %v18495_v36 = vadd.f32 %v18096_v16, %v23861_v34  ;;  %v18499_v40 = vadd.f32 %v18098_v17, %v23862_v8  ;;  %v18505_v14 = vadd.f32 %v18113_v19, %v23863_v58  ;;  %v18509_v4 = vadd.f32 %v18115_v3, %v23864_v62  ;;  %v23866_v16 = vld [vmem:[#allocation86_spill] sm:$0xff]  ;;  %v23867_v17 = vld [vmem:[#allocation87_spill] sm:$0xff]  ;;  %v23874_v58 = vld [vmem:[#allocation44_spill] sm:$0xff] }
 0x265   :  { %23858 = vst [vmem:[#allocation35_spill] sm:$0xff] %v18485_v35  ;;  %v18513_v57 = vadd.f32 %v18128_v18, %v23865_v21  ;;  %v18517_v48 = vadd.f32 %v18130_v39, %v23866_v16  ;;  %v18521_v1 = vadd.f32 %v18144_v44, %v23867_v17  ;;  %v23868_v61 = vld [vmem:[#allocation6_spill] sm:$0xff]  ;;  %v18538_v39 = vld [vmem:[%s23148_s3] ss:$0 sm:$0xff]  ;;  %v23875_v62 = vld [vmem:[#allocation8_spill] sm:$0xff] }
 0x266   :  { %v18525_v19 = vadd.f32 %v18157_v10, %v23868_v61  ;;  %v23869_v20 = vld [vmem:[#allocation18_spill] sm:$0xff]  ;;  %v23871_v33 = vld [vmem:[#allocation7_spill] sm:$0xff]  ;;  %v18558_v21 = vadd.f32 %v18206_v12, %v23875_v62  ;;  %v23876_v16 = vld [vmem:[#allocation45_spill] sm:$0xff] }
 0x267   :  { %v18529_v3 = vadd.f32 %v18170_v22, %v23869_v20  ;;  %v23870_v2 = vld [vmem:[#allocation42_spill] sm:$0xff]  ;;  %v18542_v44 = vadd.f32 %v18186_v51, %v23871_v33  ;;  %v23872_v34 = vld [vmem:[#allocation43_spill] sm:$0xff]  ;;  %v18562_v51 = vadd.f32 %v18208_v11, %v23876_v16  ;;  %v23877_v17 = vld [vmem:[#allocation20_spill] sm:$0xff]  ;;  %v18572_v20 = vpop.f32.mrf.mxu0  ;;  %v18583_v11 = vadd.f32 %v18260_v30, %v2212_v6 }
 0x268   :  { %v18533_v18 = vadd.f32 %v18172_v5, %v23870_v2  ;;  %v18546_v10 = vadd.f32 %v18188_v46, %v23872_v34  ;;  %v23873_v8 = vld [vmem:[#allocation19_spill] sm:$0xff]  ;;  %v18554_v5 = vadd.f32 %v18198_v9, %v23874_v58  ;;  %v18566_v46 = vadd.f32 %v18225_v47, %v23877_v17  ;;  %v23878_v61 = vld [vmem:[#allocation46_spill] sm:$0xff]  ;;  %v23879_v9 = vld [vmem:[#allocation9_spill] sm:$0xff] }
 0x269   :  { %v18550_v22 = vadd.f32 %v18196_v31, %v23873_v8  ;;  %v18570_v31 = vadd.f32 %v18227_v25, %v23878_v61  ;;  %v18576_v2 = vadd.f32 %v18244_v60, %v23879_v9  ;;  %v23881_v12 = vld [vmem:[#allocation47_spill] sm:$0xff]  ;;  %23882 = vst [vmem:[#allocation37_spill] sm:$0xff] %v18583_v11  ;;  %v4473_v47 = vadd.f32 %v18538_v39, %v4418_v43  ;;  %v23883_v34 = vld [vmem:[#allocation48_spill] sm:$0xff]  ;;  %v23884_v8 = vld [vmem:[#allocation97_spill] sm:$0xff] }
 0x26a   :  { %v18580_v33 = vadd.f32 %v18246_v54, %v23881_v12  ;;  %v18588_v58 = vadd.f32 %v23884_v8, %v23883_v34  ;;  %v23886_v25 = vld [vmem:[#allocation99_spill] sm:$0xff]  ;;  %v23889_v17 = vld [vmem:[#allocation100_spill] sm:$0xff]  ;;  %v23891_v61 = vld [vmem:[#allocation101_spill] sm:$0xff]  ;;  %v14263_v54 = vpop.f32.mrf.mxu1 }
 0x26b   :  { %23880 = vst [vmem:[#allocation24_spill] sm:$0xff] %v18576_v2  ;;  %v18591_v62 = vadd.f32 %v23886_v25, %v2214_v0  ;;  %v23888_v16 = vld [vmem:[#allocation23_spill] sm:$0xff]  ;;  %v18598_v9 = vadd.f32 %v23891_v61, %v2216_v23  ;;  %v23893_v12 = vld [vmem:[#allocation25_spill] sm:$0xff]  ;;  %v23894_v30 = vld [vmem:[#allocation102_spill] sm:$0xff]  ;;  %v18619_v23 = vadd.f32 %v18319_v26, %v2222_v42 }
 0x26c   :  { %23885 = vst [vmem:[#allocation16_spill] sm:$0xff] %v18588_v58  ;;  %v18595_v60 = vadd.f32 %v23889_v17, %v23888_v16  ;;  %v18602_v6 = vadd.f32 %v23894_v30, %v23893_v12  ;;  %v23896_v43 = vld [vmem:[#allocation103_spill] sm:$0xff]  ;;  %v23898_v34 = vld [vmem:[#allocation26_spill] sm:$0xff]  ;;  %v23899_v8 = vld [vmem:[#allocation104_spill] sm:$0xff] }
 0x26d   :  { %23887 = vst [vmem:[#allocation39_spill] sm:$0xff] %v18591_v62  ;;  %23892 = vst [vmem:[#allocation41_spill] sm:$0xff] %v18598_v9  ;;  %v18605_v45 = vadd.f32 %v23896_v43, %v2218_v37  ;;  %v18609_v11 = vadd.f32 %v23899_v8, %v23898_v34  ;;  %v23901_v0 = vld [vmem:[#allocation105_spill] sm:$0xff]  ;;  %v23903_v16 = vld [vmem:[#allocation56_spill] sm:$0xff] }
 0x26e   :  { %23890 = vst [vmem:[#allocation17_spill] sm:$0xff] %v18595_v60  ;;  %23895 = vst [vmem:[#allocation27_spill] sm:$0xff] %v18602_v6  ;;  %v18612_v25 = vadd.f32 %v23901_v0, %v2220_v50  ;;  %v23904_v17 = vld [vmem:[#allocation106_spill] sm:$0xff]  ;;  %v23907_v61 = vld [vmem:[#allocation59_spill] sm:$0xff] }
 0x26f   :  { %23897 = vst [vmem:[#allocation22_spill] sm:$0xff] %v18605_v45  ;;  %23900 = vst [vmem:[#allocation29_spill] sm:$0xff] %v18609_v11  ;;  %v18616_v62 = vadd.f32 %v23904_v17, %v23903_v16  ;;  %v23908_v12 = vld [vmem:[#allocation107_spill] sm:$0xff]  ;;  %v23910_v37 = vld [vmem:[#allocation108_spill] sm:$0xff]  ;;  %v3849_v45 = vpop.f32.mrf.mxu0  ;;  %v4585_v16 = vcombine.high %v4473_v47, %v4473_v47 }
 0x270   :  { %23902 = vst [vmem:[#allocation49_spill] sm:$0xff] %v18612_v25  ;;  %23906 = vst [vmem:[#allocation51_spill] sm:$0xff] %v18619_v23  ;;  %v18623_v30 = vadd.f32 %v23908_v12, %v23907_v61  ;;  %v18626_v43 = vadd.f32 %v23910_v37, %v2224_v15  ;;  %v23912_v34 = vld [vmem:[#allocation34_spill] sm:$0xff]  ;;  %v23913_v8 = vld [vmem:[#allocation109_spill] sm:$0xff] }
 0x271   :  { %23905 = vst [vmem:[#allocation31_spill] sm:$0xff] %v18616_v62  ;;  %v18630_v9 = vadd.f32 %v23913_v8, %v23912_v34  ;;  %v23915_v50 = vld [vmem:[#allocation62_spill] sm:$0xff]  ;;  %v23917_v17 = vld [vmem:[#allocation5_spill] sm:$0xff]  ;;  %v23918_v42 = vld [vmem:[#allocation112_spill] sm:$0xff]  ;;  %v4475_v8 = vadd.f32 %v18538_v39, %v4420_v55 }
 0x272   :  { %23909 = vst [vmem:[#allocation33_spill] sm:$0xff] %v18623_v30  ;;  %23911 = vst [vmem:[#allocation53_spill] sm:$0xff] %v18626_v43  ;;  %v23916_v0 = vld [vmem:[#allocation118_spill] sm:$0xff]  ;;  %v18637_v26 = vadd.f32 %v14263_v54, %v23917_v17  ;;  %v18640_v23 = vadd.f32 %v23918_v42, %v2226_v52  ;;  %v23920_v61 = vld [vmem:[#allocation61_spill] sm:$0xff]  ;;  %v4592_v52 = vrot.slane %v4473_v47, %v18479_v32 }
 0x273   :  { %23914 = vst [vmem:[#allocation74_spill] sm:$0xff] %v18630_v9  ;;  %v18634_v25 = vadd.f32 %v23916_v0, %v23915_v50  ;;  %v23921_v12 = vld [vmem:[#allocation113_spill] sm:$0xff]  ;;  %v23923_v37 = vld [vmem:[#allocation88_spill] sm:$0xff]  ;;  %v23925_v50 = vld [vmem:[#allocation115_spill] sm:$0xff] }
 0x274   :  { %23919 = vst [vmem:[#allocation89_spill] sm:$0xff] %v18640_v23  ;;  %v18644_v15 = vadd.f32 %v23921_v12, %v23920_v61  ;;  %v23924_v43 = vmax.f32 %v18428_v7, %v23923_v37  ;;  %v18652_v0 = vadd.f32 %v23925_v50, %v2573_v38  ;;  %v23927_v9 = vld [vmem:[#allocation117_spill] sm:$0xff]  ;;  %v23929_v42 = vld [vmem:[#allocation120_spill] sm:$0xff]  ;;  %v23933_v37 = vld [vmem:[#allocation122_spill] sm:$0xff] }
 0x275   :  { %v18655_v54 = vadd.f32 %v23927_v9, %v2575_v59  ;;  %v4422_v17 = vmax.f32 %v18634_v25, %v18637_v26  ;;  %v18661_v61 = vadd.f32 %v23929_v42, %v2577_v28  ;;  %v23931_v12 = vld [vmem:[#allocation121_spill] sm:$0xff]  ;;  %v23934_v38 = vld [vmem:[#allocation124_spill] sm:$0xff]  ;;  %v14204_v59 = vpop.f32.mrf.mxu0  ;;  %v4150_v9 = vpop.f32.mrf.mxu1  ;;  %v23938_v25 = vld [vmem:[#allocation126_spill] sm:$0xff] }
 0x276   :  { %23922 = vst [vmem:[#allocation28_spill] sm:$0xff] %v18644_v15  ;;  %v4472_v34 = vadd.f32 %v18538_v39, %v23924_v43  ;;  %23926 = vst [vmem:[#allocation58_spill] sm:$0xff] %v18652_v0  ;;  %v18664_v7 = vadd.f32 %v23931_v12, %v3098_v27  ;;  %v23932_v43 = vld [vmem:[#allocation14_spill] sm:$0xff]  ;;  %v18671_v50 = vadd.f32 %v23934_v38, %v2579_v13  ;;  %v23937_v0 = vld [vmem:[#allocation36_spill] sm:$0xff] }
 0x277   :  { %23928 = vst [vmem:[#allocation21_spill] sm:$0xff] %v18655_v54  ;;  %23930 = vst [vmem:[#allocation71_spill] sm:$0xff] %v18661_v61  ;;  %v18668_v55 = vadd.f32 %v23933_v37, %v23932_v43  ;;  %v23936_v54 = vld [vmem:[#allocation125_spill] sm:$0xff]  ;;  %v18678_v26 = vadd.f32 %v23938_v25, %v23937_v0  ;;  %v23939_v28 = vld [vmem:[#allocation128_spill] sm:$0xff]  ;;  %v4599_v27 = vrot.slane %v4585_v16, %v18479_v32 }
 0x278   :  { %23935 = vst [vmem:[#allocation73_spill] sm:$0xff] %v18671_v50  ;;  %v18674_v47 = vadd.f32 %v23936_v54, %v3100_v49  ;;  %v18681_v42 = vadd.f32 %v23939_v28, %v2581_v63  ;;  %v23941_v12 = vld [vmem:[#allocation129_spill] sm:$0xff]  ;;  %v4568_v37 = vcombine.high %v4472_v34, %v4472_v34  ;;  %v4619_v13 = vcombine.high %v4475_v8, %v4475_v8  ;;  %v23942_v50 = vld [vmem:[#allocation63_spill] sm:$0xff]  ;;  %v23943_v61 = vld [vmem:[#allocation132_spill] sm:$0xff] }
 0x279   :  { %v18685_v43 = vadd.f32 %v23941_v12, %v3102_v24  ;;  %v4626_v38 = vrot.slane %v4475_v8, %v18479_v32  ;;  %v18690_v49 = vadd.f32 %v23943_v61, %v23942_v50  ;;  %v23944_v54 = vld [vmem:[#allocation131_spill] sm:$0xff]  ;;  %v4600_v16 = vcombine.high %v4592_v52, %v4592_v52  ;;  %v23947_v28 = vld [vmem:[#allocation64_spill] sm:$0xff]  ;;  %v23948_v24 = vld [vmem:[#allocation138_spill] sm:$0xff]  ;;  %v3859_v50 = vpop.f32.mrf.mxu0 }
 0x27a   :  { %23940 = vst [vmem:[#allocation75_spill] sm:$0xff] %v18681_v42  ;;  %v18694_v0 = vadd.f32 %v23944_v54, %v18495_v36  ;;  %v23946_v63 = vld [vmem:[#allocation135_spill] sm:$0xff]  ;;  %v18702_v12 = vadd.f32 %v23948_v24, %v23947_v28  ;;  %v23949_v42 = vld [vmem:[#allocation134_spill] sm:$0xff]  ;;  %v4575_v61 = vrot.slane %v4472_v34, %v18479_v32  ;;  %v4373_v23 = vadd.f32 %v4150_v9, %v18533_v18  ;;  %v14266_v36 = vpop.f32.mrf.mxu1  ;;  %v23951_v54 = vld [vmem:[#allocation72_spill] sm:$0xff] }
 0x27b   :  { %v18698_v25 = vadd.f32 %v23946_v63, %v18499_v40  ;;  %v18706_v8 = vadd.f32 %v23949_v42, %v18505_v14  ;;  %v23952_v40 = vld [vmem:[#allocation15_spill] sm:$0xff]  ;;  %v4601_v28 = vcombine.high %v4599_v27, %v4599_v27  ;;  %v12058_v24 = vrot.slane %v4592_v52, 9  ;;  %v23953_v18 = vld [vmem:[#allocation137_spill] sm:$0xff]  ;;  %v23961_v60 = vld [vmem:[#allocation66_spill] sm:$0xff] }
 0x27c   :  { %23945 = vst [vmem:[#allocation76_spill] sm:$0xff] %v18694_v0  ;;  %v18712_v0 = vadd.f32 %v23951_v54, %v18509_v4  ;;  %v18716_v63 = vadd.f32 %v18461_v41, %v23952_v40  ;;  %v4582_v15 = vrot.slane %v4568_v37, %v18479_v32  ;;  %v4633_v14 = vrot.slane %v4619_v13, %v18479_v32  ;;  %v23955_v40 = vld [vmem:[#allocation38_spill] sm:$0xff]  ;;  %v23957_v30 = vld [vmem:[#allocation65_spill] sm:$0xff] }
 0x27d   :  { %23950 = vst [vmem:[#allocation77_spill] sm:$0xff] %v18706_v8  ;;  %v4634_v42 = vcombine.high %v4626_v38, %v4626_v38  ;;  %v4421_v34 = vmax.f32 %v18664_v7, %v4373_v23  ;;  %v18723_v9 = vadd.f32 %v23953_v18, %v18513_v57  ;;  %v18727_v4 = vadd.f32 %v18501_v53, %v18517_v48  ;;  %v14207_v7 = vpop.f32.mrf.mxu0  ;;  %v4160_v57 = vpop.f32.mrf.mxu1 }
 0x27e   :  { %v12059_v54 = vrot.slane %v4600_v16, 9  ;;  %v12060_v41 = vrot.slane %v4599_v27, 9  ;;  %v18731_v8 = vadd.f32 %v18572_v20, %v23955_v40  ;;  %v18734_v37 = vadd.f32 %v3849_v45, %v18521_v1  ;;  %v23960_v20 = vld [vmem:[#allocation67_spill] sm:$0xff] }
 0x27f   :  { %23954 = vst [vmem:[#allocation78_spill] sm:$0xff] %v18723_v9  ;;  %v4583_v13 = vcombine.high %v4575_v61, %v4575_v61  ;;  %v18737_v23 = vadd.f32 %v14204_v59, %v23957_v30  ;;  %v12061_v18 = vrot.slane %v4601_v28, 9  ;;  %v6156_v9 = vmax.f32 %v4592_v52, %v12058_v24 }
 0x280   :  { %23956 = vst [vmem:[#allocation79_spill] sm:$0xff] %v18734_v37  ;;  %v12054_v62 = vrot.slane %v4575_v61, 9  ;;  %v18740_v53 = vadd.f32 %v3859_v50, %v18525_v19  ;;  %v4584_v48 = vcombine.high %v4582_v15, %v4582_v15  ;;  %v4635_v11 = vcombine.high %v4633_v14, %v4633_v14  ;;  %v14269_v50 = vpop.f32.mrf.mxu1 }
 0x281   :  { %23958 = vst [vmem:[#allocation80_spill] sm:$0xff] %v18737_v23  ;;  %v12067_v6 = vrot.slane %v4634_v42, 9  ;;  %v4376_v40 = vadd.f32 %v14266_v36, %v23960_v20  ;;  %v6157_v2 = vmax.f32 %v4600_v16, %v12059_v54  ;;  %v6158_v45 = vmax.f32 %v4599_v27, %v12060_v41 }
 0x282   :  { %23959 = vst [vmem:[#allocation81_spill] sm:$0xff] %v18740_v53  ;;  %v12068_v1 = vrot.slane %v4633_v14, 9  ;;  %v18744_v37 = vadd.f32 %v14207_v7, %v23961_v60  ;;  %v12055_v30 = vrot.slane %v4583_v13, 9  ;;  %v12056_v59 = vrot.slane %v4582_v15, 9 }
 0x283   :  { %v12066_v23 = vrot.slane %v4626_v38, 9  ;;  %v23963_v52 = vmax.f32 %v18469_v56, %v18471_v29  ;;  %v6348_v24 = vmax.f32 %v6156_v9, 0.0  ;;  %v6152_v53 = vmax.f32 %v4575_v61, %v12054_v62  ;;  %v23965_v56 = vld [vmem:[#allocation69_spill] sm:$0xff] }
 0x284   :  { %23962 = vst [vmem:[#allocation82_spill] sm:$0xff] %v18744_v37  ;;  %v4477_v36 = vadd.f32 %v18538_v39, %v4422_v17  ;;  %v4424_v27 = vmax.f32 %v18668_v55, %v4376_v40  ;;  %v18754_v16 = vmax.f32 %v4601_v28, %v12061_v18  ;;  %v12057_v60 = vrot.slane %v4584_v48, 9  ;;  %v3869_v40 = vpop.f32.mrf.mxu0 }
 0x285   :  { %v18750_v19 = vadd.f32 %v18538_v39, %v23963_v52  ;;  %v12069_v54 = vrot.slane %v4635_v11, 9  ;;  %v6165_v41 = vmax.f32 %v4634_v42, %v12067_v6  ;;  %v6349_v7 = vmax.f32 %v6157_v2, 0.0 }
 0x286   :  { %v6166_v20 = vmax.f32 %v4633_v14, %v12068_v1  ;;  %v4375_v37 = vadd.f32 %v4160_v57, %v18546_v10  ;;  %v18758_v29 = vadd.f32 %v14269_v50, %v23965_v56  ;;  %v6153_v52 = vmax.f32 %v4583_v13, %v12055_v30 }
 0x287   :  { %23964 = vst [vmem:[#allocation83_spill] sm:$0xff] %v18750_v19  ;;  %v6154_v58 = vmax.f32 %v4582_v15, %v12056_v59  ;;  %v6164_v9 = vmax.f32 %v4626_v38, %v12066_v23  ;;  %v18762_v62 = vrot.slane %v18750_v19, %v18479_v32  ;;  %v4660_v17 = vrot.slane %v4477_v36, %v18479_v32 }
 0x288   :  { %v4476_v55 = vadd.f32 %v18538_v39, %v4421_v34  ;;  %v4423_v2 = vmax.f32 %v18674_v47, %v4375_v37  ;;  %v6350_v6 = vmax.f32 %v6158_v45, 0.0  ;;  %v6155_v61 = vmax.f32 %v4584_v48, %v12057_v60  ;;  %v4170_v37 = vpop.f32.mrf.mxu1 }
 0x289   :  { %23966 = vst [vmem:[#allocation84_spill] sm:$0xff] %v18762_v62  ;;  %v6167_v28 = vmax.f32 %v4635_v11, %v12069_v54  ;;  %v6357_v14 = vmax.f32 %v6165_v41, 0.0  ;;  %v18771_v38 = vrot.slane %v6348_v24, %v18485_v35  ;;  %v6344_v42 = vmax.f32 %v6152_v53, 0.0 }
 0x28a   :  { %v6358_v13 = vmax.f32 %v6166_v20, 0.0  ;;  %v18774_v23 = vrot.slane %v6349_v7, %v18485_v35  ;;  %v6345_v34 = vmax.f32 %v6153_v52, 0.0  ;;  %v6356_v57 = vmax.f32 %v6164_v9, 0.0  ;;  %v14272_v20 = vpop.f32.mrf.mxu1 }
 0x28b   :  { %23967 = vst [vmem:[#allocation85_spill] sm:$0xff] %v18771_v38  ;;  %v4653_v47 = vcombine.high %v4477_v36, %v4477_v36  ;;  %v6346_v18 = vmax.f32 %v6154_v58, 0.0  ;;  %v12062_v48 = vrot.slane %v18762_v62, 9  ;;  %v12074_v11 = vrot.slane %v4660_v17, 9 }
 0x28c   :  { %23968 = vst [vmem:[#allocation86_spill] sm:$0xff] %v18774_v23  ;;  %v4636_v45 = vcombine.high %v4476_v55, %v4476_v55  ;;  %v6347_v1 = vmax.f32 %v6155_v61, 0.0  ;;  %v6359_v30 = vmax.f32 %v6167_v28, 0.0  ;;  %v6745_v59 = vrot.slane %v6357_v14, %v18485_v35 }
 0x28d   :  { %v4643_v53 = vrot.slane %v4476_v55, %v18479_v32  ;;  %v18780_v50 = vrot.slane %v6350_v6, %v18485_v35  ;;  %v18783_v24 = vrot.slane %v6358_v13, %v18485_v35  ;;  %v4668_v36 = vcombine.high %v4660_v17, %v4660_v17  ;;  %v14210_v55 = vpop.f32.mrf.mxu0 }
 0x28e   :  { %v4479_v58 = vadd.f32 %v18538_v39, %v4424_v27  ;;  %v18787_v60 = vrot.slane %v6345_v34, %v18485_v35  ;;  %v18790_v54 = vrot.slane %v6344_v42, %v18485_v35  ;;  %v7542_v41 = vrot.slane %v6356_v57, %v18485_v35 }
 0x28f   :  { %23969 = vst [vmem:[#allocation87_spill] sm:$0xff] %v18780_v50  ;;  %23970 = vst [vmem:[#allocation6_spill] sm:$0xff] %v18783_v24  ;;  %v4667_v7 = vrot.slane %v4653_v47, %v18479_v32  ;;  %v18795_v56 = vrot.slane %v6346_v18, %v18485_v35  ;;  %v18798_v52 = vmax.f32 %v18762_v62, %v12062_v48  ;;  %v12075_v13 = vrot.slane %v4668_v36, 9 }
 0x290   :  { %v6172_v9 = vmax.f32 %v4660_v17, %v12074_v11  ;;  %v4650_v27 = vrot.slane %v4636_v45, %v18479_v32  ;;  %v18802_v6 = vrot.slane %v6347_v1, %v18485_v35  ;;  %v18805_v61 = vrot.slane %v6359_v30, %v18485_v35  ;;  %v4180_v11 = vpop.f32.mrf.mxu1 }
 0x291   :  { %23971 = vst [vmem:[#allocation18_spill] sm:$0xff] %v18795_v56  ;;  %v7606_v28 = vsel %vm7222_vm2, %v6745_v59, %v7542_v41  ;;  %v4651_v14 = vcombine.high %v4643_v53, %v4643_v53  ;;  %v7236_v42 = vsel %vm7222_vm2, %v18783_v24, %v6745_v59  ;;  %v12070_v34 = vrot.slane %v4643_v53, 9  ;;  %v3879_v41 = vpop.f32.mrf.mxu0 }
 0x292   :  { %23972 = vst [vmem:[#allocation42_spill] sm:$0xff] %v18802_v6  ;;  %23973 = vst [vmem:[#allocation7_spill] sm:$0xff] %v18805_v61  ;;  %v4687_v57 = vcombine.high %v4479_v58, %v4479_v58  ;;  %v12076_v47 = vrot.slane %v4667_v7, 9  ;;  %v18813_v18 = vadd.f32 %v3869_v40, %v18529_v3  ;;  %v4478_v48 = vadd.f32 %v18538_v39, %v4423_v2 }
 0x293   :  { %v18818_v45 = vsel %vm7224_vm3, %v18783_v24, %v7606_v28  ;;  %v6364_v30 = vmax.f32 %v6172_v9, 0.0  ;;  %v4652_v59 = vcombine.high %v4650_v27, %v4650_v27  ;;  %v18823_v15 = vsel %vm7224_vm3, %v18805_v61, %v7236_v42  ;;  %v23978_v9 = vld [vmem:[#allocation40_spill] sm:$0xff] }
 0x294   :  { %23974 = vst [vmem:[#allocation43_spill] sm:$0xff] %v18813_v18  ;;  %v18825_v17 = vcombine.high %v4667_v7, %v4667_v7  ;;  %v12071_v3 = vrot.slane %v4651_v14, 9  ;;  %v4694_v40 = vrot.slane %v4479_v58, %v18479_v32  ;;  %v18828_v2 = vmax.f32 %v4668_v36, %v12075_v13  ;;  %v14275_v18 = vpop.f32.mrf.mxu1 }
 0x295   :  { %v12072_v10 = vrot.slane %v4650_v27, 9  ;;  %v6168_v62 = vmax.f32 %v4643_v53, %v12070_v34  ;;  %v4701_v28 = vrot.slane %v4687_v57, %v18479_v32  ;;  %v18831_v24 = vmax.f32 %v4667_v7, %v12076_v47  ;;  %v23983_v57 = vld [vmem:[#allocation90_spill] sm:$0xff] }
 0x296   :  { %23975 = vst [vmem:[#allocation19_spill] sm:$0xff] %v18825_v17  ;;  %23976 = vst [vmem:[#allocation44_spill] sm:$0xff] %v18828_v2  ;;  %v18834_v1 = vadd.f32 %v14210_v55, %v23978_v9  ;;  %v18837_v19 = vadd.f32 %v3879_v41, %v18542_v44  ;;  %v4670_v42 = vcombine.high %v4478_v48, %v4478_v48  ;;  %v12073_v58 = vrot.slane %v4652_v59, 9  ;;  %v14213_v2 = vpop.f32.mrf.mxu0 }
 0x297   :  { %23977 = vst [vmem:[#allocation8_spill] sm:$0xff] %v18831_v24  ;;  %v18840_v17 = vrot.slane %v6364_v30, %v18485_v35  ;;  %v4677_v36 = vrot.slane %v4478_v48, %v18479_v32  ;;  %v23982_v53 = vmax.f32 %v18678_v26, %v18758_v29  ;;  %v6169_v13 = vmax.f32 %v4651_v14, %v12071_v3  ;;  %v4190_v29 = vpop.f32.mrf.mxu1 }
 0x298   :  { %23979 = vst [vmem:[#allocation45_spill] sm:$0xff] %v18834_v1  ;;  %23980 = vst [vmem:[#allocation20_spill] sm:$0xff] %v18837_v19  ;;  %v4702_v34 = vcombine.high %v4694_v40, %v4694_v40  ;;  %v4377_v55 = vadd.f32 %v4170_v37, %v18554_v5  ;;  %v4380_v44 = vadd.f32 %v14272_v20, %v23983_v57  ;;  %v6360_v41 = vmax.f32 %v6168_v62, 0.0  ;;  %v23984_v5 = vld [vmem:[#allocation92_spill] sm:$0xff] }
 0x299   :  { %23981 = vst [vmem:[#allocation46_spill] sm:$0xff] %v18840_v17  ;;  %v4481_v7 = vadd.f32 %v18538_v39, %v23982_v53  ;;  %v6170_v47 = vmax.f32 %v4650_v27, %v12072_v10  ;;  %v4703_v9 = vcombine.high %v4701_v28, %v4701_v28  ;;  %v12082_v24 = vrot.slane %v4694_v40, 9 }
 0x29a   :  { %v4684_v30 = vrot.slane %v4670_v42, %v18479_v32  ;;  %v4425_v48 = vmax.f32 %v18685_v43, %v4377_v55  ;;  %v4428_v19 = vmax.f32 %v18690_v49, %v4380_v44  ;;  %v4379_v26 = vadd.f32 %v4180_v11, %v18562_v51  ;;  %v18860_v55 = vpop.f32.mrf.mxu0 }
 0x29b   :  { %v6171_v14 = vmax.f32 %v4652_v59, %v12073_v58  ;;  %v4685_v3 = vcombine.high %v4677_v36, %v4677_v36  ;;  %v4721_v53 = vcombine.high %v4481_v7, %v4481_v7  ;;  %v4382_v37 = vadd.f32 %v14275_v18, %v23984_v5 }
 0x29c   :  { %v6361_v20 = vmax.f32 %v6169_v13, 0.0  ;;  %v12083_v10 = vrot.slane %v4702_v34, 9  ;;  %v4728_v62 = vrot.slane %v4481_v7, %v18479_v32  ;;  %v4427_v27 = vmax.f32 %v18698_v25, %v4379_v26  ;;  %v23985_v13 = vld [vmem:[#allocation68_spill] sm:$0xff]  ;;  %v14216_v25 = vpop.f32.mrf.mxu0 }
 0x29d   :  { %v12084_v42 = vrot.slane %v4701_v28, 9  ;;  %v6180_v57 = vmax.f32 %v4694_v40, %v12082_v24  ;;  %v4430_v43 = vmax.f32 %v18702_v12, %v4382_v37  ;;  %v18858_v49 = vadd.f32 %v4190_v29, %v18570_v31 }
 0x29e   :  { %v6362_v51 = vmax.f32 %v6170_v47, 0.0  ;;  %v12085_v11 = vrot.slane %v4703_v9, 9  ;;  %v4686_v59 = vcombine.high %v4684_v30, %v4684_v30  ;;  %v12078_v58 = vrot.slane %v4677_v36, 9 }
 0x29f   :  { %v12079_v18 = vrot.slane %v4685_v3, 9  ;;  %v18863_v44 = vadd.f32 %v14213_v2, %v23985_v13  ;;  %v4735_v7 = vrot.slane %v4721_v53, %v18479_v32  ;;  %v18869_v12 = vrot.slane %v6360_v41, %v18485_v35 }
 0x2a0   :  { %v6181_v31 = vmax.f32 %v4702_v34, %v12083_v10  ;;  %v12080_v24 = vrot.slane %v4684_v30, 9  ;;  %v4736_v40 = vcombine.high %v4728_v62, %v4728_v62  ;;  %v6363_v47 = vmax.f32 %v6171_v14, 0.0 }
 0x2a1   :  { %23986 = vst [vmem:[#allocation9_spill] sm:$0xff] %v18863_v44  ;;  %23987 = vst [vmem:[#allocation47_spill] sm:$0xff] %v18869_v12  ;;  %v18872_v26 = vrot.slane %v6361_v20, %v18485_v35  ;;  %v6182_v29 = vmax.f32 %v4701_v28, %v12084_v42  ;;  %v6372_v5 = vmax.f32 %v6180_v57, 0.0  ;;  %v18875_v2 = vrot.slane %v6362_v51, %v18485_v35 }
 0x2a2   :  { %v18877_v37 = vmax.f32 %v4703_v9, %v12085_v11  ;;  %v12081_v53 = vrot.slane %v4686_v59, 9  ;;  %v6176_v13 = vmax.f32 %v4677_v36, %v12078_v58  ;;  %v6177_v44 = vmax.f32 %v4685_v3, %v12079_v18  ;;  %v3899_v11 = vpop.f32.mrf.mxu0 }
 0x2a3   :  { %23988 = vst [vmem:[#allocation48_spill] sm:$0xff] %v18872_v26  ;;  %23989 = vst [vmem:[#allocation97_spill] sm:$0xff] %v18875_v2  ;;  %v4737_v41 = vcombine.high %v4735_v7, %v4735_v7  ;;  %v12092_v1 = vrot.slane %v4735_v7, 9  ;;  %v18880_v34 = vadd.f32 %v18538_v39, %v4428_v19  ;;  %v6373_v14 = vmax.f32 %v6181_v31, 0.0 }
 0x2a4   :  { %v6178_v10 = vmax.f32 %v4684_v30, %v12080_v24  ;;  %v12090_v20 = vrot.slane %v4728_v62, 9  ;;  %v12091_v17 = vrot.slane %v4736_v40, 9  ;;  %v18883_v28 = vrot.slane %v6363_v47, %v18485_v35  ;;  %v14278_v30 = vpop.f32.mrf.mxu1 }
 0x2a5   :  { %23990 = vst [vmem:[#allocation99_spill] sm:$0xff] %v18880_v34  ;;  %v6374_v42 = vmax.f32 %v6182_v29, 0.0  ;;  %v18886_v9 = vrot.slane %v6372_v5, %v18485_v35  ;;  %v4482_v36 = vadd.f32 %v18538_v39, %v4427_v27  ;;  %v6179_v57 = vmax.f32 %v4686_v59, %v12081_v53  ;;  %v23997_v53 = vld [vmem:[#allocation94_spill] sm:$0xff] }
 0x2a6   :  { %23991 = vst [vmem:[#allocation23_spill] sm:$0xff] %v18883_v28  ;;  %v6368_v51 = vmax.f32 %v6176_v13, 0.0  ;;  %v18891_v19 = vadd.f32 %v18538_v39, %v4425_v48  ;;  %v6369_v58 = vmax.f32 %v6177_v44, 0.0  ;;  %v12093_v18 = vrot.slane %v4737_v41, 9 }
 0x2a7   :  { %23992 = vst [vmem:[#allocation100_spill] sm:$0xff] %v18886_v9  ;;  %v6190_v31 = vmax.f32 %v4735_v7, %v12092_v1  ;;  %v18895_v24 = vrot.slane %v18880_v34, %v18479_v32  ;;  %v18898_v27 = vrot.slane %v6373_v14, %v18485_v35  ;;  %v6370_v47 = vmax.f32 %v6178_v10, 0.0 }
 0x2a8   :  { %23993 = vst [vmem:[#allocation101_spill] sm:$0xff] %v18891_v19  ;;  %v6188_v59 = vmax.f32 %v4728_v62, %v12090_v20  ;;  %v6189_v29 = vmax.f32 %v4736_v40, %v12091_v17  ;;  %v18901_v48 = vrot.slane %v6374_v42, %v18485_v35  ;;  %v4738_v5 = vcombine.high %v4482_v36, %v4482_v36  ;;  %v14219_v17 = vpop.f32.mrf.mxu0 }
 0x2a9   :  { %23994 = vst [vmem:[#allocation25_spill] sm:$0xff] %v18895_v24  ;;  %23995 = vst [vmem:[#allocation102_spill] sm:$0xff] %v18898_v27  ;;  %v4485_v44 = vadd.f32 %v18538_v39, %v4430_v43  ;;  %v18905_v1 = vadd.f32 %v14278_v30, %v23997_v53  ;;  %v6371_v7 = vmax.f32 %v6179_v57, 0.0  ;;  %v18908_v13 = vrot.slane %v6368_v51, %v18485_v35 }
 0x2aa   :  { %23996 = vst [vmem:[#allocation103_spill] sm:$0xff] %v18901_v48  ;;  %v18912_v14 = vrot.slane %v18891_v19, %v18479_v32  ;;  %v4745_v62 = vrot.slane %v4482_v36, %v18479_v32  ;;  %v18916_v40 = vrot.slane %v6369_v58, %v18485_v35  ;;  %v6191_v10 = vmax.f32 %v4737_v41, %v12093_v18 }
 0x2ab   :  { %v6382_v43 = vmax.f32 %v6190_v31, 0.0  ;;  %v12098_v20 = vrot.slane %v18895_v24, 9  ;;  %v18920_v42 = vrot.slane %v6370_v47, %v18485_v35  ;;  %v6380_v57 = vmax.f32 %v6188_v59, 0.0  ;;  %v24001_v47 = vld [vmem:[#allocation70_spill] sm:$0xff] }
 0x2ac   :  { %23998 = vst [vmem:[#allocation26_spill] sm:$0xff] %v18912_v14  ;;  %v6381_v51 = vmax.f32 %v6189_v29, 0.0  ;;  %v18924_v30 = vadd.f32 %v18860_v55, %v18550_v22  ;;  %v4752_v36 = vrot.slane %v4738_v5, %v18479_v32  ;;  %v4789_v53 = vcombine.high %v4485_v44, %v4485_v44  ;;  %v3909_v55 = vpop.f32.mrf.mxu0 }
 0x2ad   :  { %23999 = vst [vmem:[#allocation104_spill] sm:$0xff] %v18920_v42  ;;  %v4432_v58 = vmax.f32 %v18716_v63, %v18905_v1  ;;  %v7599_v41 = vsel %vm7222_vm2, %v18787_v60, %v18790_v54  ;;  %v18933_v18 = vrot.slane %v6371_v7, %v18485_v35  ;;  %v12086_v31 = vrot.slane %v18912_v14, 9 }
 0x2ae   :  { %v18937_v59 = vadd.f32 %v14216_v25, %v24001_v47  ;;  %v4753_v22 = vcombine.high %v4745_v62, %v4745_v62  ;;  %v6383_v29 = vmax.f32 %v6191_v10, 0.0  ;;  %v18940_v5 = vrot.slane %v6382_v43, %v18485_v35  ;;  %v14222_v19 = vpop.f32.mrf.mxu0 }
 0x2af   :  { %24000 = vst [vmem:[#allocation105_spill] sm:$0xff] %v18933_v18  ;;  %v6196_v63 = vmax.f32 %v18895_v24, %v12098_v20  ;;  %v7600_v54 = vsel %vm7224_vm3, %v18795_v56, %v7599_v41  ;;  %v18946_v1 = vrot.slane %v6381_v51, %v18485_v35  ;;  %v12094_v7 = vrot.slane %v4745_v62, 9 }
 0x2b0   :  { %24002 = vst [vmem:[#allocation56_spill] sm:$0xff] %v18937_v59  ;;  %24003 = vst [vmem:[#allocation106_spill] sm:$0xff] %v18940_v5  ;;  %v4796_v3 = vrot.slane %v4485_v44, %v18479_v32  ;;  %v7601_v25 = vsel %vm7226_vm4, %v18802_v6, %v7600_v54  ;;  %v7550_v10 = vrot.slane %v6380_v57, %v18485_v35  ;;  %v12095_v51 = vrot.slane %v4753_v22, 9  ;;  %v24006_v59 = vld [vmem:[#allocation91_spill] sm:$0xff] }
 0x2b1   :  { %v18953_v43 = vadd.f32 %v3899_v11, %v18558_v21  ;;  %v4754_v20 = vcombine.high %v4752_v36, %v4752_v36  ;;  %v18956_v47 = vrot.slane %v4789_v53, %v18479_v32  ;;  %v18959_v41 = vmax.f32 %v18912_v14, %v12086_v31 }
 0x2b2   :  { %v12096_v24 = vrot.slane %v4752_v36, 9  ;;  %v7602_v44 = vsel %vm7228_vm5, %v18771_v38, %v7601_v25  ;;  %v18964_v54 = vrot.slane %v6383_v29, %v18485_v35  ;;  %v6388_v57 = vmax.f32 %v6196_v63, 0.0 }
 0x2b3   :  { %24004 = vst [vmem:[#allocation59_spill] sm:$0xff] %v18953_v43  ;;  %v18967_v21 = vadd.f32 %v14219_v17, %v24006_v59  ;;  %v18970_v11 = vadd.f32 %v3909_v55, %v18566_v46  ;;  %v18974_v53 = vsel %vm7222_vm2, %v18946_v1, %v7550_v10  ;;  %v6192_v31 = vmax.f32 %v4745_v62, %v12094_v7  ;;  %v4200_v43 = vpop.f32.mrf.mxu1  ;;  %v24008_v17 = vld [vmem:[#allocation93_spill] sm:$0xff] }
 0x2b4   :  { %24005 = vst [vmem:[#allocation107_spill] sm:$0xff] %v18964_v54  ;;  %v4804_v14 = vcombine.high %v4796_v3, %v4796_v3  ;;  %v7223_v25 = vsel %vm7222_vm2, %v18795_v56, %v18787_v60  ;;  %v12097_v29 = vrot.slane %v4754_v20, 9  ;;  %v4805_v63 = vcombine.high %v18956_v47, %v18956_v47 }
 0x2b5   :  { %24007 = vst [vmem:[#allocation108_spill] sm:$0xff] %v18970_v11  ;;  %v18982_v59 = vadd.f32 %v14222_v19, %v24008_v17  ;;  %v7603_v46 = vsel %vm7230_vm6, %v18774_v23, %v7602_v44  ;;  %v6193_v7 = vmax.f32 %v4753_v22, %v12095_v51  ;;  %v6194_v10 = vmax.f32 %v4752_v36, %v12096_v24  ;;  %v14281_v36 = vpop.f32.mrf.mxu1 }
 0x2b6   :  { %v18990_v60 = vrot.slane %v6388_v57, %v18485_v35  ;;  %v12106_v56 = vrot.slane %v4796_v3, 9  ;;  %v24011_v11 = vmax.f32 %v18712_v0, %v18858_v49  ;;  %v7225_v17 = vsel %vm7224_vm3, %v18802_v6, %v7223_v25 }
 0x2b7   :  { %24009 = vst [vmem:[#allocation34_spill] sm:$0xff] %v18982_v59  ;;  %v6384_v44 = vmax.f32 %v6192_v31, 0.0  ;;  %v12107_v59 = vrot.slane %v4804_v14, 9  ;;  %v24012_v55 = vmax.f32 %v18754_v16, 0.0  ;;  %v7604_v24 = vsel %vm7232_vm7, %v18780_v50, %v7603_v46 }
 0x2b8   :  { %24010 = vst [vmem:[#allocation109_spill] sm:$0xff] %v18990_v60  ;;  %v4484_v19 = vadd.f32 %v18538_v39, %v24011_v11  ;;  %v19005_v22 = vmax.f32 %v4754_v20, %v12097_v29  ;;  %v12108_v0 = vrot.slane %v18956_v47, 9  ;;  %v12109_v49 = vrot.slane %v4805_v63, 9 }
 0x2b9   :  { %v19001_v62 = vrot.slane %v24012_v55, %v18485_v35  ;;  %v4487_v51 = vadd.f32 %v18538_v39, %v4432_v58  ;;  %v6385_v57 = vmax.f32 %v6193_v7, 0.0  ;;  %v6386_v11 = vmax.f32 %v6194_v10, 0.0 }
 0x2ba   :  { %v7227_v16 = vsel %vm7226_vm4, %v18771_v38, %v7225_v17  ;;  %v19015_v25 = vmax.f32 %v4796_v3, %v12106_v56  ;;  %v4772_v46 = vcombine.high %v4484_v19, %v4484_v19  ;;  %v4779_v20 = vrot.slane %v4484_v19, %v18479_v32  ;;  %v24017_v3 = vld [vmem:[#allocation96_spill] sm:$0xff]  ;;  %v4210_v17 = vpop.f32.mrf.mxu1  ;;  %v24030_v38 = vld [vmem:[#allocation17_spill] sm:$0xff] }
 0x2bb   :  { %24013 = vst [vmem:[#allocation62_spill] sm:$0xff] %v19001_v62  ;;  %v19011_v31 = vsel %vm7234_vm8, %v19001_v62, %v7604_v24  ;;  %v7229_v58 = vsel %vm7228_vm5, %v18774_v23, %v7227_v16  ;;  %v24015_v29 = vmax.f32 %v18798_v52, 0.0  ;;  %v4383_v56 = vadd.f32 %v4200_v43, %v18580_v33 }
 0x2bc   :  { %24014 = vst [vmem:[#allocation118_spill] sm:$0xff] %v19011_v31  ;;  %14411 = vmatprep.mubr.msk.f32.mxu1 %vm7341_vm9, %v19011_v31  ;;  %v7231_v7 = vsel %vm7230_vm6, %v18780_v50, %v7229_v58  ;;  %v4386_v10 = vadd.f32 %v14281_v36, %v24017_v3  ;;  %v4823_v19 = vcombine.high %v4487_v51, %v4487_v51 }
 0x2bd   :  { %v19025_v55 = vrot.slane %v24015_v29, %v18485_v35  ;;  %v19032_v24 = vrot.slane %v4487_v51, %v18479_v32  ;;  %v7233_v16 = vsel %vm7232_vm7, %v19001_v62, %v7231_v7  ;;  %v7608_v52 = vsel %vm7226_vm4, %v18805_v61, %v18818_v45  ;;  %v24019_v7 = vld [vmem:[#allocation16_spill] sm:$0xff]  ;;  %v24026_v62 = vld [vmem:[#allocation46_spill] sm:$0xff] }
 0x2be   :  { %v4431_v33 = vmax.f32 %v18727_v4, %v4383_v56  ;;  %v4434_v43 = vmax.f32 %v18731_v8, %v4386_v10  ;;  %v7609_v36 = vsel %vm7228_vm5, %v18869_v12, %v7608_v52  ;;  %v4786_v51 = vrot.slane %v4772_v46, %v18479_v32  ;;  %v14284_v10 = vpop.f32.mrf.mxu1 }
 0x2bf   :  { %24016 = vst [vmem:[#allocation5_spill] sm:$0xff] %v19025_v55  ;;  %v19041_v29 = vsel %vm7234_vm8, %v19025_v55, %v7233_v16  ;;  %v7610_v58 = vsel %vm7230_vm6, %v18872_v26, %v7609_v36  ;;  %v7238_v45 = vsel %vm7226_vm4, %v18869_v12, %v18823_v15  ;;  %v4385_v3 = vadd.f32 %v4210_v17, %v24019_v7  ;;  %v24022_v17 = vld [vmem:[#allocation79_spill] sm:$0xff] }
 0x2c0   :  { %24018 = vst [vmem:[#allocation112_spill] sm:$0xff] %v19041_v29  ;;  %14357 = vmatprep.mubr.msk.f32.mxu0 %vm7341_vm9, %v19041_v29  ;;  %v19057_v4 = vrot.slane %v6384_v44, %v18485_v35  ;;  %v4787_v8 = vcombine.high %v4779_v20, %v4779_v20  ;;  %v7611_v56 = vsel %vm7232_vm7, %v18875_v2, %v7610_v58 }
 0x2c1   :  { %v7239_v46 = vsel %vm7228_vm5, %v18872_v26, %v7238_v45  ;;  %v4837_v16 = vrot.slane %v4823_v19, %v18479_v32  ;;  %v19066_v52 = vsel %vm7234_vm8, %v18883_v28, %v7611_v56  ;;  %v4433_v44 = vmax.f32 %v24022_v17, %v4385_v3  ;;  %v19079_v56 = vpop.f32.mrf.mxu0  ;;  %v24023_v3 = vld [vmem:[#allocation10_spill] sm:$0xff]  ;;  %v24029_v26 = vld [vmem:[#allocation80_spill] sm:$0xff] }
 0x2c2   :  { %24020 = vst [vmem:[#allocation61_spill] sm:$0xff] %v19057_v4  ;;  %24021 = vst [vmem:[#allocation113_spill] sm:$0xff] %v19066_v52  ;;  %v7240_v15 = vsel %vm7230_vm6, %v18875_v2, %v7239_v46  ;;  %v6205_v36 = vmax.f32 %v4804_v14, %v12107_v59  ;;  %v6206_v7 = vmax.f32 %v18956_v47, %v12108_v0  ;;  %14412 = vmatmul.mubr.msk.f32.vlgmr.msra.gmra.mxu1 %vm7341_vm9, %v19066_v52 }
 0x2c3   :  { %v19072_v55 = vmax.f32 %v4805_v63, %v12109_v49  ;;  %v4838_v58 = vcombine.high %v19032_v24, %v19032_v24  ;;  %v4788_v45 = vcombine.high %v4786_v51, %v4786_v51  ;;  %v7241_v46 = vsel %vm7232_vm7, %v18883_v28, %v7240_v15  ;;  %v4220_v15 = vpop.f32.mrf.mxu1  ;;  %v14225_v50 = vpop.f32.mrf.mxu0 }
 0x2c4   :  { %v4388_v14 = vadd.f32 %v14284_v10, %v24023_v3  ;;  %v19085_v47 = vrot.slane %v6385_v57, %v18485_v35  ;;  %v19088_v63 = vrot.slane %v6386_v11, %v18485_v35  ;;  %v12102_v59 = vrot.slane %v4779_v20, 9 }
 0x2c5   :  { %v4488_v0 = vadd.f32 %v18538_v39, %v4433_v44  ;;  %v6396_v49 = vmax.f32 %v19015_v25, 0.0  ;;  %v12103_v17 = vrot.slane %v4787_v8, 9  ;;  %v4839_v19 = vcombine.high %v4837_v16, %v4837_v16 }
 0x2c6   :  { %24024 = vst [vmem:[#allocation88_spill] sm:$0xff] %v19085_v47  ;;  %24025 = vst [vmem:[#allocation115_spill] sm:$0xff] %v19088_v63  ;;  %v19094_v2 = vsel %vm7234_vm8, %v24026_v62, %v7241_v46  ;;  %v6397_v28 = vmax.f32 %v6205_v36, 0.0  ;;  %v12104_v10 = vrot.slane %v4786_v51, 9  ;;  %v12115_v3 = vrot.slane %v4838_v58, 9 }
 0x2c7   :  { %24027 = vst [vmem:[#allocation117_spill] sm:$0xff] %v19094_v2  ;;  %v19097_v57 = vadd.f32 %v18538_v39, %v4434_v43  ;;  %14358 = vmatmul.mubr.msk.f32.vlgmr.msra.gmra.mxu0 %vm7341_vm9, %v19094_v2  ;;  %v6398_v11 = vmax.f32 %v6206_v7, 0.0  ;;  %v12105_v44 = vrot.slane %v4788_v45, 9  ;;  %v12114_v25 = vrot.slane %v19032_v24, 9 }
 0x2c8   :  { %v4436_v23 = vmax.f32 %v24029_v26, %v4388_v14  ;;  %v6200_v12 = vmax.f32 %v4779_v20, %v12102_v59  ;;  %v12116_v46 = vrot.slane %v4837_v16, 9  ;;  %v4840_v62 = vcombine.high %v4488_v0, %v4488_v0  ;;  %v24033_v26 = vld [vmem:[#allocation81_spill] sm:$0xff]  ;;  %v14287_v14 = vpop.f32.mrf.mxu1 }
 0x2c9   :  { %24028 = vst [vmem:[#allocation120_spill] sm:$0xff] %v19097_v57  ;;  %v19104_v36 = vadd.f32 %v4220_v15, %v24030_v38  ;;  %v6201_v43 = vmax.f32 %v4787_v8, %v12103_v17  ;;  %v12117_v52 = vrot.slane %v4839_v19, 9  ;;  %v19108_v29 = vadd.f32 %v18538_v39, %v4431_v33  ;;  %v3929_v17 = vpop.f32.mrf.mxu0 }
 0x2ca   :  { %v6202_v7 = vmax.f32 %v4786_v51, %v12104_v10  ;;  %v6213_v2 = vmax.f32 %v4838_v58, %v12115_v3  ;;  %v19112_v61 = vrot.slane %v19097_v57, %v18479_v32  ;;  %v19117_v38 = vrot.slane %v6396_v49, %v18485_v35  ;;  %v24037_v49 = vld [vmem:[#allocation11_spill] sm:$0xff] }
 0x2cb   :  { %24031 = vst [vmem:[#allocation121_spill] sm:$0xff] %v19108_v29  ;;  %v4435_v20 = vmax.f32 %v24033_v26, %v19104_v36  ;;  %v6203_v59 = vmax.f32 %v4788_v45, %v12105_v44  ;;  %v6212_v8 = vmax.f32 %v19032_v24, %v12114_v25  ;;  %v4847_v33 = vrot.slane %v4488_v0, %v18479_v32 }
 0x2cc   :  { %24032 = vst [vmem:[#allocation14_spill] sm:$0xff] %v19112_v61  ;;  %24034 = vst [vmem:[#allocation122_spill] sm:$0xff] %v19117_v38  ;;  %v19122_v51 = vrot.slane %v6397_v28, %v18485_v35  ;;  %v6392_v58 = vmax.f32 %v6200_v12, 0.0  ;;  %v6214_v15 = vmax.f32 %v4837_v16, %v12116_v46  ;;  %v4854_v10 = vrot.slane %v4840_v62, %v18479_v32 }
 0x2cd   :  { %v6393_v3 = vmax.f32 %v6201_v43, 0.0  ;;  %v6215_v6 = vmax.f32 %v4839_v19, %v12117_v52  ;;  %v19127_v36 = vrot.slane %v19108_v29, %v18479_v32  ;;  %v19130_v45 = vadd.f32 %v14287_v14, %v24037_v49  ;;  %v14228_v52 = vpop.f32.mrf.mxu0 }
 0x2ce   :  { %24035 = vst [vmem:[#allocation124_spill] sm:$0xff] %v19122_v51  ;;  %v6394_v24 = vmax.f32 %v6202_v7, 0.0  ;;  %v6405_v44 = vmax.f32 %v6213_v2, 0.0  ;;  %v12122_v0 = vrot.slane %v19112_v61, 9  ;;  %v4491_v28 = vadd.f32 %v18538_v39, %v4436_v23  ;;  %v24039_v23 = vld [vmem:[#allocation82_spill] sm:$0xff] }
 0x2cf   :  { %24036 = vst [vmem:[#allocation125_spill] sm:$0xff] %v19127_v36  ;;  %v19135_v12 = vrot.slane %v6398_v11, %v18485_v35  ;;  %v6395_v16 = vmax.f32 %v6203_v59, 0.0  ;;  %v6404_v62 = vmax.f32 %v6212_v8, 0.0  ;;  %v4855_v25 = vcombine.high %v4847_v33, %v4847_v33  ;;  %v3939_v31 = vpop.f32.mrf.mxu0 }
 0x2d0   :  { %v19138_v19 = vrot.slane %v6392_v58, %v18485_v35  ;;  %v6406_v46 = vmax.f32 %v6214_v15, 0.0  ;;  %v12118_v43 = vrot.slane %v4847_v33, 9  ;;  %v12120_v26 = vrot.slane %v4854_v10, 9 }
 0x2d1   :  { %24038 = vst [vmem:[#allocation36_spill] sm:$0xff] %v19135_v12  ;;  %v19141_v7 = vrot.slane %v6393_v3, %v18485_v35  ;;  %v6407_v2 = vmax.f32 %v6215_v6, 0.0  ;;  %v12110_v14 = vrot.slane %v19127_v36, 9  ;;  %v4438_v11 = vmax.f32 %v24039_v23, %v19130_v45  ;;  %v24043_v45 = vld [vmem:[#allocation24_spill] sm:$0xff] }
 0x2d2   :  { %v19147_v59 = vrot.slane %v6394_v24, %v18485_v35  ;;  %v19150_v8 = vrot.slane %v6405_v44, %v18485_v35  ;;  %v6220_v58 = vmax.f32 %v19112_v61, %v12122_v0  ;;  %v4891_v15 = vcombine.high %v4491_v28, %v4491_v28  ;;  %v24045_v61 = vld [vmem:[#allocation95_spill] sm:$0xff] }
 0x2d3   :  { %v19154_v49 = vrot.slane %v6395_v16, %v18485_v35  ;;  %v7558_v3 = vrot.slane %v6404_v62, %v18485_v35  ;;  %v4856_v6 = vcombine.high %v4854_v10, %v4854_v10  ;;  %v12119_v29 = vrot.slane %v4855_v25, 9 }
 0x2d4   :  { %24040 = vst [vmem:[#allocation126_spill] sm:$0xff] %v19147_v59  ;;  %v19158_v34 = vrot.slane %v6406_v46, %v18485_v35  ;;  %v19162_v24 = vadd.f32 %v19079_v56, %v24043_v45  ;;  %v6216_v44 = vmax.f32 %v4847_v33, %v12118_v43  ;;  %v6218_v23 = vmax.f32 %v4854_v10, %v12120_v26  ;;  %v24047_v56 = vld [vmem:[#allocation37_spill] sm:$0xff]  ;;  %v24049_v26 = vld [vmem:[#allocation98_spill] sm:$0xff] }
 0x2d5   :  { %24041 = vst [vmem:[#allocation128_spill] sm:$0xff] %v19154_v49  ;;  %v19165_v0 = vrot.slane %v6407_v2, %v18485_v35  ;;  %v19168_v16 = vmax.f32 %v19127_v36, %v12110_v14  ;;  %v19171_v62 = vadd.f32 %v14225_v50, %v24045_v61  ;;  %v4898_v57 = vrot.slane %v4491_v28, %v18479_v32  ;;  %v14231_v14 = vpop.f32.mrf.mxu0 }
 0x2d6   :  { %24042 = vst [vmem:[#allocation129_spill] sm:$0xff] %v19158_v34  ;;  %v19176_v46 = vsel %vm7222_vm2, %v19150_v8, %v7558_v3  ;;  %v6412_v34 = vmax.f32 %v6220_v58, 0.0  ;;  %v19179_v45 = vadd.f32 %v3929_v17, %v24047_v56  ;;  %v4905_v33 = vrot.slane %v4891_v15, %v18479_v32  ;;  %v24051_v3 = vld [vmem:[#allocation39_spill] sm:$0xff] }
 0x2d7   :  { %24044 = vst [vmem:[#allocation63_spill] sm:$0xff] %v19165_v0  ;;  %24046 = vst [vmem:[#allocation132_spill] sm:$0xff] %v19171_v62  ;;  %v12121_v10 = vrot.slane %v4856_v6, 9  ;;  %v6217_v43 = vmax.f32 %v4855_v25, %v12119_v29  ;;  %v19183_v2 = vadd.f32 %v14228_v52, %v24049_v26  ;;  %v7613_v50 = vsel %vm7222_vm2, %v18916_v40, %v18908_v13 }
 0x2d8   :  { %24048 = vst [vmem:[#allocation131_spill] sm:$0xff] %v19179_v45  ;;  %v6408_v61 = vmax.f32 %v6216_v44, 0.0  ;;  %v6410_v28 = vmax.f32 %v6218_v23, 0.0  ;;  %v19189_v36 = vadd.f32 %v3939_v31, %v24051_v3  ;;  %v4490_v17 = vadd.f32 %v18538_v39, %v4435_v20  ;;  %v24054_v23 = vld [vmem:[#allocation50_spill] sm:$0xff]  ;;  %v4230_v3 = vpop.f32.mrf.mxu1 }
 0x2d9   :  { %24050 = vst [vmem:[#allocation135_spill] sm:$0xff] %v19183_v2  ;;  %v4906_v15 = vcombine.high %v4898_v57, %v4898_v57  ;;  %v7614_v29 = vsel %vm7224_vm3, %v18920_v42, %v7613_v50  ;;  %v7243_v25 = vsel %vm7222_vm2, %v18920_v42, %v18916_v40  ;;  %v19199_v52 = vrot.slane %v6412_v34, %v18485_v35 }
 0x2da   :  { %24052 = vst [vmem:[#allocation64_spill] sm:$0xff] %v19189_v36  ;;  %v4907_v13 = vcombine.high %v4905_v33, %v4905_v33  ;;  %v12130_v44 = vrot.slane %v4898_v57, 9  ;;  %v19202_v31 = vadd.f32 %v14231_v14, %v24054_v23  ;;  %v19204_v56 = vmax.f32 %v4856_v6, %v12121_v10 }
 0x2db   :  { %24053 = vst [vmem:[#allocation138_spill] sm:$0xff] %v19199_v52  ;;  %v6409_v20 = vmax.f32 %v6217_v43, 0.0  ;;  %v7615_v26 = vsel %vm7226_vm4, %v18933_v18, %v7614_v29  ;;  %v7244_v50 = vsel %vm7224_vm3, %v18933_v18, %v7243_v25  ;;  %v19211_v40 = vrot.slane %v6408_v61, %v18485_v35 }
 0x2dc   :  { %24055 = vst [vmem:[#allocation134_spill] sm:$0xff] %v19202_v31  ;;  %v19214_v34 = vrot.slane %v6410_v28, %v18485_v35  ;;  %v12132_v58 = vrot.slane %v4905_v33, 9  ;;  %v4874_v42 = vcombine.high %v4490_v17, %v4490_v17  ;;  %v12131_v14 = vrot.slane %v4906_v15, 9 }
 0x2dd   :  { %24056 = vst [vmem:[#allocation72_spill] sm:$0xff] %v19211_v40  ;;  %v4493_v6 = vadd.f32 %v18538_v39, %v4438_v11  ;;  %v7616_v10 = vsel %vm7228_vm5, %v18886_v9, %v7615_v26  ;;  %v7245_v43 = vsel %vm7226_vm4, %v18886_v9, %v7244_v50  ;;  %v12133_v29 = vrot.slane %v4907_v13, 9  ;;  %v24060_v26 = vld [vmem:[#allocation27_spill] sm:$0xff] }
 0x2de   :  { %24057 = vst [vmem:[#allocation15_spill] sm:$0xff] %v19214_v34  ;;  %v19221_v25 = vmax.f32 %v4898_v57, %v12130_v44  ;;  %v24058_v61 = vmax.f32 %v18877_v37, 0.0  ;;  %v7617_v28 = vsel %vm7230_vm6, %v18898_v27, %v7616_v10  ;;  %v4881_v18 = vrot.slane %v4490_v17, %v18479_v32  ;;  %v14290_v57 = vpop.f32.mrf.mxu1 }
 0x2df   :  { %v7618_v39 = vsel %vm7232_vm7, %v18901_v48, %v7617_v28  ;;  %v7246_v11 = vsel %vm7228_vm5, %v18898_v27, %v7245_v43  ;;  %v19236_v50 = vadd.f32 %v4230_v3, %v24060_v26  ;;  %v19238_v44 = vmax.f32 %v4905_v33, %v12132_v58 }
 0x2e0   :  { %v19226_v23 = vrot.slane %v24058_v61, %v18485_v35  ;;  %v4888_v37 = vrot.slane %v4874_v42, %v18479_v32  ;;  %v24062_v17 = vmax.f32 %v18959_v41, 0.0  ;;  %v4925_v28 = vcombine.high %v4493_v6, %v4493_v6  ;;  %v24064_v42 = vld [vmem:[#allocation43_spill] sm:$0xff]  ;;  %v4240_v58 = vpop.f32.mrf.mxu1 }
 0x2e1   :  { %v19251_v43 = vrot.slane %v4493_v6, %v18479_v32  ;;  %v7247_v33 = vsel %vm7230_vm6, %v18901_v48, %v7246_v11  ;;  %v19260_v3 = vrot.slane %v6409_v20, %v18485_v35  ;;  %v6420_v41 = vmax.f32 %v19221_v25, 0.0  ;;  %v24068_v11 = vld [vmem:[#allocation12_spill] sm:$0xff]  ;;  %v24069_v25 = vld [vmem:[#allocation45_spill] sm:$0xff] }
 0x2e2   :  { %24059 = vst [vmem:[#allocation137_spill] sm:$0xff] %v19226_v23  ;;  %v19243_v61 = vsel %vm7234_vm8, %v19226_v23, %v7618_v39  ;;  %v19248_v10 = vrot.slane %v24062_v17, %v18485_v35  ;;  %v19262_v39 = vmax.f32 %v4906_v15, %v12131_v14  ;;  %v7248_v6 = vsel %vm7232_vm7, %v19226_v23, %v7247_v33 }
 0x2e3   :  { %24061 = vst [vmem:[#allocation38_spill] sm:$0xff] %v19243_v61  ;;  %14414 = vmatprep.mubr.msk.f32.mxu1 %vm7341_vm9, %v19243_v61  ;;  %24065 = vst [vmem:[#allocation67_spill] sm:$0xff] %v19260_v3  ;;  %v19267_v26 = vmax.f32 %v4907_v13, %v12133_v29  ;;  %v4889_v17 = vcombine.high %v4881_v18, %v4881_v18  ;;  %v4392_v48 = vadd.f32 %v14290_v57, %v24068_v11 }
 0x2e4   :  { %24063 = vst [vmem:[#allocation65_spill] sm:$0xff] %v19248_v10  ;;  %v19271_v27 = vsel %vm7234_vm8, %v19248_v10, %v7248_v6  ;;  %v6422_v20 = vmax.f32 %v19238_v44, 0.0  ;;  %v4890_v9 = vcombine.high %v4888_v37, %v4888_v37  ;;  %v7621_v15 = vsel %vm7224_vm3, %v18940_v5, %v18974_v53 }
 0x2e5   :  { %24066 = vst [vmem:[#allocation66_spill] sm:$0xff] %v19267_v26  ;;  %24067 = vst [vmem:[#allocation69_spill] sm:$0xff] %v19271_v27  ;;  %14360 = vmatprep.mubr.msk.f32.mxu0 %vm7341_vm9, %v19271_v27  ;;  %v7250_v13 = vsel %vm7222_vm2, %v18940_v5, %v18946_v1  ;;  %v4939_v14 = vrot.slane %v4925_v28, %v18479_v32  ;;  %v4940_v29 = vcombine.high %v19251_v43, %v19251_v43  ;;  %v24072_v28 = vld [vmem:[#allocation29_spill] sm:$0xff]  ;;  %v14293_v5 = vpop.f32.mrf.mxu1  ;;  %v24073_v27 = vld [vmem:[#allocation20_spill] sm:$0xff] }
 0x2e6   :  { %v4440_v57 = vmax.f32 %v24069_v25, %v4392_v48  ;;  %v7622_v44 = vsel %vm7226_vm4, %v18964_v54, %v7621_v15  ;;  %v24070_v33 = vmax.f32 %v19005_v22, 0.0  ;;  %v7251_v1 = vsel %vm7224_vm3, %v18964_v54, %v7250_v13  ;;  %v19305_v13 = vpop.f32.mrf.mxu0  ;;  %v24077_v26 = vld [vmem:[#allocation9_spill] sm:$0xff] }
 0x2e7   :  { %v7623_v53 = vsel %vm7228_vm5, %v19057_v4, %v7622_v44  ;;  %v4391_v11 = vadd.f32 %v4240_v58, %v24072_v28  ;;  %v6421_v10 = vmax.f32 %v19262_v39, 0.0  ;;  %v12126_v23 = vrot.slane %v4881_v18, 9  ;;  %v19310_v58 = vld [vmem:[%s23148_s3] ss:$0 sm:$0xff] }
 0x2e8   :  { %v19292_v6 = vrot.slane %v24070_v33, %v18485_v35  ;;  %v12127_v48 = vrot.slane %v4889_v17, 9  ;;  %v12128_v25 = vrot.slane %v4888_v37, 9  ;;  %v12129_v15 = vrot.slane %v4890_v9, 9 }
 0x2e9   :  { %v7624_v22 = vsel %vm7230_vm6, %v19085_v47, %v7623_v53  ;;  %v7252_v33 = vsel %vm7226_vm4, %v19057_v4, %v7251_v1  ;;  %v4439_v44 = vmax.f32 %v24073_v27, %v4391_v11  ;;  %v4941_v61 = vcombine.high %v4939_v14, %v4939_v14  ;;  %v24076_v11 = vld [vmem:[#allocation55_spill] sm:$0xff] }
 0x2ea   :  { %24071 = vst [vmem:[#allocation40_spill] sm:$0xff] %v19292_v6  ;;  %v12139_v31 = vrot.slane %v4940_v29, 9  ;;  %v19313_v39 = vadd.f32 %v19310_v58, %v4440_v57  ;;  %v7625_v53 = vsel %vm7232_vm7, %v19088_v63, %v7624_v22  ;;  %v7253_v27 = vsel %vm7228_vm5, %v19085_v47, %v7252_v33 }
 0x2eb   :  { %v19319_v1 = vsel %vm7234_vm8, %v19292_v6, %v7625_v53  ;;  %v4494_v28 = vadd.f32 %v19310_v58, %v4439_v44  ;;  %v4394_v4 = vadd.f32 %v14293_v5, %v24076_v11  ;;  %v6224_v54 = vmax.f32 %v4881_v18, %v12126_v23  ;;  %v14234_v18 = vpop.f32.mrf.mxu0 }
 0x2ec   :  { %24074 = vst [vmem:[#allocation90_spill] sm:$0xff] %v19313_v39  ;;  %24075 = vst [vmem:[#allocation92_spill] sm:$0xff] %v19319_v1  ;;  %v6225_v36 = vmax.f32 %v4889_v17, %v12127_v48  ;;  %v6226_v2 = vmax.f32 %v4888_v37, %v12128_v25  ;;  %v12138_v57 = vrot.slane %v19251_v43, 9  ;;  %14415 = vmatmul.mubr.msk.f32.gmra.mxu1 %vm7341_vm9, %v19319_v1  ;;  %v12140_v22 = vrot.slane %v4939_v14, 9 }
 0x2ed   :  { %v7254_v53 = vsel %vm7230_vm6, %v19088_v63, %v7253_v27  ;;  %v4942_v45 = vcombine.high %v4494_v28, %v4494_v28  ;;  %v4442_v62 = vmax.f32 %v24077_v26, %v4394_v4  ;;  %v19332_v33 = vrot.slane %v6420_v41, %v18485_v35  ;;  %v4250_v4 = vpop.f32.mrf.mxu1  ;;  %v24092_v63 = vld [vmem:[#allocation52_spill] sm:$0xff] }
 0x2ee   :  { %v12141_v44 = vrot.slane %v4941_v61, 9  ;;  %v6237_v5 = vmax.f32 %v4940_v29, %v12139_v31  ;;  %v19336_v23 = vrot.slane %v19313_v39, %v18479_v32  ;;  %v19339_v37 = vrot.slane %v6422_v20, %v18485_v35  ;;  %v24095_v39 = vld [vmem:[#allocation30_spill] sm:$0xff] }
 0x2ef   :  { %24078 = vst [vmem:[#allocation68_spill] sm:$0xff] %v19332_v33  ;;  %v6227_v17 = vmax.f32 %v4890_v9, %v12129_v15  ;;  %v7255_v48 = vsel %vm7232_vm7, %v19292_v6, %v7254_v53  ;;  %v4949_v25 = vrot.slane %v4494_v28, %v18479_v32  ;;  %v6416_v26 = vmax.f32 %v6224_v54, 0.0  ;;  %v14296_v6 = vpop.f32.mrf.mxu1 }
 0x2f0   :  { %24079 = vst [vmem:[#allocation94_spill] sm:$0xff] %v19336_v23  ;;  %24080 = vst [vmem:[#allocation70_spill] sm:$0xff] %v19339_v37  ;;  %v6236_v41 = vmax.f32 %v19251_v43, %v12138_v57  ;;  %v24081_v31 = vmax.f32 %v24064_v42, %v19236_v50  ;;  %v19353_v20 = vsel %vm7234_vm8, %v18990_v60, %v7255_v48  ;;  %v6417_v9 = vmax.f32 %v6225_v36, 0.0  ;;  %v3959_v50 = vpop.f32.mrf.mxu0  ;;  %v24084_v42 = vld [vmem:[#allocation31_spill] sm:$0xff]  ;;  %v24089_v60 = vld [vmem:[#allocation41_spill] sm:$0xff] }
 0x2f1   :  { %24083 = vst [vmem:[#allocation93_spill] sm:$0xff] %v19353_v20  ;;  %v6418_v15 = vmax.f32 %v6226_v2, 0.0  ;;  %v6238_v27 = vmax.f32 %v4939_v14, %v12140_v22  ;;  %14361 = vmatmul.mubr.msk.f32.gmra.mxu0 %vm7341_vm9, %v19353_v20  ;;  %v4956_v54 = vrot.slane %v4942_v45, %v18479_v32  ;;  %v6239_v28 = vmax.f32 %v4941_v61, %v12141_v44 }
 0x2f2   :  { %v19349_v29 = vadd.f32 %v19310_v58, %v24081_v31  ;;  %v6429_v43 = vmax.f32 %v6237_v5, 0.0  ;;  %v12146_v11 = vrot.slane %v19336_v23, 9  ;;  %v4393_v57 = vadd.f32 %v4250_v4, %v24084_v42 }
 0x2f3   :  { %v19361_v53 = vrot.slane %v6421_v10, %v18485_v35  ;;  %v6419_v48 = vmax.f32 %v6227_v17, 0.0  ;;  %v4957_v31 = vcombine.high %v4949_v25, %v4949_v25  ;;  %v4497_v36 = vadd.f32 %v19310_v58, %v4442_v62 }
 0x2f4   :  { %24082 = vst [vmem:[#allocation91_spill] sm:$0xff] %v19349_v29  ;;  %v19365_v2 = vrot.slane %v6416_v26, %v18485_v35  ;;  %v6428_v14 = vmax.f32 %v6236_v41, 0.0  ;;  %v19369_v45 = vrot.slane %v19349_v29, %v18479_v32  ;;  %v4441_v61 = vmax.f32 %v18924_v30, %v4393_v57  ;;  %v14237_v41 = vpop.f32.mrf.mxu0 }
 0x2f5   :  { %24085 = vst [vmem:[#allocation96_spill] sm:$0xff] %v19361_v53  ;;  %v19373_v22 = vrot.slane %v6418_v15, %v18485_v35  ;;  %v6430_v44 = vmax.f32 %v6238_v27, 0.0  ;;  %v4958_v10 = vcombine.high %v4956_v54, %v4956_v54  ;;  %v12142_v5 = vrot.slane %v4949_v25, 9 }
 0x2f6   :  { %24086 = vst [vmem:[#allocation16_spill] sm:$0xff] %v19369_v45  ;;  %v19376_v17 = vrot.slane %v6417_v9, %v18485_v35  ;;  %v6431_v62 = vmax.f32 %v6239_v28, 0.0  ;;  %v19379_v4 = vrot.slane %v6429_v43, %v18485_v35  ;;  %v6244_v26 = vmax.f32 %v19336_v23, %v12146_v11 }
 0x2f7   :  { %24087 = vst [vmem:[#allocation79_spill] sm:$0xff] %v19373_v22  ;;  %v19383_v42 = vrot.slane %v6419_v48, %v18485_v35  ;;  %v12143_v30 = vrot.slane %v4957_v31, 9  ;;  %v12144_v57 = vrot.slane %v4956_v54, 9  ;;  %v5000_v15 = vrot.slane %v4497_v36, %v18479_v32 }
 0x2f8   :  { %v7566_v27 = vrot.slane %v6428_v14, %v18485_v35  ;;  %v19389_v9 = vadd.f32 %v19305_v13, %v24089_v60  ;;  %v12134_v28 = vrot.slane %v19369_v45, 9  ;;  %v4993_v43 = vcombine.high %v4497_v36, %v4497_v36  ;;  %v3969_v13 = vpop.f32.mrf.mxu0 }
 0x2f9   :  { %24088 = vst [vmem:[#allocation10_spill] sm:$0xff] %v19383_v42  ;;  %v19393_v11 = vrot.slane %v6430_v44, %v18485_v35  ;;  %v19396_v48 = vadd.f32 %v14234_v18, %v24092_v63  ;;  %v12145_v47 = vrot.slane %v4958_v10, 9  ;;  %v6240_v20 = vmax.f32 %v4949_v25, %v12142_v5  ;;  %v24096_v18 = vld [vmem:[#allocation22_spill] sm:$0xff] }
 0x2fa   :  { %24090 = vst [vmem:[#allocation80_spill] sm:$0xff] %v19389_v9  ;;  %v19399_v23 = vrot.slane %v6431_v62, %v18485_v35  ;;  %v19403_v14 = vsel %vm7222_vm2, %v19379_v4, %v7566_v27  ;;  %v6436_v60 = vmax.f32 %v6244_v26, 0.0  ;;  %v4496_v36 = vadd.f32 %v19310_v58, %v4441_v61  ;;  %v24097_v5 = vld [vmem:[#allocation54_spill] sm:$0xff] }
 0x2fb   :  { %24091 = vst [vmem:[#allocation17_spill] sm:$0xff] %v19393_v11  ;;  %24093 = vst [vmem:[#allocation81_spill] sm:$0xff] %v19396_v48  ;;  %v6241_v1 = vmax.f32 %v4957_v31, %v12143_v30  ;;  %v6242_v29 = vmax.f32 %v4956_v54, %v12144_v57  ;;  %v5008_v44 = vcombine.high %v5000_v15, %v5000_v15  ;;  %v6432_v48 = vmax.f32 %v6240_v20, 0.0  ;;  %v24099_v31 = vld [vmem:[#allocation49_spill] sm:$0xff] }
 0x2fc   :  { %24094 = vst [vmem:[#allocation11_spill] sm:$0xff] %v19399_v23  ;;  %v4396_v9 = vadd.f32 %v14296_v6, %v24095_v39  ;;  %v19408_v63 = vmax.f32 %v19369_v45, %v12134_v28  ;;  %v19411_v25 = vadd.f32 %v3959_v50, %v24096_v18  ;;  %v19414_v62 = vadd.f32 %v14237_v41, %v24097_v5  ;;  %v12307_v6 = vld [vmem:[%s23150_s5 + $0xe8] sm:$0xff]  ;;  %v6565_v39 = vld [vmem:[%s23150_s5 + $0x70] sm:$0xff]  ;;  %v4260_v5 = vpop.f32.mrf.mxu1 }
 0x2fd   :  { %v5007_v27 = vrot.slane %v4993_v43, %v18479_v32  ;;  %v19417_v26 = vmax.f32 %v4958_v10, %v12145_v47  ;;  %v12154_v61 = vrot.slane %v5000_v15, 9  ;;  %v19420_v54 = vadd.f32 %v3969_v13, %v24099_v31  ;;  %v24101_v41 = vld [vmem:[#allocation56_spill] sm:$0xff]  ;;  %14435 = vmatprep.subr.mxu0 %v12307_v6  ;;  %14489 = vmatprep.subr.mxu1 %v6565_v39 }
 0x2fe   :  { %24098 = vst [vmem:[#allocation82_spill] sm:$0xff] %v19414_v62  ;;  %v4976_v50 = vcombine.high %v4496_v36, %v4496_v36  ;;  %v4444_v30 = vmax.f32 %v24101_v41, %v4396_v9  ;;  %v7627_v47 = vsel %vm7222_vm2, %v19141_v7, %v19138_v19  ;;  %v7257_v20 = vsel %vm7222_vm2, %v19147_v59, %v19141_v7 }
 0x2ff   :  { %24100 = vst [vmem:[#allocation24_spill] sm:$0xff] %v19420_v54  ;;  %v19436_v10 = vrot.slane %v6436_v60, %v18485_v35  ;;  %v6433_v57 = vmax.f32 %v6241_v1, 0.0  ;;  %v6434_v28 = vmax.f32 %v6242_v29, 0.0  ;;  %v12155_v43 = vrot.slane %v5008_v44, 9  ;;  %14436 = vmatpush3.msra.mxu0 %v12307_v6  ;;  %14490 = vmatpush3.msra.mxu1 %v6565_v39 }
 0x300   :  { %v12156_v13 = vrot.slane %v5007_v27, 9  ;;  %v4983_v9 = vrot.slane %v4496_v36, %v18479_v32  ;;  %v7628_v18 = vsel %vm7224_vm3, %v19147_v59, %v7627_v47  ;;  %v7258_v19 = vsel %vm7224_vm3, %v19154_v49, %v7257_v20 }
 0x301   :  { %24102 = vst [vmem:[#allocation95_spill] sm:$0xff] %v19436_v10  ;;  %v6435_v7 = vmax.f32 %v19417_v26, 0.0  ;;  %v19445_v60 = vrot.slane %v6432_v48, %v18485_v35  ;;  %v5009_v1 = vcombine.high %v5007_v27, %v5007_v27  ;;  %v6252_v29 = vmax.f32 %v5000_v15, %v12154_v61  ;;  %v6564_v61 = vld [vmem:[%s23150_s5 + $0x68] sm:$0xff] }
 0x302   :  { %v19448_v31 = vrot.slane %v4976_v50, %v18479_v32  ;;  %v4499_v36 = vadd.f32 %v19310_v58, %v4444_v30  ;;  %v7629_v6 = vsel %vm7226_vm4, %v19154_v49, %v7628_v18  ;;  %v7259_v41 = vsel %vm7226_vm4, %v19117_v38, %v7258_v19  ;;  %v14299_v18 = vpop.f32.mrf.mxu1  ;;  %14491 = vmatprep.subr.mxu1 %v6564_v61 }
 0x303   :  { %24103 = vst [vmem:[#allocation37_spill] sm:$0xff] %v19445_v60  ;;  %v19456_v39 = vrot.slane %v6433_v57, %v18485_v35  ;;  %v19459_v26 = vrot.slane %v6434_v28, %v18485_v35  ;;  %v6253_v48 = vmax.f32 %v5008_v44, %v12155_v43  ;;  %v7630_v15 = vsel %vm7228_vm5, %v19117_v38, %v7629_v6  ;;  %v12306_v57 = vld [vmem:[%s23150_s5 + $0xe0] sm:$0xff] }
 0x304   :  { %v6254_v50 = vmax.f32 %v5007_v27, %v12156_v13  ;;  %v4991_v30 = vcombine.high %v4983_v9, %v4983_v9  ;;  %v12150_v47 = vrot.slane %v4983_v9, 9  ;;  %v7631_v20 = vsel %vm7230_vm6, %v19122_v51, %v7630_v15  ;;  %v24108_v13 = vld [vmem:[#allocation33_spill] sm:$0xff]  ;;  %14437 = vmatprep.subr.mxu0 %v12306_v57  ;;  %14492 = vmatpush3.msra.mxu1 %v6564_v61  ;;  %v6563_v61 = vld [vmem:[%s23150_s5 + $0x60] sm:$0xff] }
 0x305   :  { %24104 = vst [vmem:[#allocation98_spill] sm:$0xff] %v19456_v39  ;;  %24105 = vst [vmem:[#allocation39_spill] sm:$0xff] %v19459_v26  ;;  %v24106_v44 = vmax.f32 %v19072_v55, 0.0  ;;  %v7632_v43 = vsel %vm7232_vm7, %v19135_v12, %v7631_v20  ;;  %v7260_v27 = vsel %vm7228_vm5, %v19122_v51, %v7259_v41  ;;  %v19481_v19 = vadd.f32 %v4260_v5, %v24108_v13  ;;  %v14240_v55 = vpop.f32.mrf.mxu0  ;;  %v24110_v41 = vld [vmem:[#allocation59_spill] sm:$0xff] }
 0x306   :  { %v12157_v6 = vrot.slane %v5009_v1, 9  ;;  %v6444_v15 = vmax.f32 %v6252_v29, 0.0  ;;  %v4992_v38 = vcombine.high %v19448_v31, %v19448_v31  ;;  %v5027_v49 = vcombine.high %v4499_v36, %v4499_v36  ;;  %14438 = vmatpush3.msra.mxu0 %v12306_v57  ;;  %14493 = vmatprep.subr.mxu1 %v6563_v61 }
 0x307   :  { %v19474_v28 = vrot.slane %v24106_v44, %v18485_v35  ;;  %v19486_v44 = vrot.slane %v4499_v36, %v18479_v32  ;;  %v7261_v5 = vsel %vm7230_vm6, %v19135_v12, %v7260_v27  ;;  %v6445_v13 = vmax.f32 %v6253_v48, 0.0  ;;  %v4270_v36 = vpop.f32.mrf.mxu1  ;;  %14494 = vmatpush3.msra.mxu1 %v6563_v61 }
 0x308   :  { %v6446_v51 = vmax.f32 %v6254_v50, 0.0  ;;  %v12151_v59 = vrot.slane %v4991_v30, 9  ;;  %v12152_v57 = vrot.slane %v19448_v31, 9  ;;  %v24111_v27 = vmax.f32 %v19168_v16, 0.0  ;;  %v24113_v50 = vld [vmem:[#allocation60_spill] sm:$0xff] }
 0x309   :  { %24107 = vst [vmem:[#allocation50_spill] sm:$0xff] %v19474_v28  ;;  %v19490_v20 = vsel %vm7234_vm8, %v19474_v28, %v7632_v43  ;;  %v6248_v43 = vmax.f32 %v4983_v9, %v12150_v47  ;;  %v7262_v48 = vsel %vm7232_vm7, %v19474_v28, %v7261_v5  ;;  %v4398_v29 = vadd.f32 %v14299_v18, %v24113_v50  ;;  %v24115_v47 = vld [vmem:[#allocation57_spill] sm:$0xff]  ;;  %v6562_v18 = vld [vmem:[%s23150_s5 + $0x58] sm:$0xff] }
 0x30a   :  { %24109 = vst [vmem:[#allocation27_spill] sm:$0xff] %v19490_v20  ;;  %14417 = vmatprep.mubr.msk.f32.mxu1 %vm7341_vm9, %v19490_v20  ;;  %v19505_v12 = vrot.slane %v24111_v27, %v18485_v35  ;;  %v12305_v20 = vld [vmem:[%s23150_s5 + $0xd8] sm:$0xff]  ;;  %v19514_v45 = vrot.slane %v6435_v7, %v18485_v35  ;;  %v19516_v54 = vmax.f32 %v5009_v1, %v12157_v6  ;;  %v12153_v9 = vrot.slane %v4992_v38, 9  ;;  %v3979_v1 = vpop.f32.mrf.mxu0 }
 0x30b   :  { %v19519_v16 = vadd.f32 %v14240_v55, %v24115_v47  ;;  %14439 = vmatprep.subr.mxu0 %v12305_v20  ;;  %v19525_v5 = vrot.slane %v5027_v49, %v18479_v32  ;;  %v5042_v27 = vcombine.high %v19486_v44, %v19486_v44  ;;  %v4446_v6 = vmax.f32 %v18967_v21, %v4398_v29  ;;  %v12304_v55 = vld [vmem:[%s23150_s5 + $0xd0] sm:$0xff] }
 0x30c   :  { %24112 = vst [vmem:[#allocation43_spill] sm:$0xff] %v19505_v12  ;;  %24114 = vst [vmem:[#allocation12_spill] sm:$0xff] %v19514_v45  ;;  %v19531_v7 = vsel %vm7234_vm8, %v19505_v12, %v7262_v48  ;;  %14440 = vmatpush3.msra.mxu0 %v12305_v20  ;;  %v6411_v61 = vmax.f32 %v19204_v56, 0.0  ;;  %v19539_v49 = vrot.slane %v6444_v15, %v18485_v35  ;;  %v24120_v48 = vld [vmem:[#allocation129_spill] sm:$0xff]  ;;  %v14302_v20 = vpop.f32.mrf.mxu1  ;;  %v6440_v15 = vmax.f32 %v6248_v43, 0.0 }
 0x30d   :  { %24116 = vst [vmem:[#allocation45_spill] sm:$0xff] %v19519_v16  ;;  %24117 = vst [vmem:[#allocation29_spill] sm:$0xff] %v19531_v7  ;;  %v19542_v50 = vrot.slane %v6445_v13, %v18485_v35  ;;  %14363 = vmatprep.mubr.msk.f32.mxu0 %vm7341_vm9, %v19531_v7  ;;  %v7635_v21 = vsel %vm7224_vm3, %v24120_v48, %v19176_v46  ;;  %14441 = vmatprep.subr.mxu0 %v12304_v55  ;;  %v12303_v13 = vld [vmem:[%s23150_s5 + $0xc8] sm:$0xff]  ;;  %v6561_v46 = vld [vmem:[%s23150_s5 + $0x50] sm:$0xff]  ;;  %v12163_v43 = vrot.slane %v5042_v27, 9 }
 0x30e   :  { %24118 = vst [vmem:[#allocation20_spill] sm:$0xff] %v19539_v49  ;;  %v19550_v29 = vrot.slane %v6446_v51, %v18485_v35  ;;  %v19552_v47 = vmax.f32 %v4991_v30, %v12151_v59  ;;  %v19555_v56 = vmax.f32 %v19448_v31, %v12152_v57  ;;  %14495 = vmatprep.subr.mxu1 %v6562_v18  ;;  %v24122_v51 = vld [vmem:[#allocation51_spill] sm:$0xff]  ;;  %v12162_v57 = vrot.slane %v19486_v44, 9 }
 0x30f   :  { %24119 = vst [vmem:[#allocation55_spill] sm:$0xff] %v19542_v50  ;;  %14442 = vmatpush3.msra.mxu0 %v12304_v55  ;;  %v19563_v12 = vmax.f32 %v4992_v38, %v12153_v9  ;;  %v19566_v28 = vadd.f32 %v3979_v1, %v24122_v51  ;;  %v7636_v59 = vsel %vm7226_vm4, %v19165_v0, %v7635_v21  ;;  %v12302_v9 = vld [vmem:[%s23150_s5 + $0xc0] sm:$0xff]  ;;  %v24125_v55 = vld [vmem:[#allocation74_spill] sm:$0xff]  ;;  %v4280_v51 = vpop.f32.mrf.mxu1 }
 0x310   :  { %24121 = vst [vmem:[#allocation9_spill] sm:$0xff] %v19550_v29  ;;  %v7264_v31 = vsel %vm7222_vm2, %v24120_v48, %v19150_v8  ;;  %14496 = vmatpush3.msra.mxu1 %v6562_v18  ;;  %v5043_v30 = vcombine.high %v19525_v5, %v19525_v5  ;;  %v7637_v38 = vsel %vm7228_vm5, %v19211_v40, %v7636_v59  ;;  %v6560_v59 = vld [vmem:[%s23150_s5 + $0x48] sm:$0xff]  ;;  %v6441_v48 = vmax.f32 %v19552_v47, 0.0 }
 0x311   :  { %24123 = vst [vmem:[#allocation31_spill] sm:$0xff] %v19566_v28  ;;  %14443 = vmatprep.subr.mxu0 %v12303_v13  ;;  %v19582_v1 = vrot.slane %v6411_v61, %v18485_v35  ;;  %v7638_v8 = vsel %vm7230_vm6, %v19260_v3, %v7637_v38  ;;  %v7265_v18 = vsel %vm7224_vm3, %v19165_v0, %v7264_v31  ;;  %v6442_v7 = vmax.f32 %v19555_v56, 0.0  ;;  %v24127_v0 = vld [vmem:[#allocation108_spill] sm:$0xff]  ;;  %v12301_v56 = vld [vmem:[%s23150_s5 + $0xb8] sm:$0xff] }
 0x312   :  { %v4397_v21 = vadd.f32 %v4270_v36, %v24125_v55  ;;  %14497 = vmatprep.subr.mxu1 %v6561_v46  ;;  %v19595_v61 = vrot.slane %v6440_v15, %v18485_v35  ;;  %v19598_v38 = vadd.f32 %v19310_v58, %v4446_v6  ;;  %14444 = vmatpush3.msra.mxu0 %v12303_v13  ;;  %v12164_v36 = vrot.slane %v19525_v5, 9 }
 0x313   :  { %24124 = vst [vmem:[#allocation41_spill] sm:$0xff] %v19582_v1  ;;  %14498 = vmatpush3.msra.mxu1 %v6561_v46  ;;  %v7639_v31 = vsel %vm7232_vm7, %v19214_v34, %v7638_v8  ;;  %v7266_v55 = vsel %vm7226_vm4, %v19211_v40, %v7265_v18  ;;  %14445 = vmatprep.subr.mxu0 %v12302_v9  ;;  %v12165_v15 = vrot.slane %v5043_v30, 9 }
 0x314   :  { %24126 = vst [vmem:[#allocation52_spill] sm:$0xff] %v19598_v38  ;;  %v4445_v47 = vmax.f32 %v24127_v0, %v4397_v21  ;;  %v19610_v6 = vmax.f32 %v19486_v44, %v12162_v57  ;;  %v19612_v13 = vmax.f32 %v5042_v27, %v12163_v43  ;;  %v24128_v46 = vmax.f32 %v24110_v41, %v19481_v19  ;;  %v6559_v0 = vld [vmem:[%s23150_s5 + $0x40] sm:$0xff]  ;;  %v14305_v41 = vpop.f32.mrf.mxu1 }
 0x315   :  { %14499 = vmatprep.subr.mxu1 %v6560_v59  ;;  %14446 = vmatpush3.msra.mxu0 %v12302_v9  ;;  %v19625_v18 = vsel %vm7234_vm8, %v19582_v1, %v7639_v31  ;;  %v7267_v44 = vsel %vm7228_vm5, %v19260_v3, %v7266_v55  ;;  %v24131_v57 = vld [vmem:[#allocation111_spill] sm:$0xff]  ;;  %v6443_v43 = vmax.f32 %v19563_v12, 0.0  ;;  %v19634_v9 = vrot.slane %v19598_v38, %v18479_v32  ;;  %v24133_v31 = vld [vmem:[#allocation28_spill] sm:$0xff]  ;;  %v12300_v3 = vld [vmem:[%s23150_s5 + $0xb0] sm:$0xff] }
 0x316   :  { %v19618_v8 = vadd.f32 %v19310_v58, %v24128_v46  ;;  %24130 = vst [vmem:[#allocation22_spill] sm:$0xff] %v19625_v18  ;;  %v4500_v27 = vadd.f32 %v19310_v58, %v4445_v47  ;;  %v4400_v19 = vadd.f32 %v14302_v20, %v24131_v57  ;;  %14500 = vmatpush3.msra.mxu1 %v6560_v59  ;;  %v14243_v47 = vpop.f32.mrf.mxu0  ;;  %v24134_v46 = vld [vmem:[#allocation34_spill] sm:$0xff]  ;;  %v6555_v38 = vld [vmem:[%s23150_s5 + $0x20] sm:$0xff] }
 0x317   :  { %24132 = vst [vmem:[#allocation54_spill] sm:$0xff] %v19634_v9  ;;  %14418 = vmatmul.mubr.msk.f32.gmra.mxu1 %vm7341_vm9, %v19625_v18  ;;  %v7268_v21 = vsel %vm7230_vm6, %v19214_v34, %v7267_v44  ;;  %v4399_v55 = vadd.f32 %v4280_v51, %v24133_v31  ;;  %14447 = vmatprep.subr.mxu0 %v12301_v56  ;;  %v24136_v31 = vld [vmem:[#allocation114_spill] sm:$0xff] }
 0x318   :  { %24129 = vst [vmem:[#allocation30_spill] sm:$0xff] %v19618_v8  ;;  %v7269_v20 = vsel %vm7232_vm7, %v19582_v1, %v7268_v21  ;;  %v5044_v59 = vcombine.high %v4500_v27, %v4500_v27  ;;  %v5051_v12 = vrot.slane %v4500_v27, %v18479_v32  ;;  %v4448_v57 = vmax.f32 %v24134_v46, %v4400_v19  ;;  %v6558_v27 = vld [vmem:[%s23150_s5 + $0x38] sm:$0xff] }
 0x319   :  { %14501 = vmatprep.subr.mxu1 %v6559_v0  ;;  %v6262_v40 = vmax.f32 %v19525_v5, %v12164_v36  ;;  %v19651_v51 = vsel %vm7234_vm8, %v19199_v52, %v7269_v20  ;;  %v4447_v44 = vmax.f32 %v19162_v24, %v4399_v55  ;;  %v19655_v21 = vadd.f32 %v14305_v41, %v24136_v31  ;;  %v24139_v55 = vld [vmem:[#allocation132_spill] sm:$0xff]  ;;  %v3989_v31 = vpop.f32.mrf.mxu0  ;;  %v24144_v19 = vld [vmem:[#allocation66_spill] sm:$0xff] }
 0x31a   :  { %24135 = vst [vmem:[#allocation49_spill] sm:$0xff] %v19651_v51  ;;  %14448 = vmatpush3.msra.mxu0 %v12301_v56  ;;  %v6263_v1 = vmax.f32 %v5043_v30, %v12165_v15  ;;  %v5058_v5 = vrot.slane %v5044_v59, %v18479_v32  ;;  %v5059_v36 = vcombine.high %v5051_v12, %v5051_v12  ;;  %v6452_v24 = vmax.f32 %v19610_v6, 0.0  ;;  %v6557_v30 = vld [vmem:[%s23150_s5 + $0x30] sm:$0xff]  ;;  %v12299_v15 = vld [vmem:[%s23150_s5 + $0xa8] sm:$0xff] }
 0x31b   :  { %14364 = vmatmul.mubr.msk.f32.gmra.mxu0 %vm7341_vm9, %v19651_v51  ;;  %14502 = vmatpush3.msra.mxu1 %v6559_v0  ;;  %v19667_v41 = vrot.slane %v19618_v8, %v18479_v32  ;;  %v4503_v56 = vadd.f32 %v19310_v58, %v4448_v57  ;;  %v19679_v6 = vrot.slane %v6441_v48, %v18485_v35  ;;  %v6453_v59 = vmax.f32 %v19612_v13, 0.0  ;;  %v12298_v48 = vld [vmem:[%s23150_s5 + $0xa0] sm:$0xff] }
 0x31c   :  { %14449 = vmatprep.subr.mxu0 %v12300_v3  ;;  %v19682_v0 = vrot.slane %v6442_v7, %v18485_v35  ;;  %v12170_v57 = vrot.slane %v19634_v9, 9  ;;  %14503 = vmatprep.subr.mxu1 %v6558_v27  ;;  %v19687_v46 = vrot.slane %v6443_v43, %v18485_v35  ;;  %v6454_v20 = vmax.f32 %v6262_v40, 0.0  ;;  %v6556_v7 = vld [vmem:[%s23150_s5 + $0x28] sm:$0xff] }
 0x31d   :  { %24138 = vst [vmem:[#allocation56_spill] sm:$0xff] %v19667_v41  ;;  %14450 = vmatpush3.msra.mxu0 %v12300_v3  ;;  %v12166_v52 = vrot.slane %v5051_v12, 9  ;;  %v4502_v34 = vadd.f32 %v19310_v58, %v4447_v44  ;;  %14504 = vmatpush3.msra.mxu1 %v6558_v27  ;;  %v6455_v13 = vmax.f32 %v6263_v1, 0.0  ;;  %v5060_v51 = vcombine.high %v5058_v5, %v5058_v5  ;;  %v24142_v44 = vld [vmem:[#allocation32_spill] sm:$0xff]  ;;  %v12297_v1 = vld [vmem:[%s23150_s5 + $0x98] sm:$0xff] }
 0x31e   :  { %24140 = vst [vmem:[#allocation33_spill] sm:$0xff] %v19682_v0  ;;  %24141 = vst [vmem:[#allocation59_spill] sm:$0xff] %v19687_v46  ;;  %v12167_v18 = vrot.slane %v5059_v36, 9  ;;  %v12168_v3 = vrot.slane %v5058_v5, 9  ;;  %14505 = vmatprep.subr.mxu1 %v6557_v30  ;;  %14451 = vmatprep.subr.mxu0 %v12299_v15  ;;  %v7574_v40 = vrot.slane %v6452_v24, %v18485_v35  ;;  %v12158_v43 = vrot.slane %v19667_v41, 9 }
 0x31f   :  { %v19699_v27 = vadd.f32 %v14243_v47, %v24142_v44  ;;  %v5095_v8 = vcombine.high %v4503_v56, %v4503_v56  ;;  %14506 = vmatpush3.msra.mxu1 %v6557_v30  ;;  %14452 = vmatpush3.msra.mxu0 %v12299_v15  ;;  %v6423_v28 = vmax.f32 %v24144_v19, 0.0  ;;  %v19709_v24 = vrot.slane %v6453_v59, %v18485_v35  ;;  %v14246_v47 = vpop.f32.mrf.mxu0  ;;  %v6554_v19 = vld [vmem:[%s23150_s5 + $0x18] sm:$0xff] }
 0x320   :  { %v6268_v16 = vmax.f32 %v19634_v9, %v12170_v57  ;;  %v19713_v44 = vrot.slane %v4503_v56, %v18479_v32  ;;  %14507 = vmatprep.subr.mxu1 %v6556_v7  ;;  %14453 = vmatprep.subr.mxu0 %v12298_v48  ;;  %v19717_v15 = vrot.slane %v6454_v20, %v18485_v35  ;;  %v12296_v56 = vld [vmem:[%s23150_s5 + $0x90] sm:$0xff]  ;;  %v12169_v57 = vrot.slane %v5060_v51, 9 }
 0x321   :  { %24143 = vst [vmem:[#allocation60_spill] sm:$0xff] %v19699_v27  ;;  %24145 = vst [vmem:[#allocation57_spill] sm:$0xff] %v19709_v24  ;;  %v6264_v27 = vmax.f32 %v5051_v12, %v12166_v52  ;;  %v5078_v62 = vcombine.high %v4502_v34, %v4502_v34  ;;  %14508 = vmatpush3.msra.mxu1 %v6556_v7  ;;  %14454 = vmatpush3.msra.mxu0 %v12298_v48 }
 0x322   :  { %24146 = vst [vmem:[#allocation51_spill] sm:$0xff] %v19717_v15  ;;  %v19726_v59 = vrot.slane %v6455_v13, %v18485_v35  ;;  %v6265_v30 = vmax.f32 %v5059_v36, %v12167_v18  ;;  %v6266_v9 = vmax.f32 %v5058_v5, %v12168_v3  ;;  %14509 = vmatprep.subr.mxu1 %v6555_v38  ;;  %v6553_v18 = vld [vmem:[%s23150_s5 + $0x10] sm:$0xff]  ;;  %v12295_v5 = vld [vmem:[%s23150_s5 + $0x88] sm:$0xff]  ;;  %v6460_v48 = vmax.f32 %v6268_v16, 0.0 }
 0x323   :  { %14455 = vmatprep.subr.mxu0 %v12297_v1  ;;  %v19730_v12 = vmax.f32 %v19667_v41, %v12158_v43  ;;  %v19733_v20 = vrot.slane %v5095_v8, %v18479_v32  ;;  %v19736_v7 = vrot.slane %v4502_v34, %v18479_v32  ;;  %14510 = vmatpush3.msra.mxu1 %v6555_v38  ;;  %v24148_v8 = vld [vmem:[#allocation53_spill] sm:$0xff]  ;;  %v3999_v38 = vpop.f32.mrf.mxu0  ;;  %v6456_v3 = vmax.f32 %v6264_v27, 0.0  ;;  %v24150_v43 = vld [vmem:[#allocation110_spill] sm:$0xff] }
 0x324   :  { %24147 = vst [vmem:[#allocation74_spill] sm:$0xff] %v19726_v59  ;;  %14456 = vmatpush3.msra.mxu0 %v12297_v1  ;;  %v19746_v36 = vsel %vm7222_vm2, %v19709_v24, %v7574_v40  ;;  %v19749_v13 = vadd.f32 %v3989_v31, %v24148_v8  ;;  %v5110_v34 = vcombine.high %v19713_v44, %v19713_v44  ;;  %v6552_v31 = vld [vmem:[%s23150_s5 + $0x8] sm:$0xff]  ;;  %v12294_v40 = vld [vmem:[%s23150_s5 + $0x80] sm:$0xff]  ;;  %v6458_v8 = vmax.f32 %v6266_v9, 0.0 }
 0x325   :  { %14511 = vmatprep.subr.mxu1 %v6554_v19  ;;  %14457 = vmatprep.subr.mxu0 %v12296_v56  ;;  %v19754_v1 = vadd.f32 %v14246_v47, %v24150_v43  ;;  %v19757_v52 = vrot.slane %v5078_v62, %v18479_v32  ;;  %v7641_v16 = vsel %vm7222_vm2, %v19376_v17, %v19365_v2  ;;  %v6457_v47 = vmax.f32 %v6265_v30, 0.0  ;;  %v4290_v43 = vpop.f32.mrf.mxu1  ;;  %v6551_v9 = vld [vmem:[%s23150_s5] sm:$0xff] }
 0x326   :  { %24149 = vst [vmem:[#allocation108_spill] sm:$0xff] %v19749_v13  ;;  %14512 = vmatpush3.msra.mxu1 %v6554_v19  ;;  %14458 = vmatpush3.msra.mxu0 %v12296_v56  ;;  %v19768_v27 = vmax.f32 %v5060_v51, %v12169_v57  ;;  %v12178_v62 = vrot.slane %v19713_v44, 9  ;;  %v5111_v19 = vcombine.high %v19733_v20, %v19733_v20  ;;  %v24152_v56 = vld [vmem:[#allocation89_spill] sm:$0xff]  ;;  %v12179_v30 = vrot.slane %v5110_v34, 9 }
 0x327   :  { %24151 = vst [vmem:[#allocation111_spill] sm:$0xff] %v19754_v1  ;;  %14513 = vmatprep.subr.mxu1 %v6553_v18  ;;  %14459 = vmatprep.subr.mxu0 %v12295_v5  ;;  %v19775_v41 = vadd.f32 %v3999_v38, %v24152_v56  ;;  %v5093_v1 = vcombine.high %v19736_v7, %v19736_v7  ;;  %v12180_v57 = vrot.slane %v19733_v20, 9  ;;  %v14308_v24 = vpop.f32.mrf.mxu1 }
 0x328   :  { %14514 = vmatpush3.msra.mxu1 %v6553_v18  ;;  %14460 = vmatpush3.msra.mxu0 %v12295_v5  ;;  %v19783_v51 = vrot.slane %v6460_v48, %v18485_v35  ;;  %v19787_v2 = vrot.slane %v6423_v28, %v18485_v35  ;;  %v12293_v18 = vld [vmem:[%s23150_s5 + $0x78] sm:$0xff]  ;;  %v19793_v5 = vrot.slane %v6456_v3, %v18485_v35 }
 0x329   :  { %24153 = vst [vmem:[#allocation28_spill] sm:$0xff] %v19775_v41  ;;  %14515 = vmatprep.subr.mxu1 %v6552_v31  ;;  %14461 = vmatprep.subr.mxu0 %v12294_v40  ;;  %v5094_v38 = vcombine.high %v19757_v52, %v19757_v52  ;;  %v24157_v48 = vmax.f32 %v24139_v55, %v19655_v21  ;;  %v6459_v41 = vmax.f32 %v19768_v27, 0.0  ;;  %v12354_v21 = vld [vmem:[%s23149_s4 + $0x160] sm:$0xff]  ;;  %v12175_v27 = vrot.slane %v5093_v1, 9 }
 0x32a   :  { %24154 = vst [vmem:[#allocation34_spill] sm:$0xff] %v19783_v51  ;;  %24155 = vst [vmem:[#allocation114_spill] sm:$0xff] %v19787_v2  ;;  %v7642_v28 = vsel %vm7224_vm3, %v19373_v22, %v7641_v16  ;;  %14516 = vmatpush3.msra.mxu1 %v6552_v31  ;;  %v19805_v13 = vrot.slane %v6457_v47, %v18485_v35  ;;  %v19808_v3 = vrot.slane %v6458_v8, %v18485_v35  ;;  %v12385_v55 = vld [vmem:[%s23150_s5 + $0x160] sm:$0xff] }
 0x32b   :  { %24156 = vst [vmem:[#allocation132_spill] sm:$0xff] %v19793_v5  ;;  %v4505_v56 = vadd.f32 %v19310_v58, %v24157_v48  ;;  %v6276_v51 = vmax.f32 %v19713_v44, %v12178_v62  ;;  %14462 = vmatpush3.msra.mxu0 %v12294_v40  ;;  %14517 = vmatprep.subr.mxu1 %v6551_v9  ;;  %v12181_v16 = vrot.slane %v5111_v19, 9  ;;  %v12174_v31 = vrot.slane %v19736_v7, 9 }
 0x32c   :  { %24158 = vst [vmem:[#allocation32_spill] sm:$0xff] %v19805_v13  ;;  %24159 = vst [vmem:[#allocation66_spill] sm:$0xff] %v19808_v3  ;;  %v7643_v47 = vsel %vm7226_vm4, %v19383_v42, %v7642_v28  ;;  %14463 = vmatprep.subr.mxu0 %v12293_v18  ;;  %14518 = vmatpush3.msra.mxu1 %v6551_v9  ;;  %v6277_v44 = vmax.f32 %v5110_v34, %v12179_v30  ;;  %v12176_v48 = vrot.slane %v19757_v52, 9  ;;  %v24160_v9 = vld [vmem:[#allocation58_spill] sm:$0xff] }
 0x32d   :  { %v6278_v40 = vmax.f32 %v19733_v20, %v12180_v57  ;;  %v7644_v8 = vsel %vm7228_vm5, %v19332_v33, %v7643_v47  ;;  %v7271_v62 = vsel %vm7222_vm2, %v19373_v22, %v19376_v17  ;;  %14464 = vmatpush3.msra.mxu0 %v12293_v18  ;;  %v12177_v3 = vrot.slane %v5094_v38, 9  ;;  %14597 = vmatprep.subr.mxu1 %v12385_v55  ;;  %v24161_v57 = vld [vmem:[#allocation116_spill] sm:$0xff]  ;;  %v4300_v17 = vpop.f32.mrf.mxu1  ;;  %v24162_v55 = vld [vmem:[#allocation131_spill] sm:$0xff] }
 0x32e   :  { %v5129_v13 = vcombine.high %v4505_v56, %v4505_v56  ;;  %v5136_v5 = vrot.slane %v4505_v56, %v18479_v32  ;;  %14543 = vmatprep.subr.mxu0 %v12354_v21  ;;  %v7645_v34 = vsel %vm7230_vm6, %v19361_v53, %v7644_v8  ;;  %v7272_v20 = vsel %vm7224_vm3, %v19383_v42, %v7271_v62  ;;  %v24163_v62 = vld [vmem:[#allocation135_spill] sm:$0xff] }
 0x32f   :  { %v4401_v30 = vadd.f32 %v4290_v43, %v24160_v9  ;;  %v4404_v28 = vadd.f32 %v14308_v24, %v24161_v57  ;;  %v19834_v18 = vmax.f32 %v5111_v19, %v12181_v16  ;;  %v6468_v47 = vmax.f32 %v6276_v51, 0.0 }
 0x330   :  { %v6272_v22 = vmax.f32 %v19736_v7, %v12174_v31  ;;  %v6273_v59 = vmax.f32 %v5093_v1, %v12175_v27  ;;  %v7646_v56 = vsel %vm7232_vm7, %v19339_v37, %v7645_v34  ;;  %v7273_v21 = vsel %vm7226_vm4, %v19332_v33, %v7272_v20  ;;  %v14311_v31 = vpop.f32.mrf.mxu1 }
 0x331   :  { %v4449_v8 = vmax.f32 %v24162_v55, %v4401_v30  ;;  %v4452_v42 = vmax.f32 %v24163_v62, %v4404_v28  ;;  %v6469_v43 = vmax.f32 %v6277_v44, 0.0  ;;  %v6470_v9 = vmax.f32 %v6278_v40, 0.0 }
 0x332   :  { %v19844_v24 = vmax.f32 %v19757_v52, %v12176_v48  ;;  %v5143_v19 = vrot.slane %v5129_v13, %v18479_v32  ;;  %v19847_v51 = vmax.f32 %v5094_v38, %v12177_v3  ;;  %v5144_v7 = vcombine.high %v5136_v5, %v5136_v5 }
 0x333   :  { %v19851_v1 = vsel %vm7234_vm8, %v19787_v2, %v7646_v56  ;;  %v7274_v16 = vsel %vm7228_vm5, %v19361_v53, %v7273_v21  ;;  %v19856_v27 = vrot.slane %v6459_v41, %v18485_v35  ;;  %v6465_v44 = vmax.f32 %v6273_v59, 0.0 }
 0x334   :  { %24164 = vst [vmem:[#allocation53_spill] sm:$0xff] %v19851_v1  ;;  %14420 = vmatprep.mubr.msk.f32.mxu1 %vm7341_vm9, %v19851_v1  ;;  %v24166_v52 = vmax.f32 %v19408_v63, 0.0  ;;  %v7275_v38 = vsel %vm7230_vm6, %v19339_v37, %v7274_v16  ;;  %v19868_v3 = vrot.slane %v6468_v47, %v18485_v35  ;;  %v6464_v40 = vmax.f32 %v6272_v22, 0.0  ;;  %v4310_v47 = vpop.f32.mrf.mxu1 }
 0x335   :  { %24165 = vst [vmem:[#allocation110_spill] sm:$0xff] %v19856_v27  ;;  %v12186_v48 = vrot.slane %v5136_v5, 9  ;;  %v7276_v41 = vsel %vm7232_vm7, %v19787_v2, %v7275_v38  ;;  %v19874_v34 = vrot.slane %v6469_v43, %v18485_v35  ;;  %v5145_v20 = vcombine.high %v5143_v19, %v5143_v19  ;;  %v24174_v38 = vld [vmem:[#allocation21_spill] sm:$0xff] }
 0x336   :  { %v19863_v13 = vrot.slane %v24166_v52, %v18485_v35  ;;  %24168 = vst [vmem:[#allocation58_spill] sm:$0xff] %v19868_v3  ;;  %v19881_v30 = vrot.slane %v6470_v9, %v18485_v35  ;;  %v6466_v57 = vmax.f32 %v19844_v24, 0.0  ;;  %v6467_v22 = vmax.f32 %v19847_v51, 0.0 }
 0x337   :  { %24169 = vst [vmem:[#allocation116_spill] sm:$0xff] %v19874_v34  ;;  %v12187_v28 = vrot.slane %v5144_v7, 9  ;;  %v19888_v56 = vrot.slane %v6465_v44, %v18485_v35  ;;  %v19891_v21 = vadd.f32 %v19310_v58, %v4452_v42  ;;  %v7649_v55 = vsel %vm7224_vm3, %v19393_v11, %v19403_v14 }
 0x338   :  { %24167 = vst [vmem:[#allocation89_spill] sm:$0xff] %v19863_v13  ;;  %v19878_v63 = vsel %vm7234_vm8, %v19863_v13, %v7276_v41  ;;  %24171 = vst [vmem:[#allocation135_spill] sm:$0xff] %v19881_v30  ;;  %v7278_v62 = vsel %vm7222_vm2, %v19393_v11, %v19379_v4  ;;  %v19900_v43 = vrot.slane %v6464_v40, %v18485_v35  ;;  %v12188_v9 = vrot.slane %v5143_v19, 9 }
 0x339   :  { %24170 = vst [vmem:[#allocation131_spill] sm:$0xff] %v19878_v63  ;;  %14366 = vmatprep.mubr.msk.f32.mxu0 %vm7341_vm9, %v19878_v63  ;;  %24172 = vst [vmem:[#allocation139_spill] sm:$0xff] %v19891_v21  ;;  %v6284_v24 = vmax.f32 %v5136_v5, %v12186_v48  ;;  %v7650_v51 = vsel %vm7226_vm4, %v19399_v23, %v7649_v55  ;;  %v12189_v16 = vrot.slane %v5145_v20, 9  ;;  %v14314_v48 = vpop.f32.mrf.mxu1 }
 0x33a   :  { %v19905_v42 = vadd.f32 %v19310_v58, %v4449_v8  ;;  %v7651_v44 = vsel %vm7228_vm5, %v19445_v60, %v7650_v51  ;;  %v7279_v14 = vsel %vm7224_vm3, %v19399_v23, %v7278_v62  ;;  %v6285_v52 = vmax.f32 %v5144_v7, %v12187_v28  ;;  %v24176_v7 = vld [vmem:[#allocation119_spill] sm:$0xff]  ;;  %v24178_v51 = vld [vmem:[#allocation64_spill] sm:$0xff] }
 0x33b   :  { %v7652_v4 = vsel %vm7230_vm6, %v19456_v39, %v7651_v44  ;;  %v7280_v5 = vsel %vm7226_vm4, %v19445_v60, %v7279_v14  ;;  %v4403_v40 = vadd.f32 %v4300_v17, %v24174_v38  ;;  %v19918_v8 = vrot.slane %v19891_v21, %v18479_v32  ;;  %v24179_v14 = vld [vmem:[#allocation71_spill] sm:$0xff] }
 0x33c   :  { %24173 = vst [vmem:[#allocation140_spill] sm:$0xff] %v19905_v42  ;;  %v7653_v41 = vsel %vm7232_vm7, %v19459_v26, %v7652_v4  ;;  %v7281_v55 = vsel %vm7228_vm5, %v19456_v39, %v7280_v5  ;;  %v4406_v28 = vadd.f32 %v14311_v31, %v24176_v7  ;;  %v4405_v38 = vadd.f32 %v4310_v47, %v24179_v14  ;;  %v24181_v4 = vld [vmem:[#allocation134_spill] sm:$0xff] }
 0x33d   :  { %24175 = vst [vmem:[#allocation21_spill] sm:$0xff] %v19918_v8  ;;  %v19927_v62 = vsel %vm7234_vm8, %v19514_v45, %v7653_v41  ;;  %v7282_v17 = vsel %vm7230_vm6, %v19459_v26, %v7281_v55  ;;  %v4451_v44 = vmax.f32 %v24178_v51, %v4403_v40  ;;  %v19935_v59 = vrot.slane %v19905_v42, %v18479_v32  ;;  %v24182_v41 = vld [vmem:[#allocation123_spill] sm:$0xff]  ;;  %v24184_v55 = vld [vmem:[#allocation80_spill] sm:$0xff] }
 0x33e   :  { %24177 = vst [vmem:[#allocation119_spill] sm:$0xff] %v19927_v62  ;;  %14421 = vmatmul.mubr.msk.f32.gmra.mxu1 %vm7341_vm9, %v19927_v62  ;;  %v7283_v31 = vsel %vm7232_vm7, %v19514_v45, %v7282_v17  ;;  %v4454_v5 = vmax.f32 %v24181_v4, %v4406_v28  ;;  %v4408_v7 = vadd.f32 %v14314_v48, %v24182_v41  ;;  %v12194_v26 = vrot.slane %v19918_v8, 9  ;;  %v24185_v28 = vld [vmem:[#allocation81_spill] sm:$0xff] }
 0x33f   :  { %24180 = vst [vmem:[#allocation64_spill] sm:$0xff] %v19935_v59  ;;  %v6286_v13 = vmax.f32 %v5143_v19, %v12188_v9  ;;  %v19945_v40 = vsel %vm7234_vm8, %v19436_v10, %v7283_v31  ;;  %v4506_v47 = vadd.f32 %v19310_v58, %v4451_v44  ;;  %v4453_v51 = vmax.f32 %v24184_v55, %v4405_v38 }
 0x340   :  { %24183 = vst [vmem:[#allocation71_spill] sm:$0xff] %v19945_v40  ;;  %v6287_v14 = vmax.f32 %v5145_v20, %v12189_v16  ;;  %14367 = vmatmul.mubr.msk.f32.gmra.mxu0 %vm7341_vm9, %v19945_v40  ;;  %v4509_v17 = vadd.f32 %v19310_v58, %v4454_v5  ;;  %v4456_v4 = vmax.f32 %v24185_v28, %v4408_v7  ;;  %v6476_v9 = vmax.f32 %v6284_v24, 0.0 }
 0x341   :  { %v19955_v19 = vrot.slane %v6466_v57, %v18485_v35  ;;  %v5146_v48 = vcombine.high %v4506_v47, %v4506_v47  ;;  %v5153_v31 = vrot.slane %v4506_v47, %v18479_v32  ;;  %v6477_v44 = vmax.f32 %v6285_v52, 0.0 }
 0x342   :  { %v12182_v38 = vrot.slane %v19935_v59, 9  ;;  %v5197_v20 = vcombine.high %v4509_v17, %v4509_v17  ;;  %v5204_v16 = vrot.slane %v4509_v17, %v18479_v32  ;;  %v6478_v41 = vmax.f32 %v6286_v13, 0.0 }
 0x343   :  { %24186 = vst [vmem:[#allocation134_spill] sm:$0xff] %v19955_v19  ;;  %v5160_v55 = vrot.slane %v5146_v48, %v18479_v32  ;;  %v5161_v10 = vcombine.high %v5153_v31, %v5153_v31  ;;  %v4508_v5 = vadd.f32 %v19310_v58, %v4453_v51  ;;  %v19963_v7 = vrot.slane %v6467_v22, %v18485_v35 }
 0x344   :  { %v6479_v57 = vmax.f32 %v6287_v14, 0.0  ;;  %v6292_v24 = vmax.f32 %v19918_v8, %v12194_v26  ;;  %v5211_v47 = vrot.slane %v5197_v20, %v18479_v32  ;;  %v12190_v52 = vrot.slane %v5153_v31, 9 }
 0x345   :  { %24187 = vst [vmem:[#allocation123_spill] sm:$0xff] %v19963_v7  ;;  %v5212_v28 = vcombine.high %v5204_v16, %v5204_v16  ;;  %v12202_v45 = vrot.slane %v5204_v16, 9  ;;  %v7655_v13 = vsel %vm7222_vm2, %v19679_v6, %v19595_v61  ;;  %v19971_v17 = vrot.slane %v6477_v44, %v18485_v35 }
 0x346   :  { %v7582_v51 = vrot.slane %v6476_v9, %v18485_v35  ;;  %v19975_v22 = vmax.f32 %v19935_v59, %v12182_v38  ;;  %v5162_v14 = vcombine.high %v5160_v55, %v5160_v55  ;;  %v19978_v26 = vrot.slane %v6478_v41, %v18485_v35  ;;  %v24215_v59 = vld [vmem:[#allocation45_spill] sm:$0xff] }
 0x347   :  { %v12191_v48 = vrot.slane %v5161_v10, 9  ;;  %v12192_v20 = vrot.slane %v5160_v55, 9  ;;  %v5180_v2 = vcombine.high %v4508_v5, %v4508_v5  ;;  %v19981_v39 = vrot.slane %v6479_v57, %v18485_v35 }
 0x348   :  { %v6484_v37 = vmax.f32 %v6292_v24, 0.0  ;;  %v5213_v61 = vcombine.high %v5211_v47, %v5211_v47  ;;  %v7656_v44 = vsel %vm7224_vm3, %v19682_v0, %v7655_v13  ;;  %v6288_v60 = vmax.f32 %v5153_v31, %v12190_v52 }
 0x349   :  { %24188 = vst [vmem:[#allocation80_spill] sm:$0xff] %v19981_v39  ;;  %v12203_v9 = vrot.slane %v5212_v28, 9  ;;  %v12204_v53 = vrot.slane %v5211_v47, 9  ;;  %v6300_v38 = vmax.f32 %v5204_v16, %v12202_v45  ;;  %v19987_v23 = vsel %vm7222_vm2, %v19971_v17, %v7582_v51 }
 0x34a   :  { %v12193_v11 = vrot.slane %v5162_v14, 9  ;;  %v5187_v33 = vrot.slane %v4508_v5, %v18479_v32  ;;  %v6289_v57 = vmax.f32 %v5161_v10, %v12191_v48  ;;  %v6290_v40 = vmax.f32 %v5160_v55, %v12192_v20  ;;  %v4320_v48 = vpop.f32.mrf.mxu1 }
 0x34b   :  { %v5194_v24 = vrot.slane %v5180_v2, %v18479_v32  ;;  %v7657_v13 = vsel %vm7226_vm4, %v19687_v46, %v7656_v44  ;;  %v19995_v31 = vrot.slane %v6484_v37, %v18485_v35  ;;  %v12205_v45 = vrot.slane %v5213_v61, 9 }
 0x34c   :  { %v4511_v16 = vadd.f32 %v19310_v58, %v4456_v4  ;;  %v24190_v52 = vmax.f32 %v19516_v54, 0.0  ;;  %v6480_v41 = vmax.f32 %v6288_v60, 0.0  ;;  %v6301_v5 = vmax.f32 %v5212_v28, %v12203_v9 }
 0x34d   :  { %24189 = vst [vmem:[#allocation81_spill] sm:$0xff] %v19995_v31  ;;  %v6302_v10 = vmax.f32 %v5211_v47, %v12204_v53  ;;  %v6492_v55 = vmax.f32 %v6300_v38, 0.0  ;;  %v20003_v2 = vmax.f32 %v5162_v14, %v12193_v11  ;;  %v5195_v20 = vcombine.high %v5187_v33, %v5187_v33 }
 0x34e   :  { %v20001_v51 = vrot.slane %v24190_v52, %v18485_v35  ;;  %v5196_v44 = vcombine.high %v5194_v24, %v5194_v24  ;;  %v7658_v37 = vsel %vm7228_vm5, %v19539_v49, %v7657_v13  ;;  %v6481_v62 = vmax.f32 %v6289_v57, 0.0 }
 0x34f   :  { %v6482_v63 = vmax.f32 %v6290_v40, 0.0  ;;  %v12198_v58 = vrot.slane %v5187_v33, 9  ;;  %v7659_v54 = vsel %vm7230_vm6, %v19542_v50, %v7658_v37  ;;  %v20009_v4 = vmax.f32 %v5213_v61, %v12205_v45  ;;  %v14317_v40 = vpop.f32.mrf.mxu1 }
 0x350   :  { %24191 = vst [vmem:[#allocation141_spill] sm:$0xff] %v20001_v51  ;;  %v12200_v60 = vrot.slane %v5194_v24, 9  ;;  %v5231_v28 = vcombine.high %v4511_v16, %v4511_v16  ;;  %v5238_v53 = vrot.slane %v4511_v16, %v18479_v32  ;;  %v20013_v11 = vrot.slane %v6480_v41, %v18485_v35 }
 0x351   :  { %v6493_v47 = vmax.f32 %v6301_v5, 0.0  ;;  %v6494_v14 = vmax.f32 %v6302_v10, 0.0  ;;  %v24193_v9 = vmax.f32 %v19730_v12, 0.0  ;;  %v20021_v57 = vrot.slane %v6492_v55, %v18485_v35  ;;  %v24202_v5 = vld [vmem:[#allocation127_spill] sm:$0xff] }
 0x352   :  { %24192 = vst [vmem:[#allocation142_spill] sm:$0xff] %v20013_v11  ;;  %v12199_v61 = vrot.slane %v5195_v20, 9  ;;  %v12201_v13 = vrot.slane %v5196_v44, 9  ;;  %v7660_v45 = vsel %vm7232_vm7, %v19550_v29, %v7659_v54  ;;  %v6483_v16 = vmax.f32 %v20003_v2, 0.0 }
 0x353   :  { %v20018_v38 = vrot.slane %v24193_v9, %v18485_v35  ;;  %24195 = vst [vmem:[#allocation144_spill] sm:$0xff] %v20021_v57  ;;  %v20027_v41 = vrot.slane %v6481_v62, %v18485_v35  ;;  %v20030_v52 = vrot.slane %v6482_v63, %v18485_v35  ;;  %v6296_v12 = vmax.f32 %v5187_v33, %v12198_v58  ;;  %v4330_v63 = vpop.f32.mrf.mxu1 }
 0x354   :  { %v6298_v10 = vmax.f32 %v5194_v24, %v12200_v60  ;;  %v5245_v55 = vrot.slane %v5231_v28, %v18479_v32  ;;  %v5246_v37 = vcombine.high %v5238_v53, %v5238_v53  ;;  %v20035_v9 = vrot.slane %v6493_v47, %v18485_v35 }
 0x355   :  { %24194 = vst [vmem:[#allocation143_spill] sm:$0xff] %v20018_v38  ;;  %24196 = vst [vmem:[#allocation145_spill] sm:$0xff] %v20027_v41  ;;  %v20038_v54 = vrot.slane %v6494_v14, %v18485_v35  ;;  %v20042_v62 = vsel %vm7234_vm8, %v20001_v51, %v7660_v45  ;;  %v7285_v33 = vsel %vm7222_vm2, %v19682_v0, %v19679_v6  ;;  %v12210_v58 = vrot.slane %v5238_v53, 9  ;;  %v24201_v14 = vld [vmem:[#allocation73_spill] sm:$0xff] }
 0x356   :  { %24197 = vst [vmem:[#allocation146_spill] sm:$0xff] %v20030_v52  ;;  %24198 = vst [vmem:[#allocation147_spill] sm:$0xff] %v20035_v9  ;;  %v6297_v2 = vmax.f32 %v5195_v20, %v12199_v61  ;;  %v6299_v24 = vmax.f32 %v5196_v44, %v12201_v13  ;;  %14423 = vmatprep.mubr.msk.f32.mxu1 %vm7341_vm9, %v20042_v62  ;;  %v7286_v60 = vsel %vm7224_vm3, %v19687_v46, %v7285_v33  ;;  %v24203_v13 = vld [vmem:[#allocation82_spill] sm:$0xff] }
 0x357   :  { %24199 = vst [vmem:[#allocation148_spill] sm:$0xff] %v20038_v54  ;;  %24200 = vst [vmem:[#allocation149_spill] sm:$0xff] %v20042_v62  ;;  %v6488_v28 = vmax.f32 %v6296_v12, 0.0  ;;  %v7287_v47 = vsel %vm7226_vm4, %v19539_v49, %v7286_v60  ;;  %v4407_v45 = vadd.f32 %v4320_v48, %v24201_v14  ;;  %v4410_v1 = vadd.f32 %v14317_v40, %v24202_v5  ;;  %v14320_v48 = vpop.f32.mrf.mxu1 }
 0x358   :  { %v6490_v8 = vmax.f32 %v6298_v10, 0.0  ;;  %v5247_v6 = vcombine.high %v5245_v55, %v5245_v55  ;;  %v12211_v0 = vrot.slane %v5246_v37, 9  ;;  %v7288_v20 = vsel %vm7228_vm5, %v19542_v50, %v7287_v47  ;;  %v24204_v10 = vld [vmem:[#allocation74_spill] sm:$0xff] }
 0x359   :  { %v7289_v44 = vsel %vm7230_vm6, %v19550_v29, %v7288_v20  ;;  %v4455_v61 = vmax.f32 %v19411_v25, %v4407_v45  ;;  %v4458_v12 = vmax.f32 %v24203_v13, %v4410_v1  ;;  %v7663_v33 = vsel %vm7224_vm3, %v19717_v15, %v19746_v36  ;;  %v20075_v25 = vld [vmem:[%s23148_s3] ss:$0 sm:$0xff]  ;;  %v24207_v1 = vld [vmem:[#allocation132_spill] sm:$0xff] }
 0x35a   :  { %v6489_v60 = vmax.f32 %v6297_v2, 0.0  ;;  %v12212_v40 = vrot.slane %v5245_v55, 9  ;;  %v7290_v5 = vsel %vm7232_vm7, %v20001_v51, %v7289_v44  ;;  %v7664_v47 = vsel %vm7226_vm4, %v24204_v10, %v7663_v33  ;;  %v24208_v45 = vld [vmem:[#allocation32_spill] sm:$0xff]  ;;  %v24209_v44 = vld [vmem:[#allocation57_spill] sm:$0xff]  ;;  %v24210_v33 = vld [vmem:[#allocation75_spill] sm:$0xff] }
 0x35b   :  { %v6491_v14 = vmax.f32 %v6299_v24, 0.0  ;;  %v20070_v20 = vsel %vm7234_vm8, %v20018_v38, %v7290_v5  ;;  %v20078_v36 = vadd.f32 %v20075_v25, %v4458_v12  ;;  %v7665_v2 = vsel %vm7228_vm5, %v24207_v1, %v7664_v47  ;;  %v24211_v38 = vld [vmem:[#allocation130_spill] sm:$0xff] }
 0x35c   :  { %24205 = vst [vmem:[#allocation73_spill] sm:$0xff] %v20070_v20  ;;  %14369 = vmatprep.mubr.msk.f32.mxu0 %vm7341_vm9, %v20070_v20  ;;  %v7666_v24 = vsel %vm7230_vm6, %v24208_v45, %v7665_v2  ;;  %v7292_v13 = vsel %vm7222_vm2, %v19717_v15, %v24209_v44  ;;  %v4409_v5 = vadd.f32 %v4330_v63, %v24210_v33  ;;  %v12213_v29 = vrot.slane %v5247_v6, 9  ;;  %v24213_v47 = vld [vmem:[#allocation66_spill] sm:$0xff]  ;;  %v24214_v20 = vld [vmem:[#allocation24_spill] sm:$0xff] }
 0x35d   :  { %24206 = vst [vmem:[#allocation127_spill] sm:$0xff] %v20078_v36  ;;  %v4412_v51 = vadd.f32 %v14320_v48, %v24211_v38  ;;  %v6308_v12 = vmax.f32 %v5238_v53, %v12210_v58  ;;  %v6309_v50 = vmax.f32 %v5246_v37, %v12211_v0  ;;  %v20092_v49 = vadd.f32 %v20075_v25, %v4455_v61 }
 0x35e   :  { %v7667_v46 = vsel %vm7232_vm7, %v24213_v47, %v7666_v24  ;;  %v7293_v2 = vsel %vm7224_vm3, %v24204_v10, %v7292_v13  ;;  %v4457_v62 = vmax.f32 %v24214_v20, %v4409_v5  ;;  %v20101_v63 = vrot.slane %v6483_v16, %v18485_v35  ;;  %v24221_v20 = vld [vmem:[#allocation76_spill] sm:$0xff] }
 0x35f   :  { %24212 = vst [vmem:[#allocation82_spill] sm:$0xff] %v20092_v49  ;;  %v4460_v44 = vmax.f32 %v24215_v59, %v4412_v51  ;;  %v20104_v38 = vrot.slane %v6490_v8, %v18485_v35  ;;  %v20107_v0 = vrot.slane %v6488_v28, %v18485_v35  ;;  %v20111_v53 = vrot.slane %v20078_v36, %v18479_v32  ;;  %v4340_v8 = vpop.f32.mrf.mxu1 }
 0x360   :  { %24216 = vst [vmem:[#allocation57_spill] sm:$0xff] %v20101_v63  ;;  %v20114_v37 = vrot.slane %v6489_v60, %v18485_v35  ;;  %v6310_v58 = vmax.f32 %v5245_v55, %v12212_v40  ;;  %v20118_v59 = vsel %vm7234_vm8, %v19856_v27, %v7667_v46  ;;  %v7294_v51 = vsel %vm7226_vm4, %v24207_v1, %v7293_v2 }
 0x361   :  { %24217 = vst [vmem:[#allocation75_spill] sm:$0xff] %v20111_v53  ;;  %24218 = vst [vmem:[#allocation130_spill] sm:$0xff] %v20118_v59  ;;  %v20123_v16 = vrot.slane %v6491_v14, %v18485_v35  ;;  %v6311_v28 = vmax.f32 %v5247_v6, %v12213_v29  ;;  %v6500_v61 = vmax.f32 %v6308_v12, 0.0  ;;  %14424 = vmatmul.mubr.msk.f32.gmra.mxu1 %vm7341_vm9, %v20118_v59  ;;  %v6501_v55 = vmax.f32 %v6309_v50, 0.0  ;;  %v24222_v50 = vld [vmem:[#allocation34_spill] sm:$0xff] }
 0x362   :  { %v7295_v48 = vsel %vm7228_vm5, %v24208_v45, %v7294_v51  ;;  %v20131_v46 = vrot.slane %v20092_v49, %v18479_v32  ;;  %v4512_v40 = vadd.f32 %v20075_v25, %v4457_v62  ;;  %v12218_v14 = vrot.slane %v20111_v53, 9 }
 0x363   :  { %24219 = vst [vmem:[#allocation24_spill] sm:$0xff] %v20123_v16  ;;  %v7296_v60 = vsel %vm7230_vm6, %v24213_v47, %v7295_v48  ;;  %v4515_v6 = vadd.f32 %v20075_v25, %v4460_v44  ;;  %v4411_v24 = vadd.f32 %v4340_v8, %v24221_v20  ;;  %v6502_v13 = vmax.f32 %v6310_v58, 0.0  ;;  %v24224_v48 = vld [vmem:[#allocation31_spill] sm:$0xff] }
 0x364   :  { %24220 = vst [vmem:[#allocation45_spill] sm:$0xff] %v20131_v46  ;;  %v7297_v29 = vsel %vm7232_vm7, %v19856_v27, %v7296_v60  ;;  %v5248_v5 = vcombine.high %v4512_v40, %v4512_v40  ;;  %v5255_v12 = vrot.slane %v4512_v40, %v18479_v32  ;;  %v6503_v2 = vmax.f32 %v6311_v28, 0.0 }
 0x365   :  { %v20143_v33 = vsel %vm7234_vm8, %v24222_v50, %v7297_v29  ;;  %v5299_v62 = vcombine.high %v4515_v6, %v4515_v6  ;;  %v5306_v51 = vrot.slane %v4515_v6, %v18479_v32  ;;  %v4459_v60 = vmax.f32 %v24224_v48, %v4411_v24  ;;  %v14323_v48 = vpop.f32.mrf.mxu1 }
 0x366   :  { %24223 = vst [vmem:[#allocation76_spill] sm:$0xff] %v20143_v33  ;;  %14370 = vmatmul.mubr.msk.f32.gmra.mxu0 %vm7341_vm9, %v20143_v33  ;;  %v12206_v44 = vrot.slane %v20131_v46, 9  ;;  %v5262_v58 = vrot.slane %v5248_v5, %v18479_v32  ;;  %v5263_v8 = vcombine.high %v5255_v12, %v5255_v12  ;;  %v12214_v20 = vrot.slane %v5255_v12, 9 }
 0x367   :  { %v6316_v29 = vmax.f32 %v20111_v53, %v12218_v14  ;;  %v5313_v50 = vrot.slane %v5299_v62, %v18479_v32  ;;  %v5314_v40 = vcombine.high %v5306_v51, %v5306_v51  ;;  %v12226_v28 = vrot.slane %v5306_v51, 9 }
 0x368   :  { %v5264_v27 = vcombine.high %v5262_v58, %v5262_v58  ;;  %v12215_v47 = vrot.slane %v5263_v8, 9  ;;  %v12216_v45 = vrot.slane %v5262_v58, 9  ;;  %v6312_v1 = vmax.f32 %v5255_v12, %v12214_v20 }
 0x369   :  { %v5315_v10 = vcombine.high %v5313_v50, %v5313_v50  ;;  %v12227_v6 = vrot.slane %v5314_v40, 9  ;;  %v12228_v15 = vrot.slane %v5313_v50, 9  ;;  %v6324_v24 = vmax.f32 %v5306_v51, %v12226_v28  ;;  %v24225_v28 = vld [vmem:[#allocation133_spill] sm:$0xff] }
 0x36a   :  { %v20155_v33 = vrot.slane %v6501_v55, %v18485_v35  ;;  %v20158_v5 = vmax.f32 %v20131_v46, %v12206_v44  ;;  %v12217_v14 = vrot.slane %v5264_v27, 9  ;;  %v4514_v62 = vadd.f32 %v20075_v25, %v4459_v60 }
 0x36b   :  { %v7590_v59 = vrot.slane %v6500_v61, %v18485_v35  ;;  %v6508_v53 = vmax.f32 %v6316_v29, 0.0  ;;  %v6313_v49 = vmax.f32 %v5263_v8, %v12215_v47  ;;  %v6314_v36 = vmax.f32 %v5262_v58, %v12216_v45 }
 0x36c   :  { %v20163_v12 = vrot.slane %v6502_v13, %v18485_v35  ;;  %v6504_v20 = vmax.f32 %v6312_v1, 0.0  ;;  %v12229_v51 = vrot.slane %v5315_v10, 9  ;;  %v4414_v42 = vadd.f32 %v14323_v48, %v24225_v28 }
 0x36d   :  { %v20167_v55 = vrot.slane %v6503_v2, %v18485_v35  ;;  %v6325_v44 = vmax.f32 %v5314_v40, %v12227_v6  ;;  %v6326_v46 = vmax.f32 %v5313_v50, %v12228_v15  ;;  %v6516_v21 = vmax.f32 %v6324_v24, 0.0 }
 0x36e   :  { %v20171_v60 = vsel %vm7222_vm2, %v20155_v33, %v7590_v59  ;;  %v6315_v45 = vmax.f32 %v5264_v27, %v12217_v14  ;;  %v5282_v61 = vcombine.high %v4514_v62, %v4514_v62  ;;  %v20175_v13 = vrot.slane %v6508_v53, %v18485_v35  ;;  %v24229_v59 = vld [vmem:[#allocation60_spill] sm:$0xff] }
 0x36f   :  { %24226 = vst [vmem:[#allocation31_spill] sm:$0xff] %v20167_v55  ;;  %v6505_v1 = vmax.f32 %v6313_v49, 0.0  ;;  %v6506_v58 = vmax.f32 %v6314_v36, 0.0  ;;  %v5289_v8 = vrot.slane %v4514_v62, %v18479_v32  ;;  %v20179_v2 = vrot.slane %v6504_v20, %v18485_v35 }
 0x370   :  { %24227 = vst [vmem:[#allocation133_spill] sm:$0xff] %v20175_v13  ;;  %v20181_v15 = vmax.f32 %v5315_v10, %v12229_v51  ;;  %v5296_v50 = vrot.slane %v5282_v61, %v18479_v32  ;;  %v4462_v29 = vmax.f32 %v24229_v59, %v4414_v42  ;;  %v6517_v40 = vmax.f32 %v6325_v44, 0.0  ;;  %v4350_v61 = vpop.f32.mrf.mxu1 }
 0x371   :  { %24228 = vst [vmem:[#allocation150_spill] sm:$0xff] %v20179_v2  ;;  %v6518_v6 = vmax.f32 %v6326_v46, 0.0  ;;  %v20186_v27 = vrot.slane %v6516_v21, %v18485_v35  ;;  %v7669_v49 = vsel %vm7222_vm2, %v19888_v56, %v19900_v43  ;;  %v6507_v36 = vmax.f32 %v6315_v45, 0.0 }
 0x372   :  { %v5297_v53 = vcombine.high %v5289_v8, %v5289_v8  ;;  %v4517_v24 = vadd.f32 %v20075_v25, %v4462_v29  ;;  %v7670_v10 = vsel %vm7224_vm3, %v19955_v19, %v7669_v49  ;;  %v20195_v48 = vrot.slane %v6505_v1, %v18485_v35 }
 0x373   :  { %24230 = vst [vmem:[#allocation60_spill] sm:$0xff] %v20186_v27  ;;  %v5298_v42 = vcombine.high %v5296_v50, %v5296_v50  ;;  %v12222_v14 = vrot.slane %v5289_v8, 9  ;;  %v7671_v21 = vsel %vm7226_vm4, %v19963_v7, %v7670_v10  ;;  %v20200_v46 = vrot.slane %v6506_v58, %v18485_v35 }
 0x374   :  { %24231 = vst [vmem:[#allocation151_spill] sm:$0xff] %v20195_v48  ;;  %v5333_v62 = vcombine.high %v4517_v24, %v4517_v24  ;;  %v5340_v20 = vrot.slane %v4517_v24, %v18479_v32  ;;  %v20205_v51 = vrot.slane %v6517_v40, %v18485_v35  ;;  %v12224_v28 = vrot.slane %v5296_v50, 9 }
 0x375   :  { %24232 = vst [vmem:[#allocation152_spill] sm:$0xff] %v20200_v46  ;;  %v7672_v44 = vsel %vm7228_vm5, %v19868_v3, %v7671_v21  ;;  %v7299_v45 = vsel %vm7222_vm2, %v19955_v19, %v19888_v56  ;;  %v20213_v1 = vrot.slane %v6518_v6, %v18485_v35  ;;  %v12223_v58 = vrot.slane %v5297_v53, 9 }
 0x376   :  { %24233 = vst [vmem:[#allocation153_spill] sm:$0xff] %v20205_v51  ;;  %v5347_v59 = vrot.slane %v5333_v62, %v18479_v32  ;;  %v5348_v29 = vcombine.high %v5340_v20, %v5340_v20  ;;  %v12225_v49 = vrot.slane %v5298_v42, 9  ;;  %v6320_v24 = vmax.f32 %v5289_v8, %v12222_v14 }
 0x377   :  { %24234 = vst [vmem:[#allocation154_spill] sm:$0xff] %v20213_v1  ;;  %v24235_v40 = vmax.f32 %v19834_v18, 0.0  ;;  %v7673_v21 = vsel %vm7230_vm6, %v19874_v34, %v7672_v44  ;;  %v12234_v56 = vrot.slane %v5340_v20, 9  ;;  %v7300_v6 = vsel %vm7224_vm3, %v19963_v7, %v7299_v45  ;;  %v14326_v18 = vpop.f32.mrf.mxu1  ;;  %v24242_v7 = vld [vmem:[#allocation136_spill] sm:$0xff] }
 0x378   :  { %v5349_v43 = vcombine.high %v5347_v59, %v5347_v59  ;;  %v12235_v47 = vrot.slane %v5348_v29, 9  ;;  %v20226_v19 = vrot.slane %v6507_v36, %v18485_v35  ;;  %v6322_v62 = vmax.f32 %v5296_v50, %v12224_v28  ;;  %v24241_v28 = vld [vmem:[#allocation77_spill] sm:$0xff] }
 0x379   :  { %v20219_v10 = vrot.slane %v24235_v40, %v18485_v35  ;;  %v12236_v1 = vrot.slane %v5347_v59, 9  ;;  %v7674_v8 = vsel %vm7232_vm7, %v19881_v30, %v7673_v21  ;;  %v6321_v14 = vmax.f32 %v5297_v53, %v12223_v58 }
 0x37a   :  { %24237 = vst [vmem:[#allocation156_spill] sm:$0xff] %v20226_v19  ;;  %v12237_v40 = vrot.slane %v5349_v43, 9  ;;  %v24239_v51 = vmax.f32 %v19975_v22, 0.0  ;;  %v6512_v45 = vmax.f32 %v6320_v24, 0.0  ;;  %v6333_v36 = vmax.f32 %v5348_v29, %v12235_v47  ;;  %v24243_v29 = vld [vmem:[#allocation108_spill] sm:$0xff] }
 0x37b   :  { %24236 = vst [vmem:[#allocation155_spill] sm:$0xff] %v20219_v10  ;;  %v20232_v44 = vsel %vm7234_vm8, %v20219_v10, %v7674_v8  ;;  %v7301_v50 = vsel %vm7226_vm4, %v19868_v3, %v7300_v6  ;;  %v4413_v53 = vadd.f32 %v4350_v61, %v24241_v28  ;;  %v6323_v58 = vmax.f32 %v5298_v42, %v12225_v49  ;;  %v24244_v61 = vld [vmem:[#allocation111_spill] sm:$0xff] }
 0x37c   :  { %24238 = vst [vmem:[#allocation157_spill] sm:$0xff] %v20232_v44  ;;  %v20237_v13 = vrot.slane %v24239_v51, %v18485_v35  ;;  %14426 = vmatprep.mubr.msk.f32.mxu1 %vm7341_vm9, %v20232_v44  ;;  %v6332_v21 = vmax.f32 %v5340_v20, %v12234_v56  ;;  %v7302_v8 = vsel %vm7228_vm5, %v19874_v34, %v7301_v50  ;;  %v6514_v22 = vmax.f32 %v6322_v62, 0.0 }
 0x37d   :  { %v4416_v27 = vadd.f32 %v14326_v18, %v24242_v7  ;;  %v6334_v51 = vmax.f32 %v5347_v59, %v12236_v1  ;;  %v7303_v47 = vsel %vm7230_vm6, %v19881_v30, %v7302_v8  ;;  %v4461_v24 = vmax.f32 %v24243_v29, %v4413_v53  ;;  %v4360_v53 = vpop.f32.mrf.mxu1 }
 0x37e   :  { %24240 = vst [vmem:[#allocation158_spill] sm:$0xff] %v20237_v13  ;;  %v6513_v44 = vmax.f32 %v6321_v14, 0.0  ;;  %v6335_v19 = vmax.f32 %v5349_v43, %v12237_v40  ;;  %v7304_v6 = vsel %vm7232_vm7, %v20219_v10, %v7303_v47  ;;  %v6525_v20 = vmax.f32 %v6333_v36, 0.0 }
 0x37f   :  { %v4464_v42 = vmax.f32 %v24244_v61, %v4416_v27  ;;  %v20255_v49 = vsel %vm7234_vm8, %v20237_v13, %v7304_v6  ;;  %v20258_v7 = vadd.f32 %v20075_v25, %v4461_v24  ;;  %v7677_v1 = vsel %vm7224_vm3, %v19978_v26, %v19987_v23  ;;  %v24246_v6 = vld [vmem:[#allocation78_spill] sm:$0xff]  ;;  %v24331_v13 = vld [vmem:[#allocation64_spill] sm:$0xff] }
 0x380   :  { %v6515_v59 = vmax.f32 %v6323_v58, 0.0  ;;  %v6524_v56 = vmax.f32 %v6332_v21, 0.0  ;;  %14372 = vmatprep.mubr.msk.f32.mxu0 %vm7341_vm9, %v20255_v49  ;;  %v7678_v27 = vsel %vm7226_vm4, %v19981_v39, %v7677_v1  ;;  %v6526_v62 = vmax.f32 %v6334_v51, 0.0 }
 0x381   :  { %v20266_v43 = vadd.f32 %v20075_v25, %v4464_v42  ;;  %v20272_v18 = vrot.slane %v20258_v7, %v18479_v32  ;;  %v7679_v14 = vsel %vm7228_vm5, %v20013_v11, %v7678_v27  ;;  %v7306_v23 = vsel %vm7222_vm2, %v19978_v26, %v19971_v17 }
 0x382   :  { %v6527_v40 = vmax.f32 %v6335_v19, 0.0  ;;  %v7680_v50 = vsel %vm7230_vm6, %v20027_v41, %v7679_v14  ;;  %v7307_v28 = vsel %vm7224_vm3, %v19981_v39, %v7306_v23  ;;  %v7594_v58 = vrot.slane %v6512_v45, %v18485_v35  ;;  %v24250_v14 = vld [vmem:[#allocation28_spill] sm:$0xff] }
 0x383   :  { %v20281_v36 = vrot.slane %v20266_v43, %v18479_v32  ;;  %v20289_v21 = vrot.slane %v6525_v20, %v18485_v35  ;;  %v12230_v8 = vrot.slane %v20272_v18, 9  ;;  %v7681_v19 = vsel %vm7232_vm7, %v20030_v52, %v7680_v50 }
 0x384   :  { %v20295_v17 = vrot.slane %v6513_v44, %v18485_v35  ;;  %v20298_v51 = vrot.slane %v6514_v22, %v18485_v35  ;;  %v20303_v29 = vsel %vm7234_vm8, %v20101_v63, %v7681_v19  ;;  %v7598_v45 = vrot.slane %v6524_v56, %v18485_v35 }
 0x385   :  { %v12242_v47 = vrot.slane %v20281_v36, 9  ;;  %v20307_v24 = vmax.f32 %v20272_v18, %v12230_v8  ;;  %14427 = vmatmul.mubr.msk.f32.gmra.mxu1 %vm7341_vm9, %v20303_v29  ;;  %v7308_v44 = vsel %vm7226_vm4, %v20013_v11, %v7307_v28  ;;  %v4415_v22 = vadd.f32 %v4360_v53, %v24246_v6 }
 0x386   :  { %24245 = vst [vmem:[#allocation77_spill] sm:$0xff] %v20298_v51  ;;  %v20315_v61 = vrot.slane %v6515_v59, %v18485_v35  ;;  %v20318_v42 = vrot.slane %v6526_v62, %v18485_v35  ;;  %v20321_v20 = vrot.slane %v6527_v40, %v18485_v35  ;;  %v20328_v56 = vsel %vm7222_vm2, %v20289_v21, %v7598_v45 }
 0x387   :  { %v20324_v1 = vmax.f32 %v20281_v36, %v12242_v47  ;;  %v7309_v27 = vsel %vm7228_vm5, %v20027_v41, %v7308_v44  ;;  %v4463_v23 = vmax.f32 %v24250_v14, %v4415_v22  ;;  %v7683_v59 = vsel %vm7222_vm2, %v20114_v37, %v20107_v0 }
 0x388   :  { %24247 = vst [vmem:[#allocation136_spill] sm:$0xff] %v20315_v61  ;;  %24248 = vst [vmem:[#allocation108_spill] sm:$0xff] %v20318_v42  ;;  %v7310_v40 = vsel %vm7230_vm6, %v20030_v52, %v7309_v27  ;;  %v24251_v50 = vmax.f32 %v20009_v4, 0.0  ;;  %v7684_v53 = vsel %vm7224_vm3, %v20104_v38, %v7683_v59  ;;  %v7313_v47 = vsel %vm7222_vm2, %v20104_v38, %v20114_v37 }
 0x389   :  { %24249 = vst [vmem:[#allocation111_spill] sm:$0xff] %v20321_v20  ;;  %v7311_v8 = vsel %vm7232_vm7, %v20101_v63, %v7310_v40  ;;  %v4518_v19 = vadd.f32 %v20075_v25, %v4463_v23  ;;  %v7685_v0 = vsel %vm7226_vm4, %v20123_v16, %v7684_v53  ;;  %v7314_v6 = vsel %vm7224_vm3, %v20123_v16, %v7313_v47 }
 0x38a   :  { %v20342_v28 = vrot.slane %v24251_v50, %v18485_v35  ;;  %v20357_v4 = vsel %vm7234_vm8, %v19995_v31, %v7311_v8  ;;  %v7686_v44 = vsel %vm7228_vm5, %v20021_v57, %v7685_v0  ;;  %v7315_v27 = vsel %vm7226_vm4, %v20021_v57, %v7314_v6 }
 0x38b   :  { %14373 = vmatmul.mubr.msk.f32.gmra.mxu0 %vm7341_vm9, %v20357_v4  ;;  %v5350_v25 = vcombine.high %v4518_v19, %v4518_v19  ;;  %v5357_v22 = vrot.slane %v4518_v19, %v18479_v32  ;;  %v7687_v37 = vsel %vm7230_vm6, %v20035_v9, %v7686_v44  ;;  %v7316_v23 = vsel %vm7228_vm5, %v20035_v9, %v7315_v27  ;;  %v24332_v9 = vld [vmem:[#allocation82_spill] sm:$0xff] }
 0x38c   :  { %24252 = vst [vmem:[#allocation78_spill] sm:$0xff] %v20342_v28  ;;  %v7688_v14 = vsel %vm7232_vm7, %v20038_v54, %v7687_v37  ;;  %v7691_v59 = vsel %vm7224_vm3, %v20163_v12, %v20171_v60  ;;  %v7320_v40 = vsel %vm7222_vm2, %v20163_v12, %v20155_v33  ;;  %v24253_v0 = vmax.f32 %v20158_v5, 0.0 }
 0x38d   :  { %v5364_v50 = vrot.slane %v5350_v25, %v18479_v32  ;;  %v5365_v53 = vcombine.high %v5357_v22, %v5357_v22  ;;  %v12238_v8 = vrot.slane %v5357_v22, 9  ;;  %v20383_v19 = vsel %vm7234_vm8, %v20342_v28, %v7688_v14 }
 0x38e   :  { %14429 = vmatprep.mubr.msk.f32.mxu1 %vm7341_vm9, %v20383_v19  ;;  %v20390_v47 = vrot.slane %v24253_v0, %v18485_v35  ;;  %v7317_v60 = vsel %vm7230_vm6, %v20038_v54, %v7316_v23  ;;  %v7692_v33 = vsel %vm7226_vm4, %v20167_v55, %v7691_v59  ;;  %v7321_v44 = vsel %vm7224_vm3, %v20167_v55, %v7320_v40 }
 0x38f   :  { %v5366_v6 = vcombine.high %v5364_v50, %v5364_v50  ;;  %v12239_v25 = vrot.slane %v5365_v53, 9  ;;  %v12240_v37 = vrot.slane %v5364_v50, 9  ;;  %v6336_v27 = vmax.f32 %v5357_v22, %v12238_v8 }
 0x390   :  { %24254 = vst [vmem:[#allocation28_spill] sm:$0xff] %v20390_v47  ;;  %v7318_v14 = vsel %vm7232_vm7, %v20342_v28, %v7317_v60  ;;  %v7693_v5 = vsel %vm7228_vm5, %v20179_v2, %v7692_v33  ;;  %v7322_v0 = vsel %vm7226_vm4, %v20179_v2, %v7321_v44  ;;  %v7697_v23 = vsel %vm7222_vm2, %v20295_v17, %v7594_v58  ;;  %v24298_v28 = vld [vmem:[#allocation25_spill] sm:$0xff] }
 0x391   :  { %v12241_v59 = vrot.slane %v5366_v6, 9  ;;  %v6337_v45 = vmax.f32 %v5365_v53, %v12239_v25  ;;  %v6338_v62 = vmax.f32 %v5364_v50, %v12240_v37  ;;  %v6528_v40 = vmax.f32 %v6336_v27, 0.0 }
 0x392   :  { %v20408_v54 = vsel %vm7234_vm8, %v20390_v47, %v7318_v14  ;;  %v7694_v22 = vsel %vm7230_vm6, %v20195_v48, %v7693_v5  ;;  %v7323_v8 = vsel %vm7228_vm5, %v20195_v48, %v7322_v0  ;;  %v7698_v60 = vsel %vm7224_vm3, %v20298_v51, %v7697_v23  ;;  %v24260_v14 = vld [vmem:[#allocation156_spill] sm:$0xff]  ;;  %v24283_v47 = vld [vmem:[#allocation90_spill] sm:$0xff] }
 0x393   :  { %v6339_v33 = vmax.f32 %v5366_v6, %v12241_v59  ;;  %v6529_v44 = vmax.f32 %v6337_v45, 0.0  ;;  %v6530_v58 = vmax.f32 %v6338_v62, 0.0  ;;  %14375 = vmatprep.mubr.msk.f32.mxu0 %vm7341_vm9, %v20408_v54  ;;  %v24255_v50 = vmax.f32 %v20181_v15, 0.0  ;;  %v24261_v23 = vld [vmem:[#allocation60_spill] sm:$0xff] }
 0x394   :  { %v20424_v25 = vrot.slane %v6528_v40, %v18485_v35  ;;  %v7695_v37 = vsel %vm7232_vm7, %v20200_v46, %v7694_v22  ;;  %v7324_v27 = vsel %vm7230_vm6, %v20200_v46, %v7323_v8  ;;  %v7699_v62 = vsel %vm7226_vm4, %v20315_v61, %v7698_v60  ;;  %v24263_v60 = vld [vmem:[#allocation133_spill] sm:$0xff]  ;;  %v12384_v46 = vld [vmem:[%s23150_s5 + $0x158] sm:$0xff] }
 0x395   :  { %v20421_v53 = vrot.slane %v24255_v50, %v18485_v35  ;;  %v6531_v45 = vmax.f32 %v6339_v33, 0.0  ;;  %v20433_v6 = vrot.slane %v6529_v44, %v18485_v35  ;;  %v20436_v15 = vrot.slane %v6530_v58, %v18485_v35  ;;  %v24264_v44 = vld [vmem:[#allocation153_spill] sm:$0xff] }
 0x396   :  { %24257 = vst [vmem:[#allocation160_spill] sm:$0xff] %v20424_v25  ;;  %v20440_v5 = vsel %vm7234_vm8, %v24260_v14, %v7695_v37  ;;  %v7325_v0 = vsel %vm7232_vm7, %v24260_v14, %v7324_v27  ;;  %v7700_v59 = vsel %vm7228_vm5, %v24261_v23, %v7699_v62  ;;  %v7327_v40 = vsel %vm7222_vm2, %v20298_v51, %v20295_v17  ;;  %v24265_v17 = vld [vmem:[#allocation154_spill] sm:$0xff]  ;;  %v24273_v14 = vld [vmem:[#allocation120_spill] sm:$0xff] }
 0x397   :  { %24256 = vst [vmem:[#allocation159_spill] sm:$0xff] %v20421_v53  ;;  %24258 = vst [vmem:[#allocation161_spill] sm:$0xff] %v20433_v6  ;;  %14430 = vmatmul.mubr.msk.f32.gmra.mxu1 %vm7341_vm9, %v20440_v5  ;;  %v7705_v22 = vsel %vm7224_vm3, %v20318_v42, %v20328_v56  ;;  %v20455_v8 = vrot.slane %v6531_v45, %v18485_v35  ;;  %v20459_v33 = vsel %vm7234_vm8, %v24263_v60, %v7325_v0 }
 0x398   :  { %24259 = vst [vmem:[#allocation162_spill] sm:$0xff] %v20436_v15  ;;  %v7701_v58 = vsel %vm7230_vm6, %v24264_v44, %v7700_v59  ;;  %v7328_v50 = vsel %vm7224_vm3, %v20315_v61, %v7327_v40  ;;  %14376 = vmatmul.mubr.msk.f32.gmra.mxu0 %vm7341_vm9, %v20459_v33  ;;  %v7706_v27 = vsel %vm7226_vm4, %v20321_v20, %v7705_v22  ;;  %v24266_v22 = vmax.f32 %v20307_v24, 0.0 }
 0x399   :  { %24262 = vst [vmem:[#allocation163_spill] sm:$0xff] %v20455_v8  ;;  %v7702_v37 = vsel %vm7232_vm7, %v24265_v17, %v7701_v58  ;;  %v7329_v56 = vsel %vm7226_vm4, %v24261_v23, %v7328_v50  ;;  %v7334_v62 = vsel %vm7222_vm2, %v20318_v42, %v20289_v21  ;;  %v7707_v59 = vsel %vm7228_vm5, %v20424_v25, %v7706_v27  ;;  %v24327_v42 = vld [vmem:[#allocation42_spill] sm:$0xff] }
 0x39a   :  { %v20478_v45 = vsel %vm7234_vm8, %v20421_v53, %v7702_v37  ;;  %v7330_v0 = vsel %vm7228_vm5, %v24264_v44, %v7329_v56  ;;  %v7335_v40 = vsel %vm7224_vm3, %v20321_v20, %v7334_v62  ;;  %v20491_v21 = vrot.slane %v24266_v22, %v18485_v35  ;;  %v24268_v56 = vld [vmem:[#allocation44_spill] sm:$0xff]  ;;  %v24321_v20 = vld [vmem:[#allocation54_spill] sm:$0xff] }
 0x39b   :  { %14432 = vmatprep.mubr.msk.f32.mxu1 %vm7341_vm9, %v20478_v45  ;;  %v7331_v58 = vsel %vm7230_vm6, %v24265_v17, %v7330_v0  ;;  %v7708_v50 = vsel %vm7230_vm6, %v20433_v6, %v7707_v59  ;;  %v7336_v37 = vsel %vm7226_vm4, %v20424_v25, %v7335_v40  ;;  %v6365_v27 = vmax.f32 %v24268_v56, 0.0  ;;  %v24307_v25 = vld [vmem:[#allocation139_spill] sm:$0xff] }
 0x39c   :  { %24267 = vst [vmem:[#allocation164_spill] sm:$0xff] %v20491_v21  ;;  %v7332_v62 = vsel %vm7232_vm7, %v20421_v53, %v7331_v58  ;;  %v7709_v60 = vsel %vm7232_vm7, %v20436_v15, %v7708_v50  ;;  %v7337_v24 = vsel %vm7228_vm5, %v20433_v6, %v7336_v37  ;;  %v24269_v0 = vmax.f32 %v20324_v1, 0.0  ;;  %v24271_v50 = vld [vmem:[#allocation8_spill] sm:$0xff]  ;;  %v24272_v53 = vld [vmem:[#allocation101_spill] sm:$0xff] }
 0x39d   :  { %v20513_v59 = vsel %vm7234_vm8, %v20491_v21, %v7332_v62  ;;  %v20517_v40 = vsel %vm7234_vm8, %v20455_v8, %v7709_v60  ;;  %v7338_v58 = vsel %vm7230_vm6, %v20436_v15, %v7337_v24  ;;  %v6366_v56 = vmax.f32 %v24271_v50, 0.0  ;;  %v24274_v62 = vld [vmem:[#allocation99_spill] sm:$0xff] }
 0x39e   :  { %v20509_v22 = vrot.slane %v24269_v0, %v18485_v35  ;;  %v4704_v37 = vcombine.high %v24272_v53, %v24272_v53  ;;  %v4857_v1 = vcombine.high %v24273_v14, %v24273_v14  ;;  %14378 = vmatprep.mubr.msk.f32.mxu0 %vm7341_vm9, %v20513_v59  ;;  %14433 = vmatmul.mubr.msk.f32.gmra.mxu1 %vm7341_vm9, %v20517_v40  ;;  %v24277_v14 = vld [vmem:[#allocation118_spill] sm:$0xff]  ;;  %v24278_v50 = vld [vmem:[#allocation83_spill] sm:$0xff] }
 0x39f   :  { %v7339_v60 = vsel %vm7232_vm7, %v20455_v8, %v7338_v58  ;;  %v24275_v24 = vcombine.high %v24274_v62, %v24274_v62  ;;  %14519 = vmatprep.mubr.msk.f32.mxu1 %vm7341_vm9, %v24277_v14  ;;  %v24279_v21 = vcombine.high %v24278_v50, %v24278_v50  ;;  %v24281_v58 = vld [vmem:[#allocation84_spill] sm:$0xff]  ;;  %v24282_v62 = vld [vmem:[#allocation121_spill] sm:$0xff]  ;;  %v24284_v14 = vld [vmem:[#allocation6_spill] sm:$0xff]  ;;  %v20714_v2 = vcombine.high %v24331_v13, %v24331_v13 }
 0x3a0   :  { %24270 = vst [vmem:[#allocation44_spill] sm:$0xff] %v20509_v22  ;;  %v20540_v53 = vsel %vm7234_vm8, %v20509_v22, %v7339_v60  ;;  %v20552_v8 = vcombine.high %v24281_v58, %v24281_v58  ;;  %v4959_v60 = vcombine.high %v24283_v47, %v24283_v47  ;;  %v24285_v22 = vld [vmem:[#allocation7_spill] sm:$0xff]  ;;  %v20571_v58 = vrot.slane %v6365_v27, %v18485_v35  ;;  %v24291_v47 = vld [vmem:[#allocation112_spill] sm:$0xff] }
 0x3a1   :  { %v20536_v0 = vrot.slane %v24275_v24, %v18479_v32  ;;  %v20548_v15 = vrot.slane %v24279_v21, %v18479_v32  ;;  %v4806_v24 = vcombine.high %v24282_v62, %v24282_v62  ;;  %14379 = vmatmul.mubr.msk.f32.gmra.mxu0 %vm7341_vm9, %v20540_v53  ;;  %v20563_v6 = vsel %vm7222_vm2, %v24285_v22, %v24284_v14  ;;  %v24286_v21 = vld [vmem:[#allocation19_spill] sm:$0xff]  ;;  %v24290_v62 = vld [vmem:[#allocation52_spill] sm:$0xff] }
 0x3a2   :  { %v24287_v50 = vrot.slane %v24286_v21, 9  ;;  %24289 = vst [vmem:[#allocation99_spill] sm:$0xff] %v20571_v58  ;;  %14465 = vmatprep.mubr.msk.f32.mxu0 %vm7341_vm9, %v24291_v47  ;;  %v20581_v14 = vrot.slane %v6366_v56, %v18485_v35  ;;  %v20584_v22 = vrot.slane %v4704_v37, %v18479_v32  ;;  %v24295_v27 = vld [vmem:[#allocation91_spill] sm:$0xff]  ;;  %v24297_v47 = vld [vmem:[#allocation26_spill] sm:$0xff]  ;;  %v20599_v56 = vcombine.high %v24298_v28, %v24298_v28 }
 0x3a3   :  { %24276 = vst [vmem:[#allocation8_spill] sm:$0xff] %v20536_v0  ;;  %24280 = vst [vmem:[#allocation101_spill] sm:$0xff] %v20548_v15  ;;  %v5061_v15 = vcombine.high %v24290_v62, %v24290_v62  ;;  %v24296_v62 = vld [vmem:[#allocation113_spill] sm:$0xff]  ;;  %v20603_v37 = vcombine.high %v20536_v0, %v20536_v0  ;;  %v20617_v28 = vrot.slane %v4959_v60, %v18479_v32  ;;  %v15017_v60 = vld [vmem:[%s23149_s4 + $0x160] sm:$0xff] }
 0x3a4   :  { %v20568_v17 = vmax.f32 %v24286_v21, %v24287_v50  ;;  %24292 = vst [vmem:[#allocation118_spill] sm:$0xff] %v20581_v14  ;;  %24293 = vst [vmem:[#allocation83_spill] sm:$0xff] %v20584_v22  ;;  %v20587_v21 = vrot.slane %v4857_v1, %v18479_v32  ;;  %v4908_v50 = vcombine.high %v24295_v27, %v24295_v27  ;;  %14520 = vmatmul.mubr.msk.f32.vlgmr.msra.gmra.mxu1 %vm7341_vm9, %v24296_v62  ;;  %v24300_v1 = vld [vmem:[#allocation38_spill] sm:$0xff]  ;;  %v15016_v27 = vld [vmem:[%s23150_s5 + $0x160] sm:$0xff] }
 0x3a5   :  { %24299 = vst [vmem:[#allocation121_spill] sm:$0xff] %v20603_v37  ;;  %14522 = vmatprep.mubr.msk.f32.mxu1 %vm7341_vm9, %v24300_v1  ;;  %14598 = vmatpush3.msra.mxu1 %v15016_v27  ;;  %v12353_v62 = vld [vmem:[%s23149_s4 + $0x158] sm:$0xff]  ;;  %24302 = vst [vmem:[#allocation6_spill] sm:$0xff] %v20617_v28  ;;  %v24304_v0 = vld [vmem:[#allocation117_spill] sm:$0xff]  ;;  %v20628_v22 = vrot.slane %v5061_v15, %v18479_v32  ;;  %v5316_v61 = vcombine.high %v20258_v7, %v20258_v7 }
 0x3a6   :  { %24288 = vst [vmem:[#allocation120_spill] sm:$0xff] %v20568_v17  ;;  %24294 = vst [vmem:[#allocation84_spill] sm:$0xff] %v20587_v21  ;;  %v20595_v17 = vcombine.high %v24297_v47, %v24297_v47  ;;  %v20614_v47 = vrot.slane %v4806_v24, %v18479_v32  ;;  %v24303_v14 = vld [vmem:[#allocation30_spill] sm:$0xff]  ;;  %14466 = vmatmul.mubr.msk.f32.vlgmr.msra.gmra.mxu0 %vm7341_vm9, %v24304_v0  ;;  %14599 = vmatprep.subr.mxu1 %v12384_v46  ;;  %v24305_v1 = vld [vmem:[#allocation125_spill] sm:$0xff] }
 0x3a7   :  { %v5010_v37 = vcombine.high %v24303_v14, %v24303_v14  ;;  %v20625_v27 = vcombine.high %v24305_v1, %v24305_v1  ;;  %24306 = vst [vmem:[#allocation19_spill] sm:$0xff] %v20628_v22  ;;  %v5163_v24 = vcombine.high %v24307_v25, %v24307_v25  ;;  %14544 = vmatpush3.msra.mxu0 %v15017_v60  ;;  %v24309_v0 = vld [vmem:[#allocation14_spill] sm:$0xff]  ;;  %v24312_v25 = vld [vmem:[#allocation92_spill] sm:$0xff]  ;;  %v12350_v13 = vld [vmem:[%s23149_s4 + $0x140] sm:$0xff] }
 0x3a8   :  { %24301 = vst [vmem:[#allocation90_spill] sm:$0xff] %v20614_v47  ;;  %v24308_v47 = vld [vmem:[#allocation69_spill] sm:$0xff]  ;;  %v20639_v14 = vcombine.high %v24309_v0, %v24309_v0  ;;  %v20643_v1 = vcombine.high %v20587_v21, %v20587_v21  ;;  %v20646_v15 = vrot.slane %v4908_v50, %v18479_v32  ;;  %14523 = vmatmul.mubr.msk.f32.gmra.mxu1 %vm7341_vm9, %v24312_v25  ;;  %v24313_v60 = vld [vmem:[#allocation16_spill] sm:$0xff]  ;;  %v24314_v0 = vld [vmem:[#allocation94_spill] sm:$0xff] }
 0x3a9   :  { %14468 = vmatprep.mubr.msk.f32.mxu0 %vm7341_vm9, %v24308_v47  ;;  %14545 = vmatprep.subr.mxu0 %v12353_v62  ;;  %v12352_v47 = vld [vmem:[%s23149_s4 + $0x150] sm:$0xff]  ;;  %v20655_v44 = vcombine.high %v24313_v60, %v24313_v60  ;;  %v20659_v48 = vcombine.high %v24314_v0, %v24314_v0  ;;  %v20670_v21 = vcombine.high %v20617_v28, %v20617_v28  ;;  %v24319_v0 = vld [vmem:[#allocation56_spill] sm:$0xff]  ;;  %v12380_v7 = vld [vmem:[%s23150_s5 + $0x138] sm:$0xff] }
 0x3aa   :  { %24310 = vst [vmem:[#allocation52_spill] sm:$0xff] %v20643_v1  ;;  %24311 = vst [vmem:[#allocation112_spill] sm:$0xff] %v20646_v15  ;;  %v24315_v1 = vld [vmem:[#allocation140_spill] sm:$0xff]  ;;  %v24316_v15 = vld [vmem:[#allocation27_spill] sm:$0xff]  ;;  %14546 = vmatpush3.msra.mxu0 %v12353_v62  ;;  %v20673_v60 = vrot.slane %v5010_v37, %v18479_v32  ;;  %v20677_v31 = vcombine.high %v24319_v0, %v24319_v0  ;;  %14600 = vmatpush3.msra.mxu1 %v12384_v46 }
 0x3ab   :  { %v5112_v50 = vcombine.high %v24315_v1, %v24315_v1  ;;  %14525 = vmatprep.mubr.msk.f32.mxu1 %vm7341_vm9, %v24316_v15  ;;  %v12383_v25 = vld [vmem:[%s23150_s5 + $0x150] sm:$0xff]  ;;  %24317 = vst [vmem:[#allocation91_spill] sm:$0xff] %v20670_v21  ;;  %v12351_v62 = vld [vmem:[%s23149_s4 + $0x148] sm:$0xff]  ;;  %v12063_v15 = vrot.slane %v20552_v8, 9  ;;  %v20687_v21 = vcombine.high %v24321_v20, %v24321_v20  ;;  %v20691_v37 = vcombine.high %v20628_v22, %v20628_v22  ;;  %v24326_v20 = vld [vmem:[#allocation18_spill] sm:$0xff] }
 0x3ac   :  { %24318 = vst [vmem:[#allocation113_spill] sm:$0xff] %v20673_v60  ;;  %v24320_v1 = vld [vmem:[#allocation93_spill] sm:$0xff]  ;;  %v20694_v0 = vrot.slane %v5163_v24, %v18479_v32  ;;  %14547 = vmatprep.subr.mxu0 %v12352_v47  ;;  %v12382_v46 = vld [vmem:[%s23150_s5 + $0x148] sm:$0xff]  ;;  %14601 = vmatprep.subr.mxu1 %v12383_v25 }
 0x3ad   :  { %14469 = vmatmul.mubr.msk.f32.gmra.mxu0 %vm7341_vm9, %v24320_v1  ;;  %24322 = vst [vmem:[#allocation26_spill] sm:$0xff] %v20691_v37  ;;  %v24324_v60 = vld [vmem:[#allocation29_spill] sm:$0xff]  ;;  %v24325_v1 = vld [vmem:[#allocation127_spill] sm:$0xff]  ;;  %v8290_v37 = vsel %vm7222_vm2, %v24327_v42, %v24326_v20  ;;  %v24328_v22 = vld [vmem:[#allocation104_spill] sm:$0xff]  ;;  %14602 = vmatpush3.msra.mxu1 %v12383_v25  ;;  %v5367_v20 = vcombine.high %v20266_v43, %v20266_v43  ;;  %v12087_v42 = vrot.slane %v20595_v17, 9 }
 0x3ae   :  { %24323 = vst [vmem:[#allocation25_spill] sm:$0xff] %v20694_v0  ;;  %14471 = vmatprep.mubr.msk.f32.mxu0 %vm7341_vm9, %v24324_v60  ;;  %v5265_v28 = vcombine.high %v24325_v1, %v24325_v1  ;;  %14548 = vmatpush3.msra.mxu0 %v12352_v47  ;;  %v24329_v24 = vld [vmem:[#allocation105_spill] sm:$0xff]  ;;  %v20710_v60 = vrot.slane %v5112_v50, %v18479_v32  ;;  %v12381_v43 = vld [vmem:[%s23150_s5 + $0x140] sm:$0xff] }
 0x3af   :  { %v8304_v23 = vsel %vm7222_vm2, %v24329_v24, %v24328_v22  ;;  %v5214_v1 = vcombine.high %v24332_v9, %v24332_v9  ;;  %14549 = vmatprep.subr.mxu0 %v12351_v62  ;;  %v24333_v47 = vld [vmem:[#allocation21_spill] sm:$0xff]  ;;  %v24334_v22 = vld [vmem:[#allocation22_spill] sm:$0xff]  ;;  %14603 = vmatprep.subr.mxu1 %v12382_v46  ;;  %v6161_v50 = vmax.f32 %v20552_v8, %v12063_v15  ;;  %v24339_v8 = vld [vmem:[#allocation100_spill] sm:$0xff] }
 0x3b0   :  { %24330 = vst [vmem:[#allocation38_spill] sm:$0xff] %v20710_v60  ;;  %v20720_v63 = vcombine.high %v24333_v47, %v24333_v47  ;;  %14526 = vmatmul.mubr.msk.f32.gmra.mxu1 %vm7341_vm9, %v24334_v22  ;;  %v24335_v9 = vld [vmem:[#allocation49_spill] sm:$0xff]  ;;  %v24338_v60 = vld [vmem:[#allocation47_spill] sm:$0xff]  ;;  %v8305_v15 = vsel %vm7224_vm3, %v24339_v8, %v8304_v23  ;;  %14550 = vmatpush3.msra.mxu0 %v12351_v62 }
 0x3b1   :  { %14472 = vmatmul.mubr.msk.f32.gmra.mxu0 %vm7341_vm9, %v24335_v9  ;;  %v24336_v25 = vld [vmem:[#allocation53_spill] sm:$0xff]  ;;  %v8298_v24 = vsel %vm7224_vm3, %v24338_v60, %v20563_v6  ;;  %v20747_v9 = vcombine.high %v20694_v0, %v20694_v0  ;;  %14604 = vmatpush3.msra.mxu1 %v12382_v46  ;;  %v12349_v6 = vld [vmem:[%s23149_s4 + $0x138] sm:$0xff]  ;;  %v24346_v62 = vld [vmem:[#allocation107_spill] sm:$0xff]  ;;  %v20783_v10 = vrot.slane %v5367_v20, %v18479_v32 }
 0x3b2   :  { %14528 = vmatprep.mubr.msk.f32.mxu1 %vm7341_vm9, %v24336_v25  ;;  %v24337_v47 = vld [vmem:[#allocation85_spill] sm:$0xff]  ;;  %v20750_v25 = vrot.slane %v5265_v28, %v18479_v32  ;;  %14551 = vmatprep.subr.mxu0 %v12350_v13  ;;  %v24345_v28 = vld [vmem:[#allocation106_spill] sm:$0xff]  ;;  %v24348_v0 = vld [vmem:[#allocation48_spill] sm:$0xff] }
 0x3b3   :  { %v8291_v22 = vsel %vm7224_vm3, %v24337_v47, %v8290_v37  ;;  %24340 = vst [vmem:[#allocation30_spill] sm:$0xff] %v20747_v9  ;;  %v20758_v37 = vrot.slane %v5214_v1, %v18479_v32  ;;  %v24343_v23 = vld [vmem:[#allocation45_spill] sm:$0xff]  ;;  %v24344_v9 = vld [vmem:[#allocation131_spill] sm:$0xff]  ;;  %v8311_v46 = vsel %vm7222_vm2, %v24346_v62, %v24345_v28  ;;  %14605 = vmatprep.subr.mxu1 %v12381_v43  ;;  %v24347_v1 = vld [vmem:[#allocation86_spill] sm:$0xff]  ;;  %v6353_v28 = vmax.f32 %v6161_v50, 0.0 }
 0x3b4   :  { %24341 = vst [vmem:[#allocation117_spill] sm:$0xff] %v20750_v25  ;;  %v20762_v8 = vcombine.high %v24343_v23, %v24343_v23  ;;  %14474 = vmatprep.mubr.msk.f32.mxu0 %vm7341_vm9, %v24344_v9  ;;  %14552 = vmatpush3.msra.mxu0 %v12350_v13  ;;  %v8299_v23 = vsel %vm7226_vm4, %v24348_v0, %v8298_v24  ;;  %v24349_v60 = vld [vmem:[#allocation102_spill] sm:$0xff]  ;;  %v24350_v47 = vld [vmem:[#allocation75_spill] sm:$0xff]  ;;  %24351 = vst [vmem:[#allocation139_spill] sm:$0xff] %v20783_v10  ;;  %v12123_v0 = vrot.slane %v20639_v14, 9 }
 0x3b5   :  { %24342 = vst [vmem:[#allocation125_spill] sm:$0xff] %v20758_v37  ;;  %v8292_v37 = vsel %vm7226_vm4, %v24347_v1, %v8291_v22  ;;  %v8306_v9 = vsel %vm7226_vm4, %v24349_v60, %v8305_v15  ;;  %v20780_v51 = vcombine.high %v24350_v47, %v24350_v47  ;;  %14606 = vmatpush3.msra.mxu1 %v12381_v43  ;;  %v24354_v15 = vld [vmem:[#allocation119_spill] sm:$0xff]  ;;  %v12348_v20 = vld [vmem:[%s23149_s4 + $0x130] sm:$0xff] }
 0x3b6   :  { %14553 = vmatprep.subr.mxu0 %v12349_v6  ;;  %v6185_v13 = vmax.f32 %v20595_v17, %v12087_v42  ;;  %v20788_v22 = vcombine.high %v20750_v25, %v20750_v25  ;;  %v20791_v24 = vrot.slane %v5316_v61, %v18479_v32  ;;  %14529 = vmatmul.mubr.msk.f32.gmra.mxu1 %vm7341_vm9, %v24354_v15  ;;  %v24355_v43 = vld [vmem:[#allocation61_spill] sm:$0xff]  ;;  %v12099_v42 = vrot.slane %v20599_v56, 9  ;;  %v24356_v17 = vld [vmem:[#allocation71_spill] sm:$0xff] }
 0x3b7   :  { %14607 = vmatprep.subr.mxu1 %v12380_v7  ;;  %v8312_v50 = vsel %vm7224_vm3, %v24355_v43, %v8311_v46  ;;  %14475 = vmatmul.mubr.msk.f32.gmra.mxu0 %vm7341_vm9, %v24356_v17  ;;  %v24357_v47 = vld [vmem:[#allocation149_spill] sm:$0xff]  ;;  %v24358_v15 = vld [vmem:[#allocation87_spill] sm:$0xff]  ;;  %v20816_v43 = vcombine.high %v20272_v18, %v20272_v18  ;;  %v20820_v17 = vcombine.high %v20281_v36, %v20281_v36  ;;  %v12378_v36 = vld [vmem:[%s23150_s5 + $0x128] sm:$0xff] }
 0x3b8   :  { %24352 = vst [vmem:[#allocation69_spill] sm:$0xff] %v20788_v22  ;;  %24353 = vst [vmem:[#allocation14_spill] sm:$0xff] %v20791_v24  ;;  %14531 = vmatprep.mubr.msk.f32.mxu1 %vm7341_vm9, %v24357_v47  ;;  %v12379_v61 = vld [vmem:[%s23150_s5 + $0x130] sm:$0xff]  ;;  %v8293_v32 = vsel %vm7228_vm5, %v24358_v15, %v8292_v37  ;;  %v24360_v25 = vld [vmem:[#allocation103_spill] sm:$0xff]  ;;  %14554 = vmatpush3.msra.mxu0 %v12349_v6  ;;  %v12111_v47 = vrot.slane %v20625_v27, 9  ;;  %v20831_v18 = vcombine.high %v20783_v10, %v20783_v10 }
 0x3b9   :  { %v24359_v22 = vld [vmem:[#allocation97_spill] sm:$0xff]  ;;  %v8307_v46 = vsel %vm7228_vm5, %v24360_v25, %v8306_v9  ;;  %24361 = vst [vmem:[#allocation92_spill] sm:$0xff] %v20820_v17  ;;  %14608 = vmatpush3.msra.mxu1 %v12380_v7  ;;  %v12347_v37 = vld [vmem:[%s23149_s4 + $0x128] sm:$0xff]  ;;  %14555 = vmatprep.subr.mxu0 %v12348_v20  ;;  %v20839_v6 = vrot.slane %v6353_v28, %v18485_v35  ;;  %v6377_v7 = vmax.f32 %v6185_v13, 0.0  ;;  %v24368_v10 = vld [vmem:[#allocation23_spill] sm:$0xff]  ;;  %v12135_v17 = vrot.slane %v20655_v44, 9 }
 0x3ba   :  { %v8300_v24 = vsel %vm7228_vm5, %v24359_v22, %v8299_v23  ;;  %v24362_v23 = vld [vmem:[#allocation126_spill] sm:$0xff]  ;;  %v24363_v22 = vld [vmem:[#allocation128_spill] sm:$0xff]  ;;  %24364 = vst [vmem:[#allocation16_spill] sm:$0xff] %v20831_v18  ;;  %v24365_v25 = vld [vmem:[#allocation73_spill] sm:$0xff]  ;;  %14609 = vmatprep.subr.mxu1 %v12379_v61  ;;  %14556 = vmatpush3.msra.mxu0 %v12348_v20  ;;  %v6197_v28 = vmax.f32 %v20599_v56, %v12099_v42 }
 0x3bb   :  { %v8318_v9 = vsel %vm7222_vm2, %v24363_v22, %v24362_v23  ;;  %14477 = vmatprep.mubr.msk.f32.mxu0 %vm7341_vm9, %v24365_v25  ;;  %v24366_v15 = vld [vmem:[#allocation88_spill] sm:$0xff]  ;;  %v24367_v23 = vld [vmem:[#allocation62_spill] sm:$0xff]  ;;  %v8301_v25 = vsel %vm7230_vm6, %v24368_v10, %v8300_v24  ;;  %v24369_v22 = vld [vmem:[#allocation137_spill] sm:$0xff]  ;;  %14610 = vmatpush3.msra.mxu1 %v12379_v61  ;;  %v6209_v56 = vmax.f32 %v20625_v27, %v12111_v47 }
 0x3bc   :  { %v8313_v62 = vsel %vm7226_vm4, %v24366_v15, %v8312_v50  ;;  %v8294_v18 = vsel %vm7230_vm6, %v24367_v23, %v8293_v32  ;;  %v8308_v60 = vsel %vm7230_vm6, %v24369_v22, %v8307_v46  ;;  %14557 = vmatprep.subr.mxu0 %v12347_v37  ;;  %v24370_v13 = vld [vmem:[#allocation122_spill] sm:$0xff]  ;;  %v24371_v15 = vld [vmem:[#allocation129_spill] sm:$0xff]  ;;  %v24372_v20 = vld [vmem:[#allocation63_spill] sm:$0xff]  ;;  %14611 = vmatprep.subr.mxu1 %v12378_v36 }
 0x3bd   :  { %v8319_v50 = vsel %vm7224_vm3, %v24370_v13, %v8318_v9  ;;  %v8325_v1 = vsel %vm7222_vm2, %v24372_v20, %v24371_v15  ;;  %v24373_v32 = vld [vmem:[#allocation130_spill] sm:$0xff]  ;;  %v12377_v24 = vld [vmem:[%s23150_s5 + $0x120] sm:$0xff]  ;;  %v24377_v10 = vld [vmem:[#allocation76_spill] sm:$0xff]  ;;  %v20879_v47 = vrot.slane %v6377_v7, %v18485_v35  ;;  %14558 = vmatpush3.msra.mxu0 %v12347_v37  ;;  %14612 = vmatpush3.msra.mxu1 %v12378_v36 }
 0x3be   :  { %14532 = vmatmul.mubr.msk.f32.gmra.mxu1 %vm7341_vm9, %v24373_v32  ;;  %v24374_v46 = vld [vmem:[#allocation115_spill] sm:$0xff]  ;;  %v24376_v22 = vld [vmem:[#allocation10_spill] sm:$0xff]  ;;  %14478 = vmatmul.mubr.msk.f32.gmra.mxu0 %vm7341_vm9, %v24377_v10  ;;  %v24378_v15 = vld [vmem:[#allocation157_spill] sm:$0xff]  ;;  %v6221_v7 = vmax.f32 %v20639_v14, %v12123_v0 }
 0x3bf   :  { %v8314_v61 = vsel %vm7228_vm5, %v24374_v46, %v8313_v62  ;;  %v24375_v42 = vld [vmem:[#allocation79_spill] sm:$0xff]  ;;  %14534 = vmatprep.mubr.msk.f32.mxu1 %vm7341_vm9, %v24378_v15  ;;  %v24379_v20 = vld [vmem:[#allocation5_spill] sm:$0xff]  ;;  %v24380_v62 = vld [vmem:[#allocation46_spill] sm:$0xff]  ;;  %24381 = vst [vmem:[#allocation94_spill] sm:$0xff] %v20879_v47  ;;  %14480 = vmatprep.mubr.msk.f32.mxu0 %vm7341_vm9, %v20255_v49 }
 0x3c0   :  { %v8332_v9 = vsel %vm7222_vm2, %v24376_v22, %v24375_v42  ;;  %v12346_v32 = vld [vmem:[%s23149_s4 + $0x120] sm:$0xff]  ;;  %v8295_v23 = vsel %vm7232_vm7, %v24379_v20, %v8294_v18  ;;  %v8302_v27 = vsel %vm7232_vm7, %v24380_v62, %v8301_v25  ;;  %v24382_v42 = vld [vmem:[#allocation65_spill] sm:$0xff]  ;;  %v24383_v22 = vld [vmem:[#allocation124_spill] sm:$0xff]  ;;  %14613 = vmatprep.subr.mxu1 %v12377_v24  ;;  %v6389_v18 = vmax.f32 %v6197_v28, 0.0 }
 0x3c1   :  { %v8309_v10 = vsel %vm7232_vm7, %v24382_v42, %v8308_v60  ;;  %v8320_v15 = vsel %vm7226_vm4, %v24383_v22, %v8319_v50  ;;  %v24384_v46 = vld [vmem:[#allocation72_spill] sm:$0xff]  ;;  %v12376_v37 = vld [vmem:[%s23150_s5 + $0x118] sm:$0xff]  ;;  %14559 = vmatprep.subr.mxu0 %v12346_v32  ;;  %14614 = vmatpush3.msra.mxu1 %v12377_v24  ;;  %v20907_v28 = vsel %vm7234_vm8, %v20571_v58, %v8302_v27  ;;  %v24388_v14 = vld [vmem:[#allocation11_spill] sm:$0xff] }
 0x3c2   :  { %v8326_v13 = vsel %vm7224_vm3, %v24384_v46, %v8325_v1  ;;  %v24385_v36 = vld [vmem:[#allocation40_spill] sm:$0xff]  ;;  %v12345_v49 = vld [vmem:[%s23149_s4 + $0x118] sm:$0xff]  ;;  %v20903_v1 = vsel %vm7234_vm8, %v20839_v6, %v8295_v23  ;;  %14535 = vmatmul.mubr.msk.f32.gmra.mxu1 %vm7341_vm9, %v20303_v29  ;;  %14560 = vmatpush3.msra.mxu0 %v12346_v32  ;;  %v20916_v24 = vsel %vm7234_vm8, %v20879_v47, %v8309_v10  ;;  %v12375_v29 = vld [vmem:[%s23150_s5 + $0x110] sm:$0xff] }
 0x3c3   :  { %v8315_v60 = vsel %vm7230_vm6, %v24385_v36, %v8314_v61  ;;  %v24386_v25 = vld [vmem:[#allocation68_spill] sm:$0xff]  ;;  %v6401_v61 = vmax.f32 %v6209_v56, 0.0  ;;  %v24387_v36 = vld [vmem:[#allocation17_spill] sm:$0xff]  ;;  %v12147_v56 = vrot.slane %v20659_v48, 9  ;;  %14615 = vmatprep.subr.mxu1 %v12376_v37  ;;  %14481 = vmatmul.mubr.msk.f32.gmra.mxu0 %vm7341_vm9, %v20357_v4  ;;  %v24394_v47 = vld [vmem:[#allocation59_spill] sm:$0xff]  ;;  %v20941_v58 = vrot.slane %v6389_v18, %v18485_v35 }
 0x3c4   :  { %v8333_v50 = vsel %vm7224_vm3, %v24386_v25, %v8332_v9  ;;  %v8339_v0 = vsel %vm7222_vm2, %v24388_v14, %v24387_v36  ;;  %v24389_v9 = vld [vmem:[#allocation36_spill] sm:$0xff]  ;;  %v24390_v25 = vld [vmem:[#allocation67_spill] sm:$0xff]  ;;  %v24391_v32 = vld [vmem:[#allocation109_spill] sm:$0xff]  ;;  %14537 = vmatprep.mubr.msk.f32.mxu1 %vm7341_vm9, %v20383_v19  ;;  %14561 = vmatprep.subr.mxu0 %v12345_v49 }
 0x3c5   :  { %v8321_v23 = vsel %vm7228_vm5, %v24389_v9, %v8320_v15  ;;  %v8327_v27 = vsel %vm7226_vm4, %v24390_v25, %v8326_v13  ;;  %v8316_v10 = vsel %vm7232_vm7, %v24391_v32, %v8315_v60  ;;  %v24392_v36 = vld [vmem:[#allocation96_spill] sm:$0xff]  ;;  %v24393_v15 = vld [vmem:[#allocation33_spill] sm:$0xff]  ;;  %24395 = vst [vmem:[#allocation140_spill] sm:$0xff] %v20941_v58  ;;  %v6413_v25 = vmax.f32 %v6221_v7, 0.0  ;;  %14616 = vmatpush3.msra.mxu1 %v12376_v37 }
 0x3c6   :  { %v8334_v14 = vsel %vm7226_vm4, %v24392_v36, %v8333_v50  ;;  %v8346_v13 = vsel %vm7222_vm2, %v24394_v47, %v24393_v15  ;;  %v12344_v4 = vld [vmem:[%s23149_s4 + $0x110] sm:$0xff]  ;;  %v6233_v60 = vmax.f32 %v20655_v44, %v12135_v17  ;;  %14483 = vmatprep.mubr.msk.f32.mxu0 %vm7341_vm9, %v20408_v54  ;;  %v20949_v19 = vrot.slane %v6401_v61, %v18485_v35  ;;  %v24398_v15 = vld [vmem:[#allocation50_spill] sm:$0xff]  ;;  %v24399_v36 = vld [vmem:[#allocation15_spill] sm:$0xff] }
 0x3c7   :  { %v24396_v32 = vld [vmem:[#allocation37_spill] sm:$0xff]  ;;  %v8322_v47 = vsel %vm7230_vm6, %v24398_v15, %v8321_v23  ;;  %v8328_v18 = vsel %vm7228_vm5, %v24399_v36, %v8327_v27  ;;  %14562 = vmatpush3.msra.mxu0 %v12345_v49  ;;  %14617 = vmatprep.subr.mxu1 %v12375_v29  ;;  %v12374_v44 = vld [vmem:[%s23150_s5 + $0x108] sm:$0xff]  ;;  %v20960_v17 = vsel %vm7234_vm8, %v20941_v58, %v8316_v10  ;;  %v24400_v54 = vld [vmem:[#allocation70_spill] sm:$0xff]  ;;  %v12159_v7 = vrot.slane %v20677_v31, 9 }
 0x3c8   :  { %v8340_v50 = vsel %vm7224_vm3, %v24396_v32, %v8339_v0  ;;  %24397 = vst [vmem:[#allocation27_spill] sm:$0xff] %v20949_v19  ;;  %v8335_v37 = vsel %vm7228_vm5, %v24400_v54, %v8334_v14  ;;  %v24401_v61 = vld [vmem:[#allocation20_spill] sm:$0xff]  ;;  %14563 = vmatprep.subr.mxu0 %v12344_v4  ;;  %14618 = vmatpush3.msra.mxu1 %v12375_v29  ;;  %v24402_v27 = vld [vmem:[#allocation98_spill] sm:$0xff]  ;;  %v24403_v58 = vld [vmem:[#allocation51_spill] sm:$0xff] }
 0x3c9   :  { %v8347_v0 = vsel %vm7224_vm3, %v24401_v61, %v8346_v13  ;;  %v12343_v49 = vld [vmem:[%s23149_s4 + $0x108] sm:$0xff]  ;;  %v6245_v23 = vmax.f32 %v20659_v48, %v12147_v56  ;;  %v8341_v10 = vsel %vm7226_vm4, %v24402_v27, %v8340_v50  ;;  %v24404_v32 = vld [vmem:[#allocation74_spill] sm:$0xff]  ;;  %14538 = vmatmul.mubr.msk.f32.gmra.mxu1 %vm7341_vm9, %v20440_v5  ;;  %14564 = vmatpush3.msra.mxu0 %v12344_v4  ;;  %v24405_v13 = vld [vmem:[#allocation43_spill] sm:$0xff]  ;;  %v6425_v56 = vmax.f32 %v6233_v60, 0.0 }
 0x3ca   :  { %v8353_v14 = vsel %vm7222_vm2, %v24404_v32, %v24403_v58  ;;  %v8323_v29 = vsel %vm7232_vm7, %v24405_v13, %v8322_v47  ;;  %v20981_v61 = vrot.slane %v6413_v25, %v18485_v35  ;;  %v24406_v54 = vld [vmem:[#allocation41_spill] sm:$0xff]  ;;  %14619 = vmatprep.subr.mxu1 %v12374_v44  ;;  %14484 = vmatmul.mubr.msk.f32.gmra.mxu0 %vm7341_vm9, %v20459_v33  ;;  %v12373_v58 = vld [vmem:[%s23150_s5 + $0x100] sm:$0xff]  ;;  %v24407_v5 = vld [vmem:[#allocation114_spill] sm:$0xff]  ;;  %v12171_v60 = vrot.slane %v20687_v21, 9 }
 0x3cb   :  { %v8329_v48 = vsel %vm7230_vm6, %v24406_v54, %v8328_v18  ;;  %v8336_v4 = vsel %vm7230_vm6, %v24407_v5, %v8335_v37  ;;  %v24408_v50 = vld [vmem:[#allocation55_spill] sm:$0xff]  ;;  %v24409_v25 = vld [vmem:[#allocation134_spill] sm:$0xff]  ;;  %14540 = vmatprep.mubr.msk.f32.mxu1 %vm7341_vm9, %v20478_v45  ;;  %14565 = vmatprep.subr.mxu0 %v12343_v49  ;;  %v6257_v5 = vmax.f32 %v20677_v31, %v12159_v7  ;;  %v6437_v54 = vmax.f32 %v6245_v23, 0.0  ;;  %v24414_v7 = vld [vmem:[#allocation9_spill] sm:$0xff] }
 0x3cc   :  { %v8348_v47 = vsel %vm7226_vm4, %v24408_v50, %v8347_v0  ;;  %v24410_v32 = vld [vmem:[#allocation123_spill] sm:$0xff]  ;;  %v24412_v0 = vld [vmem:[#allocation132_spill] sm:$0xff]  ;;  %14620 = vmatpush3.msra.mxu1 %v12374_v44  ;;  %14486 = vmatprep.mubr.msk.f32.mxu0 %vm7341_vm9, %v20513_v59  ;;  %v21012_v45 = vsel %vm7234_vm8, %v20949_v19, %v8323_v29  ;;  %v12195_v31 = vrot.slane %v20720_v63, 9  ;;  %v12372_v59 = vld [vmem:[%s23150_s5 + $0xf8] sm:$0xff]  ;;  %v21024_v44 = vrot.slane %v6425_v56, %v18485_v35 }
 0x3cd   :  { %v8360_v27 = vsel %vm7222_vm2, %v24410_v32, %v24409_v25  ;;  %v12342_v33 = vld [vmem:[%s23149_s4 + $0x100] sm:$0xff]  ;;  %v8354_v50 = vsel %vm7224_vm3, %v24412_v0, %v8353_v14  ;;  %v24413_v25 = vld [vmem:[#allocation138_spill] sm:$0xff]  ;;  %14566 = vmatpush3.msra.mxu0 %v12343_v49  ;;  %14621 = vmatprep.subr.mxu1 %v12373_v58  ;;  %v8349_v14 = vsel %vm7228_vm5, %v24414_v7, %v8348_v47  ;;  %v24415_v49 = vld [vmem:[#allocation89_spill] sm:$0xff]  ;;  %v12183_v47 = vrot.slane %v20714_v2, 9 }
 0x3ce   :  { %v24411_v18 = vld [vmem:[#allocation39_spill] sm:$0xff]  ;;  %v8330_v32 = vsel %vm7232_vm7, %v24413_v25, %v8329_v48  ;;  %v8361_v23 = vsel %vm7224_vm3, %v19868_v3, %v8360_v27  ;;  %14567 = vmatprep.subr.mxu0 %v12342_v33  ;;  %14622 = vmatpush3.msra.mxu1 %v12373_v58  ;;  %v8337_v29 = vsel %vm7232_vm7, %v24415_v49, %v8336_v4  ;;  %v24416_v48 = vld [vmem:[#allocation12_spill] sm:$0xff]  ;;  %v6449_v58 = vmax.f32 %v6257_v5, 0.0 }
 0x3cf   :  { %v8342_v37 = vsel %vm7228_vm5, %v24411_v18, %v8341_v10  ;;  %v8367_v10 = vsel %vm7222_vm2, %v19981_v39, %v19978_v26  ;;  %v12341_v26 = vld [vmem:[%s23149_s4 + $0xf8] sm:$0xff]  ;;  %v24417_v56 = vld [vmem:[#allocation32_spill] sm:$0xff]  ;;  %14541 = vmatmul.mubr.msk.f32.gmra.mxu1 %vm7341_vm9, %v20517_v40  ;;  %14568 = vmatpush3.msra.mxu0 %v12342_v33  ;;  %v21044_v27 = vsel %vm7234_vm8, %v20981_v61, %v8330_v32  ;;  %v24419_v33 = vld [vmem:[#allocation141_spill] sm:$0xff]  ;;  %v12207_v5 = vrot.slane %v20762_v8, 9 }
 0x3d0   :  { %v8343_v39 = vsel %vm7230_vm6, %v24416_v48, %v8342_v37  ;;  %v8355_v0 = vsel %vm7226_vm4, %v24417_v56, %v8354_v50  ;;  %v6269_v7 = vmax.f32 %v20687_v21, %v12171_v60  ;;  %v8368_v4 = vsel %vm7224_vm3, %v20013_v11, %v8367_v10  ;;  %14623 = vmatprep.subr.mxu1 %v12372_v59  ;;  %v12371_v50 = vld [vmem:[%s23150_s5 + $0xf0] sm:$0xff]  ;;  %v24421_v10 = vld [vmem:[#allocation66_spill] sm:$0xff] }
 0x3d1   :  { %14487 = vmatmul.mubr.msk.f32.gmra.mxu0 %vm7341_vm9, %v20540_v53  ;;  %v21055_v40 = vrot.slane %v6437_v54, %v18485_v35  ;;  %v8350_v32 = vsel %vm7230_vm6, %v24419_v33, %v8349_v14  ;;  %v8362_v21 = vsel %vm7226_vm4, %v19874_v34, %v8361_v23  ;;  %14569 = vmatprep.subr.mxu0 %v12341_v26  ;;  %v12340_v53 = vld [vmem:[%s23149_s4 + $0xf0] sm:$0xff]  ;;  %v24420_v54 = vld [vmem:[#allocation95_spill] sm:$0xff] }
 0x3d2   :  { %14624 = vmatpush3.msra.mxu1 %v12372_v59  ;;  %v21067_v60 = vsel %vm7234_vm8, %v21024_v44, %v8337_v29  ;;  %v8344_v37 = vsel %vm7232_vm7, %v24420_v54, %v8343_v39  ;;  %v8356_v14 = vsel %vm7228_vm5, %v24421_v10, %v8355_v0  ;;  %14627 = vmatprep.mubr.msk.f32.mxu1 %vm7341_vm9, %v20903_v1  ;;  %v24423_v0 = vld [vmem:[#allocation143_spill] sm:$0xff] }
 0x3d3   :  { %24418 = vst [vmem:[#allocation56_spill] sm:$0xff] %v21055_v40  ;;  %14570 = vmatpush3.msra.mxu0 %v12341_v26  ;;  %v6281_v59 = vmax.f32 %v20714_v2, %v12183_v47  ;;  %v8369_v23 = vsel %vm7226_vm4, %v20027_v41, %v8368_v4  ;;  %v8374_v29 = vsel %vm7222_vm2, %v20123_v16, %v20104_v38  ;;  %v6461_v26 = vmax.f32 %v6269_v7, 0.0  ;;  %v12416_v38 = vld [vmem:[%s23149_s4 + $0x1d8] sm:$0xff] }
 0x3d4   :  { %14573 = vmatprep.mubr.msk.f32.mxu0 %vm7341_vm9, %v20903_v1  ;;  %14625 = vmatprep.subr.mxu1 %v12371_v50  ;;  %v21084_v39 = vrot.slane %v6449_v58, %v18485_v35  ;;  %v8351_v33 = vsel %vm7232_vm7, %v24423_v0, %v8350_v32  ;;  %v8363_v2 = vsel %vm7228_vm5, %v19881_v30, %v8362_v21  ;;  %v12447_v1 = vld [vmem:[%s23150_s5 + $0x1d8] sm:$0xff]  ;;  %v12219_v32 = vrot.slane %v20780_v51, 9 }
 0x3d5   :  { %14571 = vmatprep.subr.mxu0 %v12340_v53  ;;  %14626 = vmatpush3.msra.mxu1 %v12371_v50  ;;  %v24424_v47 = vld [vmem:[#allocation110_spill] sm:$0xff]  ;;  %v6293_v4 = vmax.f32 %v20720_v63, %v12195_v31  ;;  %v6305_v7 = vmax.f32 %v20762_v8, %v12207_v5  ;;  %v8370_v50 = vsel %vm7228_vm5, %v20030_v52, %v8369_v23  ;;  %v12415_v63 = vld [vmem:[%s23149_s4 + $0x1d0] sm:$0xff]  ;;  %v6473_v31 = vmax.f32 %v6281_v59, 0.0  ;;  %v24425_v5 = vld [vmem:[#allocation155_spill] sm:$0xff] }
 0x3d6   :  { %24422 = vst [vmem:[#allocation93_spill] sm:$0xff] %v21084_v39  ;;  %v8357_v58 = vsel %vm7230_vm6, %v24424_v47, %v8356_v14  ;;  %14572 = vmatpush3.msra.mxu0 %v12340_v53  ;;  %14628 = vmatmul.mubr.msk.f32.vlgmr.msra.gmra.mxu1 %vm7341_vm9, %v20907_v28  ;;  %v8375_v21 = vsel %vm7224_vm3, %v20021_v57, %v8374_v29  ;;  %v24426_v23 = vld [vmem:[#allocation77_spill] sm:$0xff]  ;;  %v24429_v59 = vld [vmem:[#allocation34_spill] sm:$0xff]  ;;  %v12231_v52 = vrot.slane %v20816_v43, 9  ;;  %v24431_v57 = vld [vmem:[#allocation147_spill] sm:$0xff] }
 0x3d7   :  { %v8381_v14 = vsel %vm7222_vm2, %v20167_v55, %v20163_v12  ;;  %14574 = vmatmul.mubr.msk.f32.vlgmr.msra.gmra.mxu0 %vm7341_vm9, %v20907_v28  ;;  %14630 = vmatprep.mubr.msk.f32.mxu1 %vm7341_vm9, %v20916_v24  ;;  %v21119_v8 = vsel %vm7234_vm8, %v21055_v40, %v8344_v37  ;;  %v8364_v53 = vsel %vm7230_vm6, %v24425_v5, %v8363_v2  ;;  %v24427_v12 = vld [vmem:[#allocation136_spill] sm:$0xff]  ;;  %v12446_v28 = vld [vmem:[%s23150_s5 + $0x1d0] sm:$0xff]  ;;  %v24433_v16 = vld [vmem:[#allocation158_spill] sm:$0xff] }
 0x3d8   :  { %v8388_v29 = vsel %vm7222_vm2, %v24427_v12, %v24426_v23  ;;  %14651 = vmatprep.subr.mxu0 %v12416_v38  ;;  %14705 = vmatprep.subr.mxu1 %v12447_v1  ;;  %v21131_v55 = vsel %vm7234_vm8, %v21084_v39, %v8351_v33  ;;  %v21134_v37 = vrot.slane %v6461_v26, %v18485_v35  ;;  %v6485_v23 = vmax.f32 %v6293_v4, 0.0  ;;  %v24430_v12 = vld [vmem:[#allocation57_spill] sm:$0xff]  ;;  %v24432_v39 = vld [vmem:[#allocation150_spill] sm:$0xff]  ;;  %v12414_v4 = vld [vmem:[%s23149_s4 + $0x1c8] sm:$0xff] }
 0x3d9   :  { %v8358_v2 = vsel %vm7232_vm7, %v24429_v59, %v8357_v58  ;;  %14576 = vmatprep.mubr.msk.f32.mxu0 %vm7341_vm9, %v20916_v24  ;;  %14652 = vmatpush3.msra.mxu0 %v12416_v38  ;;  %v8371_v5 = vsel %vm7230_vm6, %v24430_v12, %v8370_v50  ;;  %v8376_v33 = vsel %vm7226_vm4, %v24431_v57, %v8375_v21  ;;  %v6497_v59 = vmax.f32 %v6305_v7, 0.0  ;;  %v24434_v24 = vld [vmem:[#allocation60_spill] sm:$0xff]  ;;  %v24461_v12 = vld [vmem:[#allocation86_spill] sm:$0xff] }
 0x3da   :  { %24428 = vst [vmem:[#allocation54_spill] sm:$0xff] %v21134_v37  ;;  %v8382_v26 = vsel %vm7224_vm3, %v24432_v39, %v8381_v14  ;;  %14706 = vmatpush3.msra.mxu1 %v12447_v1  ;;  %14653 = vmatprep.subr.mxu0 %v12415_v63  ;;  %v8365_v58 = vsel %vm7232_vm7, %v24433_v16, %v8364_v53  ;;  %v24436_v7 = vld [vmem:[#allocation108_spill] sm:$0xff] }
 0x3db   :  { %v6317_v0 = vmax.f32 %v20780_v51, %v12219_v32  ;;  %v8389_v38 = vsel %vm7224_vm3, %v24434_v24, %v8388_v29  ;;  %14631 = vmatmul.mubr.msk.f32.gmra.mxu1 %vm7341_vm9, %v20960_v17  ;;  %14707 = vmatprep.subr.mxu1 %v12446_v28  ;;  %v21159_v1 = vsel %vm7234_vm8, %v21134_v37, %v8358_v2  ;;  %v24437_v51 = vld [vmem:[#allocation111_spill] sm:$0xff]  ;;  %v24438_v21 = vld [vmem:[#allocation92_spill] sm:$0xff]  ;;  %v24439_v29 = vld [vmem:[#allocation81_spill] sm:$0xff] }
 0x3dc   :  { %v21162_v50 = vrot.slane %v6473_v31, %v18485_v35  ;;  %v8395_v32 = vsel %vm7222_vm2, %v24437_v51, %v24436_v7  ;;  %v12243_v14 = vrot.slane %v24438_v21, 9  ;;  %14577 = vmatmul.mubr.msk.f32.gmra.mxu0 %vm7341_vm9, %v20960_v17  ;;  %14633 = vmatprep.mubr.msk.f32.mxu1 %vm7341_vm9, %v21012_v45  ;;  %v12445_v53 = vld [vmem:[%s23150_s5 + $0x1c8] sm:$0xff]  ;;  %v8372_v31 = vsel %vm7232_vm7, %v24439_v29, %v8371_v5  ;;  %v24441_v37 = vld [vmem:[#allocation151_spill] sm:$0xff]  ;;  %v24443_v5 = vld [vmem:[#allocation153_spill] sm:$0xff] }
 0x3dd   :  { %v24440_v2 = vld [vmem:[#allocation148_spill] sm:$0xff]  ;;  %v8383_v7 = vsel %vm7226_vm4, %v24441_v37, %v8382_v26  ;;  %14654 = vmatpush3.msra.mxu0 %v12415_v63  ;;  %14708 = vmatpush3.msra.mxu1 %v12446_v28  ;;  %v12413_v17 = vld [vmem:[%s23149_s4 + $0x1c0] sm:$0xff]  ;;  %v21189_v39 = vrot.slane %v6485_v23, %v18485_v35  ;;  %v8390_v29 = vsel %vm7226_vm4, %v24443_v5, %v8389_v38 }
 0x3de   :  { %24435 = vst [vmem:[#allocation29_spill] sm:$0xff] %v21162_v50  ;;  %v8377_v24 = vsel %vm7228_vm5, %v24440_v2, %v8376_v33  ;;  %v21186_v51 = vsel %vm7234_vm8, %v21162_v50, %v8365_v58  ;;  %14579 = vmatprep.mubr.msk.f32.mxu0 %vm7341_vm9, %v21012_v45  ;;  %14655 = vmatprep.subr.mxu0 %v12414_v4  ;;  %v12444_v63 = vld [vmem:[%s23150_s5 + $0x1c0] sm:$0xff]  ;;  %v6509_v33 = vmax.f32 %v6317_v0, 0.0  ;;  %v24445_v58 = vld [vmem:[#allocation160_spill] sm:$0xff]  ;;  %v24446_v45 = vld [vmem:[#allocation78_spill] sm:$0xff] }
 0x3df   :  { %24442 = vst [vmem:[#allocation127_spill] sm:$0xff] %v21189_v39  ;;  %v21199_v28 = vrot.slane %v6497_v59, %v18485_v35  ;;  %v6329_v26 = vmax.f32 %v20816_v43, %v12231_v52  ;;  %v8396_v23 = vsel %vm7224_vm3, %v24445_v58, %v8395_v32  ;;  %14709 = vmatprep.subr.mxu1 %v12445_v53  ;;  %v24447_v37 = vld [vmem:[#allocation152_spill] sm:$0xff]  ;;  %v24448_v59 = vld [vmem:[#allocation101_spill] sm:$0xff]  ;;  %v24449_v52 = vld [vmem:[#allocation154_spill] sm:$0xff] }
 0x3e0   :  { %14656 = vmatpush3.msra.mxu0 %v12414_v4  ;;  %v21206_v38 = vsel %vm7234_vm8, %v21189_v39, %v8372_v31  ;;  %v8378_v5 = vsel %vm7230_vm6, %v24446_v45, %v8377_v24  ;;  %v8384_v50 = vsel %vm7228_vm5, %v24447_v37, %v8383_v7  ;;  %v12064_v2 = vrot.slane %v24448_v59, 9  ;;  %14710 = vmatpush3.msra.mxu1 %v12445_v53  ;;  %v24450_v4 = vld [vmem:[#allocation42_spill] sm:$0xff]  ;;  %v24451_v32 = vld [vmem:[#allocation85_spill] sm:$0xff]  ;;  %v24453_v37 = vld [vmem:[#allocation7_spill] sm:$0xff] }
 0x3e1   :  { %24444 = vst [vmem:[#allocation18_spill] sm:$0xff] %v21199_v28  ;;  %14657 = vmatprep.subr.mxu0 %v12413_v17  ;;  %v8391_v43 = vsel %vm7228_vm5, %v24449_v52, %v8390_v29  ;;  %v6341_v0 = vmax.f32 %v24438_v21, %v12243_v14  ;;  %v8868_v31 = vsel %vm7222_vm2, %v24451_v32, %v24450_v4  ;;  %v12412_v24 = vld [vmem:[%s23149_s4 + $0x1b8] sm:$0xff]  ;;  %v24452_v7 = vld [vmem:[#allocation161_spill] sm:$0xff]  ;;  %v24454_v39 = vld [vmem:[#allocation47_spill] sm:$0xff] }
 0x3e2   :  { %14634 = vmatmul.mubr.msk.f32.gmra.mxu1 %vm7341_vm9, %v21044_v27  ;;  %14711 = vmatprep.subr.mxu1 %v12444_v63  ;;  %v8397_v53 = vsel %vm7226_vm4, %v24452_v7, %v8396_v23  ;;  %v8875_v29 = vsel %vm7222_vm2, %v24454_v39, %v24453_v37  ;;  %v24455_v21 = vld [vmem:[#allocation105_spill] sm:$0xff]  ;;  %v24456_v14 = vld [vmem:[#allocation100_spill] sm:$0xff]  ;;  %v12443_v4 = vld [vmem:[%s23150_s5 + $0x1b8] sm:$0xff]  ;;  %v21242_v7 = vrot.slane %v6509_v33, %v18485_v35 }
 0x3e3   :  { %v8882_v52 = vsel %vm7222_vm2, %v24456_v14, %v24455_v21  ;;  %14580 = vmatmul.mubr.msk.f32.gmra.mxu0 %vm7341_vm9, %v21044_v27  ;;  %14636 = vmatprep.mubr.msk.f32.mxu1 %vm7341_vm9, %v21067_v60  ;;  %v24457_v32 = vld [vmem:[#allocation28_spill] sm:$0xff]  ;;  %v6521_v21 = vmax.f32 %v6329_v26, 0.0  ;;  %v12411_v27 = vld [vmem:[%s23149_s4 + $0x1b0] sm:$0xff]  ;;  %v24460_v14 = vld [vmem:[#allocation159_spill] sm:$0xff]  ;;  %v6162_v58 = vmax.f32 %v24448_v59, %v12064_v2 }
 0x3e4   :  { %v8379_v23 = vsel %vm7232_vm7, %v24457_v32, %v8378_v5  ;;  %24458 = vst [vmem:[#allocation104_spill] sm:$0xff] %v21242_v7  ;;  %v24459_v37 = vld [vmem:[#allocation156_spill] sm:$0xff]  ;;  %14658 = vmatpush3.msra.mxu0 %v12413_v17  ;;  %14712 = vmatpush3.msra.mxu1 %v12444_v63  ;;  %v8392_v45 = vsel %vm7230_vm6, %v24460_v14, %v8391_v43  ;;  %v24462_v17 = vld [vmem:[#allocation162_spill] sm:$0xff]  ;;  %v24464_v43 = vld [vmem:[#allocation83_spill] sm:$0xff]  ;;  %v6533_v32 = vmax.f32 %v6341_v0, 0.0 }
 0x3e5   :  { %v8385_v39 = vsel %vm7230_vm6, %v24459_v37, %v8384_v50  ;;  %v8869_v5 = vsel %vm7224_vm3, %v24461_v12, %v8868_v31  ;;  %14582 = vmatprep.mubr.msk.f32.mxu0 %vm7341_vm9, %v21067_v60  ;;  %14659 = vmatprep.subr.mxu0 %v12412_v24  ;;  %v12442_v50 = vld [vmem:[%s23150_s5 + $0x1b0] sm:$0xff]  ;;  %v8398_v63 = vsel %vm7228_vm5, %v24462_v17, %v8397_v53  ;;  %v24463_v33 = vld [vmem:[#allocation48_spill] sm:$0xff]  ;;  %v12088_v14 = vrot.slane %v24464_v43, 9  ;;  %v24465_v2 = vld [vmem:[#allocation102_spill] sm:$0xff] }
 0x3e6   :  { %v8876_v26 = vsel %vm7224_vm3, %v24463_v33, %v8875_v29  ;;  %v8883_v37 = vsel %vm7224_vm3, %v24465_v2, %v8882_v52  ;;  %14713 = vmatprep.subr.mxu1 %v12443_v4  ;;  %14660 = vmatpush3.msra.mxu0 %v12412_v24  ;;  %v21268_v60 = vsel %vm7234_vm8, %v21199_v28, %v8379_v23  ;;  %v24466_v31 = vld [vmem:[#allocation133_spill] sm:$0xff]  ;;  %v24467_v59 = vld [vmem:[#allocation107_spill] sm:$0xff]  ;;  %v24470_v52 = vld [vmem:[#allocation164_spill] sm:$0xff] }
 0x3e7   :  { %v8386_v12 = vsel %vm7232_vm7, %v24466_v31, %v8385_v39  ;;  %v24468_v53 = vld [vmem:[#allocation61_spill] sm:$0xff]  ;;  %14714 = vmatpush3.msra.mxu1 %v12443_v4  ;;  %14661 = vmatprep.subr.mxu0 %v12411_v27  ;;  %v21276_v29 = vrot.slane %v6521_v21, %v18485_v35  ;;  %v8393_v24 = vsel %vm7232_vm7, %v24470_v52, %v8392_v45  ;;  %v24471_v2 = vld [vmem:[#allocation87_spill] sm:$0xff]  ;;  %v12410_v39 = vld [vmem:[%s23149_s4 + $0x1a8] sm:$0xff]  ;;  %v6354_v52 = vmax.f32 %v6162_v58, 0.0 }
 0x3e8   :  { %v8889_v17 = vsel %vm7222_vm2, %v24468_v53, %v24467_v59  ;;  %v8870_v23 = vsel %vm7226_vm4, %v24471_v2, %v8869_v5  ;;  %14637 = vmatmul.mubr.msk.f32.gmra.mxu1 %vm7341_vm9, %v21119_v8  ;;  %14715 = vmatprep.subr.mxu1 %v12442_v50  ;;  %v24472_v59 = vld [vmem:[#allocation163_spill] sm:$0xff]  ;;  %v24473_v4 = vld [vmem:[#allocation97_spill] sm:$0xff]  ;;  %v12441_v5 = vld [vmem:[%s23150_s5 + $0x1a8] sm:$0xff]  ;;  %v6186_v31 = vmax.f32 %v24464_v43, %v12088_v14 }
 0x3e9   :  { %24469 = vst [vmem:[#allocation64_spill] sm:$0xff] %v21276_v29  ;;  %v8399_v0 = vsel %vm7230_vm6, %v24472_v59, %v8398_v63  ;;  %v8877_v21 = vsel %vm7226_vm4, %v24473_v4, %v8876_v26  ;;  %v24474_v53 = vld [vmem:[#allocation103_spill] sm:$0xff]  ;;  %14583 = vmatmul.mubr.msk.f32.gmra.mxu0 %vm7341_vm9, %v21119_v8  ;;  %14639 = vmatprep.mubr.msk.f32.mxu1 %vm7341_vm9, %v21131_v55  ;;  %v24475_v63 = vld [vmem:[#allocation88_spill] sm:$0xff]  ;;  %v24477_v4 = vld [vmem:[#allocation122_spill] sm:$0xff] }
 0x3ea   :  { %v8884_v45 = vsel %vm7226_vm4, %v24474_v53, %v8883_v37  ;;  %v8890_v59 = vsel %vm7224_vm3, %v24475_v63, %v8889_v17  ;;  %v24476_v26 = vld [vmem:[#allocation128_spill] sm:$0xff]  ;;  %14662 = vmatpush3.msra.mxu0 %v12411_v27  ;;  %14716 = vmatpush3.msra.mxu1 %v12442_v50  ;;  %v12409_v8 = vld [vmem:[%s23149_s4 + $0x1a0] sm:$0xff]  ;;  %v21312_v58 = vsel %vm7234_vm8, %v21242_v7, %v8386_v12  ;;  %v24479_v17 = vld [vmem:[#allocation62_spill] sm:$0xff] }
 0x3eb   :  { %v8896_v37 = vsel %vm7222_vm2, %v24477_v4, %v24476_v26  ;;  %v24478_v53 = vld [vmem:[#allocation8_spill] sm:$0xff]  ;;  %v21315_v14 = vrot.slane %v6533_v32, %v18485_v35  ;;  %v8871_v63 = vsel %vm7228_vm5, %v24479_v17, %v8870_v23  ;;  %14585 = vmatprep.mubr.msk.f32.mxu0 %vm7341_vm9, %v21131_v55  ;;  %14663 = vmatprep.subr.mxu0 %v12410_v39  ;;  %v12440_v27 = vld [vmem:[%s23150_s5 + $0x1a0] sm:$0xff]  ;;  %v24481_v32 = vld [vmem:[#allocation137_spill] sm:$0xff] }
 0x3ec   :  { %v12100_v2 = vrot.slane %v24478_v53, 9  ;;  %v21326_v50 = vsel %vm7234_vm8, %v21276_v29, %v8393_v24  ;;  %v24480_v12 = vld [vmem:[#allocation23_spill] sm:$0xff]  ;;  %v8885_v4 = vsel %vm7228_vm5, %v24481_v32, %v8884_v45  ;;  %v24482_v7 = vld [vmem:[#allocation90_spill] sm:$0xff]  ;;  %14717 = vmatprep.subr.mxu1 %v12441_v5  ;;  %14664 = vmatpush3.msra.mxu0 %v12410_v39  ;;  %v24483_v55 = vld [vmem:[#allocation44_spill] sm:$0xff]  ;;  %v8897_v24 = vsel %vm7224_vm3, %v24383_v22, %v8896_v37 }
 0x3ed   :  { %v8878_v26 = vsel %vm7228_vm5, %v24480_v12, %v8877_v21  ;;  %v12112_v23 = vrot.slane %v24482_v7, 9  ;;  %v8400_v43 = vsel %vm7232_vm7, %v24483_v55, %v8399_v0  ;;  %v24484_v17 = vld [vmem:[#allocation115_spill] sm:$0xff]  ;;  %14718 = vmatpush3.msra.mxu1 %v12441_v5  ;;  %14665 = vmatprep.subr.mxu0 %v12409_v8  ;;  %v21340_v21 = vrot.slane %v6354_v52, %v18485_v35  ;;  %v24486_v5 = vld [vmem:[#allocation84_spill] sm:$0xff] }
 0x3ee   :  { %v8891_v28 = vsel %vm7226_vm4, %v24484_v17, %v8890_v59  ;;  %v8872_v45 = vsel %vm7230_vm6, %v24379_v20, %v8871_v63  ;;  %v6378_v32 = vmax.f32 %v6186_v31, 0.0  ;;  %v24485_v29 = vld [vmem:[#allocation63_spill] sm:$0xff]  ;;  %14640 = vmatmul.mubr.msk.f32.gmra.mxu1 %vm7341_vm9, %v21159_v1  ;;  %14719 = vmatprep.subr.mxu1 %v12440_v27  ;;  %v12439_v59 = vld [vmem:[%s23150_s5 + $0x198] sm:$0xff]  ;;  %v8879_v52 = vsel %vm7230_vm6, %v24380_v62, %v8878_v26  ;;  %v24487_v37 = vld [vmem:[#allocation40_spill] sm:$0xff] }
 0x3ef   :  { %v8903_v39 = vsel %vm7222_vm2, %v24384_v46, %v24485_v29  ;;  %v8886_v0 = vsel %vm7230_vm6, %v24382_v42, %v8885_v4  ;;  %v6198_v31 = vmax.f32 %v24478_v53, %v12100_v2  ;;  %v12124_v63 = vrot.slane %v24486_v5, 9  ;;  %14586 = vmatmul.mubr.msk.f32.gmra.mxu0 %vm7341_vm9, %v21159_v1  ;;  %14642 = vmatprep.mubr.msk.f32.mxu1 %vm7341_vm9, %v21186_v51  ;;  %v12408_v29 = vld [vmem:[%s23149_s4 + $0x198] sm:$0xff]  ;;  %v24488_v4 = vld [vmem:[#allocation67_spill] sm:$0xff] }
 0x3f0   :  { %v8892_v26 = vsel %vm7228_vm5, %v24487_v37, %v8891_v28  ;;  %v6210_v46 = vmax.f32 %v24482_v7, %v12112_v23  ;;  %v8898_v2 = vsel %vm7226_vm4, %v24389_v9, %v8897_v24  ;;  %14666 = vmatpush3.msra.mxu0 %v12409_v8  ;;  %14720 = vmatpush3.msra.mxu1 %v12440_v27  ;;  %v12438_v28 = vld [vmem:[%s23150_s5 + $0x190] sm:$0xff]  ;;  %v24489_v8 = vld [vmem:[#allocation99_spill] sm:$0xff]  ;;  %v24491_v23 = vld [vmem:[#allocation10_spill] sm:$0xff] }
 0x3f1   :  { %v21372_v1 = vsel %vm7234_vm8, %v21315_v14, %v8400_v43  ;;  %v8873_v53 = vsel %vm7232_vm7, %v20839_v6, %v8872_v45  ;;  %v8904_v42 = vsel %vm7224_vm3, %v24488_v4, %v8903_v39  ;;  %14588 = vmatprep.mubr.msk.f32.mxu0 %vm7341_vm9, %v21186_v51  ;;  %14721 = vmatprep.subr.mxu1 %v12439_v59  ;;  %v24492_v24 = vld [vmem:[#allocation68_spill] sm:$0xff]  ;;  %v12407_v51 = vld [vmem:[%s23149_s4 + $0x190] sm:$0xff]  ;;  %v24493_v39 = vld [vmem:[#allocation94_spill] sm:$0xff]  ;;  %v6390_v37 = vmax.f32 %v6198_v31, 0.0 }
 0x3f2   :  { %v8880_v27 = vsel %vm7232_vm7, %v24489_v8, %v8879_v52  ;;  %v21386_v43 = vrot.slane %v6378_v32, %v18485_v35  ;;  %v8910_v45 = vsel %vm7222_vm2, %v24492_v24, %v24491_v23  ;;  %14667 = vmatprep.subr.mxu0 %v12408_v29  ;;  %14722 = vmatpush3.msra.mxu1 %v12439_v59  ;;  %v24494_v4 = vld [vmem:[#allocation109_spill] sm:$0xff]  ;;  %v6402_v23 = vmax.f32 %v6210_v46, 0.0  ;;  %v24495_v22 = vld [vmem:[#allocation11_spill] sm:$0xff]  ;;  %v12437_v31 = vld [vmem:[%s23150_s5 + $0x188] sm:$0xff] }
 0x3f3   :  { %v8887_v9 = vsel %vm7232_vm7, %v24493_v39, %v8886_v0  ;;  %v8893_v52 = vsel %vm7230_vm6, %v24494_v4, %v8892_v26  ;;  %v8899_v32 = vsel %vm7228_vm5, %v24398_v15, %v8898_v2  ;;  %14643 = vmatmul.mubr.msk.f32.gmra.mxu1 %vm7341_vm9, %v21206_v38  ;;  %14668 = vmatpush3.msra.mxu0 %v12408_v29  ;;  %v24496_v7 = vld [vmem:[#allocation37_spill] sm:$0xff]  ;;  %v24499_v26 = vld [vmem:[#allocation96_spill] sm:$0xff]  ;;  %v24501_v15 = vld [vmem:[#allocation6_spill] sm:$0xff] }
 0x3f4   :  { %24490 = vst [vmem:[#allocation82_spill] sm:$0xff] %v21386_v43  ;;  %v6222_v59 = vmax.f32 %v24486_v5, %v12124_v63  ;;  %v8905_v24 = vsel %vm7226_vm4, %v24399_v36, %v8904_v42  ;;  %v8917_v0 = vsel %vm7222_vm2, %v24496_v7, %v24495_v22  ;;  %14723 = vmatprep.subr.mxu1 %v12438_v28  ;;  %v24497_v5 = vld [vmem:[#allocation118_spill] sm:$0xff]  ;;  %v24498_v42 = vld [vmem:[#allocation112_spill] sm:$0xff]  ;;  %v24503_v36 = vld [vmem:[#allocation41_spill] sm:$0xff] }
 0x3f5   :  { %14589 = vmatmul.mubr.msk.f32.gmra.mxu0 %vm7341_vm9, %v21206_v38  ;;  %v21415_v46 = vsel %vm7234_vm8, %v21340_v21, %v8873_v53  ;;  %v21419_v63 = vsel %vm7234_vm8, %v24497_v5, %v8880_v27  ;;  %v12136_v29 = vrot.slane %v24498_v42, 9  ;;  %v8911_v22 = vsel %vm7224_vm3, %v24499_v26, %v8910_v45  ;;  %14645 = vmatprep.mubr.msk.f32.mxu1 %vm7341_vm9, %v21268_v60  ;;  %v12406_v38 = vld [vmem:[%s23149_s4 + $0x188] sm:$0xff] }
 0x3f6   :  { %14669 = vmatprep.subr.mxu0 %v12407_v51  ;;  %v21431_v2 = vsel %vm7234_vm8, %v21386_v43, %v8887_v9  ;;  %v24500_v53 = vld [vmem:[#allocation140_spill] sm:$0xff]  ;;  %v8900_v7 = vsel %vm7230_vm6, %v24405_v13, %v8899_v32  ;;  %v12148_v45 = vrot.slane %v24501_v15, 9  ;;  %14724 = vmatpush3.msra.mxu1 %v12438_v28  ;;  %v21441_v4 = vrot.slane %v6390_v37, %v18485_v35  ;;  %v24504_v9 = vld [vmem:[#allocation98_spill] sm:$0xff]  ;;  %v24506_v13 = vld [vmem:[#allocation59_spill] sm:$0xff] }
 0x3f7   :  { %v8894_v27 = vsel %vm7232_vm7, %v24500_v53, %v8893_v52  ;;  %14591 = vmatprep.mubr.msk.f32.mxu0 %vm7341_vm9, %v21268_v60  ;;  %v8906_v39 = vsel %vm7228_vm5, %v24503_v36, %v8905_v24  ;;  %v8918_v43 = vsel %vm7224_vm3, %v24504_v9, %v8917_v0  ;;  %14670 = vmatpush3.msra.mxu0 %v12407_v51  ;;  %v12436_v52 = vld [vmem:[%s23150_s5 + $0x180] sm:$0xff]  ;;  %v6414_v32 = vmax.f32 %v6222_v59, 0.0  ;;  %v24505_v60 = vld [vmem:[#allocation70_spill] sm:$0xff]  ;;  %v24507_v53 = vld [vmem:[#allocation20_spill] sm:$0xff] }
 0x3f8   :  { %24502 = vst [vmem:[#allocation21_spill] sm:$0xff] %v21441_v4  ;;  %14725 = vmatprep.subr.mxu1 %v12437_v31  ;;  %v21451_v28 = vrot.slane %v6402_v23, %v18485_v35  ;;  %v8912_v37 = vsel %vm7226_vm4, %v24505_v60, %v8911_v22  ;;  %v8924_v24 = vsel %vm7222_vm2, %v24507_v53, %v24506_v13  ;;  %v12405_v51 = vld [vmem:[%s23149_s4 + $0x180] sm:$0xff]  ;;  %v24508_v22 = vld [vmem:[#allocation113_spill] sm:$0xff]  ;;  %v24509_v9 = vld [vmem:[#allocation74_spill] sm:$0xff] }
 0x3f9   :  { %14671 = vmatprep.subr.mxu0 %v12406_v38  ;;  %14726 = vmatpush3.msra.mxu1 %v12437_v31  ;;  %v21463_v0 = vsel %vm7234_vm8, %v21441_v4, %v8894_v27  ;;  %v8901_v23 = vsel %vm7232_vm7, %v20949_v19, %v8900_v7  ;;  %v6234_v59 = vmax.f32 %v24498_v42, %v12136_v29  ;;  %v12160_v53 = vrot.slane %v24508_v22, 9  ;;  %v24510_v27 = vld [vmem:[#allocation132_spill] sm:$0xff]  ;;  %v24511_v36 = vld [vmem:[#allocation19_spill] sm:$0xff]  ;;  %v12435_v29 = vld [vmem:[%s23150_s5 + $0x178] sm:$0xff] }
 0x3fa   :  { %14646 = vmatmul.mubr.msk.f32.gmra.mxu1 %vm7341_vm9, %v21312_v58  ;;  %14672 = vmatpush3.msra.mxu0 %v12406_v38  ;;  %v8907_v13 = vsel %vm7230_vm6, %v24413_v25, %v8906_v39  ;;  %v8919_v31 = vsel %vm7226_vm4, %v24411_v18, %v8918_v43  ;;  %v8931_v4 = vsel %vm7222_vm2, %v24510_v27, %v24509_v9  ;;  %v12172_v7 = vrot.slane %v24511_v36, 9  ;;  %v24512_v39 = vld [vmem:[#allocation114_spill] sm:$0xff]  ;;  %v24513_v19 = vld [vmem:[#allocation55_spill] sm:$0xff] }
 0x3fb   :  { %14727 = vmatprep.subr.mxu1 %v12436_v52  ;;  %14592 = vmatmul.mubr.msk.f32.gmra.mxu0 %vm7341_vm9, %v21312_v58  ;;  %v8913_v38 = vsel %vm7228_vm5, %v24512_v39, %v8912_v37  ;;  %v6246_v43 = vmax.f32 %v24501_v15, %v12148_v45  ;;  %v8925_v18 = vsel %vm7224_vm3, %v24513_v19, %v8924_v24  ;;  %v12404_v58 = vld [vmem:[%s23149_s4 + $0x178] sm:$0xff]  ;;  %v24514_v37 = vld [vmem:[#allocation123_spill] sm:$0xff]  ;;  %v6426_v24 = vmax.f32 %v6234_v59, 0.0 }
 0x3fc   :  { %14648 = vmatprep.mubr.msk.f32.mxu1 %vm7341_vm9, %v21326_v50  ;;  %14673 = vmatprep.subr.mxu0 %v12405_v51  ;;  %v21496_v9 = vsel %vm7234_vm8, %v21451_v28, %v8901_v23  ;;  %v21499_v27 = vrot.slane %v6414_v32, %v18485_v35  ;;  %v8938_v15 = vsel %vm7222_vm2, %v19868_v3, %v24514_v37  ;;  %v12434_v32 = vld [vmem:[%s23150_s5 + $0x170] sm:$0xff] }
 0x3fd   :  { %14728 = vmatpush3.msra.mxu1 %v12436_v52  ;;  %14594 = vmatprep.mubr.msk.f32.mxu0 %vm7341_vm9, %v21326_v50  ;;  %v8908_v45 = vsel %vm7232_vm7, %v20981_v61, %v8907_v13  ;;  %v8920_v19 = vsel %vm7228_vm5, %v24416_v48, %v8919_v31  ;;  %v8932_v23 = vsel %vm7224_vm3, %v24417_v56, %v8931_v4  ;;  %v24515_v37 = vld [vmem:[#allocation9_spill] sm:$0xff]  ;;  %v24516_v13 = vld [vmem:[#allocation38_spill] sm:$0xff] }
 0x3fe   :  { %14674 = vmatpush3.msra.mxu0 %v12405_v51  ;;  %14729 = vmatprep.subr.mxu1 %v12435_v29  ;;  %v8914_v52 = vsel %vm7230_vm6, %v24415_v49, %v8913_v38  ;;  %v6258_v50 = vmax.f32 %v24508_v22, %v12160_v53  ;;  %v8926_v59 = vsel %vm7226_vm4, %v24515_v37, %v8925_v18  ;;  %v12184_v3 = vrot.slane %v24516_v13, 9  ;;  %v12403_v4 = vld [vmem:[%s23149_s4 + $0x170] sm:$0xff]  ;;  %v24517_v38 = vld [vmem:[#allocation80_spill] sm:$0xff] }
 0x3ff   :  { %14675 = vmatprep.subr.mxu0 %v12404_v58  ;;  %14730 = vmatpush3.msra.mxu1 %v12435_v29  ;;  %v6438_v51 = vmax.f32 %v6246_v43, 0.0  ;;  %v6270_v31 = vmax.f32 %v24511_v36, %v12172_v7  ;;  %v8939_v56 = vsel %vm7224_vm3, %v19874_v34, %v8938_v15  ;;  %v8945_v53 = vsel %vm7222_vm2, %v20013_v11, %v24517_v38  ;;  %v24518_v7 = vld [vmem:[#allocation25_spill] sm:$0xff] }
 0x400   :  { %14649 = vmatmul.mubr.msk.f32.gmra.mxu1 %vm7341_vm9, %v21372_v1  ;;  %14676 = vmatpush3.msra.mxu0 %v12404_v58  ;;  %v21534_v18 = vsel %vm7234_vm8, %v21499_v27, %v8908_v45  ;;  %v8921_v29 = vsel %vm7230_vm6, %v24420_v54, %v8920_v19  ;;  %v8933_v36 = vsel %vm7226_vm4, %v24421_v10, %v8932_v23  ;;  %v12196_v43 = vrot.slane %v24518_v7, 9  ;;  %v12433_v58 = vld [vmem:[%s23150_s5 + $0x168] sm:$0xff]  ;;  %v24519_v19 = vld [vmem:[#allocation141_spill] sm:$0xff] }
 0x401   :  { %14731 = vmatprep.subr.mxu1 %v12434_v32  ;;  %14595 = vmatmul.mubr.msk.f32.gmra.mxu0 %vm7341_vm9, %v21372_v1  ;;  %v21547_v15 = vrot.slane %v6426_v24, %v18485_v35  ;;  %v8915_v45 = vsel %vm7232_vm7, %v21024_v44, %v8914_v52  ;;  %v8927_v38 = vsel %vm7228_vm5, %v24519_v19, %v8926_v59  ;;  %v12402_v23 = vld [vmem:[%s23149_s4 + $0x168] sm:$0xff]  ;;  %v6450_v1 = vmax.f32 %v6258_v50, 0.0  ;;  %v24521_v50 = vld [vmem:[#allocation143_spill] sm:$0xff] }
 0x402   :  { %14677 = vmatprep.subr.mxu0 %v12403_v4  ;;  %14732 = vmatpush3.msra.mxu1 %v12434_v32  ;;  %v6282_v11 = vmax.f32 %v24516_v13, %v12184_v3  ;;  %v8940_v34 = vsel %vm7226_vm4, %v19881_v30, %v8939_v56  ;;  %v8946_v24 = vsel %vm7224_vm3, %v20027_v41, %v8945_v53  ;;  %v6462_v59 = vmax.f32 %v6270_v31, 0.0  ;;  %v24523_v53 = vld [vmem:[#allocation144_spill] sm:$0xff]  ;;  %v12478_v31 = vld [vmem:[%s23149_s4 + $0x250] sm:$0xff] }
 0x403   :  { %14735 = vmatprep.mubr.msk.f32.mxu1 %vm7341_vm9, %v21415_v46  ;;  %14678 = vmatpush3.msra.mxu0 %v12403_v4  ;;  %v21564_v52 = vrot.slane %v6438_v51, %v18485_v35  ;;  %v8922_v32 = vsel %vm7232_vm7, %v21055_v40, %v8921_v29  ;;  %v8934_v3 = vsel %vm7228_vm5, %v24424_v47, %v8933_v36  ;;  %v24522_v51 = vld [vmem:[#allocation24_spill] sm:$0xff]  ;;  %v24524_v29 = vld [vmem:[#allocation155_spill] sm:$0xff]  ;;  %v24526_v47 = vld [vmem:[#allocation125_spill] sm:$0xff] }
 0x404   :  { %14681 = vmatprep.mubr.msk.f32.mxu0 %vm7341_vm9, %v21415_v46  ;;  %14733 = vmatprep.subr.mxu1 %v12433_v58  ;;  %v21574_v56 = vsel %vm7234_vm8, %v21547_v15, %v8915_v45  ;;  %v8928_v4 = vsel %vm7230_vm6, %v24521_v50, %v8927_v38  ;;  %v8952_v41 = vsel %vm7222_vm2, %v24523_v53, %v24522_v51  ;;  %v12509_v46 = vld [vmem:[%s23150_s5 + $0x250] sm:$0xff]  ;;  %v24525_v38 = vld [vmem:[#allocation146_spill] sm:$0xff]  ;;  %v12208_v51 = vrot.slane %v24526_v47, 9  ;;  %v24536_v40 = vld [vmem:[#allocation60_spill] sm:$0xff] }
 0x405   :  { %24520 = vst [vmem:[#allocation22_spill] sm:$0xff] %v21564_v52  ;;  %14679 = vmatprep.subr.mxu0 %v12402_v23  ;;  %14734 = vmatpush3.msra.mxu1 %v12433_v58  ;;  %v8941_v36 = vsel %vm7228_vm5, %v24524_v29, %v8940_v34  ;;  %v6294_v45 = vmax.f32 %v24518_v7, %v12196_v43  ;;  %v24528_v50 = vld [vmem:[#allocation34_spill] sm:$0xff]  ;;  %v6474_v7 = vmax.f32 %v6282_v11, 0.0  ;;  %v12477_v43 = vld [vmem:[%s23149_s4 + $0x248] sm:$0xff]  ;;  %v24532_v29 = vld [vmem:[#allocation31_spill] sm:$0xff] }
 0x406   :  { %v8947_v30 = vsel %vm7226_vm4, %v24525_v38, %v8946_v24  ;;  %14680 = vmatpush3.msra.mxu0 %v12402_v23  ;;  %14736 = vmatmul.mubr.msk.f32.vlgmr.msra.gmra.mxu1 %vm7341_vm9, %v21419_v63  ;;  %v21597_v58 = vsel %vm7234_vm8, %v21564_v52, %v8922_v32  ;;  %v21600_v53 = vrot.slane %v6450_v1, %v18485_v35  ;;  %v24529_v23 = vld [vmem:[#allocation93_spill] sm:$0xff]  ;;  %v12508_v11 = vld [vmem:[%s23150_s5 + $0x248] sm:$0xff] }
 0x407   :  { %v8935_v34 = vsel %vm7230_vm6, %v24528_v50, %v8934_v3  ;;  %14682 = vmatmul.mubr.msk.f32.vlgmr.msra.gmra.mxu0 %vm7341_vm9, %v21419_v63  ;;  %14738 = vmatprep.mubr.msk.f32.mxu1 %vm7341_vm9, %v21431_v2  ;;  %v8929_v24 = vsel %vm7232_vm7, %v24529_v23, %v8928_v4  ;;  %v21614_v1 = vrot.slane %v6462_v59, %v18485_v35  ;;  %v24531_v3 = vld [vmem:[#allocation57_spill] sm:$0xff]  ;;  %v24533_v4 = vld [vmem:[#allocation150_spill] sm:$0xff]  ;;  %v6486_v50 = vmax.f32 %v6294_v45, 0.0  ;;  %v24535_v52 = vld [vmem:[#allocation136_spill] sm:$0xff] }
 0x408   :  { %24527 = vst [vmem:[#allocation49_spill] sm:$0xff] %v21600_v53  ;;  %v8953_v32 = vsel %vm7224_vm3, %v24431_v57, %v8952_v41  ;;  %14759 = vmatprep.subr.mxu0 %v12478_v31  ;;  %14813 = vmatprep.subr.mxu1 %v12509_v46  ;;  %v8942_v63 = vsel %vm7230_vm6, %v24433_v16, %v8941_v36  ;;  %v24534_v41 = vld [vmem:[#allocation54_spill] sm:$0xff] }
 0x409   :  { %24530 = vst [vmem:[#allocation53_spill] sm:$0xff] %v21614_v1  ;;  %v8948_v38 = vsel %vm7228_vm5, %v24531_v3, %v8947_v30  ;;  %v8959_v59 = vsel %vm7222_vm2, %v24533_v4, %v24532_v29  ;;  %14684 = vmatprep.mubr.msk.f32.mxu0 %vm7341_vm9, %v21431_v2  ;;  %14760 = vmatpush3.msra.mxu0 %v12478_v31  ;;  %v24538_v2 = vld [vmem:[#allocation148_spill] sm:$0xff]  ;;  %v24542_v3 = vld [vmem:[#allocation151_spill] sm:$0xff] }
 0x40a   :  { %v8936_v57 = vsel %vm7232_vm7, %v24534_v41, %v8935_v34  ;;  %v6306_v23 = vmax.f32 %v24526_v47, %v12208_v51  ;;  %v8966_v36 = vsel %vm7222_vm2, %v24536_v40, %v24535_v52  ;;  %14814 = vmatpush3.msra.mxu1 %v12509_v46  ;;  %14761 = vmatprep.subr.mxu0 %v12477_v43  ;;  %v24539_v34 = vld [vmem:[#allocation117_spill] sm:$0xff]  ;;  %v12476_v52 = vld [vmem:[%s23149_s4 + $0x240] sm:$0xff]  ;;  %v24546_v41 = vld [vmem:[#allocation160_spill] sm:$0xff] }
 0x40b   :  { %v21638_v30 = vsel %vm7234_vm8, %v21600_v53, %v8929_v24  ;;  %v21641_v29 = vrot.slane %v6474_v7, %v18485_v35  ;;  %v8954_v31 = vsel %vm7226_vm4, %v24538_v2, %v8953_v32  ;;  %v12220_v45 = vrot.slane %v24539_v34, 9  ;;  %14739 = vmatmul.mubr.msk.f32.gmra.mxu1 %vm7341_vm9, %v21463_v0  ;;  %14815 = vmatprep.subr.mxu1 %v12508_v11  ;;  %v24540_v46 = vld [vmem:[#allocation29_spill] sm:$0xff]  ;;  %v12507_v32 = vld [vmem:[%s23150_s5 + $0x240] sm:$0xff]  ;;  %v12475_v53 = vld [vmem:[%s23149_s4 + $0x238] sm:$0xff] }
 0x40c   :  { %v8943_v51 = vsel %vm7232_vm7, %v24540_v46, %v8942_v63  ;;  %v24541_v24 = vld [vmem:[#allocation81_spill] sm:$0xff]  ;;  %v8960_v16 = vsel %vm7224_vm3, %v24542_v3, %v8959_v59  ;;  %14685 = vmatmul.mubr.msk.f32.gmra.mxu0 %vm7341_vm9, %v21463_v0  ;;  %14741 = vmatprep.mubr.msk.f32.mxu1 %vm7341_vm9, %v21496_v9  ;;  %v21666_v40 = vsel %vm7234_vm8, %v21614_v1, %v8936_v57  ;;  %v24543_v63 = vld [vmem:[#allocation14_spill] sm:$0xff]  ;;  %v24545_v59 = vld [vmem:[#allocation111_spill] sm:$0xff]  ;;  %v6498_v57 = vmax.f32 %v6306_v23, 0.0 }
 0x40d   :  { %24537 = vst [vmem:[#allocation45_spill] sm:$0xff] %v21641_v29  ;;  %v8949_v7 = vsel %vm7230_vm6, %v24541_v24, %v8948_v38  ;;  %v12232_v46 = vrot.slane %v24543_v63, 9  ;;  %v24544_v38 = vld [vmem:[#allocation153_spill] sm:$0xff]  ;;  %v8973_v0 = vsel %vm7222_vm2, %v24546_v41, %v24545_v59  ;;  %14762 = vmatpush3.msra.mxu0 %v12477_v43  ;;  %14816 = vmatpush3.msra.mxu1 %v12508_v11  ;;  %v24548_v1 = vld [vmem:[#allocation78_spill] sm:$0xff]  ;;  %v24551_v59 = vld [vmem:[#allocation152_spill] sm:$0xff] }
 0x40e   :  { %v8967_v24 = vsel %vm7224_vm3, %v24544_v38, %v8966_v36  ;;  %v21678_v3 = vrot.slane %v6486_v50, %v18485_v35  ;;  %v8955_v4 = vsel %vm7228_vm5, %v24548_v1, %v8954_v31  ;;  %v24549_v2 = vld [vmem:[#allocation101_spill] sm:$0xff]  ;;  %14687 = vmatprep.mubr.msk.f32.mxu0 %vm7341_vm9, %v21496_v9  ;;  %14763 = vmatprep.subr.mxu0 %v12476_v52  ;;  %v12506_v43 = vld [vmem:[%s23150_s5 + $0x238] sm:$0xff]  ;;  %v24550_v50 = vld [vmem:[#allocation127_spill] sm:$0xff] }
 0x40f   :  { %v4618_v36 = vcombine.high %v24549_v2, %v24549_v2  ;;  %v21691_v11 = vsel %vm7234_vm8, %v21641_v29, %v8943_v51  ;;  %v8950_v23 = vsel %vm7232_vm7, %v24550_v50, %v8949_v7  ;;  %v8961_v31 = vsel %vm7226_vm4, %v24551_v59, %v8960_v16  ;;  %v24552_v41 = vld [vmem:[#allocation139_spill] sm:$0xff]  ;;  %14817 = vmatprep.subr.mxu1 %v12507_v32  ;;  %v24553_v1 = vld [vmem:[#allocation154_spill] sm:$0xff]  ;;  %v24554_v47 = vld [vmem:[#allocation161_spill] sm:$0xff] }
 0x410   :  { %24547 = vst [vmem:[#allocation131_spill] sm:$0xff] %v21678_v3  ;;  %v12244_v2 = vrot.slane %v24552_v41, 9  ;;  %14764 = vmatpush3.msra.mxu0 %v12476_v52  ;;  %v6318_v9 = vmax.f32 %v24539_v34, %v12220_v45  ;;  %v8968_v38 = vsel %vm7226_vm4, %v24553_v1, %v8967_v24  ;;  %v8974_v10 = vsel %vm7224_vm3, %v24554_v47, %v8973_v0  ;;  %v24555_v51 = vld [vmem:[#allocation28_spill] sm:$0xff]  ;;  %v24556_v16 = vld [vmem:[#allocation85_spill] sm:$0xff]  ;;  %v24557_v29 = vld [vmem:[#allocation86_spill] sm:$0xff] }
 0x411   :  { %14818 = vmatpush3.msra.mxu1 %v12507_v32  ;;  %14765 = vmatprep.subr.mxu0 %v12475_v53  ;;  %v8956_v7 = vsel %vm7230_vm6, %v24555_v51, %v8955_v4  ;;  %v6330_v50 = vmax.f32 %v24543_v63, %v12232_v46  ;;  %v9446_v59 = vsel %vm7222_vm2, %v24557_v29, %v24556_v16  ;;  %v12474_v34 = vld [vmem:[%s23149_s4 + $0x230] sm:$0xff]  ;;  %v24558_v52 = vld [vmem:[#allocation156_spill] sm:$0xff]  ;;  %v12065_v24 = vrot.slane %v4618_v36, 9  ;;  %v24559_v46 = vld [vmem:[#allocation47_spill] sm:$0xff] }
 0x412   :  { %14742 = vmatmul.mubr.msk.f32.gmra.mxu1 %vm7341_vm9, %v21534_v18  ;;  %14819 = vmatprep.subr.mxu1 %v12506_v43  ;;  %v21715_v45 = vrot.slane %v6498_v57, %v18485_v35  ;;  %v8962_v4 = vsel %vm7228_vm5, %v24558_v52, %v8961_v31  ;;  %v9453_v32 = vsel %vm7222_vm2, %v24463_v33, %v24559_v46  ;;  %v12505_v29 = vld [vmem:[%s23150_s5 + $0x230] sm:$0xff]  ;;  %v24560_v57 = vld [vmem:[#allocation159_spill] sm:$0xff]  ;;  %v24561_v16 = vld [vmem:[#allocation162_spill] sm:$0xff] }
 0x413   :  { %14688 = vmatmul.mubr.msk.f32.gmra.mxu0 %vm7341_vm9, %v21534_v18  ;;  %14744 = vmatprep.mubr.msk.f32.mxu1 %vm7341_vm9, %v21574_v56  ;;  %v21731_v0 = vsel %vm7234_vm8, %v21678_v3, %v8950_v23  ;;  %v8969_v31 = vsel %vm7228_vm5, %v24560_v57, %v8968_v38  ;;  %v8975_v33 = vsel %vm7226_vm4, %v24561_v16, %v8974_v10  ;;  %v12473_v18 = vld [vmem:[%s23149_s4 + $0x228] sm:$0xff]  ;;  %v24562_v46 = vld [vmem:[#allocation18_spill] sm:$0xff]  ;;  %v24563_v47 = vld [vmem:[#allocation87_spill] sm:$0xff]  ;;  %v6522_v3 = vmax.f32 %v6330_v50, 0.0 }
 0x414   :  { %14766 = vmatpush3.msra.mxu0 %v12475_v53  ;;  %14820 = vmatpush3.msra.mxu1 %v12506_v43  ;;  %v8957_v52 = vsel %vm7232_vm7, %v24562_v46, %v8956_v7  ;;  %v6342_v51 = vmax.f32 %v24552_v41, %v12244_v2  ;;  %v9447_v23 = vsel %vm7224_vm3, %v24563_v47, %v9446_v59  ;;  %v12504_v10 = vld [vmem:[%s23150_s5 + $0x228] sm:$0xff]  ;;  %v6510_v53 = vmax.f32 %v6318_v9, 0.0  ;;  %v24564_v38 = vld [vmem:[#allocation133_spill] sm:$0xff]  ;;  %v24567_v59 = vld [vmem:[#allocation163_spill] sm:$0xff] }
 0x415   :  { %14690 = vmatprep.mubr.msk.f32.mxu0 %vm7341_vm9, %v21574_v56  ;;  %14767 = vmatprep.subr.mxu0 %v12474_v34  ;;  %v8963_v43 = vsel %vm7230_vm6, %v24564_v38, %v8962_v4  ;;  %v24565_v16 = vld [vmem:[#allocation97_spill] sm:$0xff]  ;;  %v24566_v41 = vld [vmem:[#allocation164_spill] sm:$0xff]  ;;  %v8976_v56 = vsel %vm7228_vm5, %v24567_v59, %v8975_v33  ;;  %v6163_v2 = vmax.f32 %v4618_v36, %v12065_v24  ;;  %v24569_v9 = vld [vmem:[#allocation62_spill] sm:$0xff] }
 0x416   :  { %v9454_v7 = vsel %vm7224_vm3, %v24565_v16, %v9453_v32  ;;  %14821 = vmatprep.subr.mxu1 %v12505_v29  ;;  %14768 = vmatpush3.msra.mxu0 %v12474_v34  ;;  %v8970_v47 = vsel %vm7230_vm6, %v24566_v41, %v8969_v31  ;;  %v24568_v46 = vld [vmem:[#allocation120_spill] sm:$0xff]  ;;  %v9448_v4 = vsel %vm7226_vm4, %v24569_v9, %v9447_v23  ;;  %v24570_v50 = vld [vmem:[#allocation83_spill] sm:$0xff]  ;;  %v24572_v16 = vld [vmem:[#allocation102_spill] sm:$0xff]  ;;  %v6534_v33 = vmax.f32 %v6342_v51, 0.0 }
 0x417   :  { %v6367_v57 = vmax.f32 %v24568_v46, 0.0  ;;  %14822 = vmatpush3.msra.mxu1 %v12505_v29  ;;  %14769 = vmatprep.subr.mxu0 %v12473_v18  ;;  %v4720_v38 = vcombine.high %v24570_v50, %v24570_v50  ;;  %v24571_v32 = vld [vmem:[#allocation100_spill] sm:$0xff]  ;;  %v12472_v36 = vld [vmem:[%s23149_s4 + $0x220] sm:$0xff]  ;;  %v21773_v24 = vsel %vm7234_vm8, %v21715_v45, %v8957_v52  ;;  %v9455_v46 = vsel %vm7226_vm4, %v24480_v12, %v9454_v7  ;;  %v12471_v12 = vld [vmem:[%s23149_s4 + $0x218] sm:$0xff] }
 0x418   :  { %v9460_v34 = vsel %vm7222_vm2, %v24572_v16, %v24571_v32  ;;  %14745 = vmatmul.mubr.msk.f32.gmra.mxu1 %vm7341_vm9, %v21597_v58  ;;  %14823 = vmatprep.subr.mxu1 %v12504_v10  ;;  %v24573_v29 = vld [vmem:[#allocation104_spill] sm:$0xff]  ;;  %v12503_v23 = vld [vmem:[%s23150_s5 + $0x220] sm:$0xff]  ;;  %v21787_v52 = vrot.slane %v6510_v53, %v18485_v35  ;;  %v21790_v9 = vrot.slane %v6522_v3, %v18485_v35  ;;  %v6355_v7 = vmax.f32 %v6163_v2, 0.0  ;;  %v21803_v32 = vpop.f32.mrf.mxu1  ;;  %v21805_v16 = vpop.f32.mrf.mxu0 }
 0x419   :  { %v8964_v31 = vsel %vm7232_vm7, %v24573_v29, %v8963_v43  ;;  %14691 = vmatmul.mubr.msk.f32.gmra.mxu0 %vm7341_vm9, %v21597_v58  ;;  %14747 = vmatprep.mubr.msk.f32.mxu1 %vm7341_vm9, %v21638_v30  ;;  %v24574_v51 = vld [vmem:[#allocation64_spill] sm:$0xff]  ;;  %v8977_v58 = vsel %vm7230_vm6, %v24483_v55, %v8976_v56  ;;  %v9449_v53 = vsel %vm7228_vm5, %v24379_v20, %v9448_v4  ;;  %v24575_v50 = vld [vmem:[#allocation103_spill] sm:$0xff]  ;;  %v24578_v56 = vld [vmem:[#allocation61_spill] sm:$0xff] }
 0x41a   :  { %v8971_v43 = vsel %vm7232_vm7, %v24574_v51, %v8970_v47  ;;  %14770 = vmatpush3.msra.mxu0 %v12473_v18  ;;  %14824 = vmatpush3.msra.mxu1 %v12504_v10  ;;  %v9461_v3 = vsel %vm7224_vm3, %v24575_v50, %v9460_v34  ;;  %24576 = vst [vmem:[#allocation106_spill] sm:$0xff] %v21803_v32  ;;  %24577 = vst [vmem:[#allocation75_spill] sm:$0xff] %v21805_v16  ;;  %v12502_v18 = vld [vmem:[%s23150_s5 + $0x218] sm:$0xff]  ;;  %v12089_v47 = vrot.slane %v4720_v38, 9  ;;  %v24579_v2 = vld [vmem:[#allocation88_spill] sm:$0xff] }
 0x41b   :  { %14693 = vmatprep.mubr.msk.f32.mxu0 %vm7341_vm9, %v21638_v30  ;;  %14771 = vmatprep.subr.mxu0 %v12472_v36  ;;  %v21814_v10 = vsel %vm7234_vm8, %v21787_v52, %v8964_v31  ;;  %v9456_v20 = vsel %vm7228_vm5, %v24380_v62, %v9455_v46  ;;  %v9467_v4 = vsel %vm7222_vm2, %v24579_v2, %v24578_v56  ;;  %v24580_v50 = vld [vmem:[#allocation137_spill] sm:$0xff] }
 0x41c   :  { %14825 = vmatprep.subr.mxu1 %v12503_v23  ;;  %14772 = vmatpush3.msra.mxu0 %v12472_v36  ;;  %v21823_v30 = vsel %vm7234_vm8, %v21790_v9, %v8971_v43  ;;  %v21826_v34 = vrot.slane %v6534_v33, %v18485_v35  ;;  %v9389_v31 = vrot.slane %v6367_v57, %v18485_v35  ;;  %v24581_v56 = vld [vmem:[#allocation121_spill] sm:$0xff]  ;;  %v21846_v43 = vpop.f32.mrf.mxu1 }
 0x41d   :  { %14826 = vmatpush3.msra.mxu1 %v12503_v23  ;;  %14773 = vmatprep.subr.mxu0 %v12471_v12  ;;  %v8978_v62 = vsel %vm7232_vm7, %v21315_v14, %v8977_v58  ;;  %v9450_v46 = vsel %vm7230_vm6, %v20839_v6, %v9449_v53  ;;  %v9462_v36 = vsel %vm7226_vm4, %v24580_v50, %v9461_v3  ;;  %v12101_v2 = vrot.slane %v24581_v56, 9  ;;  %v12501_v57 = vld [vmem:[%s23150_s5 + $0x210] sm:$0xff]  ;;  %v21848_v58 = vpop.f32.mrf.mxu0  ;;  %v24584_v3 = vld [vmem:[#allocation90_spill] sm:$0xff] }
 0x41e   :  { %14748 = vmatmul.mubr.msk.f32.gmra.mxu1 %vm7341_vm9, %v21666_v40  ;;  %14827 = vmatprep.subr.mxu1 %v12502_v18  ;;  %v9385_v33 = vrot.slane %v6355_v7, %v18485_v35  ;;  %v9457_v23 = vsel %vm7230_vm6, %v24489_v8, %v9456_v20  ;;  %v9468_v6 = vsel %vm7224_vm3, %v24484_v17, %v9467_v4  ;;  %v12470_v7 = vld [vmem:[%s23149_s4 + $0x210] sm:$0xff]  ;;  %v24585_v20 = vld [vmem:[#allocation122_spill] sm:$0xff]  ;;  %v24586_v17 = vld [vmem:[#allocation124_spill] sm:$0xff] }
 0x41f   :  { %24582 = vst [vmem:[#allocation119_spill] sm:$0xff] %v21846_v43  ;;  %24583 = vst [vmem:[#allocation71_spill] sm:$0xff] %v21848_v58  ;;  %14694 = vmatmul.mubr.msk.f32.gmra.mxu0 %vm7341_vm9, %v21666_v40  ;;  %14750 = vmatprep.mubr.msk.f32.mxu1 %vm7341_vm9, %v21691_v11  ;;  %v6187_v53 = vmax.f32 %v4720_v38, %v12089_v47  ;;  %v4822_v8 = vcombine.high %v24584_v3, %v24584_v3  ;;  %v24587_v50 = vld [vmem:[#allocation65_spill] sm:$0xff]  ;;  %v24588_v43 = vld [vmem:[#allocation72_spill] sm:$0xff]  ;;  %v21869_v38 = vpop.f32.mrf.mxu1  ;;  %v21871_v47 = vpop.f32.mrf.mxu0 }
 0x420   :  { %v9474_v4 = vsel %vm7222_vm2, %v24586_v17, %v24585_v20  ;;  %14774 = vmatpush3.msra.mxu0 %v12471_v12  ;;  %14828 = vmatpush3.msra.mxu1 %v12502_v18  ;;  %v9463_v40 = vsel %vm7228_vm5, %v24587_v50, %v9462_v36  ;;  %v24589_v58 = vld [vmem:[#allocation67_spill] sm:$0xff]  ;;  %v4924_v16 = vcombine.high %v24498_v42, %v24498_v42  ;;  %v12500_v12 = vld [vmem:[%s23150_s5 + $0x208] sm:$0xff] }
 0x421   :  { %v9481_v32 = vsel %vm7222_vm2, %v24589_v58, %v24588_v43  ;;  %14696 = vmatprep.mubr.msk.f32.mxu0 %vm7341_vm9, %v21691_v11  ;;  %14829 = vmatprep.subr.mxu1 %v12501_v57  ;;  %v9451_v18 = vsel %vm7232_vm7, %v21340_v21, %v9450_v46  ;;  %v21881_v36 = vmax.f32 %v24581_v56, %v12101_v2  ;;  %v24590_v43 = vld [vmem:[#allocation40_spill] sm:$0xff]  ;;  %v6379_v46 = vmax.f32 %v6187_v53, 0.0  ;;  %v24593_v56 = vld [vmem:[#allocation94_spill] sm:$0xff] }
 0x422   :  { %v9469_v42 = vsel %vm7226_vm4, %v24590_v43, %v9468_v6  ;;  %14775 = vmatprep.subr.mxu0 %v12470_v7  ;;  %14830 = vmatpush3.msra.mxu1 %v12501_v57  ;;  %v12469_v11 = vld [vmem:[%s23149_s4 + $0x208] sm:$0xff]  ;;  %v9458_v58 = vsel %vm7232_vm7, %v24497_v5, %v9457_v23  ;;  %v9464_v2 = vsel %vm7230_vm6, %v24593_v56, %v9463_v40  ;;  %v12113_v57 = vrot.slane %v4822_v8, 9  ;;  %v24594_v6 = vld [vmem:[#allocation15_spill] sm:$0xff]  ;;  %v21917_v40 = vpop.f32.mrf.mxu0 }
 0x423   :  { %v24591_v3 = vld [vmem:[#allocation36_spill] sm:$0xff]  ;;  %14751 = vmatmul.mubr.msk.f32.gmra.mxu1 %vm7341_vm9, %v21731_v0  ;;  %14776 = vmatpush3.msra.mxu0 %v12470_v7  ;;  %v9482_v50 = vsel %vm7224_vm3, %v24594_v6, %v9481_v32  ;;  %v12499_v5 = vld [vmem:[%s23150_s5 + $0x200] sm:$0xff]  ;;  %v21911_v23 = vsel %vm7234_vm8, %v9385_v33, %v9451_v18  ;;  %v24595_v7 = vld [vmem:[#allocation109_spill] sm:$0xff]  ;;  %v21915_v32 = vpop.f32.mrf.mxu1 }
 0x424   :  { %v9475_v20 = vsel %vm7224_vm3, %v24591_v3, %v9474_v4  ;;  %v24592_v17 = vld [vmem:[#allocation68_spill] sm:$0xff]  ;;  %14831 = vmatprep.subr.mxu1 %v12500_v12  ;;  %14697 = vmatmul.mubr.msk.f32.gmra.mxu0 %vm7341_vm9, %v21731_v0  ;;  %v9470_v53 = vsel %vm7228_vm5, %v24595_v7, %v9469_v42  ;;  %v12137_v4 = vrot.slane %v4924_v16, 9  ;;  %24596 = vst [vmem:[#allocation149_spill] sm:$0xff] %v21915_v32  ;;  %v12468_v0 = vld [vmem:[%s23149_s4 + $0x200] sm:$0xff]  ;;  %v24597_v33 = vld [vmem:[#allocation50_spill] sm:$0xff] }
 0x425   :  { %v9488_v21 = vsel %vm7222_vm2, %v24499_v26, %v24592_v17  ;;  %v21908_v26 = vsel %vm7234_vm8, %v21826_v34, %v8978_v62  ;;  %14753 = vmatprep.mubr.msk.f32.mxu1 %vm7341_vm9, %v21773_v24  ;;  %14777 = vmatprep.subr.mxu0 %v12469_v11  ;;  %v21925_v62 = vsel %vm7234_vm8, %v9389_v31, %v9458_v58  ;;  %v24598_v43 = vld [vmem:[#allocation52_spill] sm:$0xff]  ;;  %v24599_v17 = vld [vmem:[#allocation82_spill] sm:$0xff]  ;;  %v24600_v6 = vld [vmem:[#allocation41_spill] sm:$0xff] }
 0x426   :  { %v9476_v18 = vsel %vm7226_vm4, %v24597_v33, %v9475_v20  ;;  %v12125_v42 = vrot.slane %v24598_v43, 9  ;;  %v9489_v3 = vsel %vm7224_vm3, %v24505_v60, %v9488_v21  ;;  %14832 = vmatpush3.msra.mxu1 %v12500_v12  ;;  %14699 = vmatprep.mubr.msk.f32.mxu0 %vm7341_vm9, %v21773_v24  ;;  %v9465_v56 = vsel %vm7232_vm7, %v24599_v17, %v9464_v2  ;;  %v24601_v31 = vld [vmem:[#allocation37_spill] sm:$0xff]  ;;  %v24602_v58 = vld [vmem:[#allocation98_spill] sm:$0xff]  ;;  %v21941_v20 = vpop.f32.mrf.mxu1  ;;  %v21943_v33 = vpop.f32.mrf.mxu0  ;;  %v24604_v21 = vld [vmem:[#allocation140_spill] sm:$0xff] }
 0x427   :  { %v9483_v7 = vsel %vm7226_vm4, %v24600_v6, %v9482_v50  ;;  %v9495_v32 = vsel %vm7222_vm2, %v24602_v58, %v24601_v31  ;;  %24603 = vst [vmem:[#allocation126_spill] sm:$0xff] %v21941_v20  ;;  %14778 = vmatpush3.msra.mxu0 %v12469_v11  ;;  %14833 = vmatprep.subr.mxu1 %v12499_v5  ;;  %v12498_v60 = vld [vmem:[%s23150_s5 + $0x1f8] sm:$0xff]  ;;  %v6391_v12 = vmax.f32 %v21881_v36, 0.0  ;;  %v24605_v11 = vld [vmem:[#allocation43_spill] sm:$0xff] }
 0x428   :  { %v9393_v24 = vrot.slane %v6379_v46, %v18485_v35  ;;  %v9471_v2 = vsel %vm7230_vm6, %v24604_v21, %v9470_v53  ;;  %v6211_v50 = vmax.f32 %v4822_v8, %v12113_v57  ;;  %14779 = vmatprep.subr.mxu0 %v12468_v0  ;;  %14834 = vmatpush3.msra.mxu1 %v12499_v5  ;;  %v12467_v17 = vld [vmem:[%s23149_s4 + $0x1f8] sm:$0xff]  ;;  %v24606_v46 = vld [vmem:[#allocation91_spill] sm:$0xff] }
 0x429   :  { %v9477_v6 = vsel %vm7228_vm5, %v24605_v11, %v9476_v18  ;;  %v6235_v31 = vmax.f32 %v4924_v16, %v12137_v4  ;;  %v9490_v58 = vsel %vm7226_vm4, %v24512_v39, %v9489_v3  ;;  %v12149_v20 = vrot.slane %v24606_v46, 9  ;;  %14754 = vmatmul.mubr.msk.f32.gmra.mxu1 %vm7341_vm9, %v21814_v10  ;;  %14780 = vmatpush3.msra.mxu0 %v12468_v0  ;;  %v24607_v57 = vld [vmem:[#allocation39_spill] sm:$0xff]  ;;  %v12497_v39 = vld [vmem:[%s23150_s5 + $0x1f0] sm:$0xff]  ;;  %v24609_v0 = vld [vmem:[#allocation20_spill] sm:$0xff] }
 0x42a   :  { %v6223_v8 = vmax.f32 %v24598_v43, %v12125_v42  ;;  %v9484_v36 = vsel %vm7228_vm5, %v24413_v25, %v9483_v7  ;;  %v9496_v5 = vsel %vm7224_vm3, %v24607_v57, %v9495_v32  ;;  %14835 = vmatprep.subr.mxu1 %v12498_v60  ;;  %14700 = vmatmul.mubr.msk.f32.gmra.mxu0 %vm7341_vm9, %v21814_v10  ;;  %v24608_v16 = vld [vmem:[#allocation21_spill] sm:$0xff]  ;;  %v24610_v18 = vld [vmem:[#allocation55_spill] sm:$0xff]  ;;  %v21979_v43 = vpop.f32.mrf.mxu1  ;;  %v21981_v32 = vpop.f32.mrf.mxu0  ;;  %v6403_v3 = vmax.f32 %v6211_v50, 0.0 }
 0x42b   :  { %v9472_v53 = vsel %vm7232_vm7, %v24608_v16, %v9471_v2  ;;  %v5026_v4 = vcombine.high %v24508_v22, %v24508_v22  ;;  %v9502_v25 = vsel %vm7222_vm2, %v24610_v18, %v24609_v0  ;;  %14756 = vmatprep.mubr.msk.f32.mxu1 %vm7341_vm9, %v21823_v30  ;;  %14781 = vmatprep.subr.mxu0 %v12467_v17  ;;  %v12466_v10 = vld [vmem:[%s23149_s4 + $0x1f0] sm:$0xff]  ;;  %v24611_v22 = vld [vmem:[#allocation27_spill] sm:$0xff]  ;;  %v6427_v11 = vmax.f32 %v6235_v31, 0.0  ;;  %v24613_v31 = vld [vmem:[#allocation32_spill] sm:$0xff] }
 0x42c   :  { %v9397_v42 = vrot.slane %v6391_v12, %v18485_v35  ;;  %v9478_v7 = vsel %vm7230_vm6, %v24611_v22, %v9477_v6  ;;  %v9491_v21 = vsel %vm7228_vm5, %v24415_v49, %v9490_v58  ;;  %14836 = vmatpush3.msra.mxu1 %v12498_v60  ;;  %14702 = vmatprep.mubr.msk.f32.mxu0 %vm7341_vm9, %v21823_v30  ;;  %v22000_v50 = vpop.f32.mrf.mxu1  ;;  %v22002_v16 = vpop.f32.mrf.mxu0  ;;  %v12496_v49 = vld [vmem:[%s23150_s5 + $0x1e8] sm:$0xff]  ;;  %v24614_v18 = vld [vmem:[#allocation66_spill] sm:$0xff] }
 0x42d   :  { %v9485_v2 = vsel %vm7230_vm6, %v20981_v61, %v9484_v36  ;;  %v6247_v57 = vmax.f32 %v24606_v46, %v12149_v20  ;;  %v9497_v12 = vsel %vm7226_vm4, %v24416_v48, %v9496_v5  ;;  %14782 = vmatpush3.msra.mxu0 %v12467_v17  ;;  %14837 = vmatprep.subr.mxu1 %v12497_v39  ;;  %v6415_v20 = vmax.f32 %v6223_v8, 0.0  ;;  %v12465_v60 = vld [vmem:[%s23149_s4 + $0x1e8] sm:$0xff]  ;;  %v24617_v22 = vld [vmem:[#allocation58_spill] sm:$0xff] }
 0x42e   :  { %v22008_v30 = vsel %vm7234_vm8, %v9393_v24, %v9465_v56  ;;  %v22011_v61 = vsel %vm7234_vm8, %v9397_v42, %v9472_v53  ;;  %v9503_v48 = vsel %vm7224_vm3, %v24515_v37, %v9502_v25  ;;  %14783 = vmatprep.subr.mxu0 %v12466_v10  ;;  %14838 = vmatpush3.msra.mxu1 %v12497_v39  ;;  %v12161_v24 = vrot.slane %v5026_v4, 9  ;;  %v24612_v6 = vld [vmem:[#allocation132_spill] sm:$0xff]  ;;  %v7839_v39 = vpop.f32.mrf.mxu1  ;;  %v7470_v53 = vpop.f32.mrf.mxu0  ;;  %v24616_v42 = vld [vmem:[#allocation26_spill] sm:$0xff] }
 0x42f   :  { %v9479_v17 = vsel %vm7232_vm7, %v21451_v28, %v9478_v7  ;;  %v9492_v56 = vsel %vm7230_vm6, %v21024_v44, %v9491_v21  ;;  %v9509_v58 = vsel %vm7222_vm2, %v24613_v31, %v24612_v6  ;;  %14757 = vmatmul.mubr.msk.f32.gmra.mxu1 %vm7341_vm9, %v21908_v26  ;;  %14784 = vmatpush3.msra.mxu0 %v12466_v10  ;;  %v12495_v44 = vld [vmem:[%s23150_s5 + $0x1e0] sm:$0xff]  ;;  %v6439_v36 = vmax.f32 %v6247_v57, 0.0  ;;  %v24618_v7 = vld [vmem:[#allocation116_spill] sm:$0xff]  ;;  %v24623_v31 = vld [vmem:[#allocation30_spill] sm:$0xff] }
 0x430   :  { %v9401_v37 = vrot.slane %v6403_v3, %v18485_v35  ;;  %v9486_v46 = vsel %vm7232_vm7, %v21499_v27, %v9485_v2  ;;  %v9498_v28 = vsel %vm7228_vm5, %v24420_v54, %v9497_v12  ;;  %14839 = vmatprep.subr.mxu1 %v12496_v49  ;;  %14703 = vmatmul.mubr.msk.f32.gmra.mxu0 %vm7341_vm9, %v21908_v26  ;;  %v12464_v54 = vld [vmem:[%s23149_s4 + $0x1e0] sm:$0xff]  ;;  %v12173_v3 = vrot.slane %v24616_v42, 9  ;;  %v14425_v2 = vpop.f32.mrf.mxu1 }
 0x431   :  { %v9409_v8 = vrot.slane %v6427_v11, %v18485_v35  ;;  %v9504_v5 = vsel %vm7226_vm4, %v24519_v19, %v9503_v48  ;;  %v5128_v27 = vcombine.high %v24516_v13, %v24516_v13  ;;  %14785 = vmatprep.subr.mxu0 %v12465_v60  ;;  %14840 = vmatpush3.msra.mxu1 %v12496_v49  ;;  %v24615_v13 = vld [vmem:[#allocation56_spill] sm:$0xff]  ;;  %v14371_v11 = vpop.f32.mrf.mxu0  ;;  %v24619_v12 = vld [vmem:[#allocation143_spill] sm:$0xff]  ;;  %v24620_v48 = vld [vmem:[#allocation110_spill] sm:$0xff] }
 0x432   :  { %v9405_v26 = vrot.slane %v6415_v20, %v18485_v35  ;;  %v9493_v0 = vsel %vm7232_vm7, %v21547_v15, %v9492_v56  ;;  %v9510_v25 = vsel %vm7224_vm3, %v24614_v18, %v9509_v58  ;;  %14843 = vmatprep.mubr.msk.f32.mxu1 %vm7341_vm9, %v21911_v23  ;;  %14786 = vmatpush3.msra.mxu0 %v12465_v60  ;;  %v12197_v58 = vrot.slane %v24623_v31, 9 }
 0x433   :  { %v9499_v19 = vsel %vm7230_vm6, %v24615_v13, %v9498_v28  ;;  %v6259_v10 = vmax.f32 %v5026_v4, %v12161_v24  ;;  %v9516_v21 = vsel %vm7222_vm2, %v24618_v7, %v24617_v22  ;;  %14789 = vmatprep.mubr.msk.f32.mxu0 %vm7341_vm9, %v21911_v23  ;;  %14841 = vmatprep.subr.mxu1 %v12495_v44  ;;  %v12185_v56 = vrot.slane %v5128_v27, 9  ;;  %v24621_v23 = vld [vmem:[#allocation22_spill] sm:$0xff]  ;;  %v24622_v24 = vld [vmem:[#allocation135_spill] sm:$0xff]  ;;  %v7480_v18 = vpop.f32.mrf.mxu0  ;;  %v24629_v13 = vld [vmem:[#allocation144_spill] sm:$0xff] }
 0x434   :  { %v9480_v15 = vsel %vm7234_vm8, %v9401_v37, %v9479_v17  ;;  %v9487_v57 = vsel %vm7234_vm8, %v9405_v26, %v9486_v46  ;;  %v9505_v49 = vsel %vm7228_vm5, %v24619_v12, %v9504_v5  ;;  %14787 = vmatprep.subr.mxu0 %v12464_v54  ;;  %14842 = vmatpush3.msra.mxu1 %v12495_v44  ;;  %v24624_v37 = vld [vmem:[#allocation125_spill] sm:$0xff]  ;;  %v24626_v5 = vld [vmem:[#allocation142_spill] sm:$0xff]  ;;  %v24631_v7 = vld [vmem:[#allocation155_spill] sm:$0xff] }
 0x435   :  { %v9494_v4 = vsel %vm7234_vm8, %v9409_v8, %v9493_v0  ;;  %v9413_v20 = vrot.slane %v6439_v36, %v18485_v35  ;;  %v9511_v60 = vsel %vm7226_vm4, %v24620_v48, %v9510_v25  ;;  %14788 = vmatpush3.msra.mxu0 %v12464_v54  ;;  %14844 = vmatmul.mubr.msk.f32.vlgmr.msra.gmra.mxu1 %vm7341_vm9, %v21925_v62  ;;  %v6451_v28 = vmax.f32 %v6259_v10, 0.0  ;;  %v24625_v44 = vld [vmem:[#allocation93_spill] sm:$0xff]  ;;  %v7849_v0 = vpop.f32.mrf.mxu1  ;;  %v24628_v25 = vld [vmem:[#allocation34_spill] sm:$0xff] }
 0x436   :  { %v9500_v17 = vsel %vm7232_vm7, %v24621_v23, %v9499_v19  ;;  %v9517_v6 = vsel %vm7224_vm3, %v24622_v24, %v9516_v21  ;;  %v5230_v46 = vcombine.high %v24624_v37, %v24624_v37  ;;  %14790 = vmatmul.mubr.msk.f32.vlgmr.msra.gmra.mxu0 %vm7341_vm9, %v21925_v62  ;;  %14846 = vmatprep.mubr.msk.f32.mxu1 %vm7341_vm9, %v22008_v30  ;;  %v24627_v54 = vld [vmem:[#allocation145_spill] sm:$0xff]  ;;  %v24630_v19 = vld [vmem:[#allocation147_spill] sm:$0xff] }
 0x437   :  { %v9506_v8 = vsel %vm7230_vm6, %v24625_v44, %v9505_v49  ;;  %v6271_v36 = vmax.f32 %v24616_v42, %v12173_v3  ;;  %v9523_v26 = vsel %vm7222_vm2, %v24627_v54, %v24626_v5  ;;  %14792 = vmatprep.mubr.msk.f32.mxu0 %vm7341_vm9, %v22008_v30  ;;  %v9512_v62 = vsel %vm7228_vm5, %v24628_v25, %v9511_v60  ;;  %v24632_v49 = vld [vmem:[#allocation146_spill] sm:$0xff]  ;;  %v24641_v54 = vld [vmem:[#allocation57_spill] sm:$0xff] }
 0x438   :  { %v9530_v10 = vsel %vm7222_vm2, %v24630_v19, %v24629_v13  ;;  %v22096_v22 = vadd.f32 %v21979_v43, %v21981_v32  ;;  %v22100_v42 = vadd.f32 %v22000_v50, %v22002_v16  ;;  %v6283_v3 = vmax.f32 %v5128_v27, %v12185_v56  ;;  %v24636_v56 = vld [vmem:[#allocation49_spill] sm:$0xff]  ;;  %v24640_v44 = vld [vmem:[#allocation158_spill] sm:$0xff]  ;;  %v24645_v19 = vld [vmem:[#allocation160_spill] sm:$0xff] }
 0x439   :  { %v9518_v21 = vsel %vm7226_vm4, %v24631_v7, %v9517_v6  ;;  %v22104_v30 = vadd.f32 %v7839_v39, %v7470_v53  ;;  %v22106_v12 = vadd.f32 %v14425_v2, %v14371_v11  ;;  %14847 = vmatmul.mubr.msk.f32.gmra.mxu1 %vm7341_vm9, %v22011_v61  ;;  %v9524_v48 = vsel %vm7224_vm3, %v24632_v49, %v9523_v26  ;;  %v24633_v39 = vld [vmem:[#allocation148_spill] sm:$0xff]  ;;  %v24634_v2 = vld [vmem:[#allocation150_spill] sm:$0xff]  ;;  %v24635_v11 = vld [vmem:[#allocation151_spill] sm:$0xff] }
 0x43a   :  { %v12209_v43 = vrot.slane %v5230_v46, 9  ;;  %v5332_v32 = vcombine.high %v24543_v63, %v24543_v63  ;;  %v22114_v50 = vadd.f32 %v7849_v0, %v7480_v18  ;;  %14793 = vmatmul.mubr.msk.f32.gmra.mxu0 %vm7341_vm9, %v22011_v61  ;;  %14849 = vmatprep.mubr.msk.f32.mxu1 %vm7341_vm9, %v9480_v15  ;;  %v9501_v16 = vsel %vm7234_vm8, %v9413_v20, %v9500_v17  ;;  %v24637_v61 = vld [vmem:[#allocation54_spill] sm:$0xff]  ;;  %v24638_v6 = vld [vmem:[#allocation60_spill] sm:$0xff]  ;;  %v24639_v20 = vld [vmem:[#allocation153_spill] sm:$0xff] }
 0x43b   :  { %v6463_v27 = vmax.f32 %v6271_v36, 0.0  ;;  %v9531_v53 = vsel %vm7224_vm3, %v24633_v39, %v9530_v10  ;;  %v9537_v60 = vsel %vm7222_vm2, %v24635_v11, %v24634_v2  ;;  %14795 = vmatprep.mubr.msk.f32.mxu0 %vm7341_vm9, %v9480_v15  ;;  %v9417_v63 = vrot.slane %v6451_v28, %v18485_v35  ;;  %v24643_v0 = vld [vmem:[#allocation152_spill] sm:$0xff]  ;;  %v24647_v7 = vld [vmem:[#allocation53_spill] sm:$0xff] }
 0x43c   :  { %v9507_v23 = vsel %vm7232_vm7, %v24636_v56, %v9506_v8  ;;  %v9513_v24 = vsel %vm7230_vm6, %v24637_v61, %v9512_v62  ;;  %v9544_v17 = vsel %vm7222_vm2, %v24639_v20, %v24638_v6  ;;  %v6475_v37 = vmax.f32 %v6283_v3, 0.0  ;;  %v24642_v8 = vld [vmem:[#allocation78_spill] sm:$0xff]  ;;  %v24650_v39 = vld [vmem:[#allocation28_spill] sm:$0xff]  ;;  %v24655_v20 = vld [vmem:[#allocation127_spill] sm:$0xff] }
 0x43d   :  { %v9519_v36 = vsel %vm7228_vm5, %v24640_v44, %v9518_v21  ;;  %v6295_v5 = vmax.f32 %v24623_v31, %v12197_v58  ;;  %v9525_v15 = vsel %vm7226_vm4, %v24641_v54, %v9524_v48  ;;  %14850 = vmatmul.mubr.msk.f32.gmra.mxu1 %vm7341_vm9, %v9487_v57  ;;  %v6307_v28 = vmax.f32 %v5230_v46, %v12209_v43  ;;  %v24644_v31 = vld [vmem:[#allocation69_spill] sm:$0xff]  ;;  %v24651_v2 = vld [vmem:[#allocation156_spill] sm:$0xff] }
 0x43e   :  { %v9532_v26 = vsel %vm7226_vm4, %v24642_v8, %v9531_v53  ;;  %v9538_v18 = vsel %vm7224_vm3, %v24643_v0, %v9537_v60  ;;  %v12233_v25 = vrot.slane %v5332_v32, 9  ;;  %14796 = vmatmul.mubr.msk.f32.gmra.mxu0 %vm7341_vm9, %v9487_v57  ;;  %14852 = vmatprep.mubr.msk.f32.mxu1 %vm7341_vm9, %v9494_v4  ;;  %v9421_v62 = vrot.slane %v6463_v27, %v18485_v35  ;;  %v24646_v46 = vld [vmem:[#allocation161_spill] sm:$0xff]  ;;  %v24656_v44 = vld [vmem:[#allocation16_spill] sm:$0xff] }
 0x43f   :  { %v12221_v58 = vrot.slane %v24644_v31, 9  ;;  %v9545_v13 = vsel %vm7224_vm3, %v24553_v1, %v9544_v17  ;;  %v9551_v10 = vsel %vm7222_vm2, %v24646_v46, %v24645_v19  ;;  %14798 = vmatprep.mubr.msk.f32.mxu0 %vm7341_vm9, %v9494_v4  ;;  %v9508_v3 = vsel %vm7234_vm8, %v9417_v63, %v9507_v23  ;;  %v24648_v21 = vld [vmem:[#allocation29_spill] sm:$0xff]  ;;  %v24652_v63 = vld [vmem:[#allocation159_spill] sm:$0xff]  ;;  %v24653_v23 = vld [vmem:[#allocation162_spill] sm:$0xff] }
 0x440   :  { %v9514_v57 = vsel %vm7232_vm7, %v24647_v7, %v9513_v24  ;;  %v9520_v49 = vsel %vm7230_vm6, %v24648_v21, %v9519_v36  ;;  %v24649_v48 = vld [vmem:[#allocation81_spill] sm:$0xff]  ;;  %v9425_v27 = vrot.slane %v6475_v37, %v18485_v35  ;;  %v6487_v1 = vmax.f32 %v6295_v5, 0.0  ;;  %v24657_v36 = vld [vmem:[#allocation18_spill] sm:$0xff] }
 0x441   :  { %v9526_v43 = vsel %vm7228_vm5, %v24649_v48, %v9525_v15  ;;  %v9533_v53 = vsel %vm7228_vm5, %v24650_v39, %v9532_v26  ;;  %v9539_v4 = vsel %vm7226_vm4, %v24651_v2, %v9538_v18  ;;  %14853 = vmatmul.mubr.msk.f32.gmra.mxu1 %vm7341_vm9, %v9501_v16  ;;  %v6499_v11 = vmax.f32 %v6307_v28, 0.0  ;;  %v24654_v24 = vld [vmem:[#allocation45_spill] sm:$0xff]  ;;  %v24659_v18 = vld [vmem:[#allocation131_spill] sm:$0xff] }
 0x442   :  { %v6331_v60 = vmax.f32 %v5332_v32, %v12233_v25  ;;  %v9546_v56 = vsel %vm7226_vm4, %v24652_v63, %v9545_v13  ;;  %v9552_v61 = vsel %vm7224_vm3, %v24653_v23, %v9551_v10  ;;  %14799 = vmatmul.mubr.msk.f32.gmra.mxu0 %vm7341_vm9, %v9501_v16  ;;  %14855 = vmatprep.mubr.msk.f32.mxu1 %vm7341_vm9, %v9508_v3  ;;  %v12245_v32 = vrot.slane %v24656_v44, 9  ;;  %v24658_v54 = vld [vmem:[#allocation133_spill] sm:$0xff] }
 0x443   :  { %v9521_v6 = vsel %vm7232_vm7, %v24654_v24, %v9520_v49  ;;  %v9527_v17 = vsel %vm7230_vm6, %v24655_v20, %v9526_v43  ;;  %v6319_v37 = vmax.f32 %v24644_v31, %v12221_v58  ;;  %14801 = vmatprep.mubr.msk.f32.mxu0 %vm7341_vm9, %v9508_v3  ;;  %v9534_v5 = vsel %vm7230_vm6, %v24657_v36, %v9533_v53 }
 0x444   :  { %v9540_v16 = vsel %vm7228_vm5, %v24658_v54, %v9539_v4  ;;  %v9515_v15 = vsel %vm7234_vm8, %v9421_v62, %v9514_v57  ;;  %v9429_v28 = vrot.slane %v6487_v1, %v18485_v35  ;;  %v9547_v8 = vsel %vm7228_vm5, %v24566_v41, %v9546_v56 }
 0x445   :  { %v9553_v26 = vsel %vm7226_vm4, %v24567_v59, %v9552_v61  ;;  %14856 = vmatmul.mubr.msk.f32.gmra.mxu1 %vm7341_vm9, %v9515_v15  ;;  %v9522_v0 = vsel %vm7234_vm8, %v9425_v27, %v9521_v6  ;;  %v9528_v25 = vsel %vm7232_vm7, %v24659_v18, %v9527_v17  ;;  %v9433_v31 = vrot.slane %v6499_v11, %v18485_v35  ;;  %v14428_v48 = vpop.f32.mrf.mxu1 }
 0x446   :  { %v6523_v58 = vmax.f32 %v6331_v60, 0.0  ;;  %14802 = vmatmul.mubr.msk.f32.gmra.mxu0 %vm7341_vm9, %v9515_v15  ;;  %14858 = vmatprep.mubr.msk.f32.mxu1 %vm7341_vm9, %v9522_v0  ;;  %v9535_v41 = vsel %vm7232_vm7, %v21715_v45, %v9534_v5  ;;  %v6511_v62 = vmax.f32 %v6319_v37, 0.0  ;;  %v9541_v59 = vsel %vm7230_vm6, %v24573_v29, %v9540_v16 }
 0x447   :  { %v6343_v13 = vmax.f32 %v24656_v44, %v12245_v32  ;;  %14804 = vmatprep.mubr.msk.f32.mxu0 %vm7341_vm9, %v9522_v0  ;;  %v9548_v19 = vsel %vm7230_vm6, %v24574_v51, %v9547_v8  ;;  %v9554_v46 = vsel %vm7228_vm5, %v24483_v55, %v9553_v26  ;;  %v9529_v10 = vsel %vm7234_vm8, %v9429_v28, %v9528_v25  ;;  %v7859_v27 = vpop.f32.mrf.mxu1 }
 0x448   :  { %v9536_v45 = vsel %vm7234_vm8, %v9433_v31, %v9535_v41  ;;  %v9542_v3 = vsel %vm7232_vm7, %v21787_v52, %v9541_v59  ;;  %v9441_v29 = vrot.slane %v6523_v58, %v18485_v35  ;;  %v9437_v51 = vrot.slane %v6511_v62, %v18485_v35 }
 0x449   :  { %14859 = vmatmul.mubr.msk.f32.gmra.mxu1 %vm7341_vm9, %v9529_v10  ;;  %v9549_v55 = vsel %vm7232_vm7, %v21790_v9, %v9548_v19  ;;  %v6535_v7 = vmax.f32 %v6343_v13, 0.0  ;;  %v9555_v57 = vsel %vm7230_vm6, %v21315_v14, %v9554_v46 }
 0x44a   :  { %14805 = vmatmul.mubr.msk.f32.gmra.mxu0 %vm7341_vm9, %v9529_v10  ;;  %14861 = vmatprep.mubr.msk.f32.mxu1 %vm7341_vm9, %v9536_v45  ;;  %v9543_v21 = vsel %vm7234_vm8, %v9437_v51, %v9542_v3  ;;  %v9550_v52 = vsel %vm7234_vm8, %v9441_v29, %v9549_v55  ;;  %v9556_v49 = vsel %vm7232_vm7, %v21826_v34, %v9555_v57 }
 0x44b   :  { %14807 = vmatprep.mubr.msk.f32.mxu0 %vm7341_vm9, %v9536_v45  ;;  %v9445_v9 = vrot.slane %v6535_v7, %v18485_v35  ;;  %v14374_v43 = vpop.f32.mrf.mxu0 }
 0x44c   :  { %v22233_v1 = vadd.f32 %v14428_v48, %v14374_v43 }
 0x44d   :  { %14862 = vmatmul.mubr.msk.f32.gmra.mxu1 %vm7341_vm9, %v9543_v21  ;;  %v9557_v14 = vsel %vm7234_vm8, %v9445_v9, %v9556_v49  ;;  %v7490_v34 = vpop.f32.mrf.mxu0 }
 0x44e   :  { %14808 = vmatmul.mubr.msk.f32.gmra.mxu0 %vm7341_vm9, %v9543_v21  ;;  %14864 = vmatprep.mubr.msk.f32.mxu1 %vm7341_vm9, %v9550_v52  ;;  %v22235_v39 = vadd.f32 %v7859_v27, %v7490_v34 }
 0x44f   :  { %14810 = vmatprep.mubr.msk.f32.mxu0 %vm7341_vm9, %v9550_v52 }
 0x451   :  { %14865 = vmatmul.mubr.msk.f32.gmra.mxu1 %vm7341_vm9, %v9557_v14 }
 0x452   :  { %14811 = vmatmul.mubr.msk.f32.gmra.mxu0 %vm7341_vm9, %v9557_v14 }
 0x457   :  { %v14431_v53 = vpop.f32.mrf.mxu1 }
 0x458   :  { %v14377_v2 = vpop.f32.mrf.mxu0 }
 0x459   :  { %v7869_v4 = vpop.f32.mrf.mxu1  ;;  %v22237_v11 = vadd.f32 %v14431_v53, %v14377_v2 }
 0x45a   :  { %v7500_v60 = vpop.f32.mrf.mxu0 }
 0x45b   :  { %v22239_v63 = vadd.f32 %v7869_v4, %v7500_v60 }
 0x45e   :  { %v14434_v56 = vpop.f32.mrf.mxu1 }
 0x460   :  { %v7879_v61 = vpop.f32.mrf.mxu1 }
 0x461   :  { %v14380_v23 = vpop.f32.mrf.mxu0 }
 0x462   :  { %v22241_v24 = vadd.f32 %v14434_v56, %v14380_v23 }
 0x463   :  { %v7510_v6 = vpop.f32.mrf.mxu0 }
 0x464   :  { %v14521_v20 = vpop.f32.mrf.mxu1  ;;  %v22243_v17 = vadd.f32 %v7879_v61, %v7510_v6 }
 0x466   :  { %v14467_v37 = vpop.f32.mrf.mxu0  ;;  %v8115_v44 = vpop.f32.mrf.mxu1 }
 0x467   :  { %v8121_v32 = vadd.f32 %v14521_v20, %v14467_v37 }
 0x468   :  { %v7970_v36 = vpop.f32.mrf.mxu0  ;;  %v14524_v5 = vpop.f32.mrf.mxu1 }
 0x469   :  { %v8116_v54 = vadd.f32 %v8115_v44, %v7970_v36 }
 0x46a   :  { %v8125_v15 = vpop.f32.mrf.mxu1 }
 0x46d   :  { %v14470_v16 = vpop.f32.mrf.mxu0 }
 0x46e   :  { %v8131_v28 = vadd.f32 %v14524_v5, %v14470_v16 }
 0x46f   :  { %v7980_v8 = vpop.f32.mrf.mxu0 }
 0x470   :  { %v8126_v26 = vadd.f32 %v8125_v15, %v7980_v8  ;;  %v14527_v0 = vpop.f32.mrf.mxu1 }
 0x471   :  { %v14473_v18 = vpop.f32.mrf.mxu0 }
 0x472   :  { %v8141_v25 = vadd.f32 %v14527_v0, %v14473_v18  ;;  %v8135_v31 = vpop.f32.mrf.mxu1 }
 0x473   :  { %v7990_v58 = vpop.f32.mrf.mxu0 }
 0x474   :  { %v8136_v41 = vadd.f32 %v8135_v31, %v7990_v58 }
 0x476   :  { %v14530_v62 = vpop.f32.mrf.mxu1 }
 0x477   :  { %v14476_v59 = vpop.f32.mrf.mxu0 }
 0x478   :  { %v8151_v13 = vadd.f32 %v14530_v62, %v14476_v59  ;;  %v8145_v19 = vpop.f32.mrf.mxu1 }
 0x479   :  { %v8000_v46 = vpop.f32.mrf.mxu0 }
 0x47a   :  { %v8146_v10 = vadd.f32 %v8145_v19, %v8000_v46 }
 0x47e   :  { %v14533_v45 = vpop.f32.mrf.mxu1  ;;  %v14479_v3 = vpop.f32.mrf.mxu0 }
 0x47f   :  { %v8161_v29 = vadd.f32 %v14533_v45, %v14479_v3 }
 0x480   :  { %v8155_v51 = vpop.f32.mrf.mxu1  ;;  %v8010_v55 = vpop.f32.mrf.mxu0 }
 0x481   :  { %v8156_v7 = vadd.f32 %v8155_v51, %v8010_v55 }
 0x482   :  { %v14536_v57 = vpop.f32.mrf.mxu1 }
 0x483   :  { %v14482_v21 = vpop.f32.mrf.mxu0 }
 0x484   :  { %v8171_v52 = vadd.f32 %v14536_v57, %v14482_v21  ;;  %v8165_v49 = vpop.f32.mrf.mxu1 }
 0x485   :  { %v8020_v9 = vpop.f32.mrf.mxu0 }
 0x486   :  { %v8166_v14 = vadd.f32 %v8165_v49, %v8020_v9 }
 0x489   :  { %v14539_v48 = vpop.f32.mrf.mxu1 }
 0x48a   :  { %v14485_v43 = vpop.f32.mrf.mxu0 }
 0x48b   :  { %v8181_v27 = vadd.f32 %v14539_v48, %v14485_v43  ;;  %v8175_v34 = vpop.f32.mrf.mxu1 }
 0x48c   :  { %v8030_v53 = vpop.f32.mrf.mxu0 }
 0x48d   :  { %v22245_v2 = vadd.f32 %v8175_v34, %v8030_v53 }
 0x48f   :  { %v14542_v4 = vpop.f32.mrf.mxu1 }
 0x491   :  { %v14488_v60 = vpop.f32.mrf.mxu0  ;;  %v8185_v23 = vpop.f32.mrf.mxu1 }
 0x492   :  { %v22247_v56 = vadd.f32 %v14542_v4, %v14488_v60  ;;  %v10648_v60 = vld [vmem:[%s23152_s7 + $0x48] sm:$0xff] }
 0x493   :  { %v8040_v61 = vpop.f32.mrf.mxu0  ;;  %14890 = vmatprep.subr.mxu1 %v10648_v60 }
 0x494   :  { %v22249_v6 = vadd.f32 %v8185_v23, %v8040_v61  ;;  %14891 = vmatpush3.msra.mxu1 %v10648_v60 }
 0x496   :  { %v14629_v20 = vpop.f32.mrf.mxu1 }
 0x497   :  { %v22251_v37 = vadd.f32 %v14629_v20, %v8121_v32  ;;  %v22253_v44 = vpop.f32.mrf.mxu0 }
 0x498   :  { %v8677_v36 = vpop.f32.mrf.mxu1 }
 0x499   :  { %v22255_v5 = vadd.f32 %v8677_v36, %v8116_v54  ;;  %v22257_v16 = vpop.f32.mrf.mxu0 }
 0x49b   :  { %v14632_v15 = vpop.f32.mrf.mxu1 }
 0x49c   :  { %v22259_v8 = vadd.f32 %v14632_v15, %v8131_v28  ;;  %v22261_v0 = vpop.f32.mrf.mxu0 }
 0x49d   :  { %v8687_v18 = vpop.f32.mrf.mxu1 }
 0x49e   :  { %v22263_v31 = vadd.f32 %v8687_v18, %v8126_v26  ;;  %v22265_v58 = vpop.f32.mrf.mxu0 }
 0x4a2   :  { %v14635_v62 = vpop.f32.mrf.mxu1 }
 0x4a3   :  { %v22267_v32 = vadd.f32 %v14635_v62, %v8141_v25  ;;  %v22269_v59 = vpop.f32.mrf.mxu0 }
 0x4a4   :  { %v8697_v19 = vpop.f32.mrf.mxu1 }
 0x4a5   :  { %v22271_v54 = vadd.f32 %v8697_v19, %v8136_v41  ;;  %v8520_v46 = vpop.f32.mrf.mxu0  ;;  %v10647_v19 = vld [vmem:[%s23152_s7 + $0x40] sm:$0xff] }
 0x4a6   :  { %v22274_v45 = vadd.f32 %v8520_v46, %v22096_v22  ;;  %14892 = vmatprep.subr.mxu1 %v10647_v19 }
 0x4a7   :  { %14893 = vmatpush3.msra.mxu1 %v10647_v19 }
 0x4a8   :  { %v14638_v28 = vpop.f32.mrf.mxu1 }
 0x4a9   :  { %v22276_v3 = vadd.f32 %v14638_v28, %v8151_v13  ;;  %v14584_v51 = vpop.f32.mrf.mxu0 }
 0x4aa   :  { %v22279_v26 = vadd.f32 %v14584_v51, %v22100_v42  ;;  %v8707_v55 = vpop.f32.mrf.mxu1 }
 0x4ab   :  { %v22281_v57 = vadd.f32 %v8707_v55, %v8146_v10  ;;  %v8530_v25 = vpop.f32.mrf.mxu0 }
 0x4ac   :  { %v22284_v21 = vadd.f32 %v8530_v25, %v22104_v30  ;;  %v12600_v30 = vld [vmem:[%s23152_s7 + $0x98] sm:$0xff] }
 0x4ad   :  { %14867 = vmatprep.subr.mxu0 %v12600_v30 }
 0x4ae   :  { %v14641_v41 = vpop.f32.mrf.mxu1  ;;  %14868 = vmatpush3.msra.mxu0 %v12600_v30 }
 0x4af   :  { %v22286_v49 = vadd.f32 %v14641_v41, %v8161_v29  ;;  %v14587_v9 = vpop.f32.mrf.mxu0 }
 0x4b0   :  { %v22289_v22 = vadd.f32 %v14587_v9, %v22106_v12  ;;  %v8717_v13 = vpop.f32.mrf.mxu1  ;;  %v12598_v9 = vld [vmem:[%s23152_s7 + $0x88] sm:$0xff] }
 0x4b1   :  { %v22291_v48 = vadd.f32 %v8717_v13, %v8156_v7  ;;  %v8540_v43 = vpop.f32.mrf.mxu0 }
 0x4b2   :  { %24660 = vst [vmem:[#allocation73_spill] sm:$0xff] %v22289_v22  ;;  %v22294_v42 = vadd.f32 %v8540_v43, %v22114_v50 }
 0x4b3   :  { %24661 = vst [vmem:[#allocation129_spill] sm:$0xff] %v22291_v48  ;;  %v14644_v10 = vpop.f32.mrf.mxu1  ;;  %v24684_v48 = vld [vmem:[#allocation71_spill] sm:$0xff] }
 0x4b4   :  { %24662 = vst [vmem:[#allocation130_spill] sm:$0xff] %v22294_v42  ;;  %v22299_v34 = vadd.f32 %v14644_v10, %v8171_v52  ;;  %v24682_v42 = vld [vmem:[#allocation75_spill] sm:$0xff] }
 0x4b5   :  { %v14590_v29 = vpop.f32.mrf.mxu0  ;;  %v8727_v12 = vpop.f32.mrf.mxu1 }
 0x4b6   :  { %24663 = vst [vmem:[#allocation79_spill] sm:$0xff] %v22299_v34  ;;  %v22302_v53 = vadd.f32 %v14590_v29, %v22233_v1  ;;  %v22304_v7 = vadd.f32 %v8727_v12, %v8166_v14  ;;  %v10646_v29 = vld [vmem:[%s23152_s7 + $0x38] sm:$0xff]  ;;  %v12597_v12 = vld [vmem:[%s23152_s7 + $0x80] sm:$0xff] }
 0x4b7   :  { %v8550_v4 = vpop.f32.mrf.mxu0  ;;  %14894 = vmatprep.subr.mxu1 %v10646_v29 }
 0x4b8   :  { %24664 = vst [vmem:[#allocation76_spill] sm:$0xff] %v22302_v53  ;;  %24665 = vst [vmem:[#allocation157_spill] sm:$0xff] %v22304_v7  ;;  %v22307_v50 = vadd.f32 %v8550_v4, %v22235_v39  ;;  %14895 = vmatpush3.msra.mxu1 %v10646_v29  ;;  %v12595_v29 = vld [vmem:[%s23152_s7 + $0x70] sm:$0xff]  ;;  %v12592_v53 = vld [vmem:[%s23152_s7 + $0x58] sm:$0xff] }
 0x4b9   :  { %v10641_v7 = vld [vmem:[%s23152_s7 + $0x10] sm:$0xff] }
 0x4ba   :  { %24666 = vst [vmem:[#allocation5_spill] sm:$0xff] %v22307_v50  ;;  %v14647_v23 = vpop.f32.mrf.mxu1  ;;  %v10642_v50 = vld [vmem:[%s23152_s7 + $0x18] sm:$0xff] }
 0x4bb   :  { %v22312_v52 = vadd.f32 %v14647_v23, %v8181_v27  ;;  %v14593_v61 = vpop.f32.mrf.mxu0  ;;  %v12599_v27 = vld [vmem:[%s23152_s7 + $0x90] sm:$0xff] }
 0x4bc   :  { %v22315_v1 = vadd.f32 %v14593_v61, %v22237_v11  ;;  %v22317_v20 = vpop.f32.mrf.mxu1  ;;  %14869 = vmatprep.subr.mxu0 %v12599_v27  ;;  %v10645_v23 = vld [vmem:[%s23152_s7 + $0x30] sm:$0xff]  ;;  %v12596_v61 = vld [vmem:[%s23152_s7 + $0x78] sm:$0xff] }
 0x4bd   :  { %24667 = vst [vmem:[#allocation46_spill] sm:$0xff] %v22312_v52  ;;  %v22319_v14 = vpop.f32.mrf.mxu0  ;;  %14870 = vmatpush3.msra.mxu0 %v12599_v27  ;;  %14896 = vmatprep.subr.mxu1 %v10645_v23  ;;  %v12594_v52 = vld [vmem:[%s23152_s7 + $0x68] sm:$0xff] }
 0x4be   :  { %24668 = vst [vmem:[#allocation17_spill] sm:$0xff] %v22315_v1  ;;  %14871 = vmatprep.subr.mxu0 %v12598_v9  ;;  %14897 = vmatpush3.msra.mxu1 %v10645_v23 }
 0x4bf   :  { %14872 = vmatpush3.msra.mxu0 %v12598_v9  ;;  %v10644_v9 = vld [vmem:[%s23152_s7 + $0x28] sm:$0xff] }
 0x4c0   :  { %v22321_v36 = vpop.f32.mrf.mxu1  ;;  %14873 = vmatprep.subr.mxu0 %v12597_v12  ;;  %14898 = vmatprep.subr.mxu1 %v10644_v9 }
 0x4c1   :  { %v22323_v39 = vpop.f32.mrf.mxu0  ;;  %14874 = vmatpush3.msra.mxu0 %v12597_v12  ;;  %14899 = vmatpush3.msra.mxu1 %v10644_v9  ;;  %v12593_v9 = vld [vmem:[%s23152_s7 + $0x60] sm:$0xff] }
 0x4c2   :  { %v22325_v15 = vpop.f32.mrf.mxu1  ;;  %14875 = vmatprep.subr.mxu0 %v12596_v61 }
 0x4c3   :  { %v22327_v18 = vpop.f32.mrf.mxu0  ;;  %14876 = vmatpush3.msra.mxu0 %v12596_v61  ;;  %v10643_v61 = vld [vmem:[%s23152_s7 + $0x20] sm:$0xff] }
 0x4c4   :  { %14877 = vmatprep.subr.mxu0 %v12595_v29  ;;  %14900 = vmatprep.subr.mxu1 %v10643_v61 }
 0x4c5   :  { %14878 = vmatpush3.msra.mxu0 %v12595_v29  ;;  %14901 = vmatpush3.msra.mxu1 %v10643_v61  ;;  %v12591_v61 = vld [vmem:[%s23152_s7 + $0x50] sm:$0xff] }
 0x4c6   :  { %v22332_v62 = vpop.f32.mrf.mxu1  ;;  %14879 = vmatprep.subr.mxu0 %v12594_v52  ;;  %14902 = vmatprep.subr.mxu1 %v10642_v50 }
 0x4c7   :  { %v22334_v11 = vpop.f32.mrf.mxu0  ;;  %14880 = vmatpush3.msra.mxu0 %v12594_v52  ;;  %14903 = vmatpush3.msra.mxu1 %v10642_v50  ;;  %v10640_v52 = vld [vmem:[%s23152_s7 + $0x8] sm:$0xff] }
 0x4c8   :  { %v22339_v46 = vpop.f32.mrf.mxu1  ;;  %14881 = vmatprep.subr.mxu0 %v12593_v9  ;;  %14904 = vmatprep.subr.mxu1 %v10641_v7  ;;  %v12614_v50 = vld [vmem:[%s23152_s7 + $0xe8] sm:$0xff] }
 0x4c9   :  { %v22341_v28 = vpop.f32.mrf.mxu0  ;;  %14882 = vmatpush3.msra.mxu0 %v12593_v9  ;;  %14905 = vmatpush3.msra.mxu1 %v10641_v7 }
 0x4ca   :  { %14883 = vmatprep.subr.mxu0 %v12592_v53  ;;  %14906 = vmatprep.subr.mxu1 %v10640_v52 }
 0x4cb   :  { %v22343_v51 = vpop.f32.mrf.mxu1  ;;  %14884 = vmatpush3.msra.mxu0 %v12592_v53  ;;  %14907 = vmatpush3.msra.mxu1 %v10640_v52 }
 0x4cc   :  { %v22345_v55 = vpop.f32.mrf.mxu0  ;;  %14885 = vmatprep.subr.mxu0 %v12591_v61 }
 0x4cd   :  { %v22347_v25 = vpop.f32.mrf.mxu1  ;;  %14886 = vmatpush3.msra.mxu0 %v12591_v61  ;;  %v7825_v61 = vadd.f32 %v21869_v38, %v21871_v47 }
 0x4ce   :  { %v22349_v41 = vpop.f32.mrf.mxu0  ;;  %14913 = vmatprep.subr.mxu0 %v12614_v50  ;;  %v24686_v50 = vld [vmem:[#allocation149_spill] sm:$0xff] }
 0x4d2   :  { %v22354_v13 = vpop.f32.mrf.mxu1 }
 0x4d3   :  { %v22356_v43 = vpop.f32.mrf.mxu0 }
 0x4d4   :  { %v22358_v10 = vpop.f32.mrf.mxu1 }
 0x4d5   :  { %v22360_v30 = vpop.f32.mrf.mxu0 }
 0x4d8   :  { %v22368_v4 = vpop.f32.mrf.mxu1 }
 0x4d9   :  { %v22370_v60 = vpop.f32.mrf.mxu0 }
 0x4da   :  { %v22378_v27 = vpop.f32.mrf.mxu1 }
 0x4db   :  { %v22380_v19 = vpop.f32.mrf.mxu0 }
 0x4de   :  { %v22388_v12 = vpop.f32.mrf.mxu1 }
 0x4df   :  { %24669 = vst [vmem:[#allocation33_spill] sm:$0xff] %v22388_v12  ;;  %v22390_v35 = vpop.f32.mrf.mxu0 }
 0x4e0   :  { %24670 = vst [vmem:[#allocation51_spill] sm:$0xff] %v22390_v35  ;;  %v22392_v1 = vpop.f32.mrf.mxu1  ;;  %v24685_v35 = vld [vmem:[#allocation119_spill] sm:$0xff] }
 0x4e1   :  { %24671 = vst [vmem:[#allocation134_spill] sm:$0xff] %v22392_v1  ;;  %v22394_v23 = vpop.f32.mrf.mxu0  ;;  %v7810_v22 = vadd.f32 %v24685_v35, %v24684_v48 }
 0x4e2   :  { %24672 = vst [vmem:[#allocation138_spill] sm:$0xff] %v22394_v23 }
 0x4e3   :  { %v22408_v29 = vpop.f32.mrf.mxu1 }
 0x4e4   :  { %24673 = vst [vmem:[#allocation89_spill] sm:$0xff] %v22408_v29  ;;  %v22416_v34 = vpop.f32.mrf.mxu0 }
 0x4e5   :  { %24674 = vst [vmem:[#allocation12_spill] sm:$0xff] %v22416_v34  ;;  %v22418_v23 = vpop.f32.mrf.mxu1 }
 0x4e6   :  { %24675 = vst [vmem:[#allocation95_spill] sm:$0xff] %v22418_v23  ;;  %v22426_v29 = vpop.f32.mrf.mxu0  ;;  %v10639_v23 = vld [vmem:[%s23152_s7] sm:$0xff] }
 0x4e7   :  { %24676 = vst [vmem:[#allocation77_spill] sm:$0xff] %v22426_v29  ;;  %v22439_v29 = vld [vmem:[%s23152_s7 + $0x138] sm:$0xff]  ;;  %14908 = vmatprep.subr.mxu1 %v10639_v23 }
 0x4e8   :  { %24678 = vst [vmem:[#allocation92_spill] sm:$0xff] %v22439_v29  ;;  %14909 = vmatpush3.msra.mxu1 %v10639_v23  ;;  %v24687_v23 = vld [vmem:[#allocation126_spill] sm:$0xff] }
 0x4e9   :  { %v22434_v9 = vpop.f32.mrf.mxu1  ;;  %14936 = vmatprep.subr.mxu1 %v22439_v29 }
 0x4ea   :  { %24677 = vst [vmem:[#allocation108_spill] sm:$0xff] %v22434_v9  ;;  %v22441_v53 = vpop.f32.mrf.mxu0  ;;  %v24683_v9 = vld [vmem:[#allocation106_spill] sm:$0xff] }
 0x4eb   :  { %24679 = vst [vmem:[#allocation42_spill] sm:$0xff] %v22441_v53  ;;  %v22443_v7 = vpop.f32.mrf.mxu1  ;;  %v7815_v52 = vadd.f32 %v24683_v9, %v24682_v42  ;;  %v7820_v53 = vadd.f32 %v24686_v50, %v21917_v40  ;;  %v8579_v42 = vadd.f32 %v22257_v16, %v7810_v22  ;;  %v8582_v9 = vadd.f32 %v22261_v0, %v7825_v61  ;;  %v24697_v61 = vld [vmem:[#allocation76_spill] sm:$0xff] }
 0x4ec   :  { %24680 = vst [vmem:[#allocation7_spill] sm:$0xff] %v22443_v7  ;;  %v22445_v34 = vpop.f32.mrf.mxu0  ;;  %v7835_v7 = vadd.f32 %v24687_v23, %v21943_v33  ;;  %v8768_v40 = vadd.f32 %v22317_v20, %v22245_v2  ;;  %v8591_v33 = vadd.f32 %v22319_v14, %v22239_v63  ;;  %v22481_v16 = vadd.f32 %v22323_v39, %v22241_v24  ;;  %v24698_v50 = vld [vmem:[#allocation12_spill] sm:$0xff] }
 0x4ed   :  { %24681 = vst [vmem:[#allocation105_spill] sm:$0xff] %v22445_v34  ;;  %v8580_v29 = vadd.f32 %v22253_v44, %v7815_v52  ;;  %v8581_v35 = vadd.f32 %v22265_v58, %v7820_v53  ;;  %v22477_v44 = vadd.f32 %v22321_v36, %v22247_v56  ;;  %v22485_v0 = vadd.f32 %v22325_v15, %v22249_v6 }
 0x4ee   :  { %v8584_v38 = vadd.f32 %v22269_v59, %v7835_v7  ;;  %v22489_v58 = vadd.f32 %v22327_v18, %v22243_v17  ;;  %v9335_v2 = vadd.f32 %v22332_v62, %v22251_v37  ;;  %v9334_v56 = vadd.f32 %v22339_v46, %v22255_v5 }
 0x4ef   :  { %v22450_v1 = vpop.f32.mrf.mxu1  ;;  %v9158_v63 = vadd.f32 %v22334_v11, %v8580_v29  ;;  %v9157_v59 = vadd.f32 %v22341_v28, %v8579_v42  ;;  %v9337_v24 = vadd.f32 %v22343_v51, %v22259_v8  ;;  %v9160_v6 = vadd.f32 %v22345_v55, %v8582_v9  ;;  %v24690_v55 = vld [vmem:[#allocation51_spill] sm:$0xff]  ;;  %v24699_v42 = vld [vmem:[#allocation157_spill] sm:$0xff] }
 0x4f0   :  { %v22460_v34 = vpop.f32.mrf.mxu0  ;;  %v9336_v17 = vadd.f32 %v22347_v25, %v22263_v31  ;;  %v9159_v48 = vadd.f32 %v22349_v41, %v8581_v35  ;;  %v22505_v37 = vadd.f32 %v22354_v13, %v22267_v32  ;;  %v22508_v5 = vadd.f32 %v22356_v43, %v8584_v38  ;;  %v24691_v41 = vld [vmem:[#allocation129_spill] sm:$0xff]  ;;  %v24692_v13 = vld [vmem:[#allocation134_spill] sm:$0xff]  ;;  %v24700_v9 = vld [vmem:[#allocation95_spill] sm:$0xff] }
 0x4f1   :  { %v22463_v12 = vpop.f32.mrf.mxu1  ;;  %v22512_v8 = vadd.f32 %v22358_v10, %v22271_v54  ;;  %v22516_v36 = vadd.f32 %v22360_v30, %v22274_v45  ;;  %v22520_v15 = vadd.f32 %v22368_v4, %v22276_v3  ;;  %v22524_v32 = vadd.f32 %v22370_v60, %v22279_v26  ;;  %v22533_v54 = vld [vmem:[%s23151_s6] ss:$0 sm:$0xff]  ;;  %v24688_v3 = vld [vmem:[#allocation33_spill] sm:$0xff]  ;;  %v24693_v10 = vld [vmem:[#allocation130_spill] sm:$0xff] }
 0x4f2   :  { %v22469_v47 = vpop.f32.mrf.mxu0  ;;  %v22528_v18 = vadd.f32 %v22378_v27, %v22281_v57  ;;  %v22537_v11 = vadd.f32 %v22380_v19, %v22284_v21  ;;  %v22541_v46 = vadd.f32 %v24688_v3, %v22286_v49  ;;  %v24689_v57 = vld [vmem:[#allocation73_spill] sm:$0xff]  ;;  %v22549_v43 = vadd.f32 %v24692_v13, %v24691_v41  ;;  %v24694_v30 = vld [vmem:[#allocation138_spill] sm:$0xff]  ;;  %v24695_v27 = vld [vmem:[#allocation79_spill] sm:$0xff] }
 0x4f3   :  { %v22545_v25 = vadd.f32 %v24690_v55, %v24689_v57  ;;  %v22553_v4 = vadd.f32 %v24694_v30, %v24693_v10  ;;  %v24696_v49 = vld [vmem:[#allocation89_spill] sm:$0xff]  ;;  %v22562_v23 = vadd.f32 %v24698_v50, %v24697_v61  ;;  %v22566_v35 = vadd.f32 %v24700_v9, %v24699_v42  ;;  %v24707_v3 = vld [vmem:[#allocation42_spill] sm:$0xff] }
 0x4f4   :  { %v22557_v19 = vadd.f32 %v24696_v49, %v24695_v27  ;;  %v24701_v38 = vld [vmem:[#allocation5_spill] sm:$0xff] }
 0x4f5   :  { %v14845_v22 = vpop.f32.mrf.mxu1  ;;  %v24709_v10 = vld [vmem:[#allocation105_spill] sm:$0xff] }
 0x4f6   :  { %v9913_v20 = vadd.f32 %v14845_v22, %v9335_v2  ;;  %v14791_v14 = vpop.f32.mrf.mxu0  ;;  %v24702_v2 = vld [vmem:[#allocation77_spill] sm:$0xff]  ;;  %v22587_v30 = vadd.f32 %v24709_v10, %v8591_v33 }
 0x4f7   :  { %v9736_v31 = vadd.f32 %v14791_v14, %v9158_v63  ;;  %v9833_v39 = vpop.f32.mrf.mxu1  ;;  %v22570_v63 = vadd.f32 %v24702_v2, %v24701_v38  ;;  %v24703_v22 = vld [vmem:[#allocation13_spill] sm:$0xff] }
 0x4f8   :  { %v9912_v45 = vadd.f32 %v9833_v39, %v9334_v56  ;;  %v9656_v62 = vpop.f32.mrf.mxu0  ;;  %v24705_v39 = vld [vmem:[#allocation108_spill] sm:$0xff] }
 0x4f9   :  { %v9929_v26 = vmax.f32 %v9736_v31, %v9913_v20  ;;  %v9735_v28 = vadd.f32 %v9656_v62, %v9157_v59  ;;  %v14848_v51 = vpop.f32.mrf.mxu1  ;;  %v24704_v31 = vld [vmem:[#allocation46_spill] sm:$0xff]  ;;  %v24706_v62 = vld [vmem:[#allocation17_spill] sm:$0xff] }
 0x4fa   :  { %v9915_v21 = vadd.f32 %v14848_v51, %v9337_v24  ;;  %v14794_v60 = vpop.f32.mrf.mxu0 }
 0x4fb   :  { %v9952_v29 = vadd.f32 %v22533_v54, %v9929_v26  ;;  %v9928_v53 = vmax.f32 %v9735_v28, %v9912_v45  ;;  %v9738_v7 = vadd.f32 %v14794_v60, %v9160_v6  ;;  %v9843_v52 = vpop.f32.mrf.mxu1  ;;  %v22576_v45 = vadd.f32 %v24705_v39, %v24704_v31  ;;  %v24708_v28 = vld [vmem:[#allocation7_spill] sm:$0xff] }
 0x4fc   :  { %v9914_v56 = vadd.f32 %v9843_v52, %v9336_v17  ;;  %v9666_v59 = vpop.f32.mrf.mxu0  ;;  %v22580_v26 = vadd.f32 %v24707_v3, %v24706_v62  ;;  %v22583_v51 = vadd.f32 %v24708_v28, %v8768_v40  ;;  %v22593_v40 = vadd.f32 %v22450_v1, %v22477_v44 }
 0x4fd   :  { %v10000_v24 = vcombine.high %v9952_v29, %v9952_v29  ;;  %v10007_v20 = vrot.slane %v9952_v29, %v24703_v22  ;;  %v9951_v6 = vadd.f32 %v22533_v54, %v9928_v53  ;;  %v9931_v14 = vmax.f32 %v9738_v7, %v9915_v21 }
 0x4fe   :  { %v9737_v57 = vadd.f32 %v9666_v59, %v9159_v48  ;;  %v22602_v31 = vadd.f32 %v22463_v12, %v22485_v0  ;;  %v22606_v28 = vadd.f32 %v22469_v47, %v22489_v58 }
 0x4ff   :  { %v10014_v17 = vrot.slane %v10000_v24, %v24703_v22  ;;  %v10015_v55 = vcombine.high %v10007_v20, %v10007_v20  ;;  %v12531_v41 = vrot.slane %v10007_v20, 9  ;;  %v9983_v13 = vcombine.high %v9951_v6, %v9951_v6  ;;  %v14851_v24 = vpop.f32.mrf.mxu1 }
 0x500   :  { %v9990_v21 = vrot.slane %v9951_v6, %v24703_v22  ;;  %v9954_v60 = vadd.f32 %v22533_v54, %v9931_v14  ;;  %v9930_v27 = vmax.f32 %v9737_v57, %v9914_v56  ;;  %v14797_v6 = vpop.f32.mrf.mxu0 }
 0x501   :  { %v10016_v49 = vcombine.high %v10014_v17, %v10014_v17  ;;  %v12532_v29 = vrot.slane %v10015_v55, 9  ;;  %v12533_v53 = vrot.slane %v10014_v17, 9  ;;  %v10515_v7 = vmax.f32 %v10007_v20, %v12531_v41 }
 0x502   :  { %v9997_v48 = vrot.slane %v9983_v13, %v24703_v22  ;;  %v9998_v52 = vcombine.high %v9990_v21, %v9990_v21  ;;  %v12527_v61 = vrot.slane %v9990_v21, 9  ;;  %v22598_v20 = vadd.f32 %v22460_v34, %v22481_v16 }
 0x503   :  { %v12534_v50 = vrot.slane %v10016_v49, 9  ;;  %v10516_v33 = vmax.f32 %v10015_v55, %v12532_v29  ;;  %v10517_v42 = vmax.f32 %v10014_v17, %v12533_v53  ;;  %v10579_v9 = vmax.f32 %v10515_v7, 0.0  ;;  %v24710_v55 = vld [vmem:[#allocation35_spill] sm:$0xff] }
 0x504   :  { %v9999_v38 = vcombine.high %v9997_v48, %v9997_v48  ;;  %v12528_v2 = vrot.slane %v9998_v52, 9  ;;  %v12529_v59 = vrot.slane %v9997_v48, 9  ;;  %v10511_v56 = vmax.f32 %v9990_v21, %v12527_v61 }
 0x505   :  { %v10518_v1 = vmax.f32 %v10016_v49, %v12534_v50  ;;  %v10580_v44 = vmax.f32 %v10516_v33, 0.0  ;;  %v10034_v14 = vcombine.high %v9954_v60, %v9954_v60  ;;  %v10581_v39 = vmax.f32 %v10517_v42, 0.0  ;;  %v9676_v42 = vpop.f32.mrf.mxu0 }
 0x506   :  { %v12530_v62 = vrot.slane %v9999_v38, 9  ;;  %v10512_v3 = vmax.f32 %v9998_v52, %v12528_v2  ;;  %v10041_v57 = vrot.slane %v9954_v60, %v24703_v22  ;;  %v9917_v17 = vadd.f32 %v14851_v24, %v22505_v37 }
 0x507   :  { %v9740_v34 = vadd.f32 %v14797_v6, %v22508_v5  ;;  %v10582_v16 = vmax.f32 %v10518_v1, 0.0  ;;  %v22612_v41 = vrot.slane %v10579_v9, %v24710_v55  ;;  %v10513_v13 = vmax.f32 %v9997_v48, %v12529_v59  ;;  %v9853_v48 = vpop.f32.mrf.mxu1 }
 0x508   :  { %v10575_v12 = vmax.f32 %v10511_v56, 0.0  ;;  %v22615_v0 = vrot.slane %v10580_v44, %v24710_v55  ;;  %v10048_v10 = vrot.slane %v10034_v14, %v24703_v22  ;;  %v10049_v21 = vcombine.high %v10041_v57, %v10041_v57 }
 0x509   :  { %v12539_v47 = vrot.slane %v10041_v57, 9  ;;  %v22619_v58 = vrot.slane %v10581_v39, %v24710_v55  ;;  %v10514_v60 = vmax.f32 %v9999_v38, %v12530_v62  ;;  %v10576_v37 = vmax.f32 %v10512_v3, 0.0  ;;  %v14854_v62 = vpop.f32.mrf.mxu1 }
 0x50a   :  { %v9953_v5 = vadd.f32 %v22533_v54, %v9930_v27  ;;  %v10050_v49 = vcombine.high %v10048_v10, %v10048_v10  ;;  %v12540_v29 = vrot.slane %v10049_v21, 9  ;;  %v12541_v53 = vrot.slane %v10048_v10, 9 }
 0x50b   :  { %24711 = vst [vmem:[#allocation48_spill] sm:$0xff] %v22619_v58  ;;  %v10523_v7 = vmax.f32 %v10041_v57, %v12539_v47  ;;  %v10577_v52 = vmax.f32 %v10513_v13, 0.0  ;;  %v9933_v33 = vmax.f32 %v9740_v34, %v9917_v17  ;;  %v22624_v9 = vrot.slane %v10575_v12, %v24710_v55  ;;  %v14800_v13 = vpop.f32.mrf.mxu0 }
 0x50c   :  { %v10017_v61 = vcombine.high %v9953_v5, %v9953_v5  ;;  %v10024_v50 = vrot.slane %v9953_v5, %v24703_v22  ;;  %v12542_v2 = vrot.slane %v10050_v49, 9  ;;  %v10524_v59 = vmax.f32 %v10049_v21, %v12540_v29 }
 0x50d   :  { %v10525_v38 = vmax.f32 %v10048_v10, %v12541_v53  ;;  %v9956_v6 = vadd.f32 %v22533_v54, %v9933_v33  ;;  %v22629_v1 = vrot.slane %v10582_v16, %v24710_v55  ;;  %v10578_v44 = vmax.f32 %v10514_v60, 0.0  ;;  %v9863_v33 = vpop.f32.mrf.mxu1 }
 0x50e   :  { %v10031_v56 = vrot.slane %v10017_v61, %v24703_v22  ;;  %v10032_v27 = vcombine.high %v10024_v50, %v10024_v50  ;;  %v12535_v24 = vrot.slane %v10024_v50, 9  ;;  %v22632_v14 = vrot.slane %v10576_v37, %v24710_v55 }
 0x50f   :  { %24712 = vst [vmem:[#allocation107_spill] sm:$0xff] %v22629_v1  ;;  %v10587_v39 = vmax.f32 %v10523_v7, 0.0  ;;  %v22634_v12 = vmax.f32 %v10050_v49, %v12542_v2  ;;  %v10588_v10 = vmax.f32 %v10524_v59, 0.0  ;;  %v10589_v21 = vmax.f32 %v10525_v38, 0.0  ;;  %v9686_v38 = vpop.f32.mrf.mxu0 }
 0x510   :  { %v10033_v3 = vcombine.high %v10031_v56, %v10031_v56  ;;  %v12536_v57 = vrot.slane %v10032_v27, 9  ;;  %v12537_v17 = vrot.slane %v10031_v56, 9  ;;  %v10519_v34 = vmax.f32 %v10024_v50, %v12535_v24 }
 0x511   :  { %24713 = vst [vmem:[#allocation128_spill] sm:$0xff] %v22634_v12  ;;  %v10068_v47 = vcombine.high %v9956_v6, %v9956_v6  ;;  %v10075_v60 = vrot.slane %v9956_v6, %v24703_v22  ;;  %v9916_v7 = vadd.f32 %v9853_v48, %v22512_v8  ;;  %v9739_v61 = vadd.f32 %v9676_v42, %v22516_v36 }
 0x512   :  { %v12538_v5 = vrot.slane %v10033_v3, 9  ;;  %v10520_v29 = vmax.f32 %v10032_v27, %v12536_v57  ;;  %v10521_v16 = vmax.f32 %v10031_v56, %v12537_v17  ;;  %v10583_v53 = vmax.f32 %v10519_v34, 0.0  ;;  %v14857_v57 = vpop.f32.mrf.mxu1 }
 0x513   :  { %v10082_v37 = vrot.slane %v10068_v47, %v24703_v22  ;;  %v22641_v50 = vrot.slane %v10577_v52, %v24710_v55  ;;  %v22644_v49 = vrot.slane %v10578_v44, %v24710_v55  ;;  %v22647_v56 = vrot.slane %v10587_v39, %v24710_v55 }
 0x514   :  { %v10522_v2 = vmax.f32 %v10033_v3, %v12538_v5  ;;  %v10584_v59 = vmax.f32 %v10520_v29, 0.0  ;;  %v10585_v27 = vmax.f32 %v10521_v16, 0.0  ;;  %v10083_v24 = vcombine.high %v10075_v60, %v10075_v60  ;;  %v14803_v5 = vpop.f32.mrf.mxu0 }
 0x515   :  { %24714 = vst [vmem:[#allocation8_spill] sm:$0xff] %v22641_v50  ;;  %24715 = vst [vmem:[#allocation23_spill] sm:$0xff] %v22644_v49  ;;  %v22649_v6 = vcombine.high %v10082_v37, %v10082_v37  ;;  %v22653_v36 = vrot.slane %v10588_v10, %v24710_v55  ;;  %v22656_v48 = vrot.slane %v10589_v21, %v24710_v55  ;;  %v12547_v3 = vrot.slane %v10075_v60, 9 }
 0x516   :  { %v9932_v52 = vmax.f32 %v9739_v61, %v9916_v7  ;;  %v10586_v42 = vmax.f32 %v10522_v2, 0.0  ;;  %v22659_v44 = vrot.slane %v10583_v53, %v24710_v55  ;;  %v12549_v39 = vrot.slane %v10082_v37, 9 }
 0x517   :  { %24716 = vst [vmem:[#allocation44_spill] sm:$0xff] %v22656_v48  ;;  %v22662_v17 = vrot.slane %v10584_v59, %v24710_v55  ;;  %v9919_v47 = vadd.f32 %v14854_v62, %v22520_v15  ;;  %v9742_v10 = vadd.f32 %v14800_v13, %v22524_v32  ;;  %v22668_v21 = vrot.slane %v10585_v27, %v24710_v55  ;;  %v9873_v13 = vpop.f32.mrf.mxu1 }
 0x518   :  { %v9955_v34 = vadd.f32 %v22533_v54, %v9932_v52  ;;  %v12548_v29 = vrot.slane %v10083_v24, 9  ;;  %v9918_v53 = vadd.f32 %v9863_v33, %v22528_v18  ;;  %v9741_v59 = vadd.f32 %v9686_v38, %v22537_v11 }
 0x519   :  { %24717 = vst [vmem:[#allocation115_spill] sm:$0xff] %v22668_v21  ;;  %v9935_v2 = vmax.f32 %v9742_v10, %v9919_v47  ;;  %v22674_v52 = vmax.f32 %v10075_v60, %v12547_v3  ;;  %v22676_v15 = vmax.f32 %v10082_v37, %v12549_v39  ;;  %v9921_v32 = vadd.f32 %v14857_v57, %v22541_v46  ;;  %v9696_v37 = vpop.f32.mrf.mxu0 }
 0x51a   :  { %v10051_v7 = vcombine.high %v9955_v34, %v9955_v34  ;;  %v10058_v61 = vrot.slane %v9955_v34, %v24703_v22  ;;  %v9744_v62 = vadd.f32 %v14803_v5, %v22545_v25  ;;  %v22683_v33 = vrot.slane %v10586_v42, %v24710_v55  ;;  %v14860_v5 = vpop.f32.mrf.mxu1 }
 0x51b   :  { %24718 = vst [vmem:[#allocation63_spill] sm:$0xff] %v22676_v15  ;;  %v9958_v18 = vadd.f32 %v22533_v54, %v9935_v2  ;;  %v22685_v34 = vmax.f32 %v10083_v24, %v12548_v29  ;;  %v9934_v11 = vmax.f32 %v9741_v59, %v9918_v53  ;;  %v9920_v24 = vadd.f32 %v9873_v13, %v22549_v43  ;;  %v14806_v59 = vpop.f32.mrf.mxu0 }
 0x51c   :  { %v10065_v27 = vrot.slane %v10051_v7, %v24703_v22  ;;  %v10066_v8 = vcombine.high %v10058_v61, %v10058_v61  ;;  %v12543_v16 = vrot.slane %v10058_v61, 9  ;;  %24719 = vst [vmem:[#allocation84_spill] sm:$0xff] %v22683_v33  ;;  %v9937_v60 = vmax.f32 %v9744_v62, %v9921_v32 }
 0x51d   :  { %v10102_v57 = vcombine.high %v9958_v18, %v9958_v18  ;;  %v9957_v47 = vadd.f32 %v22533_v54, %v9934_v11  ;;  %v22691_v42 = vrot.slane %v9958_v18, %v24703_v22  ;;  %v9743_v29 = vadd.f32 %v9696_v37, %v22553_v4 }
 0x51e   :  { %v10067_v38 = vcombine.high %v10065_v27, %v10065_v27  ;;  %v12544_v3 = vrot.slane %v10066_v8, 9  ;;  %v12545_v46 = vrot.slane %v10065_v27, 9  ;;  %v10527_v39 = vmax.f32 %v10058_v61, %v12543_v16 }
 0x51f   :  { %v9960_v10 = vadd.f32 %v22533_v54, %v9937_v60  ;;  %v10085_v61 = vcombine.high %v9957_v47, %v9957_v47  ;;  %v22702_v11 = vrot.slane %v10102_v57, %v24703_v22  ;;  %v9923_v18 = vadd.f32 %v14860_v5, %v22557_v19 }
 0x520   :  { %v12546_v7 = vrot.slane %v10067_v38, 9  ;;  %v22695_v53 = vmax.f32 %v10066_v8, %v12544_v3  ;;  %v22697_v2 = vmax.f32 %v10065_v27, %v12545_v46  ;;  %v10591_v16 = vmax.f32 %v10527_v39, 0.0  ;;  %v9883_v46 = vpop.f32.mrf.mxu1  ;;  %v9706_v27 = vpop.f32.mrf.mxu0 }
 0x521   :  { %v10092_v43 = vrot.slane %v9957_v47, %v24703_v22  ;;  %v10136_v4 = vcombine.high %v9960_v10, %v9960_v10  ;;  %v10143_v8 = vrot.slane %v9960_v10, %v24703_v22  ;;  %v22711_v13 = vcombine.high %v22691_v42, %v22691_v42 }
 0x522   :  { %24720 = vst [vmem:[#allocation99_spill] sm:$0xff] %v22697_v2  ;;  %v22705_v60 = vmax.f32 %v10067_v38, %v12546_v7  ;;  %v9936_v37 = vmax.f32 %v9743_v29, %v9920_v24  ;;  %v9746_v3 = vadd.f32 %v14806_v59, %v22562_v23  ;;  %v22718_v38 = vrot.slane %v10591_v16, %v24710_v55  ;;  %v14863_v2 = vpop.f32.mrf.mxu1 }
 0x523   :  { %v22721_v57 = vrot.slane %v10085_v61, %v24703_v22  ;;  %v10150_v47 = vrot.slane %v10136_v4, %v24703_v22  ;;  %v10151_v10 = vcombine.high %v10143_v8, %v10143_v8  ;;  %v12563_v5 = vrot.slane %v10143_v8, 9 }
 0x524   :  { %24721 = vst [vmem:[#allocation10_spill] sm:$0xff] %v22705_v60  ;;  %v9959_v7 = vadd.f32 %v22533_v54, %v9936_v37  ;;  %v12551_v23 = vrot.slane %v10092_v43, 9  ;;  %v9939_v29 = vmax.f32 %v9746_v3, %v9923_v18  ;;  %v22727_v59 = vadd.f32 %v9883_v46, %v22566_v35  ;;  %v9893_v12 = vpop.f32.mrf.mxu1 }
 0x525   :  { %v10152_v62 = vcombine.high %v10150_v47, %v10150_v47  ;;  %v12564_v19 = vrot.slane %v10151_v10, 9  ;;  %v12565_v16 = vrot.slane %v10150_v47, 9  ;;  %v10547_v32 = vmax.f32 %v10143_v8, %v12563_v5 }
 0x526   :  { %v22729_v39 = vcombine.high %v10092_v43, %v10092_v43  ;;  %v10119_v61 = vcombine.high %v9959_v7, %v9959_v7  ;;  %v10126_v4 = vrot.slane %v9959_v7, %v24703_v22  ;;  %v9962_v25 = vadd.f32 %v22533_v54, %v9939_v29 }
 0x527   :  { %v12566_v37 = vrot.slane %v10152_v62, 9  ;;  %v10548_v48 = vmax.f32 %v10151_v10, %v12564_v19  ;;  %v10549_v24 = vmax.f32 %v10150_v47, %v12565_v16  ;;  %v10611_v15 = vmax.f32 %v10547_v32, 0.0 }
 0x528   :  { %v22735_v35 = vcombine.high %v22721_v57, %v22721_v57  ;;  %v10133_v18 = vrot.slane %v10119_v61, %v24703_v22  ;;  %v10134_v3 = vcombine.high %v10126_v4, %v10126_v4  ;;  %v12559_v8 = vrot.slane %v10126_v4, 9 }
 0x529   :  { %v22738_v46 = vmax.f32 %v10092_v43, %v12551_v23  ;;  %v10550_v5 = vmax.f32 %v10152_v62, %v12566_v37  ;;  %v10170_v21 = vcombine.high %v9962_v25, %v9962_v25  ;;  %v9745_v7 = vadd.f32 %v9706_v27, %v22570_v63  ;;  %v14809_v23 = vpop.f32.mrf.mxu0 }
 0x52a   :  { %v10135_v29 = vcombine.high %v10133_v18, %v10133_v18  ;;  %v12560_v58 = vrot.slane %v10134_v3, 9  ;;  %v12561_v50 = vrot.slane %v10133_v18, 9  ;;  %v10543_v19 = vmax.f32 %v10126_v4, %v12559_v8 }
 0x52b   :  { %v10612_v47 = vmax.f32 %v10548_v48, 0.0  ;;  %v10613_v32 = vmax.f32 %v10549_v24, 0.0  ;;  %v10889_v10 = vrot.slane %v10611_v15, %v24710_v55  ;;  %v10177_v16 = vrot.slane %v9962_v25, %v24703_v22 }
 0x52c   :  { %v12562_v61 = vrot.slane %v10135_v29, 9  ;;  %v10544_v33 = vmax.f32 %v10134_v3, %v12560_v58  ;;  %v10545_v1 = vmax.f32 %v10133_v18, %v12561_v50  ;;  %v10607_v43 = vmax.f32 %v10543_v19, 0.0  ;;  %v9716_v3 = vpop.f32.mrf.mxu0 }
 0x52d   :  { %v10614_v62 = vmax.f32 %v10550_v5, 0.0  ;;  %v10184_v37 = vrot.slane %v10170_v21, %v24703_v22  ;;  %v10185_v63 = vcombine.high %v10177_v16, %v10177_v16  ;;  %v12571_v27 = vrot.slane %v10177_v16, 9 }
 0x52e   :  { %v10546_v49 = vmax.f32 %v10135_v29, %v12562_v61  ;;  %v10608_v60 = vmax.f32 %v10544_v33, 0.0  ;;  %v10609_v4 = vmax.f32 %v10545_v1, 0.0  ;;  %v10885_v48 = vrot.slane %v10607_v43, %v24710_v55 }
 0x52f   :  { %v10715_v15 = vrot.slane %v10612_v47, %v24710_v55  ;;  %v10186_v24 = vcombine.high %v10184_v37, %v10184_v37  ;;  %v12572_v25 = vrot.slane %v10185_v63, 9  ;;  %v12573_v8 = vrot.slane %v10184_v37, 9 }
 0x530   :  { %v11073_v58 = vrot.slane %v10613_v32, %v24710_v55  ;;  %v10711_v50 = vrot.slane %v10608_v60, %v24710_v55  ;;  %v22749_v18 = vsel %vm7222_vm2, %v10889_v10, %v10885_v48  ;;  %v11069_v21 = vrot.slane %v10609_v4, %v24710_v55 }
 0x531   :  { %v10610_v33 = vmax.f32 %v10546_v49, 0.0  ;;  %v12574_v5 = vrot.slane %v10186_v24, 9  ;;  %v10555_v29 = vmax.f32 %v10177_v16, %v12571_v27  ;;  %v12552_v19 = vrot.slane %v22729_v39, 9  ;;  %v14866_v49 = vpop.f32.mrf.mxu1 }
 0x532   :  { %v22755_v47 = vsel %vm7222_vm2, %v10715_v15, %v10711_v50  ;;  %v22758_v32 = vsel %vm7222_vm2, %v11073_v58, %v11069_v21  ;;  %v9938_v60 = vmax.f32 %v9745_v7, %v22727_v59  ;;  %v10599_v10 = vmax.f32 %v22738_v46, 0.0  ;;  %v14812_v58 = vpop.f32.mrf.mxu0 }
 0x533   :  { %v22763_v61 = vrot.slane %v10614_v62, %v24710_v55  ;;  %v10556_v43 = vmax.f32 %v10185_v63, %v12572_v25  ;;  %v10557_v4 = vmax.f32 %v10184_v37, %v12573_v8  ;;  %v9925_v27 = vadd.f32 %v14863_v2, %v22576_v45 }
 0x534   :  { %v9961_v16 = vadd.f32 %v22533_v54, %v9938_v60  ;;  %v9748_v48 = vadd.f32 %v14809_v23, %v22580_v26  ;;  %v9924_v15 = vadd.f32 %v9893_v12, %v22583_v51  ;;  %v22770_v50 = vrot.slane %v10610_v33, %v24710_v55 }
 0x535   :  { %v22772_v59 = vmax.f32 %v10186_v24, %v12574_v5  ;;  %v10619_v7 = vmax.f32 %v10555_v29, 0.0  ;;  %v9747_v62 = vadd.f32 %v9716_v3, %v22587_v30  ;;  %v22777_v8 = vadd.f32 %v14866_v49, %v22593_v40 }
 0x536   :  { %v10153_v63 = vcombine.high %v9961_v16, %v9961_v16  ;;  %v10160_v37 = vrot.slane %v9961_v16, %v24703_v22  ;;  %v9941_v25 = vmax.f32 %v9748_v48, %v9925_v27  ;;  %v10620_v45 = vmax.f32 %v10556_v43, 0.0 }
 0x537   :  { %v10621_v26 = vmax.f32 %v10557_v4, 0.0  ;;  %v9940_v2 = vmax.f32 %v9747_v62, %v9924_v15  ;;  %v22780_v51 = vadd.f32 %v14812_v58, %v22598_v20  ;;  %v10622_v30 = vmax.f32 %v22772_v59, 0.0 }
 0x538   :  { %v10167_v12 = vrot.slane %v10153_v63, %v24703_v22  ;;  %v10168_v23 = vcombine.high %v10160_v37, %v10160_v37  ;;  %v12567_v24 = vrot.slane %v10160_v37, 9  ;;  %v9964_v21 = vadd.f32 %v22533_v54, %v9941_v25  ;;  %v9903_v25 = vpop.f32.mrf.mxu1 }
 0x539   :  { %v10897_v3 = vrot.slane %v10619_v7, %v24710_v55  ;;  %v9963_v33 = vadd.f32 %v22533_v54, %v9940_v2  ;;  %v9943_v40 = vmax.f32 %v22780_v51, %v22777_v8  ;;  %v22790_v43 = vrot.slane %v10620_v45, %v24710_v55 }
 0x53a   :  { %v10169_v5 = vcombine.high %v10167_v12, %v10167_v12  ;;  %v12568_v29 = vrot.slane %v10168_v23, 9  ;;  %v12569_v60 = vrot.slane %v10167_v12, 9  ;;  %v10551_v20 = vmax.f32 %v10160_v37, %v12567_v24  ;;  %v9726_v37 = vpop.f32.mrf.mxu0 }
 0x53b   :  { %v10204_v4 = vcombine.high %v9964_v21, %v9964_v21  ;;  %v10211_v49 = vrot.slane %v9964_v21, %v24703_v22  ;;  %v10187_v16 = vcombine.high %v9963_v33, %v9963_v33  ;;  %v22794_v27 = vrot.slane %v10621_v26, %v24710_v55 }
 0x53c   :  { %v12570_v48 = vrot.slane %v10169_v5, 9  ;;  %v10552_v15 = vmax.f32 %v10168_v23, %v12568_v29  ;;  %v10615_v58 = vmax.f32 %v10551_v20, 0.0  ;;  %v10553_v59 = vmax.f32 %v10167_v12, %v12569_v60 }
 0x53d   :  { %v10218_v7 = vrot.slane %v10204_v4, %v24703_v22  ;;  %v10219_v62 = vcombine.high %v10211_v49, %v10211_v49  ;;  %v12579_v63 = vrot.slane %v10211_v49, 9  ;;  %v10194_v2 = vrot.slane %v9963_v33, %v24703_v22 }
 0x53e   :  { %v10616_v8 = vmax.f32 %v10552_v15, 0.0  ;;  %v10893_v45 = vrot.slane %v10615_v58, %v24710_v55  ;;  %v10201_v51 = vrot.slane %v10187_v16, %v24703_v22  ;;  %v10554_v24 = vmax.f32 %v10169_v5, %v12570_v48 }
 0x53f   :  { %v10220_v26 = vcombine.high %v10218_v7, %v10218_v7  ;;  %v12580_v21 = vrot.slane %v10219_v62, 9  ;;  %v10563_v1 = vmax.f32 %v10211_v49, %v12579_v63  ;;  %v9926_v29 = vadd.f32 %v9903_v25, %v22602_v31 }
 0x540   :  { %v10719_v23 = vrot.slane %v10616_v8, %v24710_v55  ;;  %v10922_v12 = vsel %vm7224_vm3, %v10893_v45, %v22749_v18  ;;  %v9749_v60 = vadd.f32 %v9726_v37, %v22606_v28  ;;  %v10617_v20 = vmax.f32 %v10553_v59, 0.0 }
 0x541   :  { %v12581_v4 = vrot.slane %v10218_v7, 9  ;;  %v12582_v15 = vrot.slane %v10220_v26, 9  ;;  %v10564_v58 = vmax.f32 %v10219_v62, %v12580_v21  ;;  %v10202_v5 = vcombine.high %v10194_v2, %v10194_v2 }
 0x542   :  { %v22807_v33 = vsel %vm7224_vm3, %v10719_v23, %v22755_v47  ;;  %v10203_v16 = vcombine.high %v10201_v51, %v10201_v51  ;;  %v24722_v49 = vrot.slane %v22691_v42, 9  ;;  %v10618_v63 = vmax.f32 %v10554_v24, 0.0 }
 0x543   :  { %v22812_v18 = vmax.f32 %v10220_v26, %v12582_v15  ;;  %v10627_v31 = vmax.f32 %v10563_v1, 0.0  ;;  %v10628_v25 = vmax.f32 %v10564_v58, 0.0  ;;  %v12575_v28 = vrot.slane %v10194_v2, 9 }
 0x544   :  { %v10539_v48 = vmax.f32 %v22691_v42, %v24722_v49  ;;  %v12576_v59 = vrot.slane %v10202_v5, 9  ;;  %v12577_v37 = vrot.slane %v10201_v51, 9  ;;  %v12578_v8 = vrot.slane %v10203_v16, 9 }
 0x545   :  { %v22815_v62 = vrot.slane %v10622_v30, %v24710_v55  ;;  %v22818_v47 = vrot.slane %v10617_v20, %v24710_v55  ;;  %v22820_v45 = vmax.f32 %v10218_v7, %v12581_v4  ;;  %v10923_v21 = vsel %vm7226_vm4, %v10897_v3, %v10922_v12 }
 0x546   :  { %v10559_v42 = vmax.f32 %v10194_v2, %v12575_v28  ;;  %v10560_v24 = vmax.f32 %v10202_v5, %v12576_v59  ;;  %v10561_v26 = vmax.f32 %v10201_v51, %v12577_v37  ;;  %v10562_v23 = vmax.f32 %v10203_v16, %v12578_v8 }
 0x547   :  { %v22824_v1 = vrot.slane %v10618_v63, %v24710_v55  ;;  %v22827_v15 = vrot.slane %v10627_v31, %v24710_v55  ;;  %v9966_v30 = vadd.f32 %v22533_v54, %v9943_v40  ;;  %v9942_v58 = vmax.f32 %v9749_v60, %v9926_v29 }
 0x548   :  { %v10630_v20 = vmax.f32 %v22812_v18, 0.0  ;;  %v22832_v7 = vrot.slane %v10628_v25, %v24710_v55  ;;  %v10623_v4 = vmax.f32 %v10559_v42, 0.0  ;;  %v10603_v3 = vmax.f32 %v10539_v48, 0.0  ;;  %v12610_v18 = vld [vmem:[%s23152_s7 + $0xc8] sm:$0xff] }
 0x549   :  { %v10624_v2 = vmax.f32 %v10560_v24, 0.0  ;;  %v10238_v12 = vcombine.high %v9966_v30, %v9966_v30  ;;  %v10245_v51 = vrot.slane %v9966_v30, %v24703_v22  ;;  %v9965_v5 = vadd.f32 %v22533_v54, %v9942_v58 }
 0x54a   :  { %v10625_v16 = vmax.f32 %v10561_v26, 0.0  ;;  %v10626_v49 = vmax.f32 %v10562_v23, 0.0  ;;  %v10901_v63 = vrot.slane %v10623_v4, %v24710_v55  ;;  %v24723_v40 = vmax.f32 %v22674_v52, 0.0 }
 0x54b   :  { %v22841_v60 = vrot.slane %v10238_v12, %v24703_v22  ;;  %v10253_v31 = vcombine.high %v10245_v51, %v10245_v51  ;;  %v12587_v25 = vrot.slane %v10245_v51, 9  ;;  %v10221_v48 = vcombine.high %v9965_v5, %v9965_v5 }
 0x54c   :  { %v10873_v29 = vrot.slane %v24723_v40, %v24710_v55  ;;  %v10924_v28 = vsel %vm7228_vm5, %v10901_v63, %v10923_v21  ;;  %v10228_v59 = vrot.slane %v9965_v5, %v24703_v22  ;;  %v10877_v54 = vrot.slane %v10599_v10, %v24710_v55 }
 0x54d   :  { %v10914_v37 = vsel %vm7222_vm2, %v22612_v41, %v22624_v9  ;;  %v22852_v52 = vrot.slane %v10624_v2, %v24710_v55  ;;  %v22856_v8 = vcombine.high %v22841_v60, %v22841_v60  ;;  %v12588_v42 = vrot.slane %v10253_v31, 9 }
 0x54e   :  { %v10571_v24 = vmax.f32 %v10245_v51, %v12587_v25  ;;  %v10235_v21 = vrot.slane %v10221_v48, %v24703_v22  ;;  %v10236_v26 = vcombine.high %v10228_v59, %v10228_v59  ;;  %v12583_v23 = vrot.slane %v10228_v59, 9 }
 0x54f   :  { %v10915_v46 = vsel %vm7224_vm3, %v22659_v44, %v10914_v37  ;;  %v22862_v10 = vrot.slane %v10625_v16, %v24710_v55  ;;  %v22865_v41 = vrot.slane %v10626_v49, %v24710_v55  ;;  %v10572_v9 = vmax.f32 %v10253_v31, %v12588_v42 }
 0x550   :  { %v10635_v30 = vmax.f32 %v10571_v24, 0.0  ;;  %v10237_v58 = vcombine.high %v10235_v21, %v10235_v21  ;;  %v12584_v4 = vrot.slane %v10236_v26, 9  ;;  %v12585_v2 = vrot.slane %v10235_v21, 9 }
 0x551   :  { %v10567_v12 = vmax.f32 %v10228_v59, %v12583_v23  ;;  %v12589_v22 = vrot.slane %v22841_v60, 9  ;;  %v12590_v51 = vrot.slane %v22856_v8, 9  ;;  %v10636_v5 = vmax.f32 %v10572_v9, 0.0 }
 0x552   :  { %v10881_v63 = vrot.slane %v10603_v3, %v24710_v55  ;;  %v10913_v44 = vrot.slane %v10635_v30, %v24710_v55  ;;  %v12586_v16 = vrot.slane %v10237_v58, 9  ;;  %v10568_v40 = vmax.f32 %v10236_v26, %v12584_v4 }
 0x553   :  { %v10631_v25 = vmax.f32 %v10567_v12, 0.0  ;;  %v22871_v49 = vmax.f32 %v10235_v21, %v12585_v2  ;;  %v10916_v31 = vsel %vm7226_vm4, %v22647_v56, %v10915_v46  ;;  %v12556_v48 = vrot.slane %v22711_v13, 9 }
 0x554   :  { %v10536_v59 = vmax.f32 %v22729_v39, %v12552_v19  ;;  %v22880_v37 = vrot.slane %v10636_v5, %v24710_v55  ;;  %v22882_v3 = vmax.f32 %v10237_v58, %v12586_v16  ;;  %v10632_v42 = vmax.f32 %v10568_v40, 0.0 }
 0x555   :  { %v10909_v24 = vrot.slane %v10631_v25, %v24710_v55  ;;  %v10917_v21 = vsel %vm7228_vm5, %v22718_v38, %v10916_v31  ;;  %v10540_v26 = vmax.f32 %v22711_v13, %v12556_v48  ;;  %v24724_v23 = vmax.f32 %v22695_v53, 0.0  ;;  %v24727_v31 = vld [vmem:[#allocation128_spill] sm:$0xff] }
 0x556   :  { %v10600_v56 = vmax.f32 %v10536_v59, 0.0  ;;  %v10634_v39 = vmax.f32 %v22882_v3, 0.0  ;;  %v10735_v19 = vrot.slane %v10632_v42, %v24710_v55  ;;  %v10918_v9 = vsel %vm7230_vm6, %v10873_v29, %v10917_v21 }
 0x557   :  { %v10695_v46 = vrot.slane %v24724_v23, %v24710_v55  ;;  %v24725_v30 = vmax.f32 %v22685_v34, 0.0  ;;  %v10919_v4 = vsel %vm7232_vm7, %v10877_v54, %v10918_v9  ;;  %v10604_v38 = vmax.f32 %v10540_v26, 0.0  ;;  %v24731_v26 = vld [vmem:[#allocation92_spill] sm:$0xff]  ;;  %v24732_v23 = vld [vmem:[#allocation23_spill] sm:$0xff] }
 0x558   :  { %v10703_v13 = vrot.slane %v10600_v56, %v24710_v55  ;;  %v10740_v53 = vsel %vm7222_vm2, %v22615_v0, %v22632_v14  ;;  %v10920_v2 = vsel %vm7234_vm8, %v10881_v63, %v10919_v4  ;;  %v10925_v29 = vsel %vm7230_vm6, %v22827_v15, %v10924_v28  ;;  %v12625_v15 = vld [vmem:[%s23152_s7 + $0x130] sm:$0xff]  ;;  %v24734_v4 = vld [vmem:[#allocation84_spill] sm:$0xff] }
 0x559   :  { %v10699_v58 = vrot.slane %v24725_v30, %v24710_v55  ;;  %v10741_v12 = vsel %vm7224_vm3, %v22662_v17, %v10740_v53  ;;  %v10118_v34 = vcombine.high %v22702_v11, %v22702_v11  ;;  %14910 = vmatprep.mubr.msk.f32.mxu1 %vm10754_vm10, %v10920_v2  ;;  %v10707_v54 = vrot.slane %v10604_v38, %v24710_v55 }
 0x55a   :  { %v10742_v5 = vsel %vm7226_vm4, %v22653_v36, %v10741_v12  ;;  %v10926_v0 = vsel %vm7232_vm7, %v10909_v24, %v10925_v29  ;;  %v12554_v14 = vrot.slane %v22735_v35, 9  ;;  %v24726_v16 = vrot.slane %v22649_v6, 9 }
 0x55b   :  { %v10743_v63 = vsel %vm7228_vm5, %v10695_v46, %v10742_v5  ;;  %v10927_v17 = vsel %vm7234_vm8, %v10913_v44, %v10926_v0  ;;  %v12558_v28 = vrot.slane %v10118_v34, 9  ;;  %v24728_v48 = vmax.f32 %v24727_v31, 0.0  ;;  %v24729_v44 = vld [vmem:[#allocation10_spill] sm:$0xff]  ;;  %v24733_v46 = vld [vmem:[#allocation107_spill] sm:$0xff] }
 0x55c   :  { %v10534_v40 = vmax.f32 %v22649_v6, %v24726_v16  ;;  %v10744_v25 = vsel %vm7230_vm6, %v10699_v58, %v10743_v63  ;;  %14911 = vmatmul.mubr.msk.f32.vlgmr.msra.gmra.mxu1 %vm10754_vm10, %v10927_v17  ;;  %v10538_v36 = vmax.f32 %v22735_v35, %v12554_v14  ;;  %v24730_v42 = vmax.f32 %v24729_v44, 0.0  ;;  %v12624_v35 = vld [vmem:[%s23152_s7 + $0x128] sm:$0xff] }
 0x55d   :  { %v11235_v59 = vrot.slane %v24728_v48, %v24710_v55  ;;  %v10745_v21 = vsel %vm7232_vm7, %v10703_v13, %v10744_v25  ;;  %14937 = vmatpush3.msra.mxu1 %v24731_v26  ;;  %v10542_v56 = vmax.f32 %v10118_v34, %v12558_v28  ;;  %v11284_v9 = vsel %vm7222_vm2, %v24733_v46, %v24732_v23  ;;  %v12623_v34 = vld [vmem:[%s23152_s7 + $0x120] sm:$0xff]  ;;  %v24738_v48 = vld [vmem:[#allocation8_spill] sm:$0xff]  ;;  %v12612_v26 = vld [vmem:[%s23152_s7 + $0xd8] sm:$0xff] }
 0x55e   :  { %v11239_v24 = vrot.slane %v24730_v42, %v24710_v55  ;;  %v10598_v6 = vmax.f32 %v10534_v40, 0.0  ;;  %v10746_v30 = vsel %vm7234_vm8, %v10707_v54, %v10745_v21  ;;  %14938 = vmatprep.subr.mxu1 %v12625_v15  ;;  %v10602_v58 = vmax.f32 %v10538_v36, 0.0  ;;  %v24736_v40 = vld [vmem:[#allocation99_spill] sm:$0xff]  ;;  %v24743_v23 = vld [vmem:[#allocation44_spill] sm:$0xff] }
 0x55f   :  { %v11285_v38 = vsel %vm7224_vm3, %v24734_v4, %v11284_v9  ;;  %v10749_v13 = vsel %vm7226_vm4, %v22790_v43, %v22807_v33  ;;  %14887 = vmatprep.mubr.msk.f32.mxu0 %vm10754_vm10, %v10746_v30  ;;  %v10606_v53 = vmax.f32 %v10542_v56, 0.0  ;;  %14939 = vmatpush3.msra.mxu1 %v12625_v15  ;;  %v12557_v33 = vrot.slane %v22702_v11, 9  ;;  %v12611_v30 = vld [vmem:[%s23152_s7 + $0xd0] sm:$0xff] }
 0x560   :  { %v11243_v2 = vrot.slane %v10598_v6, %v24710_v55  ;;  %v11286_v12 = vsel %vm7226_vm4, %v11235_v59, %v11285_v38  ;;  %v10750_v29 = vsel %vm7228_vm5, %v22852_v52, %v10749_v13  ;;  %v11247_v54 = vrot.slane %v10602_v58, %v24710_v55  ;;  %14940 = vmatprep.subr.mxu1 %v12624_v35  ;;  %v12620_v58 = vld [vmem:[%s23152_s7 + $0x108] sm:$0xff] }
 0x561   :  { %v11287_v5 = vsel %vm7228_vm5, %v11239_v24, %v11286_v12  ;;  %v10751_v43 = vsel %vm7230_vm6, %v22832_v7, %v10750_v29  ;;  %v11251_v0 = vrot.slane %v10606_v53, %v24710_v55  ;;  %v24735_v63 = vrot.slane %v22721_v57, 9  ;;  %14941 = vmatpush3.msra.mxu1 %v12624_v35  ;;  %v12613_v7 = vld [vmem:[%s23152_s7 + $0xe0] sm:$0xff] }
 0x562   :  { %v11288_v14 = vsel %vm7230_vm6, %v11243_v2, %v11287_v5  ;;  %v10752_v52 = vsel %vm7232_vm7, %v10735_v19, %v10751_v43  ;;  %v10541_v16 = vmax.f32 %v22702_v11, %v12557_v33  ;;  %v24737_v25 = vmax.f32 %v24736_v40, 0.0  ;;  %14942 = vmatprep.subr.mxu1 %v12623_v34  ;;  %v24739_v11 = vld [vmem:[#allocation48_spill] sm:$0xff]  ;;  %v24740_v24 = vld [vmem:[#allocation115_spill] sm:$0xff] }
 0x563   :  { %v10537_v17 = vmax.f32 %v22721_v57, %v24735_v63  ;;  %v11289_v15 = vsel %vm7232_vm7, %v11247_v54, %v11288_v14  ;;  %v10753_v28 = vsel %vm7234_vm8, %v22880_v37, %v10752_v52  ;;  %v12622_v57 = vld [vmem:[%s23152_s7 + $0x118] sm:$0xff]  ;;  %v10574_v36 = vmax.f32 %v22856_v8, %v12590_v51  ;;  %14943 = vmatpush3.msra.mxu1 %v12623_v34  ;;  %v15018_v8 = vld [vmem:[%s23152_s7 + $0xe8] sm:$0xff]  ;;  %v12617_v52 = vld [vmem:[%s23152_s7 + $0xf0] sm:$0xff] }
 0x564   :  { %v11053_v19 = vrot.slane %v24737_v25, %v24710_v55  ;;  %v11290_v37 = vsel %vm7234_vm8, %v11251_v0, %v11289_v15  ;;  %14888 = vmatmul.mubr.msk.f32.vlgmr.msra.gmra.mxu0 %vm10754_vm10, %v10753_v28  ;;  %v11098_v59 = vsel %vm7222_vm2, %v24739_v11, %v24738_v48  ;;  %v10573_v44 = vmax.f32 %v22841_v60, %v12589_v22  ;;  %v12621_v60 = vld [vmem:[%s23152_s7 + $0x110] sm:$0xff]  ;;  %v24741_v22 = vld [vmem:[#allocation63_spill] sm:$0xff]  ;;  %v12606_v15 = vld [vmem:[%s23152_s7 + $0xa8] sm:$0xff] }
 0x565   :  { %v10601_v31 = vmax.f32 %v10537_v17, 0.0  ;;  %v10633_v42 = vmax.f32 %v22871_v49, 0.0  ;;  %14956 = vmatprep.mubr.msk.f32.mxu1 %vm10754_vm10, %v11290_v37  ;;  %14914 = vmatpush3.msra.mxu0 %v15018_v8  ;;  %v10605_v51 = vmax.f32 %v10541_v16, 0.0  ;;  %v11099_v21 = vsel %vm7224_vm3, %v24740_v24, %v11098_v59  ;;  %v12607_v17 = vld [vmem:[%s23152_s7 + $0xb0] sm:$0xff]  ;;  %v12605_v28 = vld [vmem:[%s23152_s7 + $0xa0] sm:$0xff]  ;;  %v11403_v40 = vld [vmem:[%s23154_s9 + $0x68] sm:$0xff] }
 0x566   :  { %14915 = vmatprep.subr.mxu0 %v12613_v7  ;;  %v24742_v49 = vmax.f32 %v24741_v22, 0.0  ;;  %v11100_v46 = vsel %vm7226_vm4, %v24743_v23, %v11099_v21  ;;  %14944 = vmatprep.subr.mxu1 %v12622_v57  ;;  %v10629_v9 = vmax.f32 %v22820_v45, 0.0  ;;  %v11275_v4 = vrot.slane %v10630_v20, %v24710_v55  ;;  %v11404_v16 = vld [vmem:[%s23154_s9 + $0x70] sm:$0xff]  ;;  %v11402_v25 = vld [vmem:[%s23154_s9 + $0x60] sm:$0xff]  ;;  %v11395_v11 = vld [vmem:[%s23154_s9 + $0x28] sm:$0xff] }
 0x567   :  { %v11061_v6 = vrot.slane %v10601_v31, %v24710_v55  ;;  %v11101_v35 = vsel %vm7228_vm5, %v11053_v19, %v11100_v46  ;;  %14916 = vmatpush3.msra.mxu0 %v12613_v7  ;;  %14945 = vmatpush3.msra.mxu1 %v12622_v57  ;;  %v11279_v45 = vrot.slane %v10634_v39, %v24710_v55  ;;  %v10638_v53 = vmax.f32 %v10574_v36, 0.0  ;;  %v11405_v7 = vld [vmem:[%s23154_s9 + $0x78] sm:$0xff]  ;;  %v11400_v57 = vld [vmem:[%s23154_s9 + $0x50] sm:$0xff]  ;;  %v11399_v36 = vld [vmem:[%s23154_s9 + $0x48] sm:$0xff] }
 0x568   :  { %v11057_v56 = vrot.slane %v24742_v49, %v24710_v55  ;;  %v11065_v38 = vrot.slane %v10605_v51, %v24710_v55  ;;  %14917 = vmatprep.subr.mxu0 %v12612_v26  ;;  %14946 = vmatprep.subr.mxu1 %v12621_v60  ;;  %v11291_v2 = vsel %vm7222_vm2, %v22763_v61, %v22770_v50  ;;  %v10637_v12 = vmax.f32 %v10573_v44, 0.0  ;;  %v12619_v61 = vld [vmem:[%s23152_s7 + $0x100] sm:$0xff]  ;;  %v11401_v19 = vld [vmem:[%s23154_s9 + $0x58] sm:$0xff]  ;;  %v11396_v48 = vld [vmem:[%s23154_s9 + $0x30] sm:$0xff] }
 0x569   :  { %14918 = vmatpush3.msra.mxu0 %v12612_v26  ;;  %14947 = vmatpush3.msra.mxu1 %v12621_v60  ;;  %v11292_v20 = vsel %vm7224_vm3, %v22824_v1, %v11291_v2  ;;  %v11093_v3 = vrot.slane %v10633_v42, %v24710_v55  ;;  %v11106_v34 = vsel %vm7224_vm3, %v22818_v47, %v22758_v32  ;;  %v12609_v1 = vld [vmem:[%s23152_s7 + $0xc0] sm:$0xff]  ;;  %v12618_v32 = vld [vmem:[%s23152_s7 + $0xf8] sm:$0xff]  ;;  %v11392_v42 = vld [vmem:[%s23154_s9 + $0x10] sm:$0xff] }
 0x56a   :  { %v11102_v13 = vsel %vm7230_vm6, %v11057_v56, %v11101_v35  ;;  %14919 = vmatprep.subr.mxu0 %v12611_v30  ;;  %14948 = vmatprep.subr.mxu1 %v12620_v58  ;;  %v11293_v50 = vsel %vm7226_vm4, %v22815_v62, %v11292_v20  ;;  %v11089_v54 = vrot.slane %v10629_v9, %v24710_v55  ;;  %v11398_v37 = vld [vmem:[%s23154_s9 + $0x40] sm:$0xff]  ;;  %v11397_v31 = vld [vmem:[%s23154_s9 + $0x38] sm:$0xff]  ;;  %v11391_v8 = vld [vmem:[%s23154_s9 + $0x8] sm:$0xff] }
 0x56b   :  { %v11103_v29 = vsel %vm7232_vm7, %v11061_v6, %v11102_v13  ;;  %14920 = vmatpush3.msra.mxu0 %v12611_v30  ;;  %v11294_v5 = vsel %vm7228_vm5, %v22865_v41, %v11293_v50  ;;  %v11107_v43 = vsel %vm7226_vm4, %v22794_v27, %v11106_v34  ;;  %14949 = vmatpush3.msra.mxu1 %v12620_v58  ;;  %v12608_v41 = vld [vmem:[%s23152_s7 + $0xb8] sm:$0xff]  ;;  %v11394_v59 = vld [vmem:[%s23154_s9 + $0x20] sm:$0xff] }
 0x56c   :  { %v11104_v39 = vsel %vm7234_vm8, %v11065_v38, %v11103_v29  ;;  %14921 = vmatprep.subr.mxu0 %v12610_v18  ;;  %v11283_v62 = vrot.slane %v10638_v53, %v24710_v55  ;;  %v11295_v47 = vsel %vm7230_vm6, %v11275_v4, %v11294_v5  ;;  %v11108_v33 = vsel %vm7228_vm5, %v22862_v10, %v11107_v43  ;;  %v11393_v44 = vld [vmem:[%s23154_s9 + $0x18] sm:$0xff]  ;;  %v11390_v51 = vld [vmem:[%s23154_s9] sm:$0xff] }
 0x56d   :  { %14933 = vmatprep.mubr.msk.f32.mxu0 %vm10754_vm10, %v11104_v39  ;;  %14922 = vmatpush3.msra.mxu0 %v12610_v18  ;;  %v11296_v27 = vsel %vm7232_vm7, %v11279_v45, %v11295_v47  ;;  %v11097_v0 = vrot.slane %v10637_v12, %v24710_v55  ;;  %v11109_v14 = vsel %vm7230_vm6, %v11089_v54, %v11108_v33  ;;  %v12629_v35 = vld [vmem:[%s23153_s8] ss:$0 sm:$0xff]  ;;  %s15042_s8 = smov [#allocation2]  }
 0x56e   :  { %14950 = vmatprep.subr.mxu1 %v12619_v61  ;;  %14923 = vmatprep.subr.mxu0 %v12609_v1  ;;  %v11297_v10 = vsel %vm7234_vm8, %v11283_v62, %v11296_v27  ;;  %v11110_v63 = vsel %vm7232_vm7, %v11093_v3, %v11109_v14  ;;  %v12630_v12 = vld [vmem:[%s23155_s10] ss:$0 sm:$0xff]  ;;  %s11520_s10 = sshll.u32 %s15042_s8, 4  ;;  %s11521_s10 = int_to_ptr.vmem [resolvable:$true] %s11520_s10 }
 0x56f   :  { %14951 = vmatpush3.msra.mxu1 %v12619_v61  ;;  %14924 = vmatpush3.msra.mxu0 %v12609_v1  ;;  %v11111_v55 = vsel %vm7234_vm8, %v11097_v0, %v11110_v63  ;;  %s15019_s13 = scalar_lea.vmem %s11521_s10, 256  ;;  %p15024_p1 = scmp.lt.s32.totalorder %s11521_s10, %s11521_s10 }
 0x570   :  { %14952 = vmatprep.subr.mxu1 %v12618_v32  ;;  %14925 = vmatprep.subr.mxu0 %v12608_v41  ;;  %p15020_p0 = scmp.ne.s32.totalorder %s11521_s10, %s15019_s13  ;;  %p15025_p2 = scmp.lt.s32.totalorder %s15019_s13, %s15019_s13 }
 0x571   :  { %14953 = vmatpush3.msra.mxu1 %v12618_v32  ;;  %14926 = vmatpush3.msra.mxu0 %v12608_v41 }
 0x572   :  { %14954 = vmatprep.subr.mxu1 %v12617_v52  ;;  %14927 = vmatprep.subr.mxu0 %v12607_v17  ;;  %p15026_p3 = por %p15025_p2, %p15024_p1 }
 0x573   :  { %14955 = vmatpush3.msra.mxu1 %v12617_v52  ;;  %14928 = vmatpush3.msra.mxu0 %v12607_v17 }
 0x574   :  { %14957 = vmatmul.mubr.msk.f32.vlgmr.msra.gmra.mxu1 %vm10754_vm10, %v11297_v10  ;;  %14929 = vmatprep.subr.mxu0 %v12606_v15  ;;  %p15027_p4 = pnand %p15026_p3, %p15020_p0 }
 0x575   :  { %14930 = vmatpush3.msra.mxu0 %v12606_v15 }
 0x576   :  { %14931 = vmatprep.subr.mxu0 %v12605_v28 }
 0x577   :  { %14932 = vmatpush3.msra.mxu0 %v12605_v28 }
 0x578   :  { %14934 = vmatmul.mubr.msk.f32.vlgmr.msra.gmra.mxu0 %vm10754_vm10, %v11111_v55  ;;  %14959 = vmatprep.subr.mxu0 %v11405_v7 }
 0x579   :  { %14960 = vmatpush3.msra.mxu0 %v11405_v7 }
 0x57a   :  { %14961 = vmatprep.subr.mxu0 %v11404_v16 }
 0x57b   :  { %14962 = vmatpush3.msra.mxu0 %v11404_v16 }
 0x57c   :  { %14963 = vmatprep.subr.mxu0 %v11403_v40 }
 0x57d   :  { %14964 = vmatpush3.msra.mxu0 %v11403_v40 }
 0x57e   :  { %14965 = vmatprep.subr.mxu0 %v11402_v25 }
 0x57f   :  { %14966 = vmatpush3.msra.mxu0 %v11402_v25 }
 0x580   :  { %14967 = vmatprep.subr.mxu0 %v11401_v19 }
 0x581   :  { %14968 = vmatpush3.msra.mxu0 %v11401_v19 }
 0x582   :  { %14969 = vmatprep.subr.mxu0 %v11400_v57 }
 0x583   :  { %14970 = vmatpush3.msra.mxu0 %v11400_v57 }
 0x584   :  { %14971 = vmatprep.subr.mxu0 %v11399_v36 }
 0x585   :  { %14972 = vmatpush3.msra.mxu0 %v11399_v36 }
 0x586   :  { %14973 = vmatprep.subr.mxu0 %v11398_v37 }
 0x587   :  { %14974 = vmatpush3.msra.mxu0 %v11398_v37 }
 0x588   :  { %14975 = vmatprep.subr.mxu0 %v11397_v31 }
 0x589   :  { %14976 = vmatpush3.msra.mxu0 %v11397_v31 }
 0x58a   :  { %14977 = vmatprep.subr.mxu0 %v11396_v48 }
 0x58b   :  { %14978 = vmatpush3.msra.mxu0 %v11396_v48 }
 0x58c   :  { %14979 = vmatprep.subr.mxu0 %v11395_v11 }
 0x58d   :  { %14980 = vmatpush3.msra.mxu0 %v11395_v11 }
 0x58e   :  { %14981 = vmatprep.subr.mxu0 %v11394_v59 }
 0x58f   :  { %14982 = vmatpush3.msra.mxu0 %v11394_v59 }
 0x590   :  { %14983 = vmatprep.subr.mxu0 %v11393_v44 }
 0x591   :  { %14984 = vmatpush3.msra.mxu0 %v11393_v44 }
 0x592   :  { %14985 = vmatprep.subr.mxu0 %v11392_v42 }
 0x593   :  { %14986 = vmatpush3.msra.mxu0 %v11392_v42 }
 0x594   :  { %14987 = vmatprep.subr.mxu0 %v11391_v8 }
 0x595   :  { %14988 = vmatpush3.msra.mxu0 %v11391_v8 }
 0x596   :  { %14989 = vmatprep.subr.mxu0 %v11390_v51 }
 0x597   :  { %14990 = vmatpush3.msra.mxu0 %v11390_v51 }
 0x61c   :  { %v14912_v24 = vpop.f32.mrf.mxu1 }
 0x61e   :  { %v10998_v26 = vpop.f32.mrf.mxu1 }
 0x624   :  { %v14889_v21 = vpop.f32.mrf.mxu0 }
 0x625   :  { %v11004_v22 = vadd.f32 %v14912_v24, %v14889_v21 }
 0x626   :  { %v10825_v60 = vpop.f32.mrf.mxu0 }
 0x627   :  { %v10999_v6 = vadd.f32 %v10998_v26, %v10825_v60 }
 0x634   :  { %v14958_v49 = vpop.f32.mrf.mxu1 }
 0x636   :  { %v11368_v58 = vpop.f32.mrf.mxu1 }
 0x638   :  { %v14935_v56 = vpop.f32.mrf.mxu0 }
 0x639   :  { %v11192_v23 = vadd.f32 %v14935_v56, %v11004_v22 }
 0x63a   :  { %v11182_v46 = vpop.f32.mrf.mxu0 }
 0x63b   :  { %v11378_v9 = vadd.f32 %v14958_v49, %v11192_v23  ;;  %v11191_v30 = vadd.f32 %v11182_v46, %v10999_v6 }
 0x63d   :  { %v11377_v4 = vadd.f32 %v11368_v58, %v11191_v30  ;;  %v11387_v45 = vadd.f32 %v12629_v35, %v11378_v9 }
 0x63f   :  { %v11386_v38 = vadd.f32 %v12629_v35, %v11377_v4  ;;  %v11389_v53 = vmax.f32 %v11387_v45, 0.0 }
 0x641   :  { %v11388_v13 = vmax.f32 %v11386_v38, 0.0 }
 0x643   :  { %14991 = vmatprep.mubr.f32.mxu0 %v11388_v13 }
 0x644   :  { %14992 = vmatmul.mubr.f32.vlgmr.msra.gmra.mxu0 %v11389_v53 }
 0x704   :  { %v14993_v2 = vpop.f32.mrf.mxu0 }
 0x705   :  { %v11485_v20 = vadd.f32 %v14993_v2, %v12630_v12 }
 0x706   :  { %v11479_v29 = vpop.f32.mrf.mxu0 }
 0x707   :  { %v11480_v18 = vadd.f32 %v12630_v12, %v11479_v29  ;;  %v11492_v39 = vsel %vm11488_vm11, %v11485_v20, -inf }
 0x709   :  { %v11489_v3 = vsel %vm11488_vm11, %v11480_v18, -inf }
 0x70a   :  { %11490 = vmax.xlane.f32.xlu0 %v11489_v3 }
 0x70e   :  { %11493 = vmax.xlane.f32.xlu0 %v11492_v39 }
 0x793   :  { %v11491_v61 = vpop.xlane.xlu0 %11490 }
 0x794   :  { %v11495_v50 = vsub.f32 %v11480_v18, %v11491_v61 }
 0x796   :  { %v11497_v34 = vmul.f32 1.442695, %v11495_v50 }
 0x797   :  { %v11494_v54 = vpop.xlane.xlu0 %11493 }
 0x798   :  { %15006 = vpow2.f32 %v11497_v34  ;;  %v11496_v1 = vsub.f32 %v11485_v20, %v11494_v54 }
 0x79a   :  { %v11499_v5 = vmul.f32 1.442695, %v11496_v1 }
 0x79c   :  { %15008 = vpow2.f32 %v11499_v5 }
 0x7a5   :  { %v15007_v43 = vpop.eup %15006 }
 0x7a6   :  { %v11501_v32 = vsel %vm11488_vm11, %v15007_v43, 0.0 }
 0x7a7   :  { %11502 = vadd.xlane.f32.xlu1 %v11501_v32 }
 0x7a9   :  { %v15009_v62 = vpop.eup %15008 }
 0x7aa   :  { %v11504_v47 = vsel %vm11488_vm11, %v15009_v62, 0.0 }
 0x7ab   :  { %11505 = vadd.xlane.f32.xlu1 %v11504_v47 }
 0x830   :  { %v11503_v33 = vpop.xlane.xlu1 %11502 }
 0x831   :  { %15010 = vlog2.f32 %v11503_v33 }
 0x834   :  { %v11506_v41 = vpop.xlane.xlu1 %11505 }
 0x835   :  { %15012 = vlog2.f32 %v11506_v41 }
 0x83e   :  { %v15011_v27 = vpop.eup %15010 }
 0x83f   :  { %v11508_v0 = vmul.f32 0.6931472, %v15011_v27 }
 0x841   :  { %v11511_v14 = vsub.f32 %v11495_v50, %v11508_v0 }
 0x842   :  { %v15013_v52 = vpop.eup %15012 }
 0x843   :  { %11513 = vst.msk [vmem:[#allocation2] sm:$0xff] %vm11488_vm11, %v11511_v14  ;;  %v11510_v10 = vmul.f32 0.6931472, %v15013_v52 }
 0x845   :  { %v11512_v63 = vsub.f32 %v11496_v1, %v11510_v10 }
 0x847   :  { %11514 = vst.msk [vmem:[#allocation2 + $0x8] sm:$0xff] %vm11488_vm11, %v11512_v63 }
 0x848   :  { %15030 = shalt.err (!%p15027_p4)
}
 0x849   :  { %s15043_s14 = smov 128   ;;  %s15044_s15 = smov 8  }
 0x84a   :  { %11526 = dma.vmem_to_hbm [thread:$0]  %s11521_s10, 256, %s23156_s11, [#allocation3], %s15043_s14, %s15043_s14, %s15044_s15  }
 0x84b   :  { %15039 = dma.done.wait [#allocation3], 256  }
 0x84c   :  { %15040 = vsyncadd [#allocation3], 4294967040 }
 0x84d   :  { %11530 = vsyncpa [#allocation3], 1 }

</bundles_post_ra>
